<compile_context>
chip_gen: v6e
topology: v6e:2x2x1
jax: 0.10.0
libtpu: 0.0.40
codegen_flags: <defaults>
</compile_context>

<pallas_src>
import functools

import jax
import jax.numpy as jnp
from jax import lax
from jax.experimental import pallas as pl
from jax.experimental.pallas import tpu as pltpu

F_PAD = 128          # lane-dense packed feature width
ROW_TILE = 512       # row tile for linear / BN kernels
SC_NODE_TILE = 256   # node tile for the sorted scatter-add
SC_EDGE_TILE = 512   # edge block for the sorted scatter-add
BN_EPS = 1e-5


def _round_up(x, m):
    return (x + m - 1) // m * m


# ---------------------------------------------------------------------------
# Kernel bodies
# ---------------------------------------------------------------------------
def _lin_kernel(x_ref, w_ref, b_ref, o_ref, *, valid_rows, apply_sine):
    """y = x @ w + b (+ optional sine); rows >= valid_rows forced to 0."""
    tm = o_ref.shape[0]
    y = jnp.dot(x_ref[...], w_ref[...], preferred_element_type=jnp.float32) + b_ref[...]
    row = pl.program_id(0) * tm + lax.broadcasted_iota(jnp.int32, y.shape, 0)
    y = jnp.where(row < valid_rows, y, 0.0)
    if apply_sine:
        y = jnp.sin(y)                       # sin(0) == 0, padded rows stay zero
    o_ref[...] = y.astype(o_ref.dtype)


def _lin_stats_kernel(x_ref, w_ref, b_ref, y_ref, stat_ref, *, valid_rows):
    """Linear; writes y (bf16) once plus per-column sum / sumsq for BatchNorm."""
    tm = y_ref.shape[0]
    y = jnp.dot(x_ref[...], w_ref[...], preferred_element_type=jnp.float32) + b_ref[...]
    row = pl.program_id(0) * tm + lax.broadcasted_iota(jnp.int32, y.shape, 0)
    y = jnp.where(row < valid_rows, y, 0.0)   # padded rows do not pollute stats
    yb = y.astype(y_ref.dtype)
    y_ref[...] = yb
    yf = yb.astype(jnp.float32)               # stats over exactly what is read back
    s = jnp.sum(yf, axis=0, keepdims=True)
    sq = jnp.sum(yf * yf, axis=0, keepdims=True)
    pad = jnp.zeros((stat_ref.shape[0] - 2, s.shape[1]), jnp.float32)
    stat_ref[...] = jnp.concatenate([s, sq, pad], axis=0)


def _bn_sine_kernel(y_ref, mean_ref, rstd_ref, o_ref, *, valid_rows):
    """o = sin((y - mean) * rstd); rows >= valid_rows forced to 0."""
    tm = o_ref.shape[0]
    z = (y_ref[...].astype(jnp.float32) - mean_ref[...]) * rstd_ref[...]
    row = pl.program_id(0) * tm + lax.broadcasted_iota(jnp.int32, z.shape, 0)
    z = jnp.where(row < valid_rows, jnp.sin(z), 0.0)
    o_ref[...] = z.astype(o_ref.dtype)


def _scatter_kernel(node_s, eblk_s, init_s, valid_s, dst_ref, e_ref, o_ref, *, tn, te):
    """o[v] += sum_{e in block : dst[e] == v} efeats[e] for the current node tile.

    Driven by a scalar-prefetched schedule: node_s[t] = node tile, eblk_s[t] =
    dst-sorted edge block, init_s[t] = 1 on the first step of a node tile,
    valid_s[t] = 1 if the step carries real edges (padding steps are no-ops and
    their index maps repeat the previous blocks, so no DMA is issued).
    """
    t = pl.program_id(0)

    @pl.when(init_s[t] == 1)
    def _():
        o_ref[...] = jnp.zeros_like(o_ref)

    @pl.when(valid_s[t] == 1)
    def _():
        base = node_s[t] * tn
        node_ids = base + lax.broadcasted_iota(jnp.int32, (tn, te), 0)
        onehot = (node_ids == dst_ref[...]).astype(jnp.bfloat16)   # 0/1 exact in bf16
        o_ref[...] += jnp.dot(onehot, e_ref[...], preferred_element_type=jnp.float32)


# ---------------------------------------------------------------------------
# pallas_call wrappers
# ---------------------------------------------------------------------------
def fused_linear(x, w, b, *, valid_rows, apply_sine, tm=ROW_TILE, out_dtype=jnp.bfloat16):
    M, K = x.shape
    N = w.shape[1]
    assert M % tm == 0, (M, tm)
    return pl.pallas_call(
        functools.partial(_lin_kernel, valid_rows=valid_rows, apply_sine=apply_sine),
        out_shape=jax.ShapeDtypeStruct((M, N), out_dtype),
        grid=(M // tm,),
        in_specs=[pl.BlockSpec((tm, K), lambda i: (i, 0)),
                  pl.BlockSpec((K, N), lambda i: (0, 0)),
                  pl.BlockSpec((1, N), lambda i: (0, 0))],
        out_specs=pl.BlockSpec((tm, N), lambda i: (i, 0)),
        compiler_params=pltpu.CompilerParams(dimension_semantics=("parallel",)),
    )(x, w, b.reshape(1, N))


def fused_linear_bn_sine(x, w, b, *, valid_rows, tm=ROW_TILE, eps=BN_EPS):
    """Linear -> BatchNorm1d(train batch stats, gamma=1, beta=0) -> Sine.

    Two pallas_calls (both row-parallel, v7x megacore friendly):
      1) y = x @ w + b (bf16) + per-row-tile column sum / sumsq
      2) sin((y - mean) * rstd) with batch statistics computed in tiny XLA.
    """
    M, K = x.shape
    N = w.shape[1]
    assert M % tm == 0, (M, tm)
    G = M // tm

    y, partial_stats = pl.pallas_call(
        functools.partial(_lin_stats_kernel, valid_rows=valid_rows),
        out_shape=(jax.ShapeDtypeStruct((M, N), jnp.bfloat16),
                   jax.ShapeDtypeStruct((8 * G, N), jnp.float32)),
        grid=(G,),
        in_specs=[pl.BlockSpec((tm, K), lambda i: (i, 0)),
                  pl.BlockSpec((K, N), lambda i: (0, 0)),
                  pl.BlockSpec((1, N), lambda i: (0, 0))],
        out_specs=(pl.BlockSpec((tm, N), lambda i: (i, 0)),
                   pl.BlockSpec((8, N), lambda i: (i, 0))),
        compiler_params=pltpu.CompilerParams(dimension_semantics=("parallel",)),
    )(x, w, b.reshape(1, N))

    stats = partial_stats.reshape(G, 8, N)
    cnt = jnp.float32(valid_rows)
    mean = jnp.sum(stats[:, 0, :], axis=0) / cnt
    var = jnp.maximum(jnp.sum(stats[:, 1, :], axis=0) / cnt - mean * mean, 0.0)
    rstd = lax.rsqrt(var + eps)

    return pl.pallas_call(
        functools.partial(_bn_sine_kernel, valid_rows=valid_rows),
        out_shape=jax.ShapeDtypeStruct((M, N), jnp.bfloat16),
        grid=(G,),
        in_specs=[pl.BlockSpec((tm, N), lambda i: (i, 0)),
                  pl.BlockSpec((1, N), lambda i: (0, 0)),
                  pl.BlockSpec((1, N), lambda i: (0, 0))],
        out_specs=pl.BlockSpec((tm, N), lambda i: (i, 0)),
        compiler_params=pltpu.CompilerParams(dimension_semantics=("parallel",)),
    )(y, mean.reshape(1, N), rstd.reshape(1, N))


def _build_scatter_schedule(dst_sorted_padded, n_pad, e_pad, tn, te):
    """Per-step (node tile, edge block, init, valid) schedule for the sorted scatter."""
    n_tiles = n_pad // tn
    e_blocks = e_pad // te
    t_max = e_blocks + 2 * n_tiles            # static upper bound on schedule length

    bounds = (jnp.arange(n_tiles + 1, dtype=jnp.int32) * tn).astype(jnp.int32)
    starts = jnp.searchsorted(dst_sorted_padded, bounds).astype(jnp.int32)
    cnt = starts[1:] - starts[:-1]
    first_blk = starts[:-1] // te
    last_blk = jnp.where(cnt > 0, (starts[1:] - 1) // te, first_blk)
    nblk = jnp.where(cnt > 0, last_blk - first_blk + 1, 1).astype(jnp.int32)
    offsets = jnp.concatenate([jnp.zeros((1,), jnp.int32),
                               jnp.cumsum(nblk).astype(jnp.int32)])
    total = offsets[-1]

    t_idx = jnp.arange(t_max, dtype=jnp.int32)
    node_of_t = jnp.clip(jnp.searchsorted(offsets, t_idx, side="right") - 1,
                         0, n_tiles - 1).astype(jnp.int32)
    step = t_idx - offsets[node_of_t]
    eblk_of_t = jnp.clip(first_blk[node_of_t] + step, 0, e_blocks - 1).astype(jnp.int32)
    in_range = t_idx < total
    valid = (in_range & (cnt[node_of_t] > 0)).astype(jnp.int32)
    init = (in_range & (step == 0)).astype(jnp.int32)
    return node_of_t, eblk_of_t, init, valid


def scatter_add_sorted(sched, dst_2d, efeats_sorted, n_pad, *, tn=SC_NODE_TILE,
                       te=SC_EDGE_TILE):
    """agg[v] = sum_{e : dst[e] == v} efeats[e] with dst-sorted edges."""
    node_s, eblk_s, init_s, valid_s = sched
    e_pad, F = efeats_sorted.shape
    assert e_pad % te == 0 and n_pad % tn == 0
    t_max = node_s.shape[0]
    grid_spec = pltpu.PrefetchScalarGridSpec(
        num_scalar_prefetch=4,
        grid=(t_max,),
        in_specs=[pl.BlockSpec((1, te), lambda t, ns, es, ins, vs: (0, es[t])),
                  pl.BlockSpec((te, F), lambda t, ns, es, ins, vs: (es[t], 0))],
        out_specs=pl.BlockSpec((tn, F), lambda t, ns, es, ins, vs: (ns[t], 0)),
    )
    return pl.pallas_call(
        functools.partial(_scatter_kernel, tn=tn, te=te),
        out_shape=jax.ShapeDtypeStruct((n_pad, F), jnp.float32),
        grid_spec=grid_spec,
        compiler_params=pltpu.CompilerParams(dimension_semantics=("arbitrary",)),
    )(node_s, eblk_s, init_s, valid_s, dst_2d, efeats_sorted)


# ---------------------------------------------------------------------------
# Parameters (PyTorch nn.Linear default init, packed + zero-padded to 128 lanes)
# ---------------------------------------------------------------------------
def _init_linear(key, d_in, d_out):
    kw, kb = jax.random.split(key)
    lim = 1.0 / jnp.sqrt(jnp.float32(d_in))
    w = jax.random.uniform(kw, (d_in, d_out), jnp.float32, -lim, lim)
    b = jax.random.uniform(kb, (d_out,), jnp.float32, -lim, lim)
    return w, b


def _pad_w(w):
    return jnp.pad(w, ((0, F_PAD - w.shape[0]), (0, F_PAD - w.shape[1]))).astype(jnp.bfloat16)


def _pad_b(b):
    return jnp.pad(b, (0, F_PAD - b.shape[0])).astype(jnp.float32)


def init_eegnn_params(key, d_in_nfeats, d_in_efeats, d_h_efeats, d_h_nfeats, n_layers):
    assert 2 * max(d_in_nfeats, d_h_nfeats) + max(d_in_efeats, d_h_efeats) <= F_PAD
    assert 2 * max(d_h_nfeats, d_h_efeats) <= F_PAD
    layers = []
    d_n, d_e = d_in_nfeats, d_in_efeats
    for _ in range(n_layers):
        key, k1, k2 = jax.random.split(key, 3)
        we, be = _init_linear(k1, 2 * d_n + d_e, d_h_efeats)   # rows: [h_src | h_dst | e]
        wn, bn = _init_linear(k2, d_n + d_h_efeats, d_h_nfeats)  # rows: [h | agg]
        layers.append({"W_e": _pad_w(we), "b_e": _pad_b(be),
                       "W_n": _pad_w(wn), "b_n": _pad_b(bn)})
        d_n, d_e = d_h_nfeats, d_h_efeats

    key, k1, k2, k3, k4 = jax.random.split(key, 5)

    def _mlp(ka, kb2, d):
        w1, b1 = _init_linear(ka, d, 2 * d)
        w2, b2 = _init_linear(kb2, 2 * d, d)
        return {"W1": _pad_w(w1), "b1": _pad_b(b1),
                "W2": _pad_w(w2), "b2": _pad_b(b2)}

    return {"layers": layers,
            "MLP_n": _mlp(k1, k2, d_h_nfeats),
            "MLP_e": _mlp(k3, k4, d_h_efeats)}


# ---------------------------------------------------------------------------
# Forward pass
# ---------------------------------------------------------------------------
def _pack_lanes(parts):
    x = jnp.concatenate(parts, axis=1)
    return jnp.pad(x, ((0, 0), (0, F_PAD - x.shape[1])))


def _mlp2(mp, x, valid_rows, tm):
    h = fused_linear(x, mp["W1"], mp["b1"], valid_rows=valid_rows, apply_sine=True, tm=tm)
    return fused_linear(h, mp["W2"], mp["b2"], valid_rows=valid_rows, apply_sine=False,
                        tm=tm, out_dtype=jnp.float32)


@functools.partial(jax.jit, static_argnames=("d_h_nfeats", "d_h_efeats", "batch_norm",
                                              "tm", "tn", "te"))
def eegnn_forward(params, src, dst, nfeats, efeats, *, d_h_nfeats, d_h_efeats,
                  batch_norm=True, tm=ROW_TILE, tn=SC_NODE_TILE, te=SC_EDGE_TILE):
    assert tm % tn == 0 and tm % te == 0
    n_nodes, d_in_n = nfeats.shape
    n_edges, d_in_e = efeats.shape
    n_pad = _round_up(n_nodes, tm)
    e_pad = _round_up(n_edges, tm)

    # dst-sort the edges ONCE; all edge tensors stay dst-sorted through the layers
    src_i = src.astype(jnp.int32)
    dst_i = dst.astype(jnp.int32)
    order = jnp.argsort(dst_i)
    inv_order = jnp.argsort(order)
    src_s, dst_s, ef_s = src_i[order], dst_i[order], efeats[order]

    # lane-dense 128-wide bf16 slabs; padded rows masked in-kernel
    nf = (jnp.zeros((n_pad, F_PAD), jnp.bfloat16)
          .at[:n_nodes, :d_in_n].set(nfeats.astype(jnp.bfloat16)))
    ef = (jnp.zeros((e_pad, F_PAD), jnp.bfloat16)
          .at[:n_edges, :d_in_e].set(ef_s.astype(jnp.bfloat16)))
    src_p = jnp.zeros((e_pad,), jnp.int32).at[:n_edges].set(src_s)
    # padded edges get sentinel dst = n_pad -> never matched by any node tile
    dst_p = jnp.full((e_pad,), n_pad, jnp.int32).at[:n_edges].set(dst_s)

    sched = _build_scatter_schedule(dst_p, n_pad, e_pad, tn, te)
    dst_2d = dst_p.reshape(1, e_pad)

    d_n = d_in_n
    d_e = d_in_e
    for p in params["layers"]:
        # ----- edge update: e' = Sine(BN(W_e [h_src | h_dst | e])), packed slab -----
        h_n = nf[:, :d_n]
        x_e = _pack_lanes([jnp.take(h_n, src_p, axis=0, mode="clip"),
                           jnp.take(h_n, dst_p, axis=0, mode="clip"),
                           ef[:, :d_e]])
        if batch_norm:
            e_new = fused_linear_bn_sine(x_e, p["W_e"], p["b_e"], valid_rows=n_edges, tm=tm)
        else:
            e_new = fused_linear(x_e, p["W_e"], p["b_e"], valid_rows=n_edges,
                                 apply_sine=True, tm=tm)

        # ----- aggregate: agg[v] = sum_{dst(e)==v} e'_e (dst-sorted scatter) -----
        agg = scatter_add_sorted(sched, dst_2d, e_new, n_pad, tn=tn, te=te)

        # ----- node update: h' = Sine(BN(W_n [h | agg])), packed slab -----
        x_n = _pack_lanes([nf[:, :d_n], agg[:, :d_h_efeats].astype(jnp.bfloat16)])
        if batch_norm:
            n_new = fused_linear_bn_sine(x_n, p["W_n"], p["b_n"], valid_rows=n_nodes, tm=tm)
        else:
            n_new = fused_linear(x_n, p["W_n"], p["b_n"], valid_rows=n_nodes,
                                 apply_sine=True, tm=tm)

        nf, ef = n_new, e_new
        d_n, d_e = d_h_nfeats, d_h_efeats

    out_n = _mlp2(params["MLP_n"], nf, n_nodes, tm)[:n_nodes, :d_h_nfeats]
    out_e_sorted = _mlp2(params["MLP_e"], ef, n_edges, tm)[:n_edges, :d_h_efeats]
    out_e = jnp.take(out_e_sorted, inv_order, axis=0)    # undo the dst-sort
    return out_n, out_e


# ---------------------------------------------------------------------------
# Pure-JAX reference (dense f32) for correctness checking
# ---------------------------------------------------------------------------
def eegnn_reference(params, src, dst, nfeats, efeats, *, d_h_nfeats, d_h_efeats,
                    batch_norm=True):
    def bn(y):
        mean = jnp.mean(y, axis=0)
        var = jnp.mean((y - mean) ** 2, axis=0)
        return (y - mean) * lax.rsqrt(var + BN_EPS)

    nf, ef = nfeats, efeats
    n_nodes = nf.shape[0]
    d_n, d_e = nf.shape[1], ef.shape[1]
    for p in params["layers"]:
        w_e = p["W_e"][:2 * d_n + d_e, :d_h_efeats].astype(jnp.float32)
        y = jnp.concatenate([nf[src], nf[dst], ef], axis=1) @ w_e + p["b_e"][:d_h_efeats]
        e_new = jnp.sin(bn(y) if batch_norm else y)
        agg = jnp.zeros((n_nodes, d_h_efeats), jnp.float32).at[dst].add(e_new)
        w_n = p["W_n"][:d_n + d_h_efeats, :d_h_nfeats].astype(jnp.float32)
        y = jnp.concatenate([nf, agg], axis=1) @ w_n + p["b_n"][:d_h_nfeats]
        nf = jnp.sin(bn(y) if batch_norm else y)
        ef = e_new
        d_n, d_e = d_h_nfeats, d_h_efeats

    def mlp(mp, x, d):
        w1 = mp["W1"][:d, :2 * d].astype(jnp.float32)
        w2 = mp["W2"][:2 * d, :d].astype(jnp.float32)
        return jnp.sin(x @ w1 + mp["b1"][:2 * d]) @ w2 + mp["b2"][:d]

    return mlp(params["MLP_n"], nf, d_h_nfeats), mlp(params["MLP_e"], ef, d_h_efeats)


# ---------------------------------------------------------------------------
if __name__ == "__main__":
    n_nodes, n_edges = 16, 32
    d_in_nfeats, d_in_efeats = 8, 8
    d_h_nfeats, d_h_efeats = 16, 16
    n_layers = 2

    key = jax.random.PRNGKey(0)
    key, kn, ke, ks, kd, kp = jax.random.split(key, 6)
    nfeats = jax.random.normal(kn, (n_nodes, d_in_nfeats), jnp.float32)
    efeats = jax.random.normal(ke, (n_edges, d_in_efeats), jnp.float32)
    src = jax.random.randint(ks, (n_edges,), 0, n_nodes, jnp.int32)
    dst = jax.random.randint(kd, (n_edges,), 0, n_nodes, jnp.int32)

    params = init_eegnn_params(kp, d_in_nfeats, d_in_efeats,
                               d_h_efeats, d_h_nfeats, n_layers)

    out_n, out_e = eegnn_forward(params, src, dst, nfeats, efeats,
                                 d_h_nfeats=d_h_nfeats, d_h_efeats=d_h_efeats,
                                 batch_norm=True)
    jax.block_until_ready((out_n, out_e))

    assert out_n.shape == (n_nodes, d_h_nfeats), out_n.shape
    assert out_e.shape == (n_edges, d_h_efeats), out_e.shape
    assert bool(jnp.all(jnp.isfinite(out_n))) and bool(jnp.all(jnp.isfinite(out_e)))

    ref_n, ref_e = eegnn_reference(params, src, dst, nfeats, efeats,
                                   d_h_nfeats=d_h_nfeats, d_h_efeats=d_h_efeats,
                                   batch_norm=True)
    err = max(float(jnp.max(jnp.abs(out_n - ref_n))),
              float(jnp.max(jnp.abs(out_e - ref_e))))
    assert err < 0.3, f"mismatch vs reference: max abs err {err}"   # bf16-path tolerance
    print("KERNEL_OK")
</pallas_src>

<mosaic_0001>
module attributes {stable_mosaic.version = 11 : i64} {
  func.func @_lin_stats_kernel(%arg0: i32, %arg1: memref<512x128xbf16, #tpu.memory_space<vmem>>, %arg2: memref<128x128xbf16, #tpu.memory_space<vmem>>, %arg3: memref<1x128xf32, #tpu.memory_space<vmem>>, %arg4: memref<512x128xbf16, #tpu.memory_space<vmem>>, %arg5: memref<8x128xf32, #tpu.memory_space<vmem>>) attributes {dimension_semantics = [#tpu.dimension_semantics<parallel>], iteration_bounds = array<i64: 1>, scalar_prefetch = 0 : i64, scratch_operands = 0 : i64, tpu.core_type = #tpu.core_type<tc>, window_params = [{transform_indices = @transform_0, window_bounds = array<i64: 512, 128>}, {pipeline_mode = #tpu.pipeline_mode<synchronous>, transform_indices = @transform_1, window_bounds = array<i64: 128, 128>}, {pipeline_mode = #tpu.pipeline_mode<synchronous>, transform_indices = @transform_2, window_bounds = array<i64: 1, 128>}, {transform_indices = @transform_3, window_bounds = array<i64: 512, 128>}, {transform_indices = @transform_4, window_bounds = array<i64: 8, 128>}]} {
    %c0 = arith.constant 0 : index
    %c0_0 = arith.constant 0 : index
    %0 = vector.load %arg1[%c0, %c0_0] : memref<512x128xbf16, #tpu.memory_space<vmem>>, vector<512x128xbf16>
    %c0_1 = arith.constant 0 : index
    %c0_2 = arith.constant 0 : index
    %1 = vector.load %arg2[%c0_1, %c0_2] : memref<128x128xbf16, #tpu.memory_space<vmem>>, vector<128x128xbf16>
    %cst = arith.constant dense<0.000000e+00> : vector<512x128xf32>
    %2 = tpu.matmul %0, %1, %cst {dimension_numbers = #tpu.dot_dimension_numbers<[1], [0], [0], [1], [0, 0, 1, 1], [], []>} : vector<512x128xbf16>, vector<128x128xbf16>, vector<512x128xf32> -> vector<512x128xf32>
    %c0_3 = arith.constant 0 : index
    %c0_4 = arith.constant 0 : index
    %3 = vector.load %arg3[%c0_3, %c0_4] : memref<1x128xf32, #tpu.memory_space<vmem>>, vector<1x128xf32>
    %4 = vector.broadcast %3 : vector<1x128xf32> to vector<512x128xf32>
    %5 = arith.addf %2, %4 : vector<512x128xf32>
    %c512_i32 = arith.constant 512 : i32
    %6 = arith.muli %arg0, %c512_i32 : i32
    %7 = tpu.iota {dimensions = array<i32: 0>} : vector<512x128xi32>
    %8 = vector.broadcast %6 : i32 to vector<512x128xi32>
    %9 = arith.addi %8, %7 : vector<512x128xi32>
    %c32_i32 = arith.constant 32 : i32
    %10 = vector.broadcast %c32_i32 : i32 to vector<512x128xi32>
    %11 = arith.cmpi slt, %9, %10 : vector<512x128xi32>
    %cst_5 = arith.constant 0.000000e+00 : f32
    %12 = vector.broadcast %cst_5 : f32 to vector<512x128xf32>
    %13 = arith.select %11, %5, %12 : vector<512x128xi1>, vector<512x128xf32>
    %14 = arith.truncf %13 : vector<512x128xf32> to vector<512x128xbf16>
    %c0_6 = arith.constant 0 : index
    %c0_7 = arith.constant 0 : index
    %15 = vector.load %arg4[%c0_6, %c0_7] : memref<512x128xbf16, #tpu.memory_space<vmem>>, vector<512x128xbf16>
    tpu.vector_store %arg4[%c0_6, %c0_7], %14 {strides = array<i32>} : memref<512x128xbf16, #tpu.memory_space<vmem>>, vector<512x128xbf16>,
    %16 = arith.extf %14 : vector<512x128xbf16> to vector<512x128xf32>
    %cst_8 = arith.constant dense<0.000000e+00> : vector<128xf32>
    %17 = vector.multi_reduction <add>, %16, %cst_8 [0] : vector<512x128xf32> to vector<128xf32>
    %18 = vector.shape_cast %17 : vector<128xf32> to vector<1x128xf32>
    %19 = arith.mulf %16, %16 : vector<512x128xf32>
    %cst_9 = arith.constant dense<0.000000e+00> : vector<128xf32>
    %20 = vector.multi_reduction <add>, %19, %cst_9 [0] : vector<512x128xf32> to vector<128xf32>
    %21 = vector.shape_cast %20 : vector<128xf32> to vector<1x128xf32>
    %cst_10 = arith.constant 0.000000e+00 : f32
    %22 = vector.broadcast %cst_10 : f32 to vector<6x128xf32>
    %23 = tpu.concatenate %18, %21, %22 in 0 : vector<1x128xf32>, vector<1x128xf32>, vector<6x128xf32> -> vector<8x128xf32>
    %c0_11 = arith.constant 0 : index
    %c0_12 = arith.constant 0 : index
    %24 = vector.load %arg5[%c0_11, %c0_12] : memref<8x128xf32, #tpu.memory_space<vmem>>, vector<8x128xf32>
    tpu.vector_store %arg5[%c0_11, %c0_12], %23 {strides = array<i32>} : memref<8x128xf32, #tpu.memory_space<vmem>>, vector<8x128xf32>,
    return
  }
  func.func @transform_0(%arg0: i32) -> (i32, i32) {
    %c0_i32 = arith.constant 0 : i32
    %c0_i32_0 = arith.constant 0 : i32
    return %arg0, %c0_i32 : i32, i32
  }
  func.func @transform_1(%arg0: i32) -> (i32, i32) {
    %c0_i32 = arith.constant 0 : i32
    %c0_i32_0 = arith.constant 0 : i32
    %c0_i32_1 = arith.constant 0 : i32
    return %c0_i32, %c0_i32_0 : i32, i32
  }
  func.func @transform_2(%arg0: i32) -> (i32, i32) {
    %c0_i32 = arith.constant 0 : i32
    %c0_i32_0 = arith.constant 0 : i32
    %c0_i32_1 = arith.constant 0 : i32
    return %c0_i32, %c0_i32_0 : i32, i32
  }
  func.func @transform_3(%arg0: i32) -> (i32, i32) {
    %c0_i32 = arith.constant 0 : i32
    %c0_i32_0 = arith.constant 0 : i32
    return %arg0, %c0_i32 : i32, i32
  }
  func.func @transform_4(%arg0: i32) -> (i32, i32) {
    %c0_i32 = arith.constant 0 : i32
    %c0_i32_0 = arith.constant 0 : i32
    return %arg0, %c0_i32 : i32, i32
  }
}

module attributes {stable_mosaic.version = 11 : i64} {
  func.func @_bn_sine_kernel(%arg0: i32, %arg1: memref<512x128xbf16, #tpu.memory_space<vmem>>, %arg2: memref<1x128xf32, #tpu.memory_space<vmem>>, %arg3: memref<1x128xf32, #tpu.memory_space<vmem>>, %arg4: memref<512x128xbf16, #tpu.memory_space<vmem>>) attributes {dimension_semantics = [#tpu.dimension_semantics<parallel>], iteration_bounds = array<i64: 1>, scalar_prefetch = 0 : i64, scratch_operands = 0 : i64, tpu.core_type = #tpu.core_type<tc>, window_params = [{transform_indices = @transform_0, window_bounds = array<i64: 512, 128>}, {pipeline_mode = #tpu.pipeline_mode<synchronous>, transform_indices = @transform_1, window_bounds = array<i64: 1, 128>}, {pipeline_mode = #tpu.pipeline_mode<synchronous>, transform_indices = @transform_2, window_bounds = array<i64: 1, 128>}, {transform_indices = @transform_3, window_bounds = array<i64: 512, 128>}]} {
    %c0 = arith.constant 0 : index
    %c0_0 = arith.constant 0 : index
    %0 = vector.load %arg1[%c0, %c0_0] : memref<512x128xbf16, #tpu.memory_space<vmem>>, vector<512x128xbf16>
    %1 = arith.extf %0 : vector<512x128xbf16> to vector<512x128xf32>
    %c0_1 = arith.constant 0 : index
    %c0_2 = arith.constant 0 : index
    %2 = vector.load %arg2[%c0_1, %c0_2] : memref<1x128xf32, #tpu.memory_space<vmem>>, vector<1x128xf32>
    %3 = vector.broadcast %2 : vector<1x128xf32> to vector<512x128xf32>
    %4 = arith.subf %1, %3 : vector<512x128xf32>
    %c0_3 = arith.constant 0 : index
    %c0_4 = arith.constant 0 : index
    %5 = vector.load %arg3[%c0_3, %c0_4] : memref<1x128xf32, #tpu.memory_space<vmem>>, vector<1x128xf32>
    %6 = vector.broadcast %5 : vector<1x128xf32> to vector<512x128xf32>
    %7 = arith.mulf %4, %6 : vector<512x128xf32>
    %c512_i32 = arith.constant 512 : i32
    %8 = arith.muli %arg0, %c512_i32 : i32
    %9 = tpu.iota {dimensions = array<i32: 0>} : vector<512x128xi32>
    %10 = vector.broadcast %8 : i32 to vector<512x128xi32>
    %11 = arith.addi %10, %9 : vector<512x128xi32>
    %c32_i32 = arith.constant 32 : i32
    %12 = vector.broadcast %c32_i32 : i32 to vector<512x128xi32>
    %13 = arith.cmpi slt, %11, %12 : vector<512x128xi32>
    %14 = math.sin %7 : vector<512x128xf32>
    %cst = arith.constant 0.000000e+00 : f32
    %15 = vector.broadcast %cst : f32 to vector<512x128xf32>
    %16 = arith.select %13, %14, %15 : vector<512x128xi1>, vector<512x128xf32>
    %17 = arith.truncf %16 : vector<512x128xf32> to vector<512x128xbf16>
    %c0_5 = arith.constant 0 : index
    %c0_6 = arith.constant 0 : index
    %18 = vector.load %arg4[%c0_5, %c0_6] : memref<512x128xbf16, #tpu.memory_space<vmem>>, vector<512x128xbf16>
    tpu.vector_store %arg4[%c0_5, %c0_6], %17 {strides = array<i32>} : memref<512x128xbf16, #tpu.memory_space<vmem>>, vector<512x128xbf16>,
    return
  }
  func.func @transform_0(%arg0: i32) -> (i32, i32) {
    %c0_i32 = arith.constant 0 : i32
    %c0_i32_0 = arith.constant 0 : i32
    return %arg0, %c0_i32 : i32, i32
  }
  func.func @transform_1(%arg0: i32) -> (i32, i32) {
    %c0_i32 = arith.constant 0 : i32
    %c0_i32_0 = arith.constant 0 : i32
    %c0_i32_1 = arith.constant 0 : i32
    return %c0_i32, %c0_i32_0 : i32, i32
  }
  func.func @transform_2(%arg0: i32) -> (i32, i32) {
    %c0_i32 = arith.constant 0 : i32
    %c0_i32_0 = arith.constant 0 : i32
    %c0_i32_1 = arith.constant 0 : i32
    return %c0_i32, %c0_i32_0 : i32, i32
  }
  func.func @transform_3(%arg0: i32) -> (i32, i32) {
    %c0_i32 = arith.constant 0 : i32
    %c0_i32_0 = arith.constant 0 : i32
    return %arg0, %c0_i32 : i32, i32
  }
}

module attributes {stable_mosaic.version = 11 : i64} {
  func.func @_scatter_kernel(%arg0: i32, %arg1: memref<5xi32, #tpu.memory_space<smem>>, %arg2: memref<5xi32, #tpu.memory_space<smem>>, %arg3: memref<5xi32, #tpu.memory_space<smem>>, %arg4: memref<5xi32, #tpu.memory_space<smem>>, %arg5: memref<1x512xi32, #tpu.memory_space<vmem>>, %arg6: memref<512x128xbf16, #tpu.memory_space<vmem>>, %arg7: memref<256x128xf32, #tpu.memory_space<vmem>>) attributes {dimension_semantics = [#tpu.dimension_semantics<arbitrary>], iteration_bounds = array<i64: 5>, scalar_prefetch = 4 : i64, scratch_operands = 0 : i64, tpu.core_type = #tpu.core_type<tc>, window_params = [{transform_indices = @transform_0, window_bounds = array<i64: 1, 512>}, {transform_indices = @transform_1, window_bounds = array<i64: 512, 128>}, {transform_indices = @transform_2, window_bounds = array<i64: 256, 128>}]} {
    %0 = arith.index_cast %arg0 : i32 to index
    %1 = memref.load %arg3[%0] : memref<5xi32, #tpu.memory_space<smem>>
    %c1_i32 = arith.constant 1 : i32
    %2 = arith.cmpi eq, %1, %c1_i32 : i32
    %3 = arith.extui %2 : i1 to i32
    %c0_i32 = arith.constant 0 : i32
    %4 = arith.cmpi ne, %3, %c0_i32 : i32
    scf.if %4 {
      %cst = arith.constant 0.000000e+00 : f32
      %10 = vector.broadcast %cst : f32 to vector<256x128xf32>
      %c0 = arith.constant 0 : index
      %c0_2 = arith.constant 0 : index
      %11 = vector.load %arg7[%c0, %c0_2] : memref<256x128xf32, #tpu.memory_space<vmem>>, vector<256x128xf32>
      tpu.vector_store %arg7[%c0, %c0_2], %10 {strides = array<i32>} : memref<256x128xf32, #tpu.memory_space<vmem>>, vector<256x128xf32>,
    } else {
    }
    %5 = arith.index_cast %arg0 : i32 to index
    %6 = memref.load %arg4[%5] : memref<5xi32, #tpu.memory_space<smem>>
    %c1_i32_0 = arith.constant 1 : i32
    %7 = arith.cmpi eq, %6, %c1_i32_0 : i32
    %8 = arith.extui %7 : i1 to i32
    %c0_i32_1 = arith.constant 0 : i32
    %9 = arith.cmpi ne, %8, %c0_i32_1 : i32
    scf.if %9 {
      %10 = arith.index_cast %arg0 : i32 to index
      %11 = memref.load %arg1[%10] : memref<5xi32, #tpu.memory_space<smem>>
      %c256_i32 = arith.constant 256 : i32
      %12 = arith.muli %11, %c256_i32 : i32
      %13 = tpu.iota {dimensions = array<i32: 0>} : vector<256x512xi32>
      %14 = vector.broadcast %12 : i32 to vector<256x512xi32>
      %15 = arith.addi %14, %13 : vector<256x512xi32>
      %c0 = arith.constant 0 : index
      %c0_2 = arith.constant 0 : index
      %16 = vector.load %arg5[%c0, %c0_2] : memref<1x512xi32, #tpu.memory_space<vmem>>, vector<1x512xi32>
      %17 = vector.broadcast %16 : vector<1x512xi32> to vector<256x512xi32>
      %18 = arith.cmpi eq, %15, %17 : vector<256x512xi32>
      %19 = arith.extui %18 : vector<256x512xi1> to vector<256x512xi32>
      %20 = arith.sitofp %19 : vector<256x512xi32> to vector<256x512xf32>
      %21 = arith.truncf %20 : vector<256x512xf32> to vector<256x512xbf16>
      %c0_3 = arith.constant 0 : index
      %c0_4 = arith.constant 0 : index
      %22 = vector.load %arg7[%c0_3, %c0_4] : memref<256x128xf32, #tpu.memory_space<vmem>>, vector<256x128xf32>
      %c0_5 = arith.constant 0 : index
      %c0_6 = arith.constant 0 : index
      %23 = vector.load %arg6[%c0_5, %c0_6] : memref<512x128xbf16, #tpu.memory_space<vmem>>, vector<512x128xbf16>
      %cst = arith.constant dense<0.000000e+00> : vector<256x128xf32>
      %24 = tpu.matmul %21, %23, %cst {dimension_numbers = #tpu.dot_dimension_numbers<[1], [0], [0], [1], [0, 0, 1, 1], [], []>} : vector<256x512xbf16>, vector<512x128xbf16>, vector<256x128xf32> -> vector<256x128xf32>
      %25 = arith.addf %22, %24 : vector<256x128xf32>
      %c0_7 = arith.constant 0 : index
      %c0_8 = arith.constant 0 : index
      %26 = vector.load %arg7[%c0_7, %c0_8] : memref<256x128xf32, #tpu.memory_space<vmem>>, vector<256x128xf32>
      tpu.vector_store %arg7[%c0_7, %c0_8], %25 {strides = array<i32>} : memref<256x128xf32, #tpu.memory_space<vmem>>, vector<256x128xf32>,
    } else {
    }
    return
  }
  func.func @transform_0(%arg0: i32, %arg1: memref<5xi32, #tpu.memory_space<smem>>, %arg2: memref<5xi32, #tpu.memory_space<smem>>, %arg3: memref<5xi32, #tpu.memory_space<smem>>, %arg4: memref<5xi32, #tpu.memory_space<smem>>) -> (i32, i32) {
    %0 = arith.index_cast %arg0 : i32 to index
    %1 = memref.load %arg2[%0] : memref<5xi32, #tpu.memory_space<smem>>
    %c0_i32 = arith.constant 0 : i32
    %c0_i32_0 = arith.constant 0 : i32
    return %c0_i32, %1 : i32, i32
  }
  func.func @transform_1(%arg0: i32, %arg1: memref<5xi32, #tpu.memory_space<smem>>, %arg2: memref<5xi32, #tpu.memory_space<smem>>, %arg3: memref<5xi32, #tpu.memory_space<smem>>, %arg4: memref<5xi32, #tpu.memory_space<smem>>) -> (i32, i32) {
    %0 = arith.index_cast %arg0 : i32 to index
    %1 = memref.load %arg2[%0] : memref<5xi32, #tpu.memory_space<smem>>
    %c0_i32 = arith.constant 0 : i32
    %c0_i32_0 = arith.constant 0 : i32
    return %1, %c0_i32 : i32, i32
  }
  func.func @transform_2(%arg0: i32, %arg1: memref<5xi32, #tpu.memory_space<smem>>, %arg2: memref<5xi32, #tpu.memory_space<smem>>, %arg3: memref<5xi32, #tpu.memory_space<smem>>, %arg4: memref<5xi32, #tpu.memory_space<smem>>) -> (i32, i32) {
    %0 = arith.index_cast %arg0 : i32 to index
    %1 = memref.load %arg1[%0] : memref<5xi32, #tpu.memory_space<smem>>
    %c0_i32 = arith.constant 0 : i32
    %c0_i32_0 = arith.constant 0 : i32
    return %1, %c0_i32 : i32, i32
  }
}

module attributes {stable_mosaic.version = 11 : i64} {
  func.func @_lin_stats_kernel(%arg0: i32, %arg1: memref<512x128xbf16, #tpu.memory_space<vmem>>, %arg2: memref<128x128xbf16, #tpu.memory_space<vmem>>, %arg3: memref<1x128xf32, #tpu.memory_space<vmem>>, %arg4: memref<512x128xbf16, #tpu.memory_space<vmem>>, %arg5: memref<8x128xf32, #tpu.memory_space<vmem>>) attributes {dimension_semantics = [#tpu.dimension_semantics<parallel>], iteration_bounds = array<i64: 1>, scalar_prefetch = 0 : i64, scratch_operands = 0 : i64, tpu.core_type = #tpu.core_type<tc>, window_params = [{transform_indices = @transform_0, window_bounds = array<i64: 512, 128>}, {pipeline_mode = #tpu.pipeline_mode<synchronous>, transform_indices = @transform_1, window_bounds = array<i64: 128, 128>}, {pipeline_mode = #tpu.pipeline_mode<synchronous>, transform_indices = @transform_2, window_bounds = array<i64: 1, 128>}, {transform_indices = @transform_3, window_bounds = array<i64: 512, 128>}, {transform_indices = @transform_4, window_bounds = array<i64: 8, 128>}]} {
    %c0 = arith.constant 0 : index
    %c0_0 = arith.constant 0 : index
    %0 = vector.load %arg1[%c0, %c0_0] : memref<512x128xbf16, #tpu.memory_space<vmem>>, vector<512x128xbf16>
    %c0_1 = arith.constant 0 : index
    %c0_2 = arith.constant 0 : index
    %1 = vector.load %arg2[%c0_1, %c0_2] : memref<128x128xbf16, #tpu.memory_space<vmem>>, vector<128x128xbf16>
    %cst = arith.constant dense<0.000000e+00> : vector<512x128xf32>
    %2 = tpu.matmul %0, %1, %cst {dimension_numbers = #tpu.dot_dimension_numbers<[1], [0], [0], [1], [0, 0, 1, 1], [], []>} : vector<512x128xbf16>, vector<128x128xbf16>, vector<512x128xf32> -> vector<512x128xf32>
    %c0_3 = arith.constant 0 : index
    %c0_4 = arith.constant 0 : index
    %3 = vector.load %arg3[%c0_3, %c0_4] : memref<1x128xf32, #tpu.memory_space<vmem>>, vector<1x128xf32>
    %4 = vector.broadcast %3 : vector<1x128xf32> to vector<512x128xf32>
    %5 = arith.addf %2, %4 : vector<512x128xf32>
    %c512_i32 = arith.constant 512 : i32
    %6 = arith.muli %arg0, %c512_i32 : i32
    %7 = tpu.iota {dimensions = array<i32: 0>} : vector<512x128xi32>
    %8 = vector.broadcast %6 : i32 to vector<512x128xi32>
    %9 = arith.addi %8, %7 : vector<512x128xi32>
    %c16_i32 = arith.constant 16 : i32
    %10 = vector.broadcast %c16_i32 : i32 to vector<512x128xi32>
    %11 = arith.cmpi slt, %9, %10 : vector<512x128xi32>
    %cst_5 = arith.constant 0.000000e+00 : f32
    %12 = vector.broadcast %cst_5 : f32 to vector<512x128xf32>
    %13 = arith.select %11, %5, %12 : vector<512x128xi1>, vector<512x128xf32>
    %14 = arith.truncf %13 : vector<512x128xf32> to vector<512x128xbf16>
    %c0_6 = arith.constant 0 : index
    %c0_7 = arith.constant 0 : index
    %15 = vector.load %arg4[%c0_6, %c0_7] : memref<512x128xbf16, #tpu.memory_space<vmem>>, vector<512x128xbf16>
    tpu.vector_store %arg4[%c0_6, %c0_7], %14 {strides = array<i32>} : memref<512x128xbf16, #tpu.memory_space<vmem>>, vector<512x128xbf16>,
    %16 = arith.extf %14 : vector<512x128xbf16> to vector<512x128xf32>
    %cst_8 = arith.constant dense<0.000000e+00> : vector<128xf32>
    %17 = vector.multi_reduction <add>, %16, %cst_8 [0] : vector<512x128xf32> to vector<128xf32>
    %18 = vector.shape_cast %17 : vector<128xf32> to vector<1x128xf32>
    %19 = arith.mulf %16, %16 : vector<512x128xf32>
    %cst_9 = arith.constant dense<0.000000e+00> : vector<128xf32>
    %20 = vector.multi_reduction <add>, %19, %cst_9 [0] : vector<512x128xf32> to vector<128xf32>
    %21 = vector.shape_cast %20 : vector<128xf32> to vector<1x128xf32>
    %cst_10 = arith.constant 0.000000e+00 : f32
    %22 = vector.broadcast %cst_10 : f32 to vector<6x128xf32>
    %23 = tpu.concatenate %18, %21, %22 in 0 : vector<1x128xf32>, vector<1x128xf32>, vector<6x128xf32> -> vector<8x128xf32>
    %c0_11 = arith.constant 0 : index
    %c0_12 = arith.constant 0 : index
    %24 = vector.load %arg5[%c0_11, %c0_12] : memref<8x128xf32, #tpu.memory_space<vmem>>, vector<8x128xf32>
    tpu.vector_store %arg5[%c0_11, %c0_12], %23 {strides = array<i32>} : memref<8x128xf32, #tpu.memory_space<vmem>>, vector<8x128xf32>,
    return
  }
  func.func @transform_0(%arg0: i32) -> (i32, i32) {
    %c0_i32 = arith.constant 0 : i32
    %c0_i32_0 = arith.constant 0 : i32
    return %arg0, %c0_i32 : i32, i32
  }
  func.func @transform_1(%arg0: i32) -> (i32, i32) {
    %c0_i32 = arith.constant 0 : i32
    %c0_i32_0 = arith.constant 0 : i32
    %c0_i32_1 = arith.constant 0 : i32
    return %c0_i32, %c0_i32_0 : i32, i32
  }
  func.func @transform_2(%arg0: i32) -> (i32, i32) {
    %c0_i32 = arith.constant 0 : i32
    %c0_i32_0 = arith.constant 0 : i32
    %c0_i32_1 = arith.constant 0 : i32
    return %c0_i32, %c0_i32_0 : i32, i32
  }
  func.func @transform_3(%arg0: i32) -> (i32, i32) {
    %c0_i32 = arith.constant 0 : i32
    %c0_i32_0 = arith.constant 0 : i32
    return %arg0, %c0_i32 : i32, i32
  }
  func.func @transform_4(%arg0: i32) -> (i32, i32) {
    %c0_i32 = arith.constant 0 : i32
    %c0_i32_0 = arith.constant 0 : i32
    return %arg0, %c0_i32 : i32, i32
  }
}

module attributes {stable_mosaic.version = 11 : i64} {
  func.func @_bn_sine_kernel(%arg0: i32, %arg1: memref<512x128xbf16, #tpu.memory_space<vmem>>, %arg2: memref<1x128xf32, #tpu.memory_space<vmem>>, %arg3: memref<1x128xf32, #tpu.memory_space<vmem>>, %arg4: memref<512x128xbf16, #tpu.memory_space<vmem>>) attributes {dimension_semantics = [#tpu.dimension_semantics<parallel>], iteration_bounds = array<i64: 1>, scalar_prefetch = 0 : i64, scratch_operands = 0 : i64, tpu.core_type = #tpu.core_type<tc>, window_params = [{transform_indices = @transform_0, window_bounds = array<i64: 512, 128>}, {pipeline_mode = #tpu.pipeline_mode<synchronous>, transform_indices = @transform_1, window_bounds = array<i64: 1, 128>}, {pipeline_mode = #tpu.pipeline_mode<synchronous>, transform_indices = @transform_2, window_bounds = array<i64: 1, 128>}, {transform_indices = @transform_3, window_bounds = array<i64: 512, 128>}]} {
    %c0 = arith.constant 0 : index
    %c0_0 = arith.constant 0 : index
    %0 = vector.load %arg1[%c0, %c0_0] : memref<512x128xbf16, #tpu.memory_space<vmem>>, vector<512x128xbf16>
    %1 = arith.extf %0 : vector<512x128xbf16> to vector<512x128xf32>
    %c0_1 = arith.constant 0 : index
    %c0_2 = arith.constant 0 : index
    %2 = vector.load %arg2[%c0_1, %c0_2] : memref<1x128xf32, #tpu.memory_space<vmem>>, vector<1x128xf32>
    %3 = vector.broadcast %2 : vector<1x128xf32> to vector<512x128xf32>
    %4 = arith.subf %1, %3 : vector<512x128xf32>
    %c0_3 = arith.constant 0 : index
    %c0_4 = arith.constant 0 : index
    %5 = vector.load %arg3[%c0_3, %c0_4] : memref<1x128xf32, #tpu.memory_space<vmem>>, vector<1x128xf32>
    %6 = vector.broadcast %5 : vector<1x128xf32> to vector<512x128xf32>
    %7 = arith.mulf %4, %6 : vector<512x128xf32>
    %c512_i32 = arith.constant 512 : i32
    %8 = arith.muli %arg0, %c512_i32 : i32
    %9 = tpu.iota {dimensions = array<i32: 0>} : vector<512x128xi32>
    %10 = vector.broadcast %8 : i32 to vector<512x128xi32>
    %11 = arith.addi %10, %9 : vector<512x128xi32>
    %c16_i32 = arith.constant 16 : i32
    %12 = vector.broadcast %c16_i32 : i32 to vector<512x128xi32>
    %13 = arith.cmpi slt, %11, %12 : vector<512x128xi32>
    %14 = math.sin %7 : vector<512x128xf32>
    %cst = arith.constant 0.000000e+00 : f32
    %15 = vector.broadcast %cst : f32 to vector<512x128xf32>
    %16 = arith.select %13, %14, %15 : vector<512x128xi1>, vector<512x128xf32>
    %17 = arith.truncf %16 : vector<512x128xf32> to vector<512x128xbf16>
    %c0_5 = arith.constant 0 : index
    %c0_6 = arith.constant 0 : index
    %18 = vector.load %arg4[%c0_5, %c0_6] : memref<512x128xbf16, #tpu.memory_space<vmem>>, vector<512x128xbf16>
    tpu.vector_store %arg4[%c0_5, %c0_6], %17 {strides = array<i32>} : memref<512x128xbf16, #tpu.memory_space<vmem>>, vector<512x128xbf16>,
    return
  }
  func.func @transform_0(%arg0: i32) -> (i32, i32) {
    %c0_i32 = arith.constant 0 : i32
    %c0_i32_0 = arith.constant 0 : i32
    return %arg0, %c0_i32 : i32, i32
  }
  func.func @transform_1(%arg0: i32) -> (i32, i32) {
    %c0_i32 = arith.constant 0 : i32
    %c0_i32_0 = arith.constant 0 : i32
    %c0_i32_1 = arith.constant 0 : i32
    return %c0_i32, %c0_i32_0 : i32, i32
  }
  func.func @transform_2(%arg0: i32) -> (i32, i32) {
    %c0_i32 = arith.constant 0 : i32
    %c0_i32_0 = arith.constant 0 : i32
    %c0_i32_1 = arith.constant 0 : i32
    return %c0_i32, %c0_i32_0 : i32, i32
  }
  func.func @transform_3(%arg0: i32) -> (i32, i32) {
    %c0_i32 = arith.constant 0 : i32
    %c0_i32_0 = arith.constant 0 : i32
    return %arg0, %c0_i32 : i32, i32
  }
}

module attributes {stable_mosaic.version = 11 : i64} {
  func.func @_lin_kernel(%arg0: i32, %arg1: memref<512x128xbf16, #tpu.memory_space<vmem>>, %arg2: memref<128x128xbf16, #tpu.memory_space<vmem>>, %arg3: memref<1x128xf32, #tpu.memory_space<vmem>>, %arg4: memref<512x128xbf16, #tpu.memory_space<vmem>>) attributes {dimension_semantics = [#tpu.dimension_semantics<parallel>], iteration_bounds = array<i64: 1>, scalar_prefetch = 0 : i64, scratch_operands = 0 : i64, tpu.core_type = #tpu.core_type<tc>, window_params = [{transform_indices = @transform_0, window_bounds = array<i64: 512, 128>}, {pipeline_mode = #tpu.pipeline_mode<synchronous>, transform_indices = @transform_1, window_bounds = array<i64: 128, 128>}, {pipeline_mode = #tpu.pipeline_mode<synchronous>, transform_indices = @transform_2, window_bounds = array<i64: 1, 128>}, {transform_indices = @transform_3, window_bounds = array<i64: 512, 128>}]} {
    %c0 = arith.constant 0 : index
    %c0_0 = arith.constant 0 : index
    %0 = vector.load %arg1[%c0, %c0_0] : memref<512x128xbf16, #tpu.memory_space<vmem>>, vector<512x128xbf16>
    %c0_1 = arith.constant 0 : index
    %c0_2 = arith.constant 0 : index
    %1 = vector.load %arg2[%c0_1, %c0_2] : memref<128x128xbf16, #tpu.memory_space<vmem>>, vector<128x128xbf16>
    %cst = arith.constant dense<0.000000e+00> : vector<512x128xf32>
    %2 = tpu.matmul %0, %1, %cst {dimension_numbers = #tpu.dot_dimension_numbers<[1], [0], [0], [1], [0, 0, 1, 1], [], []>} : vector<512x128xbf16>, vector<128x128xbf16>, vector<512x128xf32> -> vector<512x128xf32>
    %c0_3 = arith.constant 0 : index
    %c0_4 = arith.constant 0 : index
    %3 = vector.load %arg3[%c0_3, %c0_4] : memref<1x128xf32, #tpu.memory_space<vmem>>, vector<1x128xf32>
    %4 = vector.broadcast %3 : vector<1x128xf32> to vector<512x128xf32>
    %5 = arith.addf %2, %4 : vector<512x128xf32>
    %c512_i32 = arith.constant 512 : i32
    %6 = arith.muli %arg0, %c512_i32 : i32
    %7 = tpu.iota {dimensions = array<i32: 0>} : vector<512x128xi32>
    %8 = vector.broadcast %6 : i32 to vector<512x128xi32>
    %9 = arith.addi %8, %7 : vector<512x128xi32>
    %c16_i32 = arith.constant 16 : i32
    %10 = vector.broadcast %c16_i32 : i32 to vector<512x128xi32>
    %11 = arith.cmpi slt, %9, %10 : vector<512x128xi32>
    %cst_5 = arith.constant 0.000000e+00 : f32
    %12 = vector.broadcast %cst_5 : f32 to vector<512x128xf32>
    %13 = arith.select %11, %5, %12 : vector<512x128xi1>, vector<512x128xf32>
    %14 = math.sin %13 : vector<512x128xf32>
    %15 = arith.truncf %14 : vector<512x128xf32> to vector<512x128xbf16>
    %c0_6 = arith.constant 0 : index
    %c0_7 = arith.constant 0 : index
    %16 = vector.load %arg4[%c0_6, %c0_7] : memref<512x128xbf16, #tpu.memory_space<vmem>>, vector<512x128xbf16>
    tpu.vector_store %arg4[%c0_6, %c0_7], %15 {strides = array<i32>} : memref<512x128xbf16, #tpu.memory_space<vmem>>, vector<512x128xbf16>,
    return
  }
  func.func @transform_0(%arg0: i32) -> (i32, i32) {
    %c0_i32 = arith.constant 0 : i32
    %c0_i32_0 = arith.constant 0 : i32
    return %arg0, %c0_i32 : i32, i32
  }
  func.func @transform_1(%arg0: i32) -> (i32, i32) {
    %c0_i32 = arith.constant 0 : i32
    %c0_i32_0 = arith.constant 0 : i32
    %c0_i32_1 = arith.constant 0 : i32
    return %c0_i32, %c0_i32_0 : i32, i32
  }
  func.func @transform_2(%arg0: i32) -> (i32, i32) {
    %c0_i32 = arith.constant 0 : i32
    %c0_i32_0 = arith.constant 0 : i32
    %c0_i32_1 = arith.constant 0 : i32
    return %c0_i32, %c0_i32_0 : i32, i32
  }
  func.func @transform_3(%arg0: i32) -> (i32, i32) {
    %c0_i32 = arith.constant 0 : i32
    %c0_i32_0 = arith.constant 0 : i32
    return %arg0, %c0_i32 : i32, i32
  }
}

module attributes {stable_mosaic.version = 11 : i64} {
  func.func @_lin_kernel(%arg0: i32, %arg1: memref<512x128xbf16, #tpu.memory_space<vmem>>, %arg2: memref<128x128xbf16, #tpu.memory_space<vmem>>, %arg3: memref<1x128xf32, #tpu.memory_space<vmem>>, %arg4: memref<512x128xf32, #tpu.memory_space<vmem>>) attributes {dimension_semantics = [#tpu.dimension_semantics<parallel>], iteration_bounds = array<i64: 1>, scalar_prefetch = 0 : i64, scratch_operands = 0 : i64, tpu.core_type = #tpu.core_type<tc>, window_params = [{transform_indices = @transform_0, window_bounds = array<i64: 512, 128>}, {pipeline_mode = #tpu.pipeline_mode<synchronous>, transform_indices = @transform_1, window_bounds = array<i64: 128, 128>}, {pipeline_mode = #tpu.pipeline_mode<synchronous>, transform_indices = @transform_2, window_bounds = array<i64: 1, 128>}, {transform_indices = @transform_3, window_bounds = array<i64: 512, 128>}]} {
    %c0 = arith.constant 0 : index
    %c0_0 = arith.constant 0 : index
    %0 = vector.load %arg1[%c0, %c0_0] : memref<512x128xbf16, #tpu.memory_space<vmem>>, vector<512x128xbf16>
    %c0_1 = arith.constant 0 : index
    %c0_2 = arith.constant 0 : index
    %1 = vector.load %arg2[%c0_1, %c0_2] : memref<128x128xbf16, #tpu.memory_space<vmem>>, vector<128x128xbf16>
    %cst = arith.constant dense<0.000000e+00> : vector<512x128xf32>
    %2 = tpu.matmul %0, %1, %cst {dimension_numbers = #tpu.dot_dimension_numbers<[1], [0], [0], [1], [0, 0, 1, 1], [], []>} : vector<512x128xbf16>, vector<128x128xbf16>, vector<512x128xf32> -> vector<512x128xf32>
    %c0_3 = arith.constant 0 : index
    %c0_4 = arith.constant 0 : index
    %3 = vector.load %arg3[%c0_3, %c0_4] : memref<1x128xf32, #tpu.memory_space<vmem>>, vector<1x128xf32>
    %4 = vector.broadcast %3 : vector<1x128xf32> to vector<512x128xf32>
    %5 = arith.addf %2, %4 : vector<512x128xf32>
    %c512_i32 = arith.constant 512 : i32
    %6 = arith.muli %arg0, %c512_i32 : i32
    %7 = tpu.iota {dimensions = array<i32: 0>} : vector<512x128xi32>
    %8 = vector.broadcast %6 : i32 to vector<512x128xi32>
    %9 = arith.addi %8, %7 : vector<512x128xi32>
    %c16_i32 = arith.constant 16 : i32
    %10 = vector.broadcast %c16_i32 : i32 to vector<512x128xi32>
    %11 = arith.cmpi slt, %9, %10 : vector<512x128xi32>
    %cst_5 = arith.constant 0.000000e+00 : f32
    %12 = vector.broadcast %cst_5 : f32 to vector<512x128xf32>
    %13 = arith.select %11, %5, %12 : vector<512x128xi1>, vector<512x128xf32>
    %c0_6 = arith.constant 0 : index
    %c0_7 = arith.constant 0 : index
    %14 = vector.load %arg4[%c0_6, %c0_7] : memref<512x128xf32, #tpu.memory_space<vmem>>, vector<512x128xf32>
    tpu.vector_store %arg4[%c0_6, %c0_7], %13 {strides = array<i32>} : memref<512x128xf32, #tpu.memory_space<vmem>>, vector<512x128xf32>,
    return
  }
  func.func @transform_0(%arg0: i32) -> (i32, i32) {
    %c0_i32 = arith.constant 0 : i32
    %c0_i32_0 = arith.constant 0 : i32
    return %arg0, %c0_i32 : i32, i32
  }
  func.func @transform_1(%arg0: i32) -> (i32, i32) {
    %c0_i32 = arith.constant 0 : i32
    %c0_i32_0 = arith.constant 0 : i32
    %c0_i32_1 = arith.constant 0 : i32
    return %c0_i32, %c0_i32_0 : i32, i32
  }
  func.func @transform_2(%arg0: i32) -> (i32, i32) {
    %c0_i32 = arith.constant 0 : i32
    %c0_i32_0 = arith.constant 0 : i32
    %c0_i32_1 = arith.constant 0 : i32
    return %c0_i32, %c0_i32_0 : i32, i32
  }
  func.func @transform_3(%arg0: i32) -> (i32, i32) {
    %c0_i32 = arith.constant 0 : i32
    %c0_i32_0 = arith.constant 0 : i32
    return %arg0, %c0_i32 : i32, i32
  }
}

module attributes {stable_mosaic.version = 11 : i64} {
  func.func @_lin_kernel(%arg0: i32, %arg1: memref<512x128xbf16, #tpu.memory_space<vmem>>, %arg2: memref<128x128xbf16, #tpu.memory_space<vmem>>, %arg3: memref<1x128xf32, #tpu.memory_space<vmem>>, %arg4: memref<512x128xbf16, #tpu.memory_space<vmem>>) attributes {dimension_semantics = [#tpu.dimension_semantics<parallel>], iteration_bounds = array<i64: 1>, scalar_prefetch = 0 : i64, scratch_operands = 0 : i64, tpu.core_type = #tpu.core_type<tc>, window_params = [{transform_indices = @transform_0, window_bounds = array<i64: 512, 128>}, {pipeline_mode = #tpu.pipeline_mode<synchronous>, transform_indices = @transform_1, window_bounds = array<i64: 128, 128>}, {pipeline_mode = #tpu.pipeline_mode<synchronous>, transform_indices = @transform_2, window_bounds = array<i64: 1, 128>}, {transform_indices = @transform_3, window_bounds = array<i64: 512, 128>}]} {
    %c0 = arith.constant 0 : index
    %c0_0 = arith.constant 0 : index
    %0 = vector.load %arg1[%c0, %c0_0] : memref<512x128xbf16, #tpu.memory_space<vmem>>, vector<512x128xbf16>
    %c0_1 = arith.constant 0 : index
    %c0_2 = arith.constant 0 : index
    %1 = vector.load %arg2[%c0_1, %c0_2] : memref<128x128xbf16, #tpu.memory_space<vmem>>, vector<128x128xbf16>
    %cst = arith.constant dense<0.000000e+00> : vector<512x128xf32>
    %2 = tpu.matmul %0, %1, %cst {dimension_numbers = #tpu.dot_dimension_numbers<[1], [0], [0], [1], [0, 0, 1, 1], [], []>} : vector<512x128xbf16>, vector<128x128xbf16>, vector<512x128xf32> -> vector<512x128xf32>
    %c0_3 = arith.constant 0 : index
    %c0_4 = arith.constant 0 : index
    %3 = vector.load %arg3[%c0_3, %c0_4] : memref<1x128xf32, #tpu.memory_space<vmem>>, vector<1x128xf32>
    %4 = vector.broadcast %3 : vector<1x128xf32> to vector<512x128xf32>
    %5 = arith.addf %2, %4 : vector<512x128xf32>
    %c512_i32 = arith.constant 512 : i32
    %6 = arith.muli %arg0, %c512_i32 : i32
    %7 = tpu.iota {dimensions = array<i32: 0>} : vector<512x128xi32>
    %8 = vector.broadcast %6 : i32 to vector<512x128xi32>
    %9 = arith.addi %8, %7 : vector<512x128xi32>
    %c32_i32 = arith.constant 32 : i32
    %10 = vector.broadcast %c32_i32 : i32 to vector<512x128xi32>
    %11 = arith.cmpi slt, %9, %10 : vector<512x128xi32>
    %cst_5 = arith.constant 0.000000e+00 : f32
    %12 = vector.broadcast %cst_5 : f32 to vector<512x128xf32>
    %13 = arith.select %11, %5, %12 : vector<512x128xi1>, vector<512x128xf32>
    %14 = math.sin %13 : vector<512x128xf32>
    %15 = arith.truncf %14 : vector<512x128xf32> to vector<512x128xbf16>
    %c0_6 = arith.constant 0 : index
    %c0_7 = arith.constant 0 : index
    %16 = vector.load %arg4[%c0_6, %c0_7] : memref<512x128xbf16, #tpu.memory_space<vmem>>, vector<512x128xbf16>
    tpu.vector_store %arg4[%c0_6, %c0_7], %15 {strides = array<i32>} : memref<512x128xbf16, #tpu.memory_space<vmem>>, vector<512x128xbf16>,
    return
  }
  func.func @transform_0(%arg0: i32) -> (i32, i32) {
    %c0_i32 = arith.constant 0 : i32
    %c0_i32_0 = arith.constant 0 : i32
    return %arg0, %c0_i32 : i32, i32
  }
  func.func @transform_1(%arg0: i32) -> (i32, i32) {
    %c0_i32 = arith.constant 0 : i32
    %c0_i32_0 = arith.constant 0 : i32
    %c0_i32_1 = arith.constant 0 : i32
    return %c0_i32, %c0_i32_0 : i32, i32
  }
  func.func @transform_2(%arg0: i32) -> (i32, i32) {
    %c0_i32 = arith.constant 0 : i32
    %c0_i32_0 = arith.constant 0 : i32
    %c0_i32_1 = arith.constant 0 : i32
    return %c0_i32, %c0_i32_0 : i32, i32
  }
  func.func @transform_3(%arg0: i32) -> (i32, i32) {
    %c0_i32 = arith.constant 0 : i32
    %c0_i32_0 = arith.constant 0 : i32
    return %arg0, %c0_i32 : i32, i32
  }
}

module attributes {stable_mosaic.version = 11 : i64} {
  func.func @_lin_kernel(%arg0: i32, %arg1: memref<512x128xbf16, #tpu.memory_space<vmem>>, %arg2: memref<128x128xbf16, #tpu.memory_space<vmem>>, %arg3: memref<1x128xf32, #tpu.memory_space<vmem>>, %arg4: memref<512x128xf32, #tpu.memory_space<vmem>>) attributes {dimension_semantics = [#tpu.dimension_semantics<parallel>], iteration_bounds = array<i64: 1>, scalar_prefetch = 0 : i64, scratch_operands = 0 : i64, tpu.core_type = #tpu.core_type<tc>, window_params = [{transform_indices = @transform_0, window_bounds = array<i64: 512, 128>}, {pipeline_mode = #tpu.pipeline_mode<synchronous>, transform_indices = @transform_1, window_bounds = array<i64: 128, 128>}, {pipeline_mode = #tpu.pipeline_mode<synchronous>, transform_indices = @transform_2, window_bounds = array<i64: 1, 128>}, {transform_indices = @transform_3, window_bounds = array<i64: 512, 128>}]} {
    %c0 = arith.constant 0 : index
    %c0_0 = arith.constant 0 : index
    %0 = vector.load %arg1[%c0, %c0_0] : memref<512x128xbf16, #tpu.memory_space<vmem>>, vector<512x128xbf16>
    %c0_1 = arith.constant 0 : index
    %c0_2 = arith.constant 0 : index
    %1 = vector.load %arg2[%c0_1, %c0_2] : memref<128x128xbf16, #tpu.memory_space<vmem>>, vector<128x128xbf16>
    %cst = arith.constant dense<0.000000e+00> : vector<512x128xf32>
    %2 = tpu.matmul %0, %1, %cst {dimension_numbers = #tpu.dot_dimension_numbers<[1], [0], [0], [1], [0, 0, 1, 1], [], []>} : vector<512x128xbf16>, vector<128x128xbf16>, vector<512x128xf32> -> vector<512x128xf32>
    %c0_3 = arith.constant 0 : index
    %c0_4 = arith.constant 0 : index
    %3 = vector.load %arg3[%c0_3, %c0_4] : memref<1x128xf32, #tpu.memory_space<vmem>>, vector<1x128xf32>
    %4 = vector.broadcast %3 : vector<1x128xf32> to vector<512x128xf32>
    %5 = arith.addf %2, %4 : vector<512x128xf32>
    %c512_i32 = arith.constant 512 : i32
    %6 = arith.muli %arg0, %c512_i32 : i32
    %7 = tpu.iota {dimensions = array<i32: 0>} : vector<512x128xi32>
    %8 = vector.broadcast %6 : i32 to vector<512x128xi32>
    %9 = arith.addi %8, %7 : vector<512x128xi32>
    %c32_i32 = arith.constant 32 : i32
    %10 = vector.broadcast %c32_i32 : i32 to vector<512x128xi32>
    %11 = arith.cmpi slt, %9, %10 : vector<512x128xi32>
    %cst_5 = arith.constant 0.000000e+00 : f32
    %12 = vector.broadcast %cst_5 : f32 to vector<512x128xf32>
    %13 = arith.select %11, %5, %12 : vector<512x128xi1>, vector<512x128xf32>
    %c0_6 = arith.constant 0 : index
    %c0_7 = arith.constant 0 : index
    %14 = vector.load %arg4[%c0_6, %c0_7] : memref<512x128xf32, #tpu.memory_space<vmem>>, vector<512x128xf32>
    tpu.vector_store %arg4[%c0_6, %c0_7], %13 {strides = array<i32>} : memref<512x128xf32, #tpu.memory_space<vmem>>, vector<512x128xf32>,
    return
  }
  func.func @transform_0(%arg0: i32) -> (i32, i32) {
    %c0_i32 = arith.constant 0 : i32
    %c0_i32_0 = arith.constant 0 : i32
    return %arg0, %c0_i32 : i32, i32
  }
  func.func @transform_1(%arg0: i32) -> (i32, i32) {
    %c0_i32 = arith.constant 0 : i32
    %c0_i32_0 = arith.constant 0 : i32
    %c0_i32_1 = arith.constant 0 : i32
    return %c0_i32, %c0_i32_0 : i32, i32
  }
  func.func @transform_2(%arg0: i32) -> (i32, i32) {
    %c0_i32 = arith.constant 0 : i32
    %c0_i32_0 = arith.constant 0 : i32
    %c0_i32_1 = arith.constant 0 : i32
    return %c0_i32, %c0_i32_0 : i32, i32
  }
  func.func @transform_3(%arg0: i32) -> (i32, i32) {
    %c0_i32 = arith.constant 0 : i32
    %c0_i32_0 = arith.constant 0 : i32
    return %arg0, %c0_i32 : i32, i32
  }
}

</mosaic_0001>

<bundles_post_ra>
// kernel: custom-call
= control target key start
LH: loop header
LB: loop body
LE: loop exit
PB: predicated region body
PF: predicated region fallthrough
CT: control target
= control target key end

     0   :  { %s6_s0 = inlined_call_operand.vmem [shape: u32[3], index: 0, kind: output, shape index: {}]  }

// kernel: custom-call.2
= control target key start
LH: loop header
LB: loop body
LE: loop exit
PB: predicated region body
PF: predicated region fallthrough
CT: control target
= control target key end

     0   :  { %s6_s0 = inlined_call_operand.vmem [shape: u32[5], index: 0, kind: output, shape index: {}]  }

// kernel: eegnn_forward.15
= control target key start
LH: loop header
LB: loop body
LE: loop exit
PB: predicated region body
PF: predicated region fallthrough
CT: control target
= control target key end

     0   :  { %v7908_v42 = vmov 683565275   ;;  %v7909_v44 = vmov 2475754826   ;;  %v7910_v46 = vmov 2131351028   ;;  %s8523_s0 = inlined_call_operand.vmem [shape: bf16[512,128], index: 0, kind: input, shape index: {}]   ;;  %s8524_s1 = inlined_call_operand.vmem [shape: f32[1,128], index: 1, kind: input, shape index: {}]   ;;  %s8525_s2 = inlined_call_operand.vmem [shape: f32[1,128], index: 2, kind: input, shape index: {}]   ;;  %s8526_s3 = inlined_call_operand.vmem [shape: bf16[512,128], index: 3, kind: output, shape index: {}]  }
   0x1   :  { %v7850_v0 = vld [vmem:[%s8523_s0] sm:$0xff]   ;;  %v7867_v4 = vld [vmem:[%s8523_s0 + $0x8] sm:$0xff]   ;;  %v7911_v48 = vmov 2102212464   ;;  %v7912_v50 = vmov 920167782  }
   0x2   :  { %v7523_v1 = vld [vmem:[%s8524_s1] ss:$0 sm:$0xff]  ;;  %v7851_v2 = vunpack.c.l.bf16 %v7850_v0  ;;  %v7852_v3 = vunpack.c.h.bf16 %v7850_v0  ;;  %v7855_v6 = vunpack.c.l.bf16 %v7867_v4  ;;  %v7856_v24 = vunpack.c.h.bf16 %v7867_v4 }
   0x3   :  { %v7947_v5 = vld [vmem:[%s8525_s2] ss:$0 sm:$0xff]  ;;  %v7913_v58 = vmov 1326507024  }
   0x4   :  { %v149_v7 = vsub.f32 %v7851_v2, %v7523_v1  ;;  %v150_v8 = vsub.f32 %v7852_v3, %v7523_v1  ;;  %v151_v9 = vsub.f32 %v7855_v6, %v7523_v1  ;;  %v7967_v32 = vsub.f32 %v7856_v24, %v7523_v1 }
   0x6   :  { %v7950_v10 = vmul.f32 %v7947_v5, %v149_v7  ;;  %v7953_v11 = vmul.f32 %v7947_v5, %v150_v8  ;;  %v7956_v12 = vmul.f32 %v7947_v5, %v151_v9 }
   0x8   :  { %v479_v13 = vand.u32 2147483647, %v7950_v10  ;;  %v482_v14 = vand.u32 2139095040, %v7950_v10  ;;  %v583_v15 = vand.u32 2147483647, %v7953_v11  ;;  %v586_v16 = vand.u32 2139095040, %v7953_v11 }
   0x9   :  { %v690_v21 = vand.u32 2139095040, %v7956_v12  ;;  %v687_v36 = vand.u32 2147483647, %v7956_v12  ;;  %vm481_vm14 = vcmp.lt.s32.totalorder %v7950_v10, 0 }
   0xa   :  { %v483_v17 = vshrl.u32 %v482_v14, 23  ;;  %v486_v18 = vand.u32 8388607, %v479_v13  ;;  %v587_v19 = vshrl.u32 %v586_v16, 23  ;;  %v590_v20 = vand.u32 8388607, %v583_v15 }
   0xb   :  { %v691_v25 = vshrl.u32 %v690_v21, 23 }
   0xc   :  { %v7525_v22 = vadd.s32 4294967169, %v483_v17  ;;  %v7529_v23 = vadd.s32 4294967169, %v587_v19  ;;  %v487_v27 = vor.u32 8388608, %v486_v18  ;;  %v591_v28 = vor.u32 8388608, %v590_v20 }
   0xd   :  { %v7533_v30 = vadd.s32 4294967169, %v691_v25 }
   0xe   :  { %v489_v26 = vadd.s32 1, %v7525_v22  ;;  %v593_v29 = vadd.s32 1, %v7529_v23  ;;  %v7970_v37 = vshll.u32 %v487_v27, 8  ;;  %v7972_v39 = vshll.u32 %v591_v28, 8 }
   0xf   :  { %v7974_v40 = vadd.s32 1, %v7533_v30 }
  0x10   :  { %vm490_vm0 = vcmp.gt.s32.totalorder %v489_v26, 0  ;;  %vm594_vm1 = vcmp.gt.s32.totalorder %v593_v29, 0 }
  0x11   :  { %v491_v31 = vsel %vm490_vm0, %v489_v26, 0  ;;  %v595_v35 = vsel %vm594_vm1, %v593_v29, 0  ;;  %vm698_vm6 = vcmp.gt.s32.totalorder %v7974_v40, 0 }
  0x12   :  { %v492_v33 = vshrl.u32 %v491_v31, 5  ;;  %v493_v34 = vand.u32 31, %v491_v31  ;;  %v597_v38 = vand.u32 31, %v595_v35  ;;  %v7981_v52 = vshrl.u32 %v595_v35, 5 }
  0x14   :  { %v494_v41 = vsub.s32 32, %v493_v34  ;;  %v496_v43 = vshll.u32 %v7908_v42, %v493_v34  ;;  %v499_v45 = vshll.u32 %v7909_v44, %v493_v34  ;;  %v502_v47 = vshll.u32 %v7910_v46, %v493_v34 }
  0x15   :  { %v505_v49 = vshll.u32 %v7911_v48, %v493_v34  ;;  %v508_v51 = vshll.u32 %v7912_v50, %v493_v34  ;;  %vm511_vm2 = vcmp.lt.s32.totalorder %v492_v33, 1  ;;  %vm512_vm3 = vcmp.lt.s32.totalorder %v492_v33, 2 }
  0x16   :  { %v495_v53 = vshrl.u32 %v7908_v42, %v494_v41  ;;  %v497_v54 = vshrl.u32 %v7909_v44, %v494_v41  ;;  %v500_v55 = vshrl.u32 %v7910_v46, %v494_v41  ;;  %v503_v56 = vshrl.u32 %v7911_v48, %v494_v41 }
  0x17   :  { %v506_v57 = vshrl.u32 %v7912_v50, %v494_v41  ;;  %v509_v59 = vshrl.u32 %v7913_v58, %v494_v41  ;;  %vm514_vm4 = vcmp.lt.s32.totalorder %v492_v33, 4  ;;  %v598_v63 = vsub.s32 32, %v597_v38 }
  0x18   :  { %v498_v60 = vor.u32 %v497_v54, %v496_v43  ;;  %v501_v61 = vor.u32 %v500_v55, %v499_v45  ;;  %v504_v62 = vor.u32 %v503_v56, %v502_v47  ;;  %vm513_vm5 = vcmp.lt.s32.totalorder %v492_v33, 3 }
  0x19   :  { %v507_v0 = vor.u32 %v506_v57, %v505_v49  ;;  %v510_v1 = vor.u32 %v509_v59, %v508_v51  ;;  %v600_v2 = vshll.u32 %v7908_v42, %v597_v38  ;;  %v603_v16 = vshll.u32 %v7909_v44, %v597_v38 }
  0x1a   :  { %v515_v3 = vsel %vm511_vm2, %v495_v53, %v498_v60  ;;  %v516_v4 = vsel %vm514_vm4, %v504_v62, 2102212464  ;;  %v519_v6 = vsel %vm511_vm2, %v498_v60, %v501_v61  ;;  %v523_v7 = vsel %vm511_vm2, %v501_v61, %v504_v62 }
  0x1b   :  { %v517_v8 = vsel %vm513_vm5, %v501_v61, %v516_v4  ;;  %v520_v9 = vsel %vm514_vm4, %v507_v0, 920167782  ;;  %v524_v14 = vsel %vm514_vm4, %v510_v1, 1326507024  ;;  %v599_v19 = vshrl.u32 %v7908_v42, %v598_v63 }
  0x1c   :  { %v521_v17 = vsel %vm513_vm5, %v504_v62, %v520_v9  ;;  %v525_v18 = vsel %vm513_vm5, %v507_v0, %v524_v14  ;;  %v601_v20 = vshrl.u32 %v7909_v44, %v598_v63  ;;  %v518_v21 = vsel %vm512_vm3, %v515_v3, %v517_v8 }
  0x1d   :  { %v522_v22 = vsel %vm512_vm3, %v519_v6, %v521_v17  ;;  %v526_v23 = vsel %vm512_vm3, %v523_v7, %v525_v18  ;;  %v604_v24 = vshrl.u32 %v7910_v46, %v598_v63  ;;  %v606_v31 = vshll.u32 %v7910_v46, %v597_v38 }
  0x1e   :  { %v8002_v25 = vmul.u32.u64.low %v7970_v37, %v526_v23  ;;  %v8003_v26 = vmul.u32.u64.high %v7970_v37, %v526_v23, %v8002_v25  ;;  %v8006_v27 = vmul.u32.u64.low %v7970_v37, %v522_v22  ;;  %v8007_v28 = vmul.u32.u64.high %v7970_v37, %v522_v22, %v8006_v27 }
  0x1f   :  { %v602_v29 = vor.u32 %v601_v20, %v600_v2  ;;  %v605_v30 = vor.u32 %v604_v24, %v603_v16  ;;  %v607_v34 = vshrl.u32 %v7911_v48, %v598_v63  ;;  %v609_v33 = vshll.u32 %v7911_v48, %v597_v38 }
  0x20   :  { %v610_v35 = vshrl.u32 %v7912_v50, %v598_v63  ;;  %v612_v41 = vshll.u32 %v7912_v50, %v597_v38  ;;  %v613_v43 = vshrl.u32 %v7913_v58, %v598_v63  ;;  %v534_v45 = vmul.u32 %v7970_v37, %v518_v21 }
  0x21   :  { %v608_v47 = vor.u32 %v607_v34, %v606_v31  ;;  %vm615_vm7 = vcmp.lt.s32.totalorder %v7981_v52, 1  ;;  %vm616_vm8 = vcmp.lt.s32.totalorder %v7981_v52, 2  ;;  %vm536_vm9 = vc.u32 %v8003_v26, %v8006_v27 }
  0x22   :  { %v537_v49 = vadd.s32 1, %v8007_v28  ;;  %v611_v51 = vor.u32 %v610_v35, %v609_v33  ;;  %vm617_vm10 = vcmp.lt.s32.totalorder %v7981_v52, 3  ;;  %v614_v53 = vor.u32 %v613_v43, %v612_v41 }
  0x23   :  { %vm618_vm11 = vcmp.lt.s32.totalorder %v7981_v52, 4  ;;  %v619_v38 = vsel %vm615_vm7, %v599_v19, %v602_v29  ;;  %v623_v54 = vsel %vm615_vm7, %v602_v29, %v605_v30  ;;  %v627_v57 = vsel %vm615_vm7, %v605_v30, %v608_v47 }
  0x24   :  { %v538_v37 = vsel %vm536_vm9, %v537_v49, %v8007_v28  ;;  %v620_v55 = vsel %vm618_vm11, %v608_v47, 2102212464  ;;  %v624_v56 = vsel %vm618_vm11, %v611_v51, 920167782  ;;  %v628_v62 = vsel %vm618_vm11, %v614_v53, 1326507024 }
  0x25   :  { %v539_v59 = vadd.s32 %v538_v37, %v534_v45  ;;  %v621_v60 = vsel %vm617_vm10, %v605_v30, %v620_v55  ;;  %v625_v61 = vsel %vm617_vm10, %v608_v47, %v624_v56  ;;  %v629_v1 = vsel %vm617_vm10, %v611_v51, %v628_v62 }
  0x26   :  { %v622_v63 = vsel %vm616_vm8, %v619_v38, %v621_v60  ;;  %v626_v0 = vsel %vm616_vm8, %v623_v54, %v625_v61  ;;  %v699_v2 = vsel %vm698_vm6, %v7974_v40, 0  ;;  %v630_v4 = vsel %vm616_vm8, %v627_v57, %v629_v1 }
  0x27   :  { %v540_v3 = vadd.s32 536870912, %v539_v59  ;;  %v8035_v6 = vmul.u32.u64.low %v7972_v39, %v626_v0  ;;  %v8036_v7 = vmul.u32.u64.high %v7972_v39, %v626_v0, %v8035_v6  ;;  %v8045_v14 = vmul.f32 %v7947_v5, %v7967_v32 }
  0x28   :  { %v8040_v8 = vmul.u32.u64.low %v7972_v39, %v630_v4  ;;  %v8041_v9 = vmul.u32.u64.high %v7972_v39, %v630_v4, %v8040_v8  ;;  %v694_v40 = vand.u32 8388607, %v687_v36  ;;  %v701_v52 = vand.u32 31, %v699_v2 }
  0x29   :  { %v8049_v16 = vshrl.u32 %v540_v3, 30  ;;  %v638_v17 = vmul.u32 %v7972_v39, %v622_v63  ;;  %v641_v19 = vadd.s32 1, %v8036_v7  ;;  %v794_v5 = vand.u32 2139095040, %v8045_v14 }
  0x2a   :  { %v702_v20 = vsub.s32 32, %v701_v52  ;;  %vm640_vm12 = vc.u32 %v8041_v9, %v8035_v6  ;;  %v695_v21 = vor.u32 8388608, %v694_v40  ;;  %v8060_v23 = vshrl.u32 %v699_v2, 5 }
  0x2b   :  { %v542_v18 = vshll.u32 %v8049_v16, 30  ;;  %v642_v22 = vsel %vm640_vm12, %v641_v19, %v8036_v7  ;;  %v791_v24 = vand.u32 2147483647, %v8045_v14  ;;  %v704_v25 = vshll.u32 %v7908_v42, %v701_v52 }
  0x2c   :  { %v643_v39 = vadd.s32 %v642_v22, %v638_v17  ;;  %v705_v28 = vshrl.u32 %v7909_v44, %v702_v20  ;;  %v707_v29 = vshll.u32 %v7909_v44, %v701_v52  ;;  %v708_v31 = vshrl.u32 %v7910_v46, %v702_v20 }
  0x2d   :  { %v8057_v32 = vsub.s32 %v539_v59, %v542_v18  ;;  %v710_v34 = vshll.u32 %v7910_v46, %v701_v52  ;;  %v711_v33 = vshrl.u32 %v7911_v48, %v702_v20  ;;  %v713_v41 = vshll.u32 %v7911_v48, %v701_v52 }
  0x2e   :  { %v644_v35 = vadd.s32 536870912, %v643_v39  ;;  %v8071_v43 = vshll.u32 %v695_v21, 8  ;;  %v795_v45 = vshrl.u32 %v794_v5, 23  ;;  %v535_v47 = vadd.s32 %v8006_v27, %v8003_v26 }
  0x2f   :  { %v545_v30 = vsub.s32 0, %v8057_v32  ;;  %v714_v51 = vshrl.u32 %v7912_v50, %v702_v20  ;;  %vm722_vm13 = vcmp.lt.s32.totalorder %v8060_v23, 4  ;;  %v703_v38 = vshrl.u32 %v7908_v42, %v702_v20 }
  0x30   :  { %v8078_v53 = vshrl.u32 %v644_v35, 30  ;;  %v716_v54 = vshll.u32 %v7912_v50, %v701_v52  ;;  %v717_v37 = vshrl.u32 %v7913_v58, %v702_v20  ;;  %v706_v56 = vor.u32 %v705_v28, %v704_v25 }
  0x31   :  { %v7526_v49 = vmin.u32 %v545_v30, %v8057_v32  ;;  %v709_v57 = vor.u32 %v708_v31, %v707_v29  ;;  %v712_v26 = vor.u32 %v711_v33, %v710_v34  ;;  %v715_v59 = vor.u32 %v714_v51, %v713_v41 }
  0x32   :  { %v646_v27 = vshll.u32 %v8078_v53, 30  ;;  %vm719_vm15 = vcmp.lt.s32.totalorder %v8060_v23, 1  ;;  %vm721_vm0 = vcmp.lt.s32.totalorder %v8060_v23, 3  ;;  %v718_v61 = vor.u32 %v717_v37, %v716_v54 }
  0x33   :  { %v547_v55 = vclz %v7526_v49  ;;  %v724_v62 = vsel %vm722_vm13, %v712_v26, 2102212464  ;;  %v7537_v63 = vadd.s32 4294967169, %v795_v45  ;;  %v565_v0 = vsub.s32 4, %v8049_v16 }
  0x34   :  { %v8090_v1 = vsub.s32 %v643_v39, %v646_v27  ;;  %vm720_vm1 = vcmp.lt.s32.totalorder %v8060_v23, 2  ;;  %v728_v2 = vsel %vm722_vm13, %v715_v59, 920167782  ;;  %v723_v3 = vsel %vm719_vm15, %v703_v38, %v706_v56 }
  0x35   :  { %v7527_v60 = vadd.s32 4294967294, %v547_v55  ;;  %v727_v4 = vsel %vm719_vm15, %v706_v56, %v709_v57  ;;  %v729_v7 = vsel %vm721_vm0, %v712_v26, %v728_v2  ;;  %v725_v52 = vsel %vm721_vm0, %v709_v57, %v724_v62 }
  0x36   :  { %v649_v40 = vsub.s32 0, %v8090_v1  ;;  %v731_v17 = vsel %vm719_vm15, %v709_v57, %v712_v26  ;;  %v732_v21 = vsel %vm722_vm13, %v718_v61, 1326507024  ;;  %v730_v22 = vsel %vm720_vm1, %v727_v4, %v729_v7 }
  0x37   :  { %vm7528_vm2 = vcmp.lt.s32.totalorder %v7527_v60, 0  ;;  %v733_v39 = vsel %vm721_vm0, %v715_v59, %v732_v21  ;;  %v8116_v25 = vand.u32 8388607, %v791_v24  ;;  %v801_v30 = vadd.s32 1, %v7537_v63 }
  0x38   :  { %v550_v8 = vsel %vm7528_vm2, 0, %v7527_v60  ;;  %v7530_v5 = vmin.u32 %v649_v40, %v8090_v1  ;;  %vm8122_vm3 = vcmp.le.f32.partialorder %v479_v13, 0.7853982  ;;  %v566_v34 = vsel %vm481_vm14, %v565_v0, %v8049_v16 }
  0x39   :  { %v551_v18 = vsub.s32 32, %v550_v8  ;;  %v552_v19 = vshll.u32 %v8057_v32, %v550_v8  ;;  %v555_v20 = vsub.s32 4294967266, %v550_v8  ;;  %v734_v32 = vsel %vm720_vm1, %v731_v17, %v733_v39 }
  0x3a   :  { %v651_v33 = vclz %v7530_v5  ;;  %v726_v35 = vsel %vm720_vm1, %v723_v3, %v725_v52  ;;  %v8136_v13 = vmul.u32.u64.low %v8071_v43, %v730_v22  ;;  %v8137_v38 = vmul.u32.u64.high %v8071_v43, %v730_v22, %v8136_v13 }
  0x3b   :  { %v553_v28 = vshrl.u32 %v535_v47, %v551_v18  ;;  %v556_v29 = vadd.s32 127, %v555_v20  ;;  %v8132_v47 = vmul.u32.u64.low %v8071_v43, %v734_v32  ;;  %v8133_v49 = vmul.u32.u64.high %v8071_v43, %v734_v32, %v8132_v47 }
  0x3c   :  { %v7531_v51 = vadd.s32 4294967294, %v651_v33  ;;  %vm802_vm4 = vcmp.gt.s32.totalorder %v801_v30, 0  ;;  %v799_v16 = vor.u32 8388608, %v8116_v25  ;;  %v568_v23 = vsel %vm8122_vm3, 0, %v566_v34 }
  0x3d   :  { %v554_v41 = vor.u32 %v553_v28, %v552_v19  ;;  %v557_v45 = vshll.u32 %v556_v29, 23  ;;  %v803_v55 = vsel %vm802_vm4, %v801_v30, 0  ;;  %v639_v56 = vadd.s32 %v8035_v6, %v8041_v9 }
  0x3e   :  { %vm7532_vm5 = vcmp.lt.s32.totalorder %v7531_v51, 0  ;;  %v805_v57 = vand.u32 31, %v803_v55  ;;  %v742_v59 = vmul.u32 %v8071_v43, %v726_v35  ;;  %vm744_vm6 = vc.u32 %v8133_v49, %v8136_v13 }
  0x3f   :  { %v558_v54 = vor.u32 4788187, %v557_v45  ;;  %v561_v37 = vcvt.s32.f32 %v554_v41  ;;  %v654_v27 = vsel %vm7532_vm5, 0, %v7531_v51  ;;  %v745_v63 = vadd.s32 1, %v8137_v38 }
  0x40   :  { %v655_v60 = vsub.s32 32, %v654_v27  ;;  %v656_v61 = vshll.u32 %v8090_v1, %v654_v27  ;;  %v659_v62 = vsub.s32 4294967266, %v654_v27  ;;  %v572_v2 = vadd.s32 3, %v568_v23 }
  0x41   :  { %v559_v26 = vand.u32 2147483647, %v558_v54  ;;  %v8150_v3 = vshrl.u32 %v803_v55, 5  ;;  %v806_v6 = vsub.s32 32, %v805_v57  ;;  %v746_v7 = vsel %vm744_vm6, %v745_v63, %v8137_v38 }
  0x42   :  { %v657_v9 = vshrl.u32 %v639_v56, %v655_v60  ;;  %v660_v4 = vadd.s32 127, %v659_v62  ;;  %v808_v43 = vshll.u32 %v7908_v42, %v805_v57  ;;  %vm585_vm7 = vcmp.lt.s32.totalorder %v7953_v11, 0 }
  0x43   :  { %v562_v0 = vmul.f32 %v561_v37, %v559_v26  ;;  %v747_v40 = vadd.s32 %v746_v7, %v742_v59  ;;  %v809_v1 = vshrl.u32 %v7909_v44, %v806_v6  ;;  %v811_v52 = vshll.u32 %v7909_v44, %v805_v57 }
  0x44   :  { %vm8159_vm8 = vcmp.le.f32.partialorder %v583_v15, 0.7853982  ;;  %v658_v18 = vor.u32 %v657_v9, %v656_v61  ;;  %v661_v19 = vshll.u32 %v660_v4, 23  ;;  %v812_v20 = vshrl.u32 %v7910_v46, %v806_v6 }
  0x45   :  { %v563_v8 = vxor.u32 2147483648, %v562_v0  ;;  %v814_v21 = vshll.u32 %v7910_v46, %v805_v57  ;;  %v748_v22 = vadd.s32 536870912, %v747_v40  ;;  %v815_v39 = vshrl.u32 %v7911_v48, %v806_v6 }
  0x46   :  { %v817_v44 = vshll.u32 %v7911_v48, %v805_v57  ;;  %v662_v25 = vor.u32 4788187, %v661_v19  ;;  %v665_v28 = vcvt.s32.f32 %v658_v18  ;;  %v810_v29 = vor.u32 %v809_v1, %v808_v43 }
  0x47   :  { %v564_v5 = vsel %vm481_vm14, %v563_v8, %v562_v0  ;;  %v8172_v32 = vshrl.u32 %v748_v22, 30  ;;  %v813_v30 = vor.u32 %v812_v20, %v811_v52  ;;  %v818_v46 = vshrl.u32 %v7912_v50, %v806_v6 }
  0x48   :  { %v567_v15 = vsel %vm8122_vm3, %v7950_v10, %v564_v5  ;;  %v663_v34 = vand.u32 2147483647, %v662_v25  ;;  %v820_v33 = vshll.u32 %v7912_v50, %v805_v57  ;;  %v821_v35 = vshrl.u32 %v7913_v58, %v806_v6 }
  0x49   :  { %7892 = vcosq.f32 %v567_v15  ;;  %v669_v48 = vsub.s32 4, %v8078_v53  ;;  %v750_v31 = vshll.u32 %v8172_v32, 30  ;;  %v819_v41 = vor.u32 %v818_v46, %v817_v44 }
  0x4a   :  { %7894 = vsinq.f32 %v567_v15  ;;  %vm823_vm9 = vcmp.lt.s32.totalorder %v8150_v3, 1  ;;  %v666_v45 = vmul.f32 %v665_v28, %v663_v34  ;;  %v807_v47 = vshrl.u32 %v7908_v42, %v806_v6 }
  0x4b   :  { %v816_v51 = vor.u32 %v815_v39, %v814_v21  ;;  %v8181_v38 = vshll.u32 %v799_v16, 8  ;;  %v8183_v54 = vsub.s32 %v747_v40, %v750_v31  ;;  %v822_v37 = vor.u32 %v821_v35, %v820_v33 }
  0x4c   :  { %vm825_vm10 = vcmp.lt.s32.totalorder %v8150_v3, 3  ;;  %vm826_vm11 = vcmp.lt.s32.totalorder %v8150_v3, 4  ;;  %v667_v50 = vxor.u32 2147483648, %v666_v45  ;;  %vm824_vm12 = vcmp.lt.s32.totalorder %v8150_v3, 2 }
  0x4d   :  { %v828_v58 = vsel %vm826_vm11, %v816_v51, 2102212464  ;;  %v831_v55 = vsel %vm823_vm9, %v810_v29, %v813_v30  ;;  %v8192_v42 = vand.u32 3, %v572_v2  ;;  %v670_v16 = vsel %vm585_vm7, %v669_v48, %v8078_v53 }
  0x4e   :  { %v753_v23 = vsub.s32 0, %v8183_v54  ;;  %v832_v56 = vsel %vm826_vm11, %v819_v41, 920167782  ;;  %v668_v57 = vsel %vm585_vm7, %v667_v50, %v666_v45  ;;  %v827_v26 = vsel %vm823_vm9, %v807_v47, %v810_v29 }
  0x4f   :  { %v829_v27 = vsel %vm825_vm10, %v813_v30, %v828_v58  ;;  %v833_v59 = vsel %vm825_vm10, %v816_v51, %v832_v56  ;;  %v671_v53 = vsel %vm8159_vm8, %v7953_v11, %v668_v57  ;;  %v835_v62 = vsel %vm823_vm9, %v813_v30, %v816_v51 }
  0x50   :  { %v7534_v60 = vmin.u32 %v753_v23, %v8183_v54  ;;  %v834_v61 = vsel %vm824_vm12, %v831_v55, %v833_v59  ;;  %7896 = vcosq.f32 %v671_v53  ;;  %v836_v63 = vsel %vm826_vm11, %v822_v37, 1326507024 }
  0x51   :  { %v8219_v0 = vmul.u32.u64.low %v8181_v38, %v834_v61  ;;  %v8220_v2 = vmul.u32.u64.high %v8181_v38, %v834_v61, %v8219_v0  ;;  %7898 = vsinq.f32 %v671_v53  ;;  %v672_v9 = vsel %vm8159_vm8, 0, %v670_v16 }
  0x52   :  { %v755_v6 = vclz %v7534_v60  ;;  %v8227_v4 = vsel %vm824_vm12, %v827_v26, %v829_v27  ;;  %v837_v7 = vsel %vm825_vm10, %v819_v41, %v836_v63  ;;  %v7914_v40 = vmov 0.0|0.0  }
  0x53   :  { %v8235_v8 = vsel %vm824_vm12, %v835_v62, %v837_v7  ;;  %v7785_v1 = vcombine.low %v7914_v40, %v7914_v40  ;;  %v8237_v52 = vcombine.high %v7914_v40, %v7914_v40  ;;  %vm578_vm13 = vcmp.eq.s32.totalorder %v8192_v42, 2 }
  0x54   :  { %v8231_v43 = vadd.s32 4294967294, %v755_v6  ;;  %v8244_v17 = vmul.u32.u64.low %v8181_v38, %v8235_v8  ;;  %v8245_v19 = vmul.u32.u64.high %v8181_v38, %v8235_v8, %v8244_v17  ;;  %v8251_v21 = vadd.s32 3, %v672_v9 }
  0x55   :  { %v8255_v5 = vadd.s32 1, %v8220_v2  ;;  %7459 = vst [vmem:[%s8526_s3 + $0x10] sm:$0xf] %v7785_v1  ;;  %7461 = vst [vmem:[%s8526_s3 + $0x18] sm:$0xf] %v7785_v1  ;;  %v743_v39 = vadd.s32 %v8136_v13, %v8133_v49  ;;  %v846_v15 = vmul.u32 %v8181_v38, %v8227_v4  ;;  %vm575_vm15 = vcmp.eq.s32.totalorder %v8192_v42, 0 }
  0x56   :  { %v8239_v18 = vpop.eup %7892  ;;  %vm7536_vm14 = vcmp.lt.s32.totalorder %v8231_v43, 0  ;;  %7463 = vst [vmem:[%s8526_s3 + $0x20] sm:$0xf] %v7785_v1  ;;  %7465 = vst [vmem:[%s8526_s3 + $0x28] sm:$0xf] %v7785_v1  ;;  %vm574_vm0 = vcmp.lt.s32.totalorder %v8192_v42, 2  ;;  %vm848_vm1 = vc.u32 %v8245_v19, %v8219_v0  ;;  %vm571_vm2 = vweird.f32 %v7950_v10 }
  0x57   :  { %v8248_v20 = vpop.eup %7894  ;;  %v579_v3 = vxor.u32 2147483648, %v8239_v18  ;;  %7467 = vst [vmem:[%s8526_s3 + $0x30] sm:$0xf] %v7785_v1  ;;  %7469 = vst [vmem:[%s8526_s3 + $0x38] sm:$0xf] %v7785_v1  ;;  %v758_v44 = vsel %vm7536_vm14, 0, %v8231_v43  ;;  %v850_v30 = vsel %vm848_vm1, %v8255_v5, %v8220_v2  ;;  %vm675_vm6 = vweird.f32 %v7953_v11 }
  0x58   :  { %7471 = vst [vmem:[%s8526_s3 + $0x40] sm:$0xf] %v7785_v1  ;;  %7473 = vst [vmem:[%s8526_s3 + $0x48] sm:$0xf] %v7785_v1  ;;  %v576_v22 = vxor.u32 2147483648, %v8248_v20  ;;  %v759_v25 = vsub.s32 32, %v758_v44  ;;  %v760_v34 = vshll.u32 %v8183_v54, %v758_v44  ;;  %v851_v35 = vadd.s32 %v850_v30, %v846_v15 }
  0x59   :  { %7475 = vst [vmem:[%s8526_s3 + $0x50] sm:$0xf] %v7785_v1  ;;  %7477 = vst [vmem:[%s8526_s3 + $0x58] sm:$0xf] %v7785_v1  ;;  %v763_v28 = vsub.s32 4294967266, %v758_v44  ;;  %v580_v49 = vsel %vm578_vm13, %v579_v3, %v8248_v20  ;;  %v677_v13 = vand.u32 3, %v8251_v21  ;;  %v847_v63 = vadd.s32 %v8219_v0, %v8245_v19 }
  0x5a   :  { %7479 = vst [vmem:[%s8526_s3 + $0x60] sm:$0xf] %v7785_v1  ;;  %7481 = vst [vmem:[%s8526_s3 + $0x68] sm:$0xf] %v7785_v1  ;;  %v577_v46 = vsel %vm575_vm15, %v8239_v18, %v576_v22  ;;  %v761_v33 = vshrl.u32 %v743_v39, %v759_v25  ;;  %v852_v31 = vadd.s32 536870912, %v851_v35  ;;  %vm689_vm7 = vcmp.lt.s32.totalorder %v7956_v12, 0 }
  0x5b   :  { %7483 = vst [vmem:[%s8526_s3 + $0x70] sm:$0xf] %v7785_v1  ;;  %7485 = vst [vmem:[%s8526_s3 + $0x78] sm:$0xf] %v7785_v1  ;;  %v764_v29 = vadd.s32 127, %v763_v28  ;;  %v581_v45 = vsel %vm574_vm0, %v577_v46, %v580_v49  ;;  %vm679_vm3 = vcmp.eq.s32.totalorder %v677_v13, 0  ;;  %vm779_vm0 = vweird.f32 %v7956_v12 }
  0x5c   :  { %7487 = vst [vmem:[%s8526_s3 + $0x80] sm:$0xf] %v7785_v1  ;;  %7489 = vst [vmem:[%s8526_s3 + $0x88] sm:$0xf] %v7785_v1  ;;  %vm682_vm4 = vcmp.eq.s32.totalorder %v677_v13, 2  ;;  %v762_v38 = vor.u32 %v761_v33, %v760_v34  ;;  %v853_v50 = vshrl.u32 %v852_v31, 30 }
  0x5d   :  { %7491 = vst [vmem:[%s8526_s3 + $0x90] sm:$0xf] %v7785_v1  ;;  %7493 = vst [vmem:[%s8526_s3 + $0x98] sm:$0xf] %v7785_v1  ;;  %v765_v48 = vshll.u32 %v764_v29, 23  ;;  %v7897_v41 = vpop.eup %7896  ;;  %vm678_vm5 = vcmp.lt.s32.totalorder %v677_v13, 2 }
  0x5e   :  { %7495 = vst [vmem:[%s8526_s3 + $0xa0] sm:$0xf] %v7785_v1  ;;  %7497 = vst [vmem:[%s8526_s3 + $0xa8] sm:$0xf] %v7785_v1  ;;  %v7899_v47 = vpop.eup %7898  ;;  %v683_v51 = vxor.u32 2147483648, %v7897_v41  ;;  %v854_v55 = vshll.u32 %v853_v50, 30  ;;  %v769_v57 = vcvt.s32.f32 %v762_v38 }
  0x5f   :  { %7499 = vst [vmem:[%s8526_s3 + $0xb0] sm:$0xf] %v7785_v1  ;;  %7501 = vst [vmem:[%s8526_s3 + $0xb8] sm:$0xf] %v7785_v1  ;;  %v766_v37 = vor.u32 4788187, %v765_v48 }
  0x60   :  { %7503 = vst [vmem:[%s8526_s3 + $0xc0] sm:$0xf] %v7785_v1  ;;  %7505 = vst [vmem:[%s8526_s3 + $0xc8] sm:$0xf] %v7785_v1  ;;  %v680_v58 = vxor.u32 2147483648, %v7899_v47  ;;  %v684_v54 = vsel %vm682_vm4, %v683_v51, %v7899_v47  ;;  %v582_v42 = vsel %vm571_vm2, nan, %v581_v45  ;;  %v855_v10 = vsub.s32 %v851_v35, %v854_v55 }
  0x61   :  { %7507 = vst [vmem:[%s8526_s3 + $0xd0] sm:$0xf] %v7785_v1  ;;  %7509 = vst [vmem:[%s8526_s3 + $0xd8] sm:$0xf] %v7785_v1  ;;  %v767_v56 = vand.u32 2147483647, %v766_v37 }
  0x62   :  { %7511 = vst [vmem:[%s8526_s3 + $0xe0] sm:$0xf] %v7785_v1  ;;  %7513 = vst [vmem:[%s8526_s3 + $0xe8] sm:$0xf] %v7785_v1  ;;  %v681_v16 = vsel %vm679_vm3, %v7897_v41, %v680_v58  ;;  %v857_v59 = vsub.s32 0, %v855_v10  ;;  %vm793_vm10 = vcmp.lt.s32.totalorder %v8045_v14, 0  ;;  %vm883_vm3 = vweird.f32 %v8045_v14 }
  0x63   :  { %7515 = vst [vmem:[%s8526_s3 + $0xf0] sm:$0xf] %v7785_v1  ;;  %7517 = vst [vmem:[%s8526_s3 + $0xf8] sm:$0xf] %v7785_v1  ;;  %v685_v23 = vsel %vm678_vm5, %v681_v16, %v684_v54  ;;  %v770_v53 = vmul.f32 %v769_v57, %v767_v56  ;;  %vm8499_vm9 = vcmp.le.f32.partialorder %v687_v36, 0.7853982 }
  0x64   :  { %7460 = vst [vmem:[%s8526_s3 + $0x14] sm:$0xf] %v8237_v52  ;;  %7462 = vst [vmem:[%s8526_s3 + $0x1c] sm:$0xf] %v8237_v52  ;;  %v686_v26 = vsel %vm675_vm6, nan, %v685_v23  ;;  %v7538_v60 = vmin.u32 %v857_v59, %v855_v10  ;;  %v773_v36 = vsub.s32 4, %v8172_v32 }
  0x65   :  { %7464 = vst [vmem:[%s8526_s3 + $0x24] sm:$0xf] %v8237_v52  ;;  %7466 = vst [vmem:[%s8526_s3 + $0x2c] sm:$0xf] %v8237_v52  ;;  %v7860_v27 = vpack.c.bf16 %v686_v26, %v582_v42  ;;  %v771_v62 = vxor.u32 2147483648, %v770_v53  ;;  %v877_v21 = vsub.s32 4, %v853_v50 }
  0x66   :  { %7468 = vst [vmem:[%s8526_s3 + $0x34] sm:$0xf] %v8237_v52  ;;  %7470 = vst [vmem:[%s8526_s3 + $0x3c] sm:$0xf] %v8237_v52  ;;  %v859_v61 = vclz %v7538_v60  ;;  %v774_v20 = vsel %vm689_vm7, %v773_v36, %v8172_v32  ;;  %vm792_vm11 = vcmp.le.f32.partialorder %v791_v24, 0.7853982 }
  0x67   :  { %7472 = vst [vmem:[%s8526_s3 + $0x44] sm:$0xf] %v8237_v52  ;;  %7474 = vst [vmem:[%s8526_s3 + $0x4c] sm:$0xf] %v8237_v52  ;;  %v772_v9 = vsel %vm689_vm7, %v771_v62, %v770_v53  ;;  %v776_v22 = vsel %vm8499_vm9, 0, %v774_v20  ;;  %v878_v44 = vsel %vm793_vm10, %v877_v21, %v853_v50 }
  0x68   :  { %7476 = vst [vmem:[%s8526_s3 + $0x54] sm:$0xf] %v8237_v52  ;;  %7478 = vst [vmem:[%s8526_s3 + $0x5c] sm:$0xf] %v8237_v52  ;;  %v7539_v11 = vadd.s32 4294967294, %v859_v61  ;;  %v775_v0 = vsel %vm8499_vm9, %v7956_v12, %v772_v9  ;;  %v780_v25 = vadd.s32 3, %v776_v22 }
  0x69   :  { %7480 = vst [vmem:[%s8526_s3 + $0x64] sm:$0xf] %v8237_v52  ;;  %7482 = vst [vmem:[%s8526_s3 + $0x6c] sm:$0xf] %v8237_v52  ;;  %7900 = vcosq.f32 %v775_v0  ;;  %v880_v28 = vsel %vm792_vm11, 0, %v878_v44 }
  0x6a   :  { %7484 = vst [vmem:[%s8526_s3 + $0x74] sm:$0xf] %v8237_v52  ;;  %7486 = vst [vmem:[%s8526_s3 + $0x7c] sm:$0xf] %v8237_v52  ;;  %vm7540_vm8 = vcmp.lt.s32.totalorder %v7539_v11, 0  ;;  %7902 = vsinq.f32 %v775_v0  ;;  %v781_v13 = vand.u32 3, %v780_v25 }
  0x6b   :  { %7488 = vst [vmem:[%s8526_s3 + $0x84] sm:$0xf] %v8237_v52  ;;  %7490 = vst [vmem:[%s8526_s3 + $0x8c] sm:$0xf] %v8237_v52  ;;  %v862_v6 = vsel %vm7540_vm8, 0, %v7539_v11  ;;  %v884_v29 = vadd.s32 3, %v880_v28 }
  0x6c   :  { %7492 = vst [vmem:[%s8526_s3 + $0x94] sm:$0xf] %v8237_v52  ;;  %7494 = vst [vmem:[%s8526_s3 + $0x9c] sm:$0xf] %v8237_v52  ;;  %v863_v4 = vsub.s32 32, %v862_v6  ;;  %v864_v7 = vshll.u32 %v855_v10, %v862_v6  ;;  %v867_v43 = vsub.s32 4294967266, %v862_v6 }
  0x6d   :  { %7496 = vst [vmem:[%s8526_s3 + $0xa4] sm:$0xf] %v8237_v52  ;;  %7498 = vst [vmem:[%s8526_s3 + $0xac] sm:$0xf] %v8237_v52  ;;  %vm783_vm12 = vcmp.eq.s32.totalorder %v781_v13, 0  ;;  %vm786_vm13 = vcmp.eq.s32.totalorder %v781_v13, 2 }
  0x6e   :  { %7500 = vst [vmem:[%s8526_s3 + $0xb4] sm:$0xf] %v8237_v52  ;;  %7502 = vst [vmem:[%s8526_s3 + $0xbc] sm:$0xf] %v8237_v52  ;;  %v865_v8 = vshrl.u32 %v847_v63, %v863_v4  ;;  %v868_v40 = vadd.s32 127, %v867_v43  ;;  %v885_v24 = vand.u32 3, %v884_v29 }
  0x6f   :  { %7504 = vst [vmem:[%s8526_s3 + $0xc4] sm:$0xf] %v8237_v52  ;;  %7506 = vst [vmem:[%s8526_s3 + $0xcc] sm:$0xf] %v8237_v52  ;;  %vm782_vm14 = vcmp.lt.s32.totalorder %v781_v13, 2 }
  0x70   :  { %7508 = vst [vmem:[%s8526_s3 + $0xd4] sm:$0xf] %v8237_v52  ;;  %7510 = vst [vmem:[%s8526_s3 + $0xdc] sm:$0xf] %v8237_v52  ;;  %v866_v1 = vor.u32 %v865_v8, %v864_v7  ;;  %vm890_vm15 = vcmp.eq.s32.totalorder %v885_v24, 2  ;;  %vm887_vm1 = vcmp.eq.s32.totalorder %v885_v24, 0 }
  0x71   :  { %7512 = vst [vmem:[%s8526_s3 + $0xe4] sm:$0xf] %v8237_v52  ;;  %7514 = vst [vmem:[%s8526_s3 + $0xec] sm:$0xf] %v8237_v52  ;;  %vm886_vm2 = vcmp.lt.s32.totalorder %v885_v24, 2 }
  0x72   :  { %7516 = vst [vmem:[%s8526_s3 + $0xf4] sm:$0xf] %v8237_v52  ;;  %7518 = vst [vmem:[%s8526_s3 + $0xfc] sm:$0xf] %v8237_v52  ;;  %v869_v52 = vshll.u32 %v868_v40, 23  ;;  %v873_v17 = vcvt.s32.f32 %v866_v1 }
  0x73   :  { %7861 = vst [vmem:[%s8526_s3] sm:$0xff] %v7860_v27  }
  0x74   :  { %v870_v18 = vor.u32 4788187, %v869_v52 }
  0x76   :  { %v871_v19 = vand.u32 2147483647, %v870_v18  ;;  %v7901_v32 = vpop.eup %7900 }
  0x77   :  { %v7903_v49 = vpop.eup %7902  ;;  %v787_v46 = vxor.u32 2147483648, %v7901_v32 }
  0x78   :  { %v874_v3 = vmul.f32 %v873_v17, %v871_v19  ;;  %v784_v30 = vxor.u32 2147483648, %v7903_v49 }
  0x79   :  { %v788_v33 = vsel %vm786_vm13, %v787_v46, %v7903_v49 }
  0x7a   :  { %v875_v5 = vxor.u32 2147483648, %v874_v3  ;;  %v785_v34 = vsel %vm783_vm12, %v7901_v32, %v784_v30 }
  0x7b   :  { %v789_v31 = vsel %vm782_vm14, %v785_v34, %v788_v33 }
  0x7c   :  { %v876_v39 = vsel %vm793_vm10, %v875_v5, %v874_v3  ;;  %v790_v51 = vsel %vm779_vm0, nan, %v789_v31 }
  0x7d   :  { %v879_v15 = vsel %vm792_vm11, %v8045_v14, %v876_v39 }
  0x7e   :  { %7904 = vcosq.f32 %v879_v15 }
  0x7f   :  { %7906 = vsinq.f32 %v879_v15 }
  0x8b   :  { %v7905_v35 = vpop.eup %7904 }
  0x8c   :  { %v7907_v48 = vpop.eup %7906  ;;  %v891_v41 = vxor.u32 2147483648, %v7905_v35 }
  0x8d   :  { %v888_v45 = vxor.u32 2147483648, %v7907_v48 }
  0x8e   :  { %v892_v47 = vsel %vm890_vm15, %v891_v41, %v7907_v48 }
  0x8f   :  { %v889_v38 = vsel %vm887_vm1, %v7905_v35, %v888_v45 }
  0x90   :  { %v893_v37 = vsel %vm886_vm2, %v889_v38, %v892_v47 }
  0x91   :  { %v894_v50 = vsel %vm883_vm3, nan, %v893_v37 }
  0x92   :  { %v7865_v58 = vpack.c.bf16 %v894_v50, %v790_v51 }
  0x94   :  { %7868 = vst [vmem:[%s8526_s3 + $0x8] sm:$0xff] %v7865_v58  }

// kernel: eegnn_forward.14
= control target key start
LH: loop header
LB: loop body
LE: loop exit
PB: predicated region body
PF: predicated region fallthrough
CT: control target
= control target key end

     0   :  { %v1788_v40 = vmov 0.0|0.0   ;;  %vm1478_vm0 = vcmask 1040384   ;;  %vm1480_vm1 = vcmask 1041408   ;;  %s2264_s1 = inlined_call_operand.vmem [shape: bf16[128,128], index: 1, kind: input, shape index: {}]   ;;  %s2265_s0 = inlined_call_operand.vmem [shape: bf16[512,128], index: 0, kind: input, shape index: {}]   ;;  %s2266_s3 = inlined_call_operand.vmem [shape: bf16[512,128], index: 3, kind: output, shape index: {0}]   ;;  %s2267_s2 = inlined_call_operand.vmem [shape: f32[1,128], index: 2, kind: input, shape index: {}]   ;;  %s2268_s4 = inlined_call_operand.vmem [shape: f32[8,128], index: 4, kind: output, shape index: {1}]  }
   0x1   :  { %v1748_v0 = vld [vmem:[%s2264_s1 + $0x38] sm:$0xff]   ;;  %v1749_v1 = vld [vmem:[%s2264_s1 + $0x30] sm:$0xff]   ;;  %v1750_v2 = vld [vmem:[%s2264_s1 + $0x28] sm:$0xff]   ;;  %v1536_v41 = vcombine.low %v1788_v40, %v1788_v40  ;;  %v1537_v42 = vcombine.high %v1788_v40, %v1788_v40 }
   0x2   :  { %1651 = vmatprep.subr.bf16.mxu0 %v1748_v0  ;;  %1731 = vmatprep.subr.bf16.mxu1 %v1748_v0  ;;  %v1751_v3 = vld [vmem:[%s2264_s1 + $0x20] sm:$0xff]   ;;  %v1752_v6 = vld [vmem:[%s2264_s1 + $0x18] sm:$0xff]   ;;  %v1753_v7 = vld [vmem:[%s2264_s1 + $0x10] sm:$0xff]  }
   0x3   :  { %1652 = vmatpush3.bf16.msra.mxu0 %v1748_v0  ;;  %1739 = vmatpush3.bf16.msra.mxu1 %v1748_v0  ;;  %v1756_v4 = vld [vmem:[%s2265_s0] sm:$0xff]   ;;  %v1754_v8 = vld [vmem:[%s2264_s1 + $0x8] sm:$0xff]   ;;  %v1760_v12 = vld [vmem:[%s2265_s0 + $0x10] sm:$0xff]   ;;  %1152 = vst [vmem:[%s2266_s3 + $0x10] sm:$0xf] %v1536_v41 }
   0x4   :  { %1653 = vmatprep.subr.bf16.mxu0 %v1749_v1  ;;  %1732 = vmatprep.subr.bf16.mxu1 %v1749_v1  ;;  %v1758_v5 = vld [vmem:[%s2265_s0 + $0x80] sm:$0xff]   ;;  %v1757_v10 = vld [vmem:[%s2265_s0 + $0x8] sm:$0xff]   ;;  %v1761_v13 = vld [vmem:[%s2265_s0 + $0x90] sm:$0xff]   ;;  %1153 = vst [vmem:[%s2266_s3 + $0x14] sm:$0xf] %v1537_v42 }
   0x5   :  { %1667 = vmatprep.mubr.bf16.mxu0 %v1756_v4  ;;  %1699 = vmatprep.mubr.bf16.mxu1 %v1758_v5  ;;  %v1755_v9 = vld [vmem:[%s2264_s1] sm:$0xff]   ;;  %v1759_v11 = vld [vmem:[%s2265_s0 + $0x88] sm:$0xff]   ;;  %v1762_v14 = vld [vmem:[%s2265_s0 + $0x18] sm:$0xff]   ;;  %1154 = vst [vmem:[%s2266_s3 + $0x18] sm:$0xf] %v1536_v41 }
   0x6   :  { %v1763_v15 = vld [vmem:[%s2265_s0 + $0x98] sm:$0xff]   ;;  %v1764_v16 = vld [vmem:[%s2265_s0 + $0x20] sm:$0xff]   ;;  %v1766_v18 = vld [vmem:[%s2265_s0 + $0x28] sm:$0xff]   ;;  %1155 = vst [vmem:[%s2266_s3 + $0x1c] sm:$0xf] %v1537_v42 }
   0x7   :  { %1654 = vmatpush3.bf16.msra.mxu0 %v1749_v1  ;;  %1740 = vmatpush3.bf16.msra.mxu1 %v1749_v1  ;;  %v1765_v17 = vld [vmem:[%s2265_s0 + $0xa0] sm:$0xff]   ;;  %v1767_v19 = vld [vmem:[%s2265_s0 + $0xa8] sm:$0xff]   ;;  %v1768_v20 = vld [vmem:[%s2265_s0 + $0x30] sm:$0xff]   ;;  %1156 = vst [vmem:[%s2266_s3 + $0x20] sm:$0xf] %v1536_v41  ;;  %v2128_v1 = vunpack.c.l.bf16 %v1788_v40 }
   0x8   :  { %1655 = vmatprep.subr.bf16.mxu0 %v1750_v2  ;;  %1733 = vmatprep.subr.bf16.mxu1 %v1750_v2  ;;  %v1769_v21 = vld [vmem:[%s2265_s0 + $0xb0] sm:$0xff]   ;;  %v1770_v22 = vld [vmem:[%s2265_s0 + $0x38] sm:$0xff]   ;;  %v1772_v24 = vld [vmem:[%s2265_s0 + $0x40] sm:$0xff]   ;;  %1157 = vst [vmem:[%s2266_s3 + $0x24] sm:$0xf] %v1537_v42 }
   0x9   :  { %v1771_v23 = vld [vmem:[%s2265_s0 + $0xb8] sm:$0xff]   ;;  %v1773_v25 = vld [vmem:[%s2265_s0 + $0xc0] sm:$0xff]   ;;  %v1774_v26 = vld [vmem:[%s2265_s0 + $0x48] sm:$0xff]   ;;  %1158 = vst [vmem:[%s2266_s3 + $0x28] sm:$0xf] %v1536_v41 }
   0xa   :  { %v1775_v27 = vld [vmem:[%s2265_s0 + $0xc8] sm:$0xff]   ;;  %v1776_v28 = vld [vmem:[%s2265_s0 + $0x50] sm:$0xff]   ;;  %v1778_v30 = vld [vmem:[%s2265_s0 + $0x58] sm:$0xff]   ;;  %1159 = vst [vmem:[%s2266_s3 + $0x2c] sm:$0xf] %v1537_v42 }
   0xb   :  { %1656 = vmatpush3.bf16.msra.mxu0 %v1750_v2  ;;  %1741 = vmatpush3.bf16.msra.mxu1 %v1750_v2  ;;  %v1777_v29 = vld [vmem:[%s2265_s0 + $0xd0] sm:$0xff]   ;;  %v1779_v31 = vld [vmem:[%s2265_s0 + $0xd8] sm:$0xff]   ;;  %v1780_v32 = vld [vmem:[%s2265_s0 + $0x60] sm:$0xff]   ;;  %1160 = vst [vmem:[%s2266_s3 + $0x30] sm:$0xf] %v1536_v41 }
   0xc   :  { %1657 = vmatprep.subr.bf16.mxu0 %v1751_v3  ;;  %1734 = vmatprep.subr.bf16.mxu1 %v1751_v3  ;;  %v1781_v33 = vld [vmem:[%s2265_s0 + $0xe0] sm:$0xff]   ;;  %v1782_v34 = vld [vmem:[%s2265_s0 + $0x68] sm:$0xff]   ;;  %v1784_v36 = vld [vmem:[%s2265_s0 + $0x70] sm:$0xff]   ;;  %1161 = vst [vmem:[%s2266_s3 + $0x34] sm:$0xf] %v1537_v42 }
   0xd   :  { %v1783_v35 = vld [vmem:[%s2265_s0 + $0xe8] sm:$0xff]   ;;  %v1785_v37 = vld [vmem:[%s2265_s0 + $0xf0] sm:$0xff]   ;;  %v1786_v38 = vld [vmem:[%s2265_s0 + $0x78] sm:$0xff]   ;;  %1162 = vst [vmem:[%s2266_s3 + $0x38] sm:$0xf] %v1536_v41 }
   0xe   :  { %v1787_v39 = vld [vmem:[%s2265_s0 + $0xf8] sm:$0xff]   ;;  %1163 = vst [vmem:[%s2266_s3 + $0x3c] sm:$0xf] %v1537_v42  ;;  %1164 = vst [vmem:[%s2266_s3 + $0x40] sm:$0xf] %v1536_v41 }
   0xf   :  { %1658 = vmatpush3.bf16.msra.mxu0 %v1751_v3  ;;  %1742 = vmatpush3.bf16.msra.mxu1 %v1751_v3  ;;  %1165 = vst [vmem:[%s2266_s3 + $0x44] sm:$0xf] %v1537_v42  ;;  %1166 = vst [vmem:[%s2266_s3 + $0x48] sm:$0xf] %v1536_v41  ;;  %v1491_v45 = vld [vmem:[%s2267_s2] ss:$0 sm:$0xff] }
  0x10   :  { %1659 = vmatprep.subr.bf16.mxu0 %v1752_v6  ;;  %1735 = vmatprep.subr.bf16.mxu1 %v1752_v6  ;;  %1167 = vst [vmem:[%s2266_s3 + $0x4c] sm:$0xf] %v1537_v42  ;;  %1168 = vst [vmem:[%s2266_s3 + $0x50] sm:$0xf] %v1536_v41 }
  0x11   :  { %1169 = vst [vmem:[%s2266_s3 + $0x54] sm:$0xf] %v1537_v42  ;;  %1170 = vst [vmem:[%s2266_s3 + $0x58] sm:$0xf] %v1536_v41 }
  0x12   :  { %1171 = vst [vmem:[%s2266_s3 + $0x5c] sm:$0xf] %v1537_v42  ;;  %1172 = vst [vmem:[%s2266_s3 + $0x60] sm:$0xf] %v1536_v41 }
  0x13   :  { %1660 = vmatpush3.bf16.msra.mxu0 %v1752_v6  ;;  %1743 = vmatpush3.bf16.msra.mxu1 %v1752_v6  ;;  %1173 = vst [vmem:[%s2266_s3 + $0x64] sm:$0xf] %v1537_v42  ;;  %1174 = vst [vmem:[%s2266_s3 + $0x68] sm:$0xf] %v1536_v41 }
  0x14   :  { %1661 = vmatprep.subr.bf16.mxu0 %v1753_v7  ;;  %1736 = vmatprep.subr.bf16.mxu1 %v1753_v7  ;;  %1175 = vst [vmem:[%s2266_s3 + $0x6c] sm:$0xf] %v1537_v42  ;;  %1176 = vst [vmem:[%s2266_s3 + $0x70] sm:$0xf] %v1536_v41 }
  0x15   :  { %1177 = vst [vmem:[%s2266_s3 + $0x74] sm:$0xf] %v1537_v42  ;;  %1178 = vst [vmem:[%s2266_s3 + $0x78] sm:$0xf] %v1536_v41 }
  0x16   :  { %1179 = vst [vmem:[%s2266_s3 + $0x7c] sm:$0xf] %v1537_v42  ;;  %1180 = vst [vmem:[%s2266_s3 + $0x80] sm:$0xf] %v1536_v41 }
  0x17   :  { %1662 = vmatpush3.bf16.msra.mxu0 %v1753_v7  ;;  %1744 = vmatpush3.bf16.msra.mxu1 %v1753_v7  ;;  %1181 = vst [vmem:[%s2266_s3 + $0x84] sm:$0xf] %v1537_v42  ;;  %1182 = vst [vmem:[%s2266_s3 + $0x88] sm:$0xf] %v1536_v41 }
  0x18   :  { %1663 = vmatprep.subr.bf16.mxu0 %v1754_v8  ;;  %1737 = vmatprep.subr.bf16.mxu1 %v1754_v8  ;;  %1183 = vst [vmem:[%s2266_s3 + $0x8c] sm:$0xf] %v1537_v42  ;;  %1184 = vst [vmem:[%s2266_s3 + $0x90] sm:$0xf] %v1536_v41 }
  0x19   :  { %1185 = vst [vmem:[%s2266_s3 + $0x94] sm:$0xf] %v1537_v42  ;;  %1186 = vst [vmem:[%s2266_s3 + $0x98] sm:$0xf] %v1536_v41 }
  0x1a   :  { %1187 = vst [vmem:[%s2266_s3 + $0x9c] sm:$0xf] %v1537_v42  ;;  %1188 = vst [vmem:[%s2266_s3 + $0xa0] sm:$0xf] %v1536_v41 }
  0x1b   :  { %1664 = vmatpush3.bf16.msra.mxu0 %v1754_v8  ;;  %1745 = vmatpush3.bf16.msra.mxu1 %v1754_v8  ;;  %1189 = vst [vmem:[%s2266_s3 + $0xa4] sm:$0xf] %v1537_v42  ;;  %1190 = vst [vmem:[%s2266_s3 + $0xa8] sm:$0xf] %v1536_v41 }
  0x1c   :  { %1665 = vmatprep.subr.bf16.mxu0 %v1755_v9  ;;  %1738 = vmatprep.subr.bf16.mxu1 %v1755_v9  ;;  %1191 = vst [vmem:[%s2266_s3 + $0xac] sm:$0xf] %v1537_v42  ;;  %1192 = vst [vmem:[%s2266_s3 + $0xb0] sm:$0xf] %v1536_v41 }
  0x1d   :  { %1193 = vst [vmem:[%s2266_s3 + $0xb4] sm:$0xf] %v1537_v42  ;;  %1194 = vst [vmem:[%s2266_s3 + $0xb8] sm:$0xf] %v1536_v41 }
  0x1e   :  { %1195 = vst [vmem:[%s2266_s3 + $0xbc] sm:$0xf] %v1537_v42  ;;  %1196 = vst [vmem:[%s2266_s3 + $0xc0] sm:$0xf] %v1536_v41 }
  0x1f   :  { %1666 = vmatpush3.bf16.msra.mxu0 %v1755_v9  ;;  %1746 = vmatpush3.bf16.msra.mxu1 %v1755_v9  ;;  %1197 = vst [vmem:[%s2266_s3 + $0xc4] sm:$0xf] %v1537_v42  ;;  %1198 = vst [vmem:[%s2266_s3 + $0xc8] sm:$0xf] %v1536_v41 }
  0x20   :  { %1199 = vst [vmem:[%s2266_s3 + $0xcc] sm:$0xf] %v1537_v42  ;;  %1200 = vst [vmem:[%s2266_s3 + $0xd0] sm:$0xf] %v1536_v41 }
  0x21   :  { %1201 = vst [vmem:[%s2266_s3 + $0xd4] sm:$0xf] %v1537_v42  ;;  %1202 = vst [vmem:[%s2266_s3 + $0xd8] sm:$0xf] %v1536_v41 }
  0x22   :  { %1668 = vmatmul.mubr.bf16.vlgmr.msra.gmra.mxu0 %v1757_v10  ;;  %1700 = vmatmul.mubr.bf16.vlgmr.msra.gmra.mxu1 %v1759_v11  ;;  %1203 = vst [vmem:[%s2266_s3 + $0xdc] sm:$0xf] %v1537_v42  ;;  %1204 = vst [vmem:[%s2266_s3 + $0xe0] sm:$0xf] %v1536_v41  ;;  %v2131_v11 = vunpack.c.h.bf16 %v1788_v40 }
  0x23   :  { %1671 = vmatprep.mubr.bf16.mxu0 %v1760_v12  ;;  %1703 = vmatprep.mubr.bf16.mxu1 %v1761_v13  ;;  %1205 = vst [vmem:[%s2266_s3 + $0xe4] sm:$0xf] %v1537_v42  ;;  %1206 = vst [vmem:[%s2266_s3 + $0xe8] sm:$0xf] %v1536_v41 }
  0x24   :  { %1207 = vst [vmem:[%s2266_s3 + $0xec] sm:$0xf] %v1537_v42  ;;  %1208 = vst [vmem:[%s2266_s3 + $0xf0] sm:$0xf] %v1536_v41 }
  0x25   :  { %1209 = vst [vmem:[%s2266_s3 + $0xf4] sm:$0xf] %v1537_v42  ;;  %1210 = vst [vmem:[%s2266_s3 + $0xf8] sm:$0xf] %v1536_v41 }
  0x26   :  { %1211 = vst [vmem:[%s2266_s3 + $0xfc] sm:$0xf] %v1537_v42 }
  0x2a   :  { %1672 = vmatmul.mubr.bf16.gmra.mxu0 %v1762_v14  ;;  %1704 = vmatmul.mubr.bf16.gmra.mxu1 %v1763_v15 }
  0x2b   :  { %1675 = vmatprep.mubr.bf16.mxu0 %v1764_v16  ;;  %1707 = vmatprep.mubr.bf16.mxu1 %v1765_v17 }
  0x32   :  { %1676 = vmatmul.mubr.bf16.gmra.mxu0 %v1766_v18  ;;  %1708 = vmatmul.mubr.bf16.gmra.mxu1 %v1767_v19  ;;  %v2135_v18 = vmul.f32 %v2128_v1, %v2128_v1 }
  0x33   :  { %1679 = vmatprep.mubr.bf16.mxu0 %v1768_v20  ;;  %1711 = vmatprep.mubr.bf16.mxu1 %v1769_v21 }
  0x3a   :  { %1680 = vmatmul.mubr.bf16.gmra.mxu0 %v1770_v22  ;;  %1712 = vmatmul.mubr.bf16.gmra.mxu1 %v1771_v23  ;;  %v2140_v23 = vmul.f32 %v2131_v11, %v2131_v11 }
  0x3b   :  { %1683 = vmatprep.mubr.bf16.mxu0 %v1772_v24  ;;  %1715 = vmatprep.mubr.bf16.mxu1 %v1773_v25 }
  0x42   :  { %1684 = vmatmul.mubr.bf16.gmra.mxu0 %v1774_v26  ;;  %1716 = vmatmul.mubr.bf16.gmra.mxu1 %v1775_v27 }
  0x43   :  { %1687 = vmatprep.mubr.bf16.mxu0 %v1776_v28  ;;  %1719 = vmatprep.mubr.bf16.mxu1 %v1777_v29 }
  0x4a   :  { %1688 = vmatmul.mubr.bf16.gmra.mxu0 %v1778_v30  ;;  %1720 = vmatmul.mubr.bf16.gmra.mxu1 %v1779_v31 }
  0x4b   :  { %1691 = vmatprep.mubr.bf16.mxu0 %v1780_v32  ;;  %1723 = vmatprep.mubr.bf16.mxu1 %v1781_v33 }
  0x52   :  { %1692 = vmatmul.mubr.bf16.gmra.mxu0 %v1782_v34  ;;  %1724 = vmatmul.mubr.bf16.gmra.mxu1 %v1783_v35 }
  0x53   :  { %1695 = vmatprep.mubr.bf16.mxu0 %v1784_v36  ;;  %1727 = vmatprep.mubr.bf16.mxu1 %v1785_v37 }
  0x5a   :  { %1696 = vmatmul.mubr.bf16.gmra.mxu0 %v1786_v38  ;;  %1728 = vmatmul.mubr.bf16.gmra.mxu1 %v1787_v39 }
  0xe2   :  { %v1669_v43 = vpop.f32.mrf.mxu0  ;;  %v1701_v44 = vpop.f32.mrf.mxu1 }
  0xe3   :  { %v387_v50 = vadd.f32 %v1669_v43, %v1491_v45 }
  0xe4   :  { %v378_v46 = vpop.f32.mrf.mxu0  ;;  %v506_v47 = vpop.f32.mrf.mxu1 }
  0xe5   :  { %v379_v54 = vadd.f32 %v1491_v45, %v378_v46 }
  0xe6   :  { %v1670_v48 = vpop.f32.mrf.mxu0  ;;  %v1702_v49 = vpop.f32.mrf.mxu1 }
  0xe7   :  { %v390_v51 = vadd.f32 %v1670_v48, %v1491_v45 }
  0xe8   :  { %v381_v52 = vpop.f32.mrf.mxu0  ;;  %v509_v53 = vpop.f32.mrf.mxu1 }
  0xe9   :  { %v893_v55 = vpack.c.bf16 %v390_v51, %v387_v50  ;;  %v382_v56 = vadd.f32 %v1491_v45, %v381_v52 }
  0xea   :  { %v1673_v57 = vpop.f32.mrf.mxu0  ;;  %v1705_v58 = vpop.f32.mrf.mxu1 }
  0xeb   :  { %1610 = vst [vmem:[%s2266_s3 + $0x8] sm:$0xff] %v893_v55   ;;  %v892_v59 = vpack.c.bf16 %v382_v56, %v379_v54  ;;  %v1214_v62 = vunpack.c.l.bf16 %v893_v55  ;;  %v1215_v4 = vunpack.c.h.bf16 %v893_v55 }
  0xec   :  { %v394_v60 = vpop.f32.mrf.mxu0  ;;  %v522_v61 = vpop.f32.mrf.mxu1 }
  0xed   :  { %1604 = vst [vmem:[%s2266_s3] sm:$0xff] %v892_v59   ;;  %v1212_v63 = vunpack.c.l.bf16 %v892_v59  ;;  %v1213_v0 = vunpack.c.h.bf16 %v892_v59  ;;  %v1347_v10 = vmul.f32 %v1214_v62, %v1214_v62  ;;  %v1348_v16 = vmul.f32 %v1215_v4, %v1215_v4 }
  0xee   :  { %v1674_v2 = vpop.f32.mrf.mxu0  ;;  %v1706_v3 = vpop.f32.mrf.mxu1 }
  0xef   :  { %v1276_v5 = vadd.f32 %v1213_v0, %v1212_v63  ;;  %v1345_v6 = vmul.f32 %v1212_v63, %v1212_v63  ;;  %v1346_v7 = vmul.f32 %v1213_v0, %v1213_v0 }
  0xf0   :  { %v397_v8 = vpop.f32.mrf.mxu0  ;;  %v525_v9 = vpop.f32.mrf.mxu1 }
  0xf1   :  { %v1277_v12 = vadd.f32 %v1276_v5, %v1214_v62  ;;  %v1409_v13 = vadd.f32 %v1346_v7, %v1345_v6 }
  0xf2   :  { %v1677_v14 = vpop.f32.mrf.mxu0  ;;  %v1709_v15 = vpop.f32.mrf.mxu1 }
  0xf3   :  { %v1278_v17 = vadd.f32 %v1277_v12, %v1215_v4  ;;  %v1410_v19 = vadd.f32 %v1409_v13, %v1347_v10 }
  0xf4   :  { %v410_v20 = vpop.f32.mrf.mxu0  ;;  %v538_v21 = vpop.f32.mrf.mxu1 }
  0xf5   :  { %v1279_v22 = vadd.f32 %v1278_v17, %v2128_v1  ;;  %v1411_v24 = vadd.f32 %v1410_v19, %v1348_v16 }
  0xf6   :  { %v1678_v25 = vpop.f32.mrf.mxu0  ;;  %v1710_v26 = vpop.f32.mrf.mxu1 }
  0xf7   :  { %v1280_v27 = vadd.f32 %v1279_v22, %v2131_v11  ;;  %v1412_v28 = vadd.f32 %v1411_v24, %v2135_v18 }
  0xf8   :  { %v413_v29 = vpop.f32.mrf.mxu0  ;;  %v541_v30 = vpop.f32.mrf.mxu1 }
  0xf9   :  { %v1281_v31 = vadd.f32 %v1280_v27, %v2128_v1  ;;  %v1413_v32 = vadd.f32 %v1412_v28, %v2140_v23 }
  0xfa   :  { %v1681_v33 = vpop.f32.mrf.mxu0  ;;  %v1713_v34 = vpop.f32.mrf.mxu1 }
  0xfb   :  { %v1282_v35 = vadd.f32 %v1281_v31, %v2131_v11  ;;  %v1414_v36 = vadd.f32 %v1413_v32, %v2135_v18 }
  0xfc   :  { %v426_v37 = vpop.f32.mrf.mxu0  ;;  %v554_v38 = vpop.f32.mrf.mxu1 }
  0xfd   :  { %v1283_v39 = vadd.f32 %v1282_v35, %v2128_v1  ;;  %v1415_v40 = vadd.f32 %v1414_v36, %v2140_v23 }
  0xfe   :  { %v1682_v41 = vpop.f32.mrf.mxu0  ;;  %v1714_v42 = vpop.f32.mrf.mxu1 }
  0xff   :  { %v1284_v43 = vadd.f32 %v1283_v39, %v2131_v11  ;;  %v1416_v44 = vadd.f32 %v1415_v40, %v2135_v18 }
 0x100   :  { %v429_v45 = vpop.f32.mrf.mxu0  ;;  %v557_v46 = vpop.f32.mrf.mxu1 }
 0x101   :  { %v1285_v47 = vadd.f32 %v1284_v43, %v2128_v1  ;;  %v1417_v48 = vadd.f32 %v1416_v44, %v2140_v23 }
 0x102   :  { %v1685_v49 = vpop.f32.mrf.mxu0  ;;  %v1717_v50 = vpop.f32.mrf.mxu1 }
 0x103   :  { %v1286_v51 = vadd.f32 %v1285_v47, %v2131_v11  ;;  %v1418_v52 = vadd.f32 %v1417_v48, %v2135_v18 }
 0x104   :  { %v442_v53 = vpop.f32.mrf.mxu0  ;;  %v570_v54 = vpop.f32.mrf.mxu1 }
 0x105   :  { %v1287_v55 = vadd.f32 %v1286_v51, %v2128_v1  ;;  %v1419_v56 = vadd.f32 %v1418_v52, %v2140_v23 }
 0x106   :  { %v1686_v57 = vpop.f32.mrf.mxu0  ;;  %v1718_v58 = vpop.f32.mrf.mxu1 }
 0x107   :  { %v1288_v59 = vadd.f32 %v1287_v55, %v2131_v11  ;;  %v1420_v60 = vadd.f32 %v1419_v56, %v2135_v18 }
 0x108   :  { %v445_v61 = vpop.f32.mrf.mxu0  ;;  %v573_v62 = vpop.f32.mrf.mxu1 }
 0x109   :  { %v1289_v63 = vadd.f32 %v1288_v59, %v2128_v1  ;;  %v1421_v0 = vadd.f32 %v1420_v60, %v2140_v23 }
 0x10a   :  { %v1689_v2 = vpop.f32.mrf.mxu0  ;;  %v1721_v3 = vpop.f32.mrf.mxu1 }
 0x10b   :  { %v1290_v4 = vadd.f32 %v1289_v63, %v2131_v11  ;;  %v1422_v5 = vadd.f32 %v1421_v0, %v2135_v18 }
 0x10c   :  { %v458_v6 = vpop.f32.mrf.mxu0  ;;  %v586_v7 = vpop.f32.mrf.mxu1 }
 0x10d   :  { %v1291_v8 = vadd.f32 %v1290_v4, %v2128_v1  ;;  %v1423_v9 = vadd.f32 %v1422_v5, %v2140_v23 }
 0x10e   :  { %v1690_v10 = vpop.f32.mrf.mxu0  ;;  %v1722_v12 = vpop.f32.mrf.mxu1 }
 0x10f   :  { %v1292_v13 = vadd.f32 %v1291_v8, %v2131_v11  ;;  %v1424_v14 = vadd.f32 %v1423_v9, %v2135_v18 }
 0x110   :  { %v461_v15 = vpop.f32.mrf.mxu0  ;;  %v589_v16 = vpop.f32.mrf.mxu1 }
 0x111   :  { %v1293_v17 = vadd.f32 %v1292_v13, %v2128_v1  ;;  %v1425_v19 = vadd.f32 %v1424_v14, %v2140_v23 }
 0x112   :  { %v1693_v20 = vpop.f32.mrf.mxu0  ;;  %v1725_v21 = vpop.f32.mrf.mxu1 }
 0x113   :  { %v1294_v22 = vadd.f32 %v1293_v17, %v2131_v11  ;;  %v1426_v24 = vadd.f32 %v1425_v19, %v2135_v18 }
 0x114   :  { %v474_v25 = vpop.f32.mrf.mxu0  ;;  %v602_v26 = vpop.f32.mrf.mxu1 }
 0x115   :  { %v1295_v27 = vadd.f32 %v1294_v22, %v2128_v1  ;;  %v1427_v28 = vadd.f32 %v1426_v24, %v2140_v23 }
 0x116   :  { %v1694_v29 = vpop.f32.mrf.mxu0  ;;  %v1726_v30 = vpop.f32.mrf.mxu1 }
 0x117   :  { %v1296_v31 = vadd.f32 %v1295_v27, %v2131_v11  ;;  %v1428_v32 = vadd.f32 %v1427_v28, %v2135_v18 }
 0x118   :  { %v477_v33 = vpop.f32.mrf.mxu0  ;;  %v605_v34 = vpop.f32.mrf.mxu1 }
 0x119   :  { %v1297_v35 = vadd.f32 %v1296_v31, %v2128_v1  ;;  %v1429_v36 = vadd.f32 %v1428_v32, %v2140_v23 }
 0x11a   :  { %v1697_v37 = vpop.f32.mrf.mxu0  ;;  %v1729_v38 = vpop.f32.mrf.mxu1 }
 0x11b   :  { %v1298_v39 = vadd.f32 %v1297_v35, %v2131_v11  ;;  %v1430_v40 = vadd.f32 %v1429_v36, %v2135_v18 }
 0x11c   :  { %v490_v41 = vpop.f32.mrf.mxu0  ;;  %v618_v42 = vpop.f32.mrf.mxu1 }
 0x11d   :  { %v1299_v43 = vadd.f32 %v1298_v39, %v2128_v1  ;;  %v1431_v44 = vadd.f32 %v1430_v40, %v2140_v23 }
 0x11e   :  { %v1698_v45 = vpop.f32.mrf.mxu0  ;;  %v1730_v46 = vpop.f32.mrf.mxu1 }
 0x11f   :  { %v1300_v47 = vadd.f32 %v1299_v43, %v2131_v11  ;;  %v1432_v48 = vadd.f32 %v1431_v44, %v2135_v18 }
 0x120   :  { %v493_v49 = vpop.f32.mrf.mxu0  ;;  %v621_v50 = vpop.f32.mrf.mxu1 }
 0x121   :  { %v1301_v51 = vadd.f32 %v1300_v47, %v2128_v1  ;;  %v1433_v52 = vadd.f32 %v1432_v48, %v2140_v23 }
 0x123   :  { %v1302_v53 = vadd.f32 %v1301_v51, %v2131_v11  ;;  %v1434_v54 = vadd.f32 %v1433_v52, %v2135_v18 }
 0x125   :  { %v1303_v55 = vadd.f32 %v1302_v53, %v2128_v1  ;;  %v1435_v56 = vadd.f32 %v1434_v54, %v2140_v23 }
 0x127   :  { %v1304_v57 = vadd.f32 %v1303_v55, %v2131_v11  ;;  %v1436_v58 = vadd.f32 %v1435_v56, %v2135_v18 }
 0x129   :  { %v1305_v59 = vadd.f32 %v1304_v57, %v2128_v1  ;;  %v1437_v60 = vadd.f32 %v1436_v58, %v2140_v23 }
 0x12b   :  { %v1306_v61 = vadd.f32 %v1305_v59, %v2131_v11  ;;  %v1438_v62 = vadd.f32 %v1437_v60, %v2135_v18 }
 0x12d   :  { %v1307_v63 = vadd.f32 %v1306_v61, %v2128_v1  ;;  %v1439_v0 = vadd.f32 %v1438_v62, %v2140_v23 }
 0x12f   :  { %v1308_v2 = vadd.f32 %v1307_v63, %v2131_v11  ;;  %v1440_v3 = vadd.f32 %v1439_v0, %v2135_v18 }
 0x131   :  { %v1309_v4 = vadd.f32 %v1308_v2, %v2128_v1  ;;  %v1441_v5 = vadd.f32 %v1440_v3, %v2140_v23 }
 0x133   :  { %v1310_v6 = vadd.f32 %v1309_v4, %v2131_v11  ;;  %v1442_v7 = vadd.f32 %v1441_v5, %v2135_v18 }
 0x135   :  { %v1311_v8 = vadd.f32 %v1310_v6, %v2128_v1  ;;  %v1443_v9 = vadd.f32 %v1442_v7, %v2140_v23 }
 0x137   :  { %v1312_v10 = vadd.f32 %v1311_v8, %v2131_v11  ;;  %v1444_v12 = vadd.f32 %v1443_v9, %v2135_v18 }
 0x139   :  { %v1313_v13 = vadd.f32 %v1312_v10, %v2128_v1  ;;  %v1445_v14 = vadd.f32 %v1444_v12, %v2140_v23 }
 0x13b   :  { %v1314_v15 = vadd.f32 %v1313_v13, %v2131_v11  ;;  %v1446_v16 = vadd.f32 %v1445_v14, %v2135_v18 }
 0x13d   :  { %v1315_v17 = vadd.f32 %v1314_v15, %v2128_v1  ;;  %v1447_v19 = vadd.f32 %v1446_v16, %v2140_v23 }
 0x13f   :  { %v1316_v20 = vadd.f32 %v1315_v17, %v2131_v11  ;;  %v1448_v21 = vadd.f32 %v1447_v19, %v2135_v18 }
 0x141   :  { %v1317_v22 = vadd.f32 %v1316_v20, %v2128_v1  ;;  %v1449_v24 = vadd.f32 %v1448_v21, %v2140_v23 }
 0x143   :  { %v1318_v25 = vadd.f32 %v1317_v22, %v2131_v11  ;;  %v1450_v26 = vadd.f32 %v1449_v24, %v2135_v18 }
 0x145   :  { %v1319_v27 = vadd.f32 %v1318_v25, %v2128_v1  ;;  %v1451_v28 = vadd.f32 %v1450_v26, %v2140_v23 }
 0x147   :  { %v1320_v29 = vadd.f32 %v1319_v27, %v2131_v11  ;;  %v1452_v30 = vadd.f32 %v1451_v28, %v2135_v18 }
 0x149   :  { %v1321_v31 = vadd.f32 %v1320_v29, %v2128_v1  ;;  %v1453_v32 = vadd.f32 %v1452_v30, %v2140_v23 }
 0x14b   :  { %v1322_v33 = vadd.f32 %v1321_v31, %v2131_v11  ;;  %v1454_v34 = vadd.f32 %v1453_v32, %v2135_v18 }
 0x14d   :  { %v1323_v35 = vadd.f32 %v1322_v33, %v2128_v1  ;;  %v1455_v36 = vadd.f32 %v1454_v34, %v2140_v23 }
 0x14f   :  { %v1324_v37 = vadd.f32 %v1323_v35, %v2131_v11  ;;  %v1456_v38 = vadd.f32 %v1455_v36, %v2135_v18 }
 0x151   :  { %v1325_v39 = vadd.f32 %v1324_v37, %v2128_v1  ;;  %v1457_v40 = vadd.f32 %v1456_v38, %v2140_v23 }
 0x153   :  { %v1326_v41 = vadd.f32 %v1325_v39, %v2131_v11  ;;  %v1458_v42 = vadd.f32 %v1457_v40, %v2135_v18 }
 0x155   :  { %v1327_v43 = vadd.f32 %v1326_v41, %v2128_v1  ;;  %v1459_v44 = vadd.f32 %v1458_v42, %v2140_v23 }
 0x157   :  { %v1328_v45 = vadd.f32 %v1327_v43, %v2131_v11  ;;  %v1460_v46 = vadd.f32 %v1459_v44, %v2135_v18 }
 0x159   :  { %v1329_v47 = vadd.f32 %v1328_v45, %v2128_v1  ;;  %v1461_v48 = vadd.f32 %v1460_v46, %v2140_v23 }
 0x15b   :  { %v1330_v49 = vadd.f32 %v1329_v47, %v2131_v11  ;;  %v1462_v50 = vadd.f32 %v1461_v48, %v2135_v18 }
 0x15d   :  { %v1331_v51 = vadd.f32 %v1330_v49, %v2128_v1  ;;  %v1463_v52 = vadd.f32 %v1462_v50, %v2140_v23 }
 0x15f   :  { %v1332_v53 = vadd.f32 %v1331_v51, %v2131_v11  ;;  %v1464_v54 = vadd.f32 %v1463_v52, %v2135_v18 }
 0x161   :  { %v1333_v55 = vadd.f32 %v1332_v53, %v2128_v1  ;;  %v1465_v56 = vadd.f32 %v1464_v54, %v2140_v23 }
 0x163   :  { %v1334_v57 = vadd.f32 %v1333_v55, %v2131_v11  ;;  %v1466_v58 = vadd.f32 %v1465_v56, %v2135_v18 }
 0x165   :  { %v1335_v59 = vadd.f32 %v1334_v57, %v2128_v1  ;;  %v1467_v60 = vadd.f32 %v1466_v58, %v2140_v23 }
 0x167   :  { %v1336_v61 = vadd.f32 %v1335_v59, %v2131_v11  ;;  %v1468_v62 = vadd.f32 %v1467_v60, %v2135_v18 }
 0x169   :  { %v1337_v63 = vadd.f32 %v1336_v61, %v2128_v1  ;;  %v1469_v0 = vadd.f32 %v1468_v62, %v2140_v23 }
 0x16b   :  { %v1338_v2 = vadd.f32 %v1337_v63, %v2131_v11  ;;  %v1470_v3 = vadd.f32 %v1469_v0, %v2135_v18 }
 0x16d   :  { %v1339_v4 = vrot.slane %v1338_v2, 4  ;;  %v1471_v5 = vadd.f32 %v1470_v3, %v2140_v23 }
 0x16f   :  { %v1340_v6 = vadd.f32 %v1339_v4, %v1338_v2  ;;  %v1472_v7 = vrot.slane %v1471_v5, 4 }
 0x171   :  { %v1341_v8 = vrot.slane %v1340_v6, 2  ;;  %v1473_v9 = vadd.f32 %v1472_v7, %v1471_v5 }
 0x173   :  { %v1342_v10 = vadd.f32 %v1341_v8, %v1340_v6  ;;  %v1474_v12 = vrot.slane %v1473_v9, 2 }
 0x175   :  { %v1343_v13 = vrot.slane %v1342_v10, 1  ;;  %v1475_v14 = vadd.f32 %v1474_v12, %v1473_v9 }
 0x177   :  { %v1476_v15 = vrot.slane %v1475_v14, 1  ;;  %v1344_v1 = vadd.f32 %v1343_v13, %v1342_v10 }
 0x179   :  { %v1477_v16 = vadd.f32 %v1476_v15, %v1475_v14 }
 0x17b   :  { %v1479_v17 = vsel %vm1478_vm0, %v1344_v1, %v1477_v16 }
 0x17c   :  { %v1481_v11 = vsel %vm1480_vm1, %v1479_v17, 0.0 }
 0x17d   :  { %1482 = vst [vmem:[%s2268_s4] sm:$0xff] %v1481_v11 }

// kernel: eegnn_forward.16
= control target key start
LH: loop header
LB: loop body
LE: loop exit
PB: predicated region body
PF: predicated region fallthrough
CT: control target
= control target key end

     0   :  { %s3348_s0 = inlined_call_operand.vmem [shape: s32[5], index: 0, kind: input, shape index: {}]   ;;  %s3349_s4 = inlined_call_operand.vmem [shape: s32[1,512], index: 4, kind: input, shape index: {}]   ;;  %s3350_s5 = inlined_call_operand.vmem [shape: bf16[512,128], index: 5, kind: input, shape index: {}]   ;;  %s3351_s6 = inlined_call_operand.vmem [shape: f32[512,128], index: 6, kind: output, shape index: {}]   ;;  %s3352_s1 = inlined_call_operand.vmem [shape: s32[5], index: 1, kind: input, shape index: {}]   ;;  %s3353_s2 = inlined_call_operand.vmem [shape: s32[5], index: 2, kind: input, shape index: {}]   ;;  %s3354_s3 = inlined_call_operand.vmem [shape: s32[5], index: 3, kind: input, shape index: {}]  }
   0x1   :  { %s11_s23 = sshll.u32 %s3348_s0, 4  ;;  %s15_s26 = sshll.u32 %s3352_s1, 4  ;;  %s12_s23 = int_to_ptr.vmem [resolvable:$true] %s11_s23  ;;  %s16_s26 = int_to_ptr.vmem [resolvable:$true] %s15_s26 }
   0x2   :  { %s2098_s27 = scalar_lea.vmem %s12_s23, 16  ;;  %p2103_p1 = scmp.lt.s32.totalorder %s12_s23, %s12_s23 }
   0x3   :  { %p2099_p0 = scmp.ne.s32.totalorder %s12_s23, %s2098_s27  ;;  %p2104_p2 = scmp.lt.s32.totalorder %s2098_s27, %s2098_s27 }
   0x5   :  { %p2105_p3 = por %p2104_p2, %p2103_p1 }
   0x7   :  { %p2106_p4 = pnand %p2105_p3, %p2099_p0 }
   0x9   :  { %2109 = shalt.err (!%p2106_p4)  }
   0xa   :  { %s2156_s28 = smov [#allocation3]   ;;  %s2110_s29 = scalar_lea.vmem %s16_s26, 16 }
   0xb   :  { %14 = dma.vmem_to_smem %s12_s23, 16, %s2156_s28, [#allocation2] }
   0xc   :  { %p2111_p5 = scmp.ne.s32.totalorder %s16_s26, %s2110_s29  ;;  %p2115_p6 = scmp.lt.s32.totalorder %s16_s26, %s16_s26 }
   0xd   :  { %p2116_p7 = scmp.lt.s32.totalorder %s2110_s29, %s2110_s29 }
   0xf   :  { %p2117_p8 = por %p2116_p7, %p2115_p6 }
  0x11   :  { %p2118_p9 = pnand %p2117_p8, %p2111_p5 }
  0x13   :  { %2121 = shalt.err (!%p2118_p9)  }
  0x14   :  { %s2157_s0 = smov [#allocation4]   ;;  %s19_s7 = sshll.u32 %s3353_s2, 4  ;;  %s20_s7 = int_to_ptr.vmem [resolvable:$true] %s19_s7 }
  0x15   :  { %18 = dma.vmem_to_smem %s16_s26, 16, %s2157_s0, [#allocation2] }
  0x16   :  { %s23_s10 = sshll.u32 %s3354_s3, 4  ;;  %s2122_s11 = scalar_lea.vmem %s20_s7, 16  ;;  %s24_s10 = int_to_ptr.vmem [resolvable:$true] %s23_s10 }
  0x17   :  { %p2123_p10 = scmp.ne.s32.totalorder %s20_s7, %s2122_s11  ;;  %p2127_p11 = scmp.lt.s32.totalorder %s20_s7, %s20_s7 }
  0x18   :  { %p2128_p12 = scmp.lt.s32.totalorder %s2122_s11, %s2122_s11 }
  0x1a   :  { %p2129_p13 = por %p2128_p12, %p2127_p11 }
  0x1c   :  { %p2130_p0 = pnand %p2129_p13, %p2123_p10 }
  0x1e   :  { %2133 = shalt.err (!%p2130_p0)  }
  0x1f   :  { %s2158_s12 = smov [#allocation5]   ;;  %s2134_s13 = scalar_lea.vmem %s24_s10, 16 }
  0x20   :  { %22 = dma.vmem_to_smem %s20_s7, 16, %s2158_s12, [#allocation2] }
  0x21   :  { %p2135_p1 = scmp.ne.s32.totalorder %s24_s10, %s2134_s13  ;;  %p2139_p2 = scmp.lt.s32.totalorder %s24_s10, %s24_s10 }
  0x22   :  { %p2140_p3 = scmp.lt.s32.totalorder %s2134_s13, %s2134_s13 }
  0x24   :  { %p2141_p4 = por %p2140_p3, %p2139_p2 }
  0x26   :  { %p2142_p5 = pnand %p2141_p4, %p2135_p1 }
  0x28   :  { %2145 = shalt.err (!%p2142_p5)  }
  0x29   :  { %s2159_s2 = smov [#allocation6]  }
  0x2a   :  { %26 = dma.vmem_to_smem %s24_s10, 16, %s2159_s2, [#allocation2] }
  0x2b   :  { %2150 = dma.done.wait [#allocation2], 64 }
  0x2c   :  { %2151 = vsyncadd [#allocation2], 4294967232 }
  0x2d   :  { %28 = sfence }
  0x2e   :  { %s2209_s3 = smov 0  }
  0x2f LB: > { %s2215_s14 = sadd.s32 4294967295, %s2154_s3   ;;  %p1529_p6 = scmp.ge.s32.totalorder %s2154_s3, 1  ;;  %s2154_s3 = sphi %s2209_s3, %s34_s3  }
  0x30   : > { %p155_p7 = scmp.lt.s32.totalorder %s2154_s3, 6 }
  0x32   : > { %p156_p8 = pnand %p1529_p6, %p155_p7 }
  0x33   : > { %s184_s15 = sld [smem:[#allocation4 + %s2215_s14]] (!%p156_p8) }
  0x34   : > { %159 = sbr.rel (%p156_p8) target bundleno = 468 (0x1d4), region = 28  ;;  %s191_s16 = sld [smem:[#allocation4 + %s2215_s14]] (!%p156_p8) }
  0x35   : > { %s199_s17 = sld [smem:[#allocation3 + %s2215_s14]] (!%p156_p8) }
  0x36   : > { %s208_s18 = sld [smem:[#allocation5 + %s2215_s14]] (!%p156_p8) }
  0x39   : > { %s1530_s19 = sshll.u32 %s184_s15, 2 }
  0x3a   : > { %p186_p9 = scmp.lt.s32.totalorder %s1530_s19, 3  ;;  %s1531_s20 = sshll.u32 %s191_s16, 6 }
  0x3b   : > { %p193_p10 = scmp.lt.s32.totalorder %s1531_s20, 63  ;;  %s1533_s21 = sshll.u32 %s199_s17, 5 }
  0x3c   : > { %s3560_s19 = smov (!%p186_p9, %s1530_s19), 3  ;;  %p201_p11 = scmp.lt.s32.totalorder %s1533_s21, 63 }
  0x3d   : > { %s3562_s20 = smov (!%p193_p10, %s1531_s20), 63  ;;  %s188_s24 = scalar_lea.vmem %s3349_s4, %s3560_s19 }
  0x3e   : > { %s1532_s25 = sshll.u32 %s3562_s20, 2  ;;  %s3564_s21 = smov (!%p201_p11, %s1533_s21), 63 }
  0x3f   : > { %s2232_s28 = scalar_lea.vmem %s3350_s5, %s1532_s25  ;;  %s1534_s29 = sshll.u32 %s3564_s21, 3 }
  0x40   : > { %s2237_s30 = scalar_lea.vmem %s3351_s6, %s1534_s29  ;;  %p1535_p12 = scmp.ne.s32.totalorder %s208_s18, 1 }
  0x42   : > { %212 = sbr.rel (%p1535_p12) target bundleno = 88 (0x58), region = 32 }
  0x47   : > { %v2160_v0 = vmov 0.0  }
  0x48   : > { %213 = vst [vmem:[%s2237_s30] sm:$0xff] %v2160_v0  ;;  %214 = vst [vmem:[%s2237_s30 + $0x8] sm:$0xff] %v2160_v0 }
  0x49   : > { %215 = vst [vmem:[%s2237_s30 + $0x10] sm:$0xff] %v2160_v0  ;;  %216 = vst [vmem:[%s2237_s30 + $0x18] sm:$0xff] %v2160_v0 }
  0x4a   : > { %217 = vst [vmem:[%s2237_s30 + $0x20] sm:$0xff] %v2160_v0  ;;  %218 = vst [vmem:[%s2237_s30 + $0x28] sm:$0xff] %v2160_v0 }
  0x4b   : > { %219 = vst [vmem:[%s2237_s30 + $0x30] sm:$0xff] %v2160_v0  ;;  %220 = vst [vmem:[%s2237_s30 + $0x38] sm:$0xff] %v2160_v0 }
  0x4c   : > { %221 = vst [vmem:[%s2237_s30 + $0x40] sm:$0xff] %v2160_v0  ;;  %222 = vst [vmem:[%s2237_s30 + $0x48] sm:$0xff] %v2160_v0 }
  0x4d   : > { %223 = vst [vmem:[%s2237_s30 + $0x50] sm:$0xff] %v2160_v0  ;;  %224 = vst [vmem:[%s2237_s30 + $0x58] sm:$0xff] %v2160_v0 }
  0x4e   : > { %225 = vst [vmem:[%s2237_s30 + $0x60] sm:$0xff] %v2160_v0  ;;  %226 = vst [vmem:[%s2237_s30 + $0x68] sm:$0xff] %v2160_v0 }
  0x4f   : > { %227 = vst [vmem:[%s2237_s30 + $0x70] sm:$0xff] %v2160_v0  ;;  %228 = vst [vmem:[%s2237_s30 + $0x78] sm:$0xff] %v2160_v0 }
  0x50   : > { %229 = vst [vmem:[%s2237_s30 + $0x80] sm:$0xff] %v2160_v0  ;;  %230 = vst [vmem:[%s2237_s30 + $0x88] sm:$0xff] %v2160_v0 }
  0x51   : > { %231 = vst [vmem:[%s2237_s30 + $0x90] sm:$0xff] %v2160_v0  ;;  %232 = vst [vmem:[%s2237_s30 + $0x98] sm:$0xff] %v2160_v0 }
  0x52   : > { %233 = vst [vmem:[%s2237_s30 + $0xa0] sm:$0xff] %v2160_v0  ;;  %234 = vst [vmem:[%s2237_s30 + $0xa8] sm:$0xff] %v2160_v0 }
  0x53   : > { %235 = vst [vmem:[%s2237_s30 + $0xb0] sm:$0xff] %v2160_v0  ;;  %236 = vst [vmem:[%s2237_s30 + $0xb8] sm:$0xff] %v2160_v0 }
  0x54   : > { %237 = vst [vmem:[%s2237_s30 + $0xc0] sm:$0xff] %v2160_v0  ;;  %238 = vst [vmem:[%s2237_s30 + $0xc8] sm:$0xff] %v2160_v0 }
  0x55   : > { %239 = vst [vmem:[%s2237_s30 + $0xd0] sm:$0xff] %v2160_v0  ;;  %240 = vst [vmem:[%s2237_s30 + $0xd8] sm:$0xff] %v2160_v0 }
  0x56   : > { %241 = vst [vmem:[%s2237_s30 + $0xe0] sm:$0xff] %v2160_v0  ;;  %242 = vst [vmem:[%s2237_s30 + $0xe8] sm:$0xff] %v2160_v0 }
  0x57   : > { %243 = vst [vmem:[%s2237_s30 + $0xf0] sm:$0xff] %v2160_v0  ;;  %244 = vst [vmem:[%s2237_s30 + $0xf8] sm:$0xff] %v2160_v0 }
  0x58 PF: > { %s245_s7 = sld [smem:[#allocation6 + %s2215_s14]] }
  0x5e   : > { %p1536_p13 = scmp.ne.s32.totalorder %s245_s7, 1 }
  0x5f   : > { %s2285_s8 = sld [smem:[#allocation3 + %s2215_s14]] (!%p1536_p13) }
  0x60   : > { %249 = sbr.rel (%p1536_p13) target bundleno = 468 (0x1d4), region = 36 }
  0x65   : > { %v2066_v1 = vld [vmem:[%s2232_s28 + $0x78] sm:$0xff]   ;;  %v2070_v5 = vld [vmem:[%s2232_s28 + $0x70] sm:$0xff]   ;;  %v2074_v9 = vld [vmem:[%s2232_s28 + $0x68] sm:$0xff]   ;;  %v252_v11 = vlaneseq  ;;  %s1537_s9 = sshll.u32 %s2285_s8, 8 }
  0x66   : > { %v2067_v2 = vld [vmem:[%s2232_s28 + $0xf8] sm:$0xff]   ;;  %1828 = vmatprep.subr.bf16.mxu0 %v2066_v1  ;;  %v2071_v6 = vld [vmem:[%s2232_s28 + $0xf0] sm:$0xff]   ;;  %v2075_v10 = vld [vmem:[%s2232_s28 + $0xe8] sm:$0xff]   ;;  %v2315_v40 = vstv %s1537_s9 }
  0x67   : > { %v2068_v3 = vld [vmem:[%s2232_s28 + $0x38] sm:$0xff]   ;;  %1940 = vmatprep.subr.bf16.mxu1 %v2067_v2  ;;  %v2072_v7 = vld [vmem:[%s2232_s28 + $0x30] sm:$0xff]   ;;  %v2076_v12 = vld [vmem:[%s2232_s28 + $0x28] sm:$0xff]   ;;  %v2289_v16 = vshrl.u32 %v252_v11, 7 }
  0x68   : > { %v2069_v4 = vld [vmem:[%s2232_s28 + $0xb8] sm:$0xff]   ;;  %1829 = vmatpush3.bf16.msra.mxu0 %v2068_v3  ;;  %v2073_v8 = vld [vmem:[%s2232_s28 + $0xb0] sm:$0xff]   ;;  %v2077_v13 = vld [vmem:[%s2232_s28 + $0xa8] sm:$0xff]  }
  0x69   : > { %1941 = vmatpush3.bf16.msra.mxu1 %v2069_v4  ;;  %1830 = vmatprep.subr.bf16.mxu0 %v2070_v5  ;;  %v2078_v14 = vld [vmem:[%s2232_s28 + $0x60] sm:$0xff]   ;;  %v2082_v19 = vld [vmem:[%s2232_s28 + $0x58] sm:$0xff]   ;;  %v254_v21 = vadd.s32 8, %v2289_v16  ;;  %v325_v23 = vsub.s32 1, %v2289_v16  ;;  %v2086_v25 = vld [vmem:[%s2232_s28 + $0x50] sm:$0xff]   ;;  %v333_v26 = vsub.s32 3, %v2289_v16  ;;  %v286_v49 = vadd.s32 %v2315_v40, %v2289_v16 }
  0x6a   : > { %1942 = vmatprep.subr.bf16.mxu1 %v2071_v6  ;;  %v2079_v15 = vld [vmem:[%s2232_s28 + $0xe0] sm:$0xff]   ;;  %v2083_v20 = vld [vmem:[%s2232_s28 + $0xd8] sm:$0xff]   ;;  %v2087_v27 = vld [vmem:[%s2232_s28 + $0xd0] sm:$0xff]   ;;  %v321_v28 = vsub.s32 0, %v2289_v16  ;;  %v329_v30 = vsub.s32 2, %v2289_v16  ;;  %v255_v32 = vadd.s32 16, %v2289_v16 }
  0x6b   : > { %v2080_v17 = vld [vmem:[%s2232_s28 + $0x20] sm:$0xff]   ;;  %v2084_v22 = vld [vmem:[%s2232_s28 + $0x18] sm:$0xff]   ;;  %v2088_v29 = vld [vmem:[%s2232_s28 + $0x10] sm:$0xff]   ;;  %v256_v34 = vadd.s32 24, %v2289_v16  ;;  %v257_v36 = vadd.s32 32, %v2289_v16  ;;  %v271_v38 = vadd.s32 144, %v2289_v16  ;;  %v287_v50 = vadd.s32 %v2315_v40, %v254_v21 }
  0x6c   : > { %1831 = vmatpush3.bf16.msra.mxu0 %v2072_v7  ;;  %v2081_v18 = vld [vmem:[%s2232_s28 + $0xa0] sm:$0xff]   ;;  %v2085_v24 = vld [vmem:[%s2232_s28 + $0x98] sm:$0xff]   ;;  %v2089_v31 = vld [vmem:[%s2232_s28 + $0x90] sm:$0xff]   ;;  %v272_v41 = vadd.s32 152, %v2289_v16  ;;  %v273_v44 = vadd.s32 160, %v2289_v16  ;;  %v274_v47 = vadd.s32 168, %v2289_v16  ;;  %v288_v54 = vadd.s32 %v2315_v40, %v255_v32 }
  0x6d   : > { %1943 = vmatpush3.bf16.msra.mxu1 %v2073_v8  ;;  %1832 = vmatprep.subr.bf16.mxu0 %v2074_v9  ;;  %v2090_v33 = vld [vmem:[%s2232_s28 + $0x48] sm:$0xff]   ;;  %v2094_v42 = vld [vmem:[%s2232_s28 + $0x40] sm:$0xff]   ;;  %v2320_v43 = vadd.s32 %v2315_v40, %v271_v38  ;;  %v275_v52 = vadd.s32 176, %v2289_v16  ;;  %v289_v55 = vadd.s32 %v2315_v40, %v256_v34  ;;  %v276_v57 = vadd.s32 184, %v2289_v16 }
  0x6e   : > { %1944 = vmatprep.subr.bf16.mxu1 %v2075_v10  ;;  %v2091_v35 = vld [vmem:[%s2232_s28 + $0xc8] sm:$0xff]   ;;  %v2095_v45 = vld [vmem:[%s2232_s28 + $0xc0] sm:$0xff]   ;;  %v2325_v46 = vadd.s32 %v2315_v40, %v272_v41  ;;  %v2333_v51 = vadd.s32 %v2315_v40, %v273_v44  ;;  %v2340_v56 = vadd.s32 %v2315_v40, %v274_v47  ;;  %v258_v59 = vadd.s32 40, %v2289_v16 }
  0x6f   : > { %v2092_v37 = vld [vmem:[%s2232_s28 + $0x8] sm:$0xff]   ;;  %v2096_v48 = vld [vmem:[%s2232_s28] sm:$0xff]   ;;  %v2350_v60 = vadd.s32 %v2315_v40, %v275_v52  ;;  %v277_v61 = vadd.s32 192, %v2289_v16  ;;  %v278_v62 = vadd.s32 200, %v2289_v16  ;;  %v2363_v3 = vadd.s32 %v2315_v40, %v276_v57 }
  0x70   : > { %1833 = vmatpush3.bf16.msra.mxu0 %v2076_v12  ;;  %v2093_v39 = vld [vmem:[%s2232_s28 + $0x88] sm:$0xff]   ;;  %v2097_v53 = vld [vmem:[%s2232_s28 + $0x80] sm:$0xff]   ;;  %v2161_v6 = vmov 1.0|1.0   ;;  %v290_v7 = vadd.s32 %v2315_v40, %v257_v36  ;;  %v291_v8 = vadd.s32 %v2315_v40, %v258_v59  ;;  %v259_v9 = vadd.s32 48, %v2289_v16 }
  0x71   : > { %1945 = vmatpush3.bf16.msra.mxu1 %v2077_v13  ;;  %1834 = vmatprep.subr.bf16.mxu0 %v2078_v14  ;;  %v318_v58 = vld [vmem:[%s188_s24] sm:$0xf]  ;;  %v2366_v4 = vadd.s32 %v2315_v40, %v277_v61  ;;  %v2369_v5 = vadd.s32 %v2315_v40, %v278_v62  ;;  %v260_v10 = vadd.s32 56, %v2289_v16  ;;  %v261_v11 = vadd.s32 64, %v2289_v16 }
  0x72   : > { %1946 = vmatprep.subr.bf16.mxu1 %v2079_v15  ;;  %v2354_v63 = vrot.slane %v318_v58, %v325_v23  ;;  %v2356_v0 = vrot.slane %v318_v58, %v333_v26  ;;  %v2358_v1 = vrot.slane %v318_v58, %v321_v28  ;;  %v2360_v2 = vrot.slane %v318_v58, %v329_v30 }
  0x73   : > { %v262_v12 = vadd.s32 72, %v2289_v16  ;;  %v263_v13 = vadd.s32 80, %v2289_v16  ;;  %v264_v14 = vadd.s32 88, %v2289_v16  ;;  %v265_v15 = vadd.s32 96, %v2289_v16 }
  0x74   : > { %1835 = vmatpush3.bf16.msra.mxu0 %v2080_v17  ;;  %vm336_vm0 = vcmp.eq.s32.totalorder %v286_v49, %v2354_v63  ;;  %vm340_vm1 = vcmp.eq.s32.totalorder %v287_v50, %v2354_v63  ;;  %vm338_vm2 = vcmp.eq.s32.totalorder %v286_v49, %v2356_v0  ;;  %vm342_vm3 = vcmp.eq.s32.totalorder %v287_v50, %v2356_v0 }
  0x75   : > { %1947 = vmatpush3.bf16.msra.mxu1 %v2081_v18  ;;  %1836 = vmatprep.subr.bf16.mxu0 %v2082_v19  ;;  %vm1698_vm4 = vmpackc.low %vm340_vm1, %vm336_vm0  ;;  %vm335_vm5 = vcmp.eq.s32.totalorder %v286_v49, %v2358_v1  ;;  %vm339_vm6 = vcmp.eq.s32.totalorder %v287_v50, %v2358_v1  ;;  %vm337_vm7 = vcmp.eq.s32.totalorder %v286_v49, %v2360_v2  ;;  %v266_v17 = vadd.s32 104, %v2289_v16 }
  0x76   : > { %1948 = vmatprep.subr.bf16.mxu1 %v2083_v20  ;;  %vm341_vm8 = vcmp.eq.s32.totalorder %v287_v50, %v2360_v2  ;;  %1699 = vmatprep.mubr.msk.bf16.mxu0 %vm1698_vm4, %v2161_v6  ;;  %vm1762_vm9 = vmpackc.low %vm342_vm3, %vm338_vm2  ;;  %vm344_vm10 = vcmp.eq.s32.totalorder %v288_v54, %v2354_v63  ;;  %vm348_vm11 = vcmp.eq.s32.totalorder %v289_v55, %v2354_v63  ;;  %v282_v41 = vadd.s32 232, %v2289_v16 }
  0x77   : > { %1763 = vmatprep.mubr.msk.bf16.mxu1 %vm1762_vm9, %v2161_v6  ;;  %vm1700_vm12 = vmpackc.low %vm339_vm6, %vm335_vm5  ;;  %vm346_vm13 = vcmp.eq.s32.totalorder %v288_v54, %v2356_v0  ;;  %vm350_vm14 = vcmp.eq.s32.totalorder %v289_v55, %v2356_v0  ;;  %vm343_vm1 = vcmp.eq.s32.totalorder %v288_v54, %v2358_v1  ;;  %vm347_vm2 = vcmp.eq.s32.totalorder %v289_v55, %v2358_v1 }
  0x78   : > { %1837 = vmatpush3.bf16.msra.mxu0 %v2084_v22  ;;  %vm1764_vm15 = vmpackc.low %vm341_vm8, %vm337_vm7  ;;  %vm345_vm4 = vcmp.eq.s32.totalorder %v288_v54, %v2360_v2  ;;  %vm349_vm5 = vcmp.eq.s32.totalorder %v289_v55, %v2360_v2  ;;  %vm352_vm6 = vcmp.eq.s32.totalorder %v290_v7, %v2354_v63  ;;  %vm356_vm7 = vcmp.eq.s32.totalorder %v291_v8, %v2354_v63 }
  0x79   : > { %1949 = vmatpush3.bf16.msra.mxu1 %v2085_v24  ;;  %1838 = vmatprep.subr.bf16.mxu0 %v2086_v25  ;;  %vm1702_vm0 = vmpackc.low %vm348_vm11, %vm344_vm10  ;;  %vm354_vm9 = vcmp.eq.s32.totalorder %v290_v7, %v2356_v0  ;;  %vm358_vm10 = vcmp.eq.s32.totalorder %v291_v8, %v2356_v0  ;;  %v2408_v18 = vadd.s32 %v2315_v40, %v259_v9  ;;  %v2434_v25 = vadd.s32 112, %v2289_v16 }
  0x7a   : > { %1950 = vmatprep.subr.bf16.mxu1 %v2087_v27  ;;  %vm1766_vm3 = vmpackc.low %vm350_vm14, %vm346_vm13  ;;  %v2411_v19 = vadd.s32 %v2315_v40, %v260_v10  ;;  %v2415_v20 = vadd.s32 %v2315_v40, %v261_v11  ;;  %v2418_v21 = vadd.s32 %v2315_v40, %v262_v12  ;;  %v2421_v22 = vadd.s32 %v2315_v40, %v263_v13 }
  0x7b   : > { %vm1704_vm8 = vmpackc.low %vm347_vm2, %vm343_vm1  ;;  %v2424_v23 = vadd.s32 %v2315_v40, %v264_v14  ;;  %vm351_vm14 = vcmp.eq.s32.totalorder %v290_v7, %v2358_v1  ;;  %v2431_v24 = vadd.s32 %v2315_v40, %v265_v15  ;;  %vm357_vm1 = vcmp.eq.s32.totalorder %v291_v8, %v2360_v2 }
  0x7c   : > { %1839 = vmatpush3.bf16.msra.mxu0 %v2088_v29  ;;  %vm1768_vm11 = vmpackc.low %vm349_vm5, %vm345_vm4  ;;  %v2440_v26 = vadd.s32 %v2315_v40, %v266_v17  ;;  %v2443_v27 = vadd.s32 208, %v2289_v16  ;;  %vm360_vm2 = vcmp.eq.s32.totalorder %v2408_v18, %v2354_v63  ;;  %vm362_vm4 = vcmp.eq.s32.totalorder %v2408_v18, %v2356_v0 }
  0x7d   : > { %1951 = vmatpush3.bf16.msra.mxu1 %v2089_v31  ;;  %1840 = vmatprep.subr.bf16.mxu0 %v2090_v33  ;;  %vm1770_vm13 = vmpackc.low %vm358_vm10, %vm354_vm9  ;;  %vm366_vm5 = vcmp.eq.s32.totalorder %v2411_v19, %v2356_v0  ;;  %vm365_vm10 = vcmp.eq.s32.totalorder %v2411_v19, %v2360_v2  ;;  %v280_v31 = vadd.s32 216, %v2289_v16  ;;  %v281_v33 = vadd.s32 224, %v2289_v16 }
  0x7e   : > { %1952 = vmatprep.subr.bf16.mxu1 %v2091_v35  ;;  %v283_v44 = vadd.s32 240, %v2289_v16  ;;  %v2704_v50 = vadd.s32 %v2315_v40, %v282_v41  ;;  %v3388_v57 = vmov 0  ;;  %v3392_v58 = vmov 0 }
  0x7f   : > { %v2636_v38 = vadd.s32 %v2315_v40, %v280_v31  ;;  %v3396_v59 = vmov 0  ;;  %v300_v61 = vadd.s32 %v2315_v40, %v2434_v25  ;;  %v269_v9 = vadd.s32 128, %v2289_v16 }
  0x80   : > { %1841 = vmatpush3.bf16.msra.mxu0 %v2092_v37  ;;  %v2633_v37 = vadd.s32 %v2315_v40, %v2443_v27  ;;  %v270_v10 = vadd.s32 136, %v2289_v16  ;;  %v3407_v11 = vmov 0  ;;  %v3415_v12 = vmov 0 }
  0x81   : > { %1953 = vmatpush3.bf16.msra.mxu1 %v2093_v39  ;;  %1842 = vmatprep.subr.bf16.mxu0 %v2094_v42  ;;  %v2650_v42 = vadd.s32 %v2315_v40, %v281_v33  ;;  %v3417_v13 = vmov 0  ;;  %v3421_v14 = vmov 0  ;;  %v3429_v15 = vmov 0 }
  0x82   : > { %1954 = vmatprep.subr.bf16.mxu1 %v2095_v45  ;;  %v284_v45 = vadd.s32 248, %v2289_v16  ;;  %v3431_v17 = vmov 0  ;;  %v3484_v28 = vmov 0  ;;  %v3499_v29 = vmov 0 }
  0x83   : > { %v3503_v30 = vmov 0  ;;  %v3507_v31 = vmov 0  ;;  %v3511_v32 = vmov 0  ;;  %v3515_v33 = vmov 0 }
  0x84   : > { %1843 = vmatpush3.bf16.msra.mxu0 %v2096_v48  ;;  %v268_v48 = vadd.s32 120, %v2289_v16  ;;  %v2728_v54 = vadd.s32 %v2315_v40, %v284_v45  ;;  %v3411_v16 = vmov 0  ;;  %v3519_v34 = vmov 0 }
  0x85   : > { %1955 = vmatpush3.bf16.msra.mxu1 %v2097_v53  ;;  %v2725_v53 = vadd.s32 %v2315_v40, %v283_v44  ;;  %v3523_v35 = vmov 0  ;;  %v783_v44 = vld [vmem:[%s2237_s30] sm:$0xff] }
  0x86   : > { %v301_v62 = vadd.s32 %v2315_v40, %v268_v48 }
  0x87   : > { %1701 = vmatmul.mubr.msk.bf16.vlgmr.msra.gmra.mxu0 %vm1700_vm12, %v2161_v6  ;;  %vm1706_vm12 = vmpackc.low %vm356_vm7, %vm352_vm6  ;;  %vm359_vm7 = vcmp.eq.s32.totalorder %v2408_v18, %v2358_v1 }
  0x88   : > { %1765 = vmatmul.mubr.msk.bf16.vlgmr.msra.gmra.mxu1 %vm1764_vm15, %v2161_v6  ;;  %1703 = vmatprep.mubr.msk.bf16.mxu0 %vm1702_vm0, %v2161_v6  ;;  %vm355_vm15 = vcmp.eq.s32.totalorder %v291_v8, %v2358_v1  ;;  %vm353_vm0 = vcmp.eq.s32.totalorder %v290_v7, %v2360_v2  ;;  %v3399_v7 = vmov 0  ;;  %v3403_v8 = vmov 0 }
  0x89   : > { %1767 = vmatprep.mubr.msk.bf16.mxu1 %vm1766_vm3, %v2161_v6  ;;  %vm364_vm3 = vcmp.eq.s32.totalorder %v2411_v19, %v2354_v63  ;;  %vm2453_vm6 = vmpackc.low %vm355_vm15, %vm351_vm14  ;;  %vm374_vm15 = vcmp.eq.s32.totalorder %v2418_v21, %v2356_v0  ;;  %vm390_vm14 = vcmp.eq.s32.totalorder %v2440_v26, %v2356_v0 }
  0x8a   : > { %vm2477_vm9 = vmpackc.low %vm364_vm3, %vm360_vm2  ;;  %vm369_vm3 = vcmp.eq.s32.totalorder %v2415_v20, %v2360_v2 }
  0x8b   : > { %vm2498_vm2 = vmpackc.low %vm366_vm5, %vm362_vm4  ;;  %vm376_vm5 = vcmp.eq.s32.totalorder %v2421_v22, %v2354_v63  ;;  %vm3369_vm4 = vcmp.eq.s32.totalorder %v2418_v21, %v2354_v63 }
  0x8f   : > { %1705 = vmatmul.mubr.msk.bf16.gmra.mxu0 %vm1704_vm8, %v2161_v6  ;;  %vm363_vm8 = vcmp.eq.s32.totalorder %v2411_v19, %v2358_v1  ;;  %v303_v19 = vadd.s32 %v2315_v40, %v270_v10 }
  0x90   : > { %1769 = vmatmul.mubr.msk.bf16.gmra.mxu1 %vm1768_vm11, %v2161_v6  ;;  %1707 = vmatprep.mubr.msk.bf16.mxu0 %vm1706_vm12, %v2161_v6  ;;  %vm2465_vm11 = vmpackc.low %vm357_vm1, %vm353_vm0  ;;  %vm367_vm0 = vcmp.eq.s32.totalorder %v2415_v20, %v2358_v1  ;;  %vm3410_vm1 = vcmp.eq.s32.totalorder %v2325_v46, %v2358_v1 }
  0x91   : > { %1771 = vmatprep.mubr.msk.bf16.mxu1 %vm1770_vm13, %v2161_v6  ;;  %vm380_vm13 = vcmp.eq.s32.totalorder %v2424_v23, %v2354_v63  ;;  %vm2579_vm12 = vmpackc.low %vm363_vm8, %vm359_vm7  ;;  %vm3365_vm8 = vcmp.eq.s32.totalorder %v2408_v18, %v2360_v2  ;;  %vm3386_vm7 = vcmp.eq.s32.totalorder %v2421_v22, %v2358_v1  ;;  %v302_v18 = vadd.s32 %v2315_v40, %v269_v9  ;;  %v785_v9 = vld [vmem:[%s2237_s30 + $0x10] sm:$0xff] }
  0x92   : > { %v3440_v40 = vmov 0 }
  0x97   : > { %1709 = vmatmul.mubr.msk.bf16.gmra.mxu0 %vm2453_vm6, %v2161_v6  ;;  %vm378_vm6 = vcmp.eq.s32.totalorder %v2421_v22, %v2356_v0 }
  0x98   : > { %1773 = vmatmul.mubr.msk.bf16.gmra.mxu1 %vm2465_vm11, %v2161_v6  ;;  %1711 = vmatprep.mubr.msk.bf16.mxu0 %vm2477_vm9, %v2161_v6  ;;  %vm2601_vm11 = vmpackc.low %vm365_vm10, %vm3365_vm8  ;;  %vm3368_vm8 = vcmp.eq.s32.totalorder %v2415_v20, %v2354_v63  ;;  %vm3372_vm10 = vcmp.eq.s32.totalorder %v2415_v20, %v2356_v0  ;;  %vm3409_vm9 = vcmp.eq.s32.totalorder %v2320_v43, %v2358_v1  ;;  %v3435_v20 = vmov 0 }
  0x99   : > { %1775 = vmatprep.mubr.msk.bf16.mxu1 %vm2498_vm2, %v2161_v6  ;;  %vm2623_vm2 = vmpackc.low %vm3369_vm4, %vm3368_vm8  ;;  %vm3394_vm8 = vcmp.eq.s32.totalorder %v2431_v24, %v2354_v63 }
  0x9a   : > { %vm2644_vm4 = vmpackc.low %vm374_vm15, %vm3372_vm10  ;;  %vm3390_vm10 = vcmp.eq.s32.totalorder %v2421_v22, %v2360_v2  ;;  %v787_v22 = vld [vmem:[%s2237_s30 + $0x20] sm:$0xff] }
  0x9f   : > { %1713 = vmatmul.mubr.msk.bf16.gmra.mxu0 %vm2579_vm12, %v2161_v6  ;;  %vm3375_vm12 = vcmp.eq.s32.totalorder %v2418_v21, %v2358_v1 }
  0xa0   : > { %1777 = vmatmul.mubr.msk.bf16.gmra.mxu1 %vm2601_vm11, %v2161_v6  ;;  %1715 = vmatprep.mubr.msk.bf16.mxu0 %vm2623_vm2, %v2161_v6  ;;  %vm2677_vm15 = vmpackc.low %vm3375_vm12, %vm367_vm0  ;;  %vm3378_vm0 = vcmp.eq.s32.totalorder %v2418_v21, %v2360_v2  ;;  %vm3398_vm2 = vcmp.eq.s32.totalorder %v2431_v24, %v2356_v0  ;;  %vm392_vm11 = vcmp.eq.s32.totalorder %v300_v61, %v2354_v63  ;;  %v3455_v21 = vmov 0 }
  0xa1   : > { %1779 = vmatprep.mubr.msk.bf16.mxu1 %vm2644_vm4, %v2161_v6  ;;  %vm2697_vm12 = vmpackc.low %vm3378_vm0, %vm369_vm3  ;;  %vm396_vm0 = vcmp.eq.s32.totalorder %v301_v62, %v2354_v63 }
  0xa2   : > { %vm2716_vm3 = vmpackc.low %vm380_vm13, %vm376_vm5  ;;  %vm3383_vm13 = vcmp.eq.s32.totalorder %v2424_v23, %v2356_v0 }
  0xa3   : > { %vm2736_vm5 = vmpackc.low %vm3383_vm13, %vm378_vm6  ;;  %vm3387_vm6 = vcmp.eq.s32.totalorder %v2424_v23, %v2358_v1 }
  0xa4   : > { %vm2754_vm13 = vmpackc.low %vm3387_vm6, %vm3386_vm7  ;;  %vm3391_vm7 = vcmp.eq.s32.totalorder %v2424_v23, %v2360_v2 }
  0xa5   : > { %v3389_v57 = vsel %vm2754_vm13, 4294967295, %v3388_v57  ;;  %vm2772_vm6 = vmpackc.low %vm3391_vm7, %vm3390_vm10  ;;  %vm3395_vm10 = vcmp.eq.s32.totalorder %v2440_v26, %v2354_v63 }
  0xa6   : > { %v3393_v58 = vsel %vm2772_vm6, 4294967295, %v3392_v58  ;;  %vm2790_vm7 = vmpackc.low %vm3395_vm10, %vm3394_vm8  ;;  %vm3401_vm8 = vcmp.eq.s32.totalorder %v2320_v43, %v2354_v63 }
  0xa7   : > { %v3397_v59 = vsel %vm2790_vm7, 4294967295, %v3396_v59  ;;  %1717 = vmatmul.mubr.msk.bf16.gmra.mxu0 %vm2677_vm15, %v2161_v6  ;;  %vm2806_vm4 = vmpackc.low %vm390_vm14, %vm3398_vm2  ;;  %vm3402_vm15 = vcmp.eq.s32.totalorder %v2325_v46, %v2354_v63  ;;  %vm383_vm14 = vcmp.eq.s32.totalorder %v2431_v24, %v2358_v1  ;;  %vm387_vm2 = vcmp.eq.s32.totalorder %v2440_v26, %v2358_v1 }
  0xa8   : > { %v3400_v7 = vsel %vm2806_vm4, 4294967295, %v3399_v7  ;;  %1781 = vmatmul.mubr.msk.bf16.gmra.mxu1 %vm2697_vm12, %v2161_v6  ;;  %1719 = vmatprep.mubr.msk.bf16.mxu0 %vm2716_vm3, %v2161_v6  ;;  %vm2822_vm10 = vmpackc.low %vm3402_vm15, %vm3401_vm8  ;;  %vm3405_vm12 = vcmp.eq.s32.totalorder %v2320_v43, %v2356_v0  ;;  %vm3406_vm3 = vcmp.eq.s32.totalorder %v2325_v46, %v2356_v0  ;;  %vm389_vm15 = vcmp.eq.s32.totalorder %v2440_v26, %v2360_v2 }
  0xa9   : > { %v3404_v8 = vsel %vm2822_vm10, 4294967295, %v3403_v8  ;;  %1783 = vmatprep.mubr.msk.bf16.mxu1 %vm2736_vm5, %v2161_v6  ;;  %vm2841_vm8 = vmpackc.low %vm3406_vm3, %vm3405_vm12  ;;  %vm385_vm5 = vcmp.eq.s32.totalorder %v2431_v24, %v2360_v2  ;;  %vm394_vm3 = vcmp.eq.s32.totalorder %v300_v61, %v2356_v0  ;;  %vm3413_vm10 = vcmp.eq.s32.totalorder %v2320_v43, %v2360_v2 }
  0xaa   : > { %v3408_v11 = vsel %vm2841_vm8, 4294967295, %v3407_v11  ;;  %vm2857_vm12 = vmpackc.low %vm3410_vm1, %vm3409_vm9  ;;  %vm398_vm8 = vcmp.eq.s32.totalorder %v301_v62, %v2356_v0  ;;  %vm3414_vm4 = vcmp.eq.s32.totalorder %v2325_v46, %v2360_v2  ;;  %vm3419_vm1 = vcmp.eq.s32.totalorder %v2333_v51, %v2354_v63 }
  0xab   : > { %v3412_v16 = vsel %vm2857_vm12, 4294967295, %v3411_v16  ;;  %vm2869_vm7 = vmpackc.low %vm3414_vm4, %vm3413_vm10  ;;  %vm3420_vm9 = vcmp.eq.s32.totalorder %v2340_v56, %v2354_v63  ;;  %v3423_v43 = vmov 0  ;;  %v3425_v46 = vmov 0 }
  0xac   : > { %v3416_v12 = vsel %vm2869_vm7, 4294967295, %v3415_v12  ;;  %vm2873_vm6 = vmpackc.low %vm387_vm2, %vm383_vm14  ;;  %vm3427_vm10 = vcmp.eq.s32.totalorder %v2333_v51, %v2356_v0  ;;  %vm3428_vm14 = vcmp.eq.s32.totalorder %v2340_v56, %v2356_v0 }
  0xad   : > { %v3418_v13 = vsel %vm2873_vm6, 4294967295, %v3417_v13  ;;  %vm2883_vm12 = vmpackc.low %vm3420_vm9, %vm3419_vm1 }
  0xae   : > { %v3422_v14 = vsel %vm2883_vm12, 4294967295, %v3421_v14  ;;  %vm2887_vm13 = vmpackc.low %vm389_vm15, %vm385_vm5  ;;  %vm3438_vm15 = vcmp.eq.s32.totalorder %v2333_v51, %v2360_v2  ;;  %vm3454_vm12 = vcmp.eq.s32.totalorder %v2363_v3, %v2358_v1 }
  0xaf   : > { %v3424_v43 = vsel %vm2887_vm13, 4294967295, %v3423_v43  ;;  %vm2891_vm4 = vmpackc.low %vm396_vm0, %vm392_vm11  ;;  %vm3433_vm11 = vcmp.eq.s32.totalorder %v2333_v51, %v2358_v1  ;;  %vm3434_vm0 = vcmp.eq.s32.totalorder %v2340_v56, %v2358_v1  ;;  %v3446_v51 = vmov 0 }
  0xb0   : > { %v3426_v46 = vsel %vm2891_vm4, 4294967295, %v3425_v46  ;;  %vm2901_vm2 = vmpackc.low %vm3428_vm14, %vm3427_vm10  ;;  %vm3442_vm10 = vnez %v3393_v58  ;;  %vm3443_vm14 = vnez %v3397_v59 }
  0xb1   : > { %v3430_v15 = vsel %vm2901_vm2, 4294967295, %v3429_v15  ;;  %vm2905_vm1 = vmpackc.low %vm398_vm8, %vm394_vm3  ;;  %vm3437_vm8 = vnez %v3389_v57  ;;  %vm3439_vm3 = vcmp.eq.s32.totalorder %v2340_v56, %v2360_v2  ;;  %1785 = vmatmul.mubr.msk.bf16.gmra.mxu1 %vm3442_vm10, %v2161_v6  ;;  %vm395_vm10 = vcmp.eq.s32.totalorder %v301_v62, %v2358_v1 }
  0xb2   : > { %v3432_v17 = vsel %vm2905_vm1, 4294967295, %v3431_v17  ;;  %vm2917_vm5 = vmpackc.low %vm3434_vm0, %vm3433_vm11  ;;  %1721 = vmatmul.mubr.msk.bf16.gmra.mxu0 %vm3437_vm8, %v2161_v6  ;;  %vm3444_vm11 = vcmp.eq.s32.totalorder %v2350_v60, %v2354_v63  ;;  %vm3445_vm0 = vcmp.eq.s32.totalorder %v2363_v3, %v2354_v63  ;;  %v3451_v56 = vmov 0 }
  0xb3   : > { %v3436_v20 = vsel %vm2917_vm5, 4294967295, %v3435_v20  ;;  %vm2930_vm9 = vmpackc.low %vm3439_vm3, %vm3438_vm15  ;;  %1723 = vmatprep.mubr.msk.bf16.mxu0 %vm3443_vm14, %v2161_v6  ;;  %vm3448_vm15 = vnez %v3400_v7  ;;  %vm391_vm3 = vcmp.eq.s32.totalorder %v300_v61, %v2358_v1  ;;  %vm3449_vm14 = vcmp.eq.s32.totalorder %v2350_v60, %v2356_v0 }
  0xb4   : > { %v3441_v40 = vsel %vm2930_vm9, 4294967295, %v3440_v40  ;;  %vm2946_vm8 = vmpackc.low %vm3445_vm0, %vm3444_vm11  ;;  %1787 = vmatprep.mubr.msk.bf16.mxu1 %vm3448_vm15, %v2161_v6  ;;  %vm3450_vm9 = vcmp.eq.s32.totalorder %v2363_v3, %v2356_v0  ;;  %vm393_vm11 = vcmp.eq.s32.totalorder %v300_v61, %v2360_v2  ;;  %vm397_vm0 = vcmp.eq.s32.totalorder %v301_v62, %v2360_v2 }
  0xb5   : > { %v3447_v51 = vsel %vm2946_vm8, 4294967295, %v3446_v51  ;;  %vm2961_vm5 = vmpackc.low %vm3450_vm9, %vm3449_vm14  ;;  %vm400_vm15 = vcmp.eq.s32.totalorder %v302_v18, %v2354_v63  ;;  %vm404_vm8 = vcmp.eq.s32.totalorder %v303_v19, %v2354_v63  ;;  %vm3453_vm2 = vcmp.eq.s32.totalorder %v2350_v60, %v2358_v1 }
  0xb6   : > { %v3452_v56 = vsel %vm2961_vm5, 4294967295, %v3451_v56  ;;  %vm2975_vm7 = vmpackc.low %vm3454_vm12, %vm3453_vm2  ;;  %vm402_vm9 = vcmp.eq.s32.totalorder %v302_v18, %v2356_v0  ;;  %vm406_vm14 = vcmp.eq.s32.totalorder %v303_v19, %v2356_v0  ;;  %vm3457_vm5 = vcmp.eq.s32.totalorder %v2350_v60, %v2360_v2 }
  0xb7   : > { %v3456_v21 = vsel %vm2975_vm7, 4294967295, %v3455_v21  ;;  %vm3458_vm1 = vcmp.eq.s32.totalorder %v2363_v3, %v2360_v2  ;;  %vm2991_vm13 = vmpackc.low %vm395_vm10, %vm391_vm3  ;;  %vm3463_vm12 = vcmp.eq.s32.totalorder %v2366_v4, %v2354_v63  ;;  %vm3464_vm2 = vcmp.eq.s32.totalorder %v2369_v5, %v2354_v63 }
  0xb8   : > { %vm2987_vm4 = vmpackc.low %vm3458_vm1, %vm3457_vm5  ;;  %vm3471_vm5 = vcmp.eq.s32.totalorder %v2366_v4, %v2356_v0  ;;  %vm3472_vm3 = vcmp.eq.s32.totalorder %v2369_v5, %v2356_v0 }
  0xb9   : > { %vm3001_vm7 = vmpackc.low %vm3464_vm2, %vm3463_vm12 }
  0xba   : > { %vm3005_vm6 = vmpackc.low %vm397_vm0, %vm393_vm11  ;;  %vm3478_vm11 = vcmp.eq.s32.totalorder %v2369_v5, %v2358_v1 }
  0xbb   : > { %vm3009_vm1 = vmpackc.low %vm404_vm8, %vm400_vm15  ;;  %vm3477_vm8 = vcmp.eq.s32.totalorder %v2366_v4, %v2358_v1  ;;  %vm3481_vm15 = vnez %v3418_v13 }
  0xbc   : > { %vm3019_vm10 = vmpackc.low %vm3472_vm3, %vm3471_vm5  ;;  %1725 = vmatmul.mubr.msk.bf16.gmra.mxu0 %vm3481_vm15, %v2161_v6  ;;  %vm3486_vm5 = vnez %v3424_v43  ;;  %vm3487_vm3 = vnez %v3426_v46 }
  0xbd   : > { %vm3023_vm12 = vmpackc.low %vm406_vm14, %vm402_vm9  ;;  %vm3482_vm9 = vcmp.eq.s32.totalorder %v2366_v4, %v2360_v2  ;;  %vm3483_vm14 = vcmp.eq.s32.totalorder %v2369_v5, %v2360_v2  ;;  %1789 = vmatmul.mubr.msk.bf16.gmra.mxu1 %vm3486_vm5, %v2161_v6  ;;  %1727 = vmatprep.mubr.msk.bf16.mxu0 %vm3487_vm3, %v2161_v6  ;;  %v3490_v4 = vmov 0  ;;  %vm3494_vm5 = vcmp.eq.s32.totalorder %v2636_v38, %v2356_v0 }
  0xbe   : > { %vm3033_vm0 = vmpackc.low %vm3478_vm11, %vm3477_vm8  ;;  %vm3488_vm8 = vcmp.eq.s32.totalorder %v2633_v37, %v2354_v63  ;;  %vm3489_vm11 = vcmp.eq.s32.totalorder %v2636_v38, %v2354_v63  ;;  %v3495_v5 = vmov 0 }
  0xbf   : > { %vm3046_vm2 = vmpackc.low %vm3483_vm14, %vm3482_vm9  ;;  %vm3492_vm9 = vnez %v3432_v17  ;;  %vm3493_vm14 = vcmp.eq.s32.totalorder %v2633_v37, %v2356_v0 }
  0xc0   : > { %v3485_v28 = vsel %vm3046_vm2, 4294967295, %v3484_v28  ;;  %vm3062_vm15 = vmpackc.low %vm3489_vm11, %vm3488_vm8  ;;  %1791 = vmatprep.mubr.msk.bf16.mxu1 %vm3492_vm9, %v2161_v6  ;;  %vm3497_vm8 = vcmp.eq.s32.totalorder %v2633_v37, %v2358_v1  ;;  %vm3498_vm11 = vcmp.eq.s32.totalorder %v2636_v38, %v2358_v1  ;;  %vm3501_vm9 = vcmp.eq.s32.totalorder %v2633_v37, %v2360_v2 }
  0xc1   : > { %v3491_v4 = vsel %vm3062_vm15, 4294967295, %v3490_v4  ;;  %vm3075_vm3 = vmpackc.low %vm3494_vm5, %vm3493_vm14  ;;  %vm3502_vm2 = vcmp.eq.s32.totalorder %v2636_v38, %v2360_v2  ;;  %vm3505_vm5 = vcmp.eq.s32.totalorder %v2650_v42, %v2354_v63 }
  0xc2   : > { %v3496_v5 = vsel %vm3075_vm3, 4294967295, %v3495_v5  ;;  %vm3085_vm15 = vmpackc.low %vm3498_vm11, %vm3497_vm8  ;;  %vm3506_vm3 = vcmp.eq.s32.totalorder %v2704_v50, %v2354_v63  ;;  %vm3509_vm11 = vcmp.eq.s32.totalorder %v2650_v42, %v2356_v0 }
  0xc3   : > { %v3500_v29 = vsel %vm3085_vm15, 4294967295, %v3499_v29  ;;  %vm3095_vm14 = vmpackc.low %vm3502_vm2, %vm3501_vm9  ;;  %vm3510_vm15 = vcmp.eq.s32.totalorder %v2704_v50, %v2356_v0  ;;  %vm3513_vm9 = vcmp.eq.s32.totalorder %v2650_v42, %v2358_v1 }
  0xc4   : > { %v3504_v30 = vsel %vm3095_vm14, 4294967295, %v3503_v30  ;;  %vm3105_vm8 = vmpackc.low %vm3506_vm3, %vm3505_vm5  ;;  %vm3514_vm14 = vcmp.eq.s32.totalorder %v2704_v50, %v2358_v1  ;;  %1729 = vmatmul.mubr.msk.bf16.gmra.mxu0 %vm2991_vm13, %v2161_v6  ;;  %vm3518_vm5 = vcmp.eq.s32.totalorder %v2704_v50, %v2360_v2  ;;  %vm3521_vm13 = vcmp.eq.s32.totalorder %v2725_v53, %v2354_v63 }
  0xc5   : > { %v3508_v31 = vsel %vm3105_vm8, 4294967295, %v3507_v31  ;;  %vm3115_vm2 = vmpackc.low %vm3510_vm15, %vm3509_vm11  ;;  %vm3517_vm15 = vcmp.eq.s32.totalorder %v2650_v42, %v2360_v2  ;;  %1793 = vmatmul.mubr.msk.bf16.gmra.mxu1 %vm3005_vm6, %v2161_v6  ;;  %1731 = vmatprep.mubr.msk.bf16.mxu0 %vm3009_vm1, %v2161_v6  ;;  %vm399_vm6 = vcmp.eq.s32.totalorder %v302_v18, %v2358_v1  ;;  %vm3525_vm1 = vcmp.eq.s32.totalorder %v2725_v53, %v2356_v0 }
  0xc6   : > { %v3512_v32 = vsel %vm3115_vm2, 4294967295, %v3511_v32  ;;  %vm3125_vm3 = vmpackc.low %vm3514_vm14, %vm3513_vm9  ;;  %vm3522_vm14 = vcmp.eq.s32.totalorder %v2728_v54, %v2354_v63  ;;  %1795 = vmatprep.mubr.msk.bf16.mxu1 %vm3023_vm12, %v2161_v6  ;;  %v3527_v63 = vmov 0  ;;  %vm3529_vm12 = vcmp.eq.s32.totalorder %v2725_v53, %v2358_v1 }
  0xc7   : > { %v3516_v33 = vsel %vm3125_vm3, 4294967295, %v3515_v33  ;;  %vm3138_vm11 = vmpackc.low %vm3518_vm5, %vm3517_vm15  ;;  %vm403_vm15 = vcmp.eq.s32.totalorder %v303_v19, %v2358_v1  ;;  %vm3526_vm5 = vcmp.eq.s32.totalorder %v2728_v54, %v2356_v0 }
  0xc8   : > { %v3520_v34 = vsel %vm3138_vm11, 4294967295, %v3519_v34  ;;  %vm3154_vm9 = vmpackc.low %vm3522_vm14, %vm3521_vm13  ;;  %vm401_vm13 = vcmp.eq.s32.totalorder %v302_v18, %v2360_v2  ;;  %vm405_vm14 = vcmp.eq.s32.totalorder %v303_v19, %v2360_v2 }
  0xc9   : > { %v3524_v35 = vsel %vm3154_vm9, 4294967295, %v3523_v35  ;;  %vm3169_vm11 = vmpackc.low %vm3526_vm5, %vm3525_vm1  ;;  %vm3530_vm9 = vcmp.eq.s32.totalorder %v2728_v54, %v2358_v1  ;;  %vm3533_vm1 = vcmp.eq.s32.totalorder %v2725_v53, %v2360_v2  ;;  %vm3534_vm5 = vcmp.eq.s32.totalorder %v2728_v54, %v2360_v2  ;;  %v784_v54 = vld [vmem:[%s2237_s30 + $0x8] sm:$0xff] }
  0xca   : > { %v3528_v63 = vsel %vm3169_vm11, 4294967295, %v3527_v63  ;;  %vm3181_vm3 = vmpackc.low %vm3530_vm9, %vm3529_vm12  ;;  %vm3537_vm9 = vnez %v3404_v8  ;;  %vm3538_vm12 = vnez %v3408_v11 }
  0xcb   : > { %vm3191_vm11 = vmpackc.low %vm3534_vm5, %vm3533_vm1  ;;  %vm3539_vm1 = vnez %v3412_v16  ;;  %vm3546_vm5 = vnez %v3452_v56 }
  0xcc   : > { %vm1732_vm2 = vmpackc.low %vm403_vm15, %vm399_vm6  ;;  %vm3540_vm6 = vnez %v3416_v12  ;;  %vm3543_vm15 = vnez %v3436_v20 }
  0xcd   : > { %vm1796_vm8 = vmpackc.low %vm405_vm14, %vm401_vm13  ;;  %1733 = vmatmul.mubr.msk.bf16.gmra.mxu0 %vm1732_vm2, %v2161_v6  ;;  %vm3541_vm2 = vnez %v3422_v14  ;;  %vm3544_vm13 = vnez %v3441_v40  ;;  %vm3545_vm14 = vnez %v3447_v51 }
  0xce   : > { %1797 = vmatmul.mubr.msk.bf16.gmra.mxu1 %vm1796_vm8, %v2161_v6  ;;  %1735 = vmatprep.mubr.msk.bf16.mxu0 %vm3537_vm9, %v2161_v6  ;;  %vm3542_vm8 = vnez %v3430_v15  ;;  %vm3547_vm9 = vnez %v3456_v21  ;;  %v786_v15 = vld [vmem:[%s2237_s30 + $0x18] sm:$0xff] }
  0xcf   : > { %1799 = vmatprep.mubr.msk.bf16.mxu1 %vm3538_vm12, %v2161_v6  ;;  %vm3548_vm12 = vnez %v3485_v28 }
  0xd5   : > { %1737 = vmatmul.mubr.msk.bf16.gmra.mxu0 %vm3539_vm1, %v2161_v6  ;;  %vm3549_vm1 = vnez %v3491_v4  ;;  %v788_v4 = vld [vmem:[%s2237_s30 + $0x28] sm:$0xff] }
  0xd6   : > { %1801 = vmatmul.mubr.msk.bf16.gmra.mxu1 %vm3540_vm6, %v2161_v6  ;;  %1739 = vmatprep.mubr.msk.bf16.mxu0 %vm3541_vm2, %v2161_v6  ;;  %vm3554_vm6 = vnez %v3512_v32  ;;  %vm3555_vm2 = vnez %v3516_v33 }
  0xd7   : > { %1803 = vmatprep.mubr.msk.bf16.mxu1 %vm3542_vm8, %v2161_v6  ;;  %vm3556_vm8 = vnez %v3520_v34 }
  0xdd   : > { %1741 = vmatmul.mubr.msk.bf16.gmra.mxu0 %vm3543_vm15, %v2161_v6  ;;  %vm3557_vm15 = vnez %v3524_v35 }
  0xde   : > { %1805 = vmatmul.mubr.msk.bf16.gmra.mxu1 %vm3544_vm13, %v2161_v6  ;;  %1743 = vmatprep.mubr.msk.bf16.mxu0 %vm3545_vm14, %v2161_v6  ;;  %vm3558_vm13 = vnez %v3528_v63  ;;  %v789_v63 = vld [vmem:[%s2237_s30 + $0x30] sm:$0xff] }
  0xdf   : > { %1807 = vmatprep.mubr.msk.bf16.mxu1 %vm3546_vm5, %v2161_v6 }
  0xe5   : > { %1745 = vmatmul.mubr.msk.bf16.gmra.mxu0 %vm3547_vm9, %v2161_v6 }
  0xe6   : > { %1809 = vmatmul.mubr.msk.bf16.gmra.mxu1 %vm2987_vm4, %v2161_v6  ;;  %1747 = vmatprep.mubr.msk.bf16.mxu0 %vm3001_vm7, %v2161_v6  ;;  %vm3550_vm4 = vnez %v3496_v5  ;;  %vm3551_vm7 = vnez %v3500_v29 }
  0xe7   : > { %1811 = vmatprep.mubr.msk.bf16.mxu1 %vm3019_vm10, %v2161_v6  ;;  %vm3552_vm10 = vnez %v3504_v30 }
  0xed   : > { %1749 = vmatmul.mubr.msk.bf16.gmra.mxu0 %vm3033_vm0, %v2161_v6  ;;  %vm3553_vm0 = vnez %v3508_v31 }
  0xee   : > { %1813 = vmatmul.mubr.msk.bf16.gmra.mxu1 %vm3548_vm12, %v2161_v6  ;;  %1751 = vmatprep.mubr.msk.bf16.mxu0 %vm3549_vm1, %v2161_v6 }
  0xef   : > { %1815 = vmatprep.mubr.msk.bf16.mxu1 %vm3550_vm4, %v2161_v6 }
  0xf5   : > { %1753 = vmatmul.mubr.msk.bf16.gmra.mxu0 %vm3551_vm7, %v2161_v6 }
  0xf6   : > { %1817 = vmatmul.mubr.msk.bf16.gmra.mxu1 %vm3552_vm10, %v2161_v6  ;;  %1755 = vmatprep.mubr.msk.bf16.mxu0 %vm3553_vm0, %v2161_v6 }
  0xf7   : > { %1819 = vmatprep.mubr.msk.bf16.mxu1 %vm3554_vm6, %v2161_v6 }
  0xfd   : > { %1757 = vmatmul.mubr.msk.bf16.gmra.mxu0 %vm3555_vm2, %v2161_v6 }
  0xfe   : > { %1821 = vmatmul.mubr.msk.bf16.gmra.mxu1 %vm3556_vm8, %v2161_v6  ;;  %1759 = vmatprep.mubr.msk.bf16.mxu0 %vm3557_vm15, %v2161_v6 }
  0xff   : > { %1823 = vmatprep.mubr.msk.bf16.mxu1 %vm3558_vm13, %v2161_v6 }
 0x105   : > { %1761 = vmatmul.mubr.msk.bf16.gmra.mxu0 %vm3181_vm3, %v2161_v6 }
 0x106   : > { %1825 = vmatmul.mubr.msk.bf16.gmra.mxu1 %vm3191_vm11, %v2161_v6 }
 0x147   : > { %v1844_v1 = vpop.f32.mrf.mxu0 }
 0x148   : > { %v1956_v2 = vpop.f32.mrf.mxu1 }
 0x149   : > { %v1845_v37 = vpop.f32.mrf.mxu0 }
 0x14a   : > { %v1846_v38 = vadd.f32 %v1845_v37, %v1844_v1  ;;  %v1957_v39 = vpop.f32.mrf.mxu1 }
 0x14b   : > { %v1958_v41 = vadd.f32 %v1957_v39, %v1956_v2  ;;  %v1847_v42 = vpop.f32.mrf.mxu0 }
 0x14c   : > { %v1959_v45 = vpop.f32.mrf.mxu1 }
 0x14d   : > { %v1267_v47 = vadd.f32 %v1958_v41, %v1846_v38  ;;  %v1848_v48 = vpop.f32.mrf.mxu0 }
 0x14e   : > { %v1849_v49 = vadd.f32 %v1848_v48, %v1847_v42  ;;  %v1960_v50 = vpop.f32.mrf.mxu1  ;;  %v790_v42 = vld [vmem:[%s2237_s30 + $0x38] sm:$0xff] }
 0x14f   : > { %v1393_v52 = vadd.f32 %v1267_v47, %v783_v44  ;;  %v1961_v53 = vadd.f32 %v1960_v50, %v1959_v45  ;;  %v1850_v6 = vpop.f32.mrf.mxu0 }
 0x150   : > { %v1962_v55 = vpop.f32.mrf.mxu1 }
 0x151   : > { %1425 = vst [vmem:[%s2237_s30] sm:$0xff] %v1393_v52  ;;  %v1270_v57 = vadd.f32 %v1961_v53, %v1849_v49  ;;  %v1851_v58 = vpop.f32.mrf.mxu0 }
 0x152   : > { %v1852_v59 = vadd.f32 %v1851_v58, %v1850_v6  ;;  %v1963_v61 = vpop.f32.mrf.mxu1  ;;  %v791_v6 = vld [vmem:[%s2237_s30 + $0x40] sm:$0xff] }
 0x153   : > { %v1394_v62 = vadd.f32 %v1270_v57, %v784_v54  ;;  %v1964_v7 = vadd.f32 %v1963_v61, %v1962_v55  ;;  %v1853_v8 = vpop.f32.mrf.mxu0 }
 0x154   : > { %v1965_v10 = vpop.f32.mrf.mxu1 }
 0x155   : > { %1426 = vst [vmem:[%s2237_s30 + $0x8] sm:$0xff] %v1394_v62  ;;  %v1275_v11 = vadd.f32 %v1964_v7, %v1852_v59  ;;  %v1854_v16 = vpop.f32.mrf.mxu0 }
 0x156   : > { %v1855_v12 = vadd.f32 %v1854_v16, %v1853_v8  ;;  %v1966_v13 = vpop.f32.mrf.mxu1  ;;  %v792_v8 = vld [vmem:[%s2237_s30 + $0x48] sm:$0xff] }
 0x157   : > { %v1395_v14 = vadd.f32 %v1275_v11, %v785_v9  ;;  %v1967_v43 = vadd.f32 %v1966_v13, %v1965_v10  ;;  %v1856_v46 = vpop.f32.mrf.mxu0 }
 0x158   : > { %v1968_v17 = vpop.f32.mrf.mxu1 }
 0x159   : > { %1427 = vst [vmem:[%s2237_s30 + $0x10] sm:$0xff] %v1395_v14  ;;  %v1278_v18 = vadd.f32 %v1967_v43, %v1855_v12  ;;  %v1857_v19 = vpop.f32.mrf.mxu0 }
 0x15a   : > { %v1858_v20 = vadd.f32 %v1857_v19, %v1856_v46  ;;  %v1969_v40 = vpop.f32.mrf.mxu1  ;;  %v793_v46 = vld [vmem:[%s2237_s30 + $0x50] sm:$0xff] }
 0x15b   : > { %v1396_v51 = vadd.f32 %v1278_v18, %v786_v15  ;;  %v1970_v56 = vadd.f32 %v1969_v40, %v1968_v17  ;;  %v1859_v21 = vpop.f32.mrf.mxu0 }
 0x15c   : > { %v1971_v23 = vpop.f32.mrf.mxu1 }
 0x15d   : > { %1428 = vst [vmem:[%s2237_s30 + $0x18] sm:$0xff] %v1396_v51  ;;  %v1283_v24 = vadd.f32 %v1970_v56, %v1858_v20  ;;  %v1860_v60 = vpop.f32.mrf.mxu0 }
 0x15e   : > { %v1861_v3 = vadd.f32 %v1860_v60, %v1859_v21  ;;  %v1972_v25 = vpop.f32.mrf.mxu1  ;;  %v794_v21 = vld [vmem:[%s2237_s30 + $0x58] sm:$0xff] }
 0x15f   : > { %v1397_v26 = vadd.f32 %v1283_v24, %v787_v22  ;;  %v1973_v27 = vadd.f32 %v1972_v25, %v1971_v23  ;;  %v1862_v28 = vpop.f32.mrf.mxu0 }
 0x160   : > { %v1974_v5 = vpop.f32.mrf.mxu1 }
 0x161   : > { %1429 = vst [vmem:[%s2237_s30 + $0x20] sm:$0xff] %v1397_v26  ;;  %v1286_v29 = vadd.f32 %v1973_v27, %v1861_v3  ;;  %v1863_v30 = vpop.f32.mrf.mxu0 }
 0x162   : > { %v1864_v31 = vadd.f32 %v1863_v30, %v1862_v28  ;;  %v1975_v32 = vpop.f32.mrf.mxu1  ;;  %v795_v28 = vld [vmem:[%s2237_s30 + $0x60] sm:$0xff] }
 0x163   : > { %v1398_v33 = vadd.f32 %v1286_v29, %v788_v4  ;;  %v1976_v34 = vadd.f32 %v1975_v32, %v1974_v5  ;;  %v1865_v35 = vpop.f32.mrf.mxu0 }
 0x164   : > { %v1977_v36 = vpop.f32.mrf.mxu1 }
 0x165   : > { %1430 = vst [vmem:[%s2237_s30 + $0x28] sm:$0xff] %v1398_v33  ;;  %v1291_v0 = vadd.f32 %v1976_v34, %v1864_v31  ;;  %v1866_v1 = vpop.f32.mrf.mxu0 }
 0x166   : > { %v1867_v2 = vadd.f32 %v1866_v1, %v1865_v35  ;;  %v1978_v37 = vpop.f32.mrf.mxu1  ;;  %v796_v35 = vld [vmem:[%s2237_s30 + $0x68] sm:$0xff] }
 0x167   : > { %v1399_v38 = vadd.f32 %v1291_v0, %v789_v63  ;;  %v1979_v39 = vadd.f32 %v1978_v37, %v1977_v36  ;;  %v1868_v41 = vpop.f32.mrf.mxu0 }
 0x168   : > { %v1980_v44 = vpop.f32.mrf.mxu1 }
 0x169   : > { %1431 = vst [vmem:[%s2237_s30 + $0x30] sm:$0xff] %v1399_v38  ;;  %v1294_v45 = vadd.f32 %v1979_v39, %v1867_v2  ;;  %v1869_v47 = vpop.f32.mrf.mxu0 }
 0x16a   : > { %v1870_v48 = vadd.f32 %v1869_v47, %v1868_v41  ;;  %v1981_v49 = vpop.f32.mrf.mxu1  ;;  %v797_v41 = vld [vmem:[%s2237_s30 + $0x70] sm:$0xff] }
 0x16b   : > { %v1400_v50 = vadd.f32 %v1294_v45, %v790_v42  ;;  %v1982_v52 = vadd.f32 %v1981_v49, %v1980_v44  ;;  %v1871_v53 = vpop.f32.mrf.mxu0 }
 0x16c   : > { %v1983_v54 = vpop.f32.mrf.mxu1 }
 0x16d   : > { %1432 = vst [vmem:[%s2237_s30 + $0x38] sm:$0xff] %v1400_v50  ;;  %v1299_v55 = vadd.f32 %v1982_v52, %v1870_v48  ;;  %v1872_v57 = vpop.f32.mrf.mxu0 }
 0x16e   : > { %v1873_v58 = vadd.f32 %v1872_v57, %v1871_v53  ;;  %v1984_v59 = vpop.f32.mrf.mxu1  ;;  %v798_v53 = vld [vmem:[%s2237_s30 + $0x78] sm:$0xff] }
 0x16f   : > { %v1401_v61 = vadd.f32 %v1299_v55, %v791_v6  ;;  %v1985_v62 = vadd.f32 %v1984_v59, %v1983_v54 }
 0x171   : > { %v1986_v9 = vpop.f32.mrf.mxu1  ;;  %1433 = vst [vmem:[%s2237_s30 + $0x40] sm:$0xff] %v1401_v61  ;;  %v1302_v10 = vadd.f32 %v1985_v62, %v1873_v58 }
 0x172   : > { %v1874_v7 = vpop.f32.mrf.mxu0 }
 0x173   : > { %v1987_v12 = vpop.f32.mrf.mxu1  ;;  %v1402_v13 = vadd.f32 %v1302_v10, %v792_v8 }
 0x174   : > { %v1875_v11 = vpop.f32.mrf.mxu0  ;;  %v1988_v14 = vadd.f32 %v1987_v12, %v1986_v9 }
 0x175   : > { %v1876_v16 = vadd.f32 %v1875_v11, %v1874_v7  ;;  %v1989_v15 = vpop.f32.mrf.mxu1  ;;  %1434 = vst [vmem:[%s2237_s30 + $0x48] sm:$0xff] %v1402_v13  ;;  %v799_v7 = vld [vmem:[%s2237_s30 + $0x80] sm:$0xff] }
 0x176   : > { %v1877_v43 = vpop.f32.mrf.mxu0 }
 0x177   : > { %v1307_v17 = vadd.f32 %v1988_v14, %v1876_v16  ;;  %v1990_v20 = vpop.f32.mrf.mxu1 }
 0x178   : > { %v1878_v18 = vpop.f32.mrf.mxu0  ;;  %v1991_v51 = vadd.f32 %v1990_v20, %v1989_v15 }
 0x179   : > { %v1879_v19 = vadd.f32 %v1878_v18, %v1877_v43  ;;  %v1403_v40 = vadd.f32 %v1307_v17, %v793_v46  ;;  %v800_v43 = vld [vmem:[%s2237_s30 + $0x88] sm:$0xff] }
 0x17b   : > { %1435 = vst [vmem:[%s2237_s30 + $0x50] sm:$0xff] %v1403_v40  ;;  %v1310_v23 = vadd.f32 %v1991_v51, %v1879_v19 }
 0x17c   : > { %v1880_v56 = vpop.f32.mrf.mxu0 }
 0x17d   : > { %v1992_v22 = vpop.f32.mrf.mxu1  ;;  %v1404_v25 = vadd.f32 %v1310_v23, %v794_v21 }
 0x17e   : > { %v1881_v24 = vpop.f32.mrf.mxu0 }
 0x17f   : > { %v1882_v60 = vadd.f32 %v1881_v24, %v1880_v56  ;;  %v1993_v3 = vpop.f32.mrf.mxu1  ;;  %1436 = vst [vmem:[%s2237_s30 + $0x58] sm:$0xff] %v1404_v25  ;;  %v801_v56 = vld [vmem:[%s2237_s30 + $0x90] sm:$0xff] }
 0x180   : > { %v1994_v26 = vadd.f32 %v1993_v3, %v1992_v22  ;;  %v1883_v27 = vpop.f32.mrf.mxu0 }
 0x181   : > { %v1995_v4 = vpop.f32.mrf.mxu1 }
 0x182   : > { %v1315_v5 = vadd.f32 %v1994_v26, %v1882_v60  ;;  %v1884_v29 = vpop.f32.mrf.mxu0 }
 0x183   : > { %v1885_v30 = vadd.f32 %v1884_v29, %v1883_v27  ;;  %v1996_v31 = vpop.f32.mrf.mxu1  ;;  %v802_v27 = vld [vmem:[%s2237_s30 + $0x98] sm:$0xff] }
 0x184   : > { %v1405_v32 = vadd.f32 %v1315_v5, %v795_v28  ;;  %v1997_v33 = vadd.f32 %v1996_v31, %v1995_v4  ;;  %v1886_v34 = vpop.f32.mrf.mxu0 }
 0x185   : > { %v1998_v63 = vpop.f32.mrf.mxu1 }
 0x186   : > { %1437 = vst [vmem:[%s2237_s30 + $0x60] sm:$0xff] %v1405_v32  ;;  %v1318_v36 = vadd.f32 %v1997_v33, %v1885_v30  ;;  %v1887_v0 = vpop.f32.mrf.mxu0 }
 0x187   : > { %v1888_v1 = vadd.f32 %v1887_v0, %v1886_v34  ;;  %v1999_v2 = vpop.f32.mrf.mxu1  ;;  %v803_v34 = vld [vmem:[%s2237_s30 + $0xa0] sm:$0xff] }
 0x188   : > { %v1406_v37 = vadd.f32 %v1318_v36, %v796_v35  ;;  %v2000_v38 = vadd.f32 %v1999_v2, %v1998_v63  ;;  %v1889_v39 = vpop.f32.mrf.mxu0 }
 0x189   : > { %v2001_v42 = vpop.f32.mrf.mxu1 }
 0x18a   : > { %1438 = vst [vmem:[%s2237_s30 + $0x68] sm:$0xff] %v1406_v37  ;;  %v1323_v44 = vadd.f32 %v2000_v38, %v1888_v1  ;;  %v1890_v45 = vpop.f32.mrf.mxu0 }
 0x18b   : > { %v1891_v47 = vadd.f32 %v1890_v45, %v1889_v39  ;;  %v2002_v48 = vpop.f32.mrf.mxu1  ;;  %v804_v39 = vld [vmem:[%s2237_s30 + $0xa8] sm:$0xff] }
 0x18c   : > { %v1407_v49 = vadd.f32 %v1323_v44, %v797_v41  ;;  %v2003_v50 = vadd.f32 %v2002_v48, %v2001_v42 }
 0x18d   : > { %v1892_v52 = vpop.f32.mrf.mxu0 }
 0x18e   : > { %v2004_v6 = vpop.f32.mrf.mxu1  ;;  %1439 = vst [vmem:[%s2237_s30 + $0x70] sm:$0xff] %v1407_v49  ;;  %v1326_v54 = vadd.f32 %v2003_v50, %v1891_v47 }
 0x18f   : > { %v1893_v55 = vpop.f32.mrf.mxu0 }
 0x190   : > { %v1894_v57 = vadd.f32 %v1893_v55, %v1892_v52  ;;  %v2005_v58 = vpop.f32.mrf.mxu1  ;;  %v1408_v59 = vadd.f32 %v1326_v54, %v798_v53  ;;  %v805_v52 = vld [vmem:[%s2237_s30 + $0xb0] sm:$0xff] }
 0x191   : > { %v2006_v61 = vadd.f32 %v2005_v58, %v2004_v6  ;;  %v1895_v62 = vpop.f32.mrf.mxu0 }
 0x192   : > { %v2007_v8 = vpop.f32.mrf.mxu1  ;;  %1440 = vst [vmem:[%s2237_s30 + $0x78] sm:$0xff] %v1408_v59 }
 0x193   : > { %v1331_v9 = vadd.f32 %v2006_v61, %v1894_v57  ;;  %v1896_v10 = vpop.f32.mrf.mxu0 }
 0x194   : > { %v1897_v11 = vadd.f32 %v1896_v10, %v1895_v62  ;;  %v2008_v16 = vpop.f32.mrf.mxu1  ;;  %v806_v62 = vld [vmem:[%s2237_s30 + $0xb8] sm:$0xff] }
 0x195   : > { %v1409_v12 = vadd.f32 %v1331_v9, %v799_v7  ;;  %v2009_v13 = vadd.f32 %v2008_v16, %v2007_v8  ;;  %v1898_v14 = vpop.f32.mrf.mxu0 }
 0x196   : > { %v2010_v46 = vpop.f32.mrf.mxu1 }
 0x197   : > { %1441 = vst [vmem:[%s2237_s30 + $0x80] sm:$0xff] %v1409_v12  ;;  %v1334_v15 = vadd.f32 %v2009_v13, %v1897_v11  ;;  %v1899_v17 = vpop.f32.mrf.mxu0 }
 0x198   : > { %v1900_v18 = vadd.f32 %v1899_v17, %v1898_v14  ;;  %v2011_v19 = vpop.f32.mrf.mxu1  ;;  %v807_v14 = vld [vmem:[%s2237_s30 + $0xc0] sm:$0xff] }
 0x199   : > { %v1410_v20 = vadd.f32 %v1334_v15, %v800_v43  ;;  %v2012_v40 = vadd.f32 %v2011_v19, %v2010_v46  ;;  %v1901_v51 = vpop.f32.mrf.mxu0 }
 0x19a   : > { %v2013_v21 = vpop.f32.mrf.mxu1 }
 0x19b   : > { %1442 = vst [vmem:[%s2237_s30 + $0x88] sm:$0xff] %v1410_v20  ;;  %v1339_v22 = vadd.f32 %v2012_v40, %v1900_v18  ;;  %v1902_v23 = vpop.f32.mrf.mxu0 }
 0x19c   : > { %v1903_v24 = vadd.f32 %v1902_v23, %v1901_v51  ;;  %v2014_v60 = vpop.f32.mrf.mxu1  ;;  %v808_v51 = vld [vmem:[%s2237_s30 + $0xc8] sm:$0xff] }
 0x19d   : > { %v1411_v3 = vadd.f32 %v1339_v22, %v801_v56  ;;  %v2015_v25 = vadd.f32 %v2014_v60, %v2013_v21  ;;  %v1904_v26 = vpop.f32.mrf.mxu0 }
 0x19e   : > { %v2016_v28 = vpop.f32.mrf.mxu1 }
 0x19f   : > { %1443 = vst [vmem:[%s2237_s30 + $0x90] sm:$0xff] %v1411_v3  ;;  %v1342_v4 = vadd.f32 %v2015_v25, %v1903_v24  ;;  %v1905_v5 = vpop.f32.mrf.mxu0 }
 0x1a0   : > { %v1906_v29 = vadd.f32 %v1905_v5, %v1904_v26  ;;  %v2017_v30 = vpop.f32.mrf.mxu1  ;;  %v809_v26 = vld [vmem:[%s2237_s30 + $0xd0] sm:$0xff] }
 0x1a1   : > { %v1412_v31 = vadd.f32 %v1342_v4, %v802_v27  ;;  %v2018_v32 = vadd.f32 %v2017_v30, %v2016_v28  ;;  %v1907_v33 = vpop.f32.mrf.mxu0 }
 0x1a2   : > { %v2019_v35 = vpop.f32.mrf.mxu1 }
 0x1a3   : > { %1444 = vst [vmem:[%s2237_s30 + $0x98] sm:$0xff] %v1412_v31  ;;  %v1347_v63 = vadd.f32 %v2018_v32, %v1906_v29  ;;  %v1908_v36 = vpop.f32.mrf.mxu0 }
 0x1a4   : > { %v1909_v0 = vadd.f32 %v1908_v36, %v1907_v33  ;;  %v2020_v1 = vpop.f32.mrf.mxu1  ;;  %v810_v33 = vld [vmem:[%s2237_s30 + $0xd8] sm:$0xff] }
 0x1a5   : > { %v1413_v2 = vadd.f32 %v1347_v63, %v803_v34  ;;  %v2021_v37 = vadd.f32 %v2020_v1, %v2019_v35  ;;  %v1910_v38 = vpop.f32.mrf.mxu0 }
 0x1a6   : > { %v2022_v41 = vpop.f32.mrf.mxu1 }
 0x1a7   : > { %1445 = vst [vmem:[%s2237_s30 + $0xa0] sm:$0xff] %v1413_v2  ;;  %v1350_v42 = vadd.f32 %v2021_v37, %v1909_v0  ;;  %v1911_v44 = vpop.f32.mrf.mxu0 }
 0x1a8   : > { %v1912_v45 = vadd.f32 %v1911_v44, %v1910_v38  ;;  %v2023_v47 = vpop.f32.mrf.mxu1  ;;  %v811_v38 = vld [vmem:[%s2237_s30 + $0xe0] sm:$0xff] }
 0x1a9   : > { %v1414_v48 = vadd.f32 %v1350_v42, %v804_v39  ;;  %v2024_v49 = vadd.f32 %v2023_v47, %v2022_v41  ;;  %v1913_v50 = vpop.f32.mrf.mxu0 }
 0x1aa   : > { %v2025_v53 = vpop.f32.mrf.mxu1 }
 0x1ab   : > { %1446 = vst [vmem:[%s2237_s30 + $0xa8] sm:$0xff] %v1414_v48  ;;  %v1355_v6 = vadd.f32 %v2024_v49, %v1912_v45  ;;  %v1914_v54 = vpop.f32.mrf.mxu0 }
 0x1ac   : > { %v1915_v55 = vadd.f32 %v1914_v54, %v1913_v50  ;;  %v2026_v57 = vpop.f32.mrf.mxu1  ;;  %v812_v50 = vld [vmem:[%s2237_s30 + $0xe8] sm:$0xff] }
 0x1ad   : > { %v1415_v58 = vadd.f32 %v1355_v6, %v805_v52  ;;  %v2027_v59 = vadd.f32 %v2026_v57, %v2025_v53  ;;  %v1916_v61 = vpop.f32.mrf.mxu0 }
 0x1ae   : > { %v2028_v7 = vpop.f32.mrf.mxu1 }
 0x1af   : > { %1447 = vst [vmem:[%s2237_s30 + $0xb0] sm:$0xff] %v1415_v58  ;;  %v1358_v8 = vadd.f32 %v2027_v59, %v1915_v55  ;;  %v1917_v9 = vpop.f32.mrf.mxu0 }
 0x1b0   : > { %v1918_v10 = vadd.f32 %v1917_v9, %v1916_v61  ;;  %v2029_v11 = vpop.f32.mrf.mxu1  ;;  %v813_v61 = vld [vmem:[%s2237_s30 + $0xf0] sm:$0xff] }
 0x1b1   : > { %v1416_v16 = vadd.f32 %v1358_v8, %v806_v62  ;;  %v2030_v12 = vadd.f32 %v2029_v11, %v2028_v7  ;;  %v1919_v13 = vpop.f32.mrf.mxu0 }
 0x1b2   : > { %v2031_v43 = vpop.f32.mrf.mxu1 }
 0x1b3   : > { %1448 = vst [vmem:[%s2237_s30 + $0xb8] sm:$0xff] %v1416_v16  ;;  %v1363_v46 = vadd.f32 %v2030_v12, %v1918_v10  ;;  %v1920_v15 = vpop.f32.mrf.mxu0  ;;  %v814_v12 = vld [vmem:[%s2237_s30 + $0xf8] sm:$0xff] }
 0x1b4   : > { %v1921_v17 = vadd.f32 %v1920_v15, %v1919_v13  ;;  %v2032_v18 = vpop.f32.mrf.mxu1 }
 0x1b5   : > { %v1417_v19 = vadd.f32 %v1363_v46, %v807_v14  ;;  %v2033_v20 = vadd.f32 %v2032_v18, %v2031_v43  ;;  %v1922_v40 = vpop.f32.mrf.mxu0 }
 0x1b6   : > { %v2034_v56 = vpop.f32.mrf.mxu1 }
 0x1b7   : > { %1449 = vst [vmem:[%s2237_s30 + $0xc0] sm:$0xff] %v1417_v19  ;;  %v1366_v21 = vadd.f32 %v2033_v20, %v1921_v17  ;;  %v1923_v22 = vpop.f32.mrf.mxu0 }
 0x1b8   : > { %v1924_v23 = vadd.f32 %v1923_v22, %v1922_v40  ;;  %v2035_v24 = vpop.f32.mrf.mxu1 }
 0x1b9   : > { %v1418_v60 = vadd.f32 %v1366_v21, %v808_v51  ;;  %v2036_v3 = vadd.f32 %v2035_v24, %v2034_v56  ;;  %v1925_v25 = vpop.f32.mrf.mxu0 }
 0x1ba   : > { %v2037_v27 = vpop.f32.mrf.mxu1 }
 0x1bb   : > { %1450 = vst [vmem:[%s2237_s30 + $0xc8] sm:$0xff] %v1418_v60  ;;  %v1371_v28 = vadd.f32 %v2036_v3, %v1924_v23  ;;  %v1926_v4 = vpop.f32.mrf.mxu0 }
 0x1bc   : > { %v1927_v5 = vadd.f32 %v1926_v4, %v1925_v25  ;;  %v2038_v29 = vpop.f32.mrf.mxu1 }
 0x1bd   : > { %v1419_v30 = vadd.f32 %v1371_v28, %v809_v26  ;;  %v2039_v31 = vadd.f32 %v2038_v29, %v2037_v27  ;;  %v1928_v32 = vpop.f32.mrf.mxu0 }
 0x1be   : > { %v2040_v34 = vpop.f32.mrf.mxu1 }
 0x1bf   : > { %1451 = vst [vmem:[%s2237_s30 + $0xd0] sm:$0xff] %v1419_v30  ;;  %v1374_v35 = vadd.f32 %v2039_v31, %v1927_v5  ;;  %v1929_v63 = vpop.f32.mrf.mxu0 }
 0x1c0   : > { %v1930_v36 = vadd.f32 %v1929_v63, %v1928_v32  ;;  %v2041_v0 = vpop.f32.mrf.mxu1 }
 0x1c1   : > { %v1420_v1 = vadd.f32 %v1374_v35, %v810_v33  ;;  %v2042_v2 = vadd.f32 %v2041_v0, %v2040_v34  ;;  %v1931_v37 = vpop.f32.mrf.mxu0 }
 0x1c2   : > { %v2043_v39 = vpop.f32.mrf.mxu1 }
 0x1c3   : > { %1452 = vst [vmem:[%s2237_s30 + $0xd8] sm:$0xff] %v1420_v1  ;;  %v1379_v41 = vadd.f32 %v2042_v2, %v1930_v36  ;;  %v1932_v42 = vpop.f32.mrf.mxu0 }
 0x1c4   : > { %v1933_v44 = vadd.f32 %v1932_v42, %v1931_v37  ;;  %v2044_v45 = vpop.f32.mrf.mxu1 }
 0x1c5   : > { %v1421_v47 = vadd.f32 %v1379_v41, %v811_v38  ;;  %v2045_v48 = vadd.f32 %v2044_v45, %v2043_v39  ;;  %v1934_v49 = vpop.f32.mrf.mxu0 }
 0x1c6   : > { %v2046_v52 = vpop.f32.mrf.mxu1 }
 0x1c7   : > { %1453 = vst [vmem:[%s2237_s30 + $0xe0] sm:$0xff] %v1421_v47  ;;  %v1382_v53 = vadd.f32 %v2045_v48, %v1933_v44  ;;  %v1935_v6 = vpop.f32.mrf.mxu0 }
 0x1c8   : > { %v1936_v54 = vadd.f32 %v1935_v6, %v1934_v49  ;;  %v2047_v55 = vpop.f32.mrf.mxu1 }
 0x1c9   : > { %v1422_v57 = vadd.f32 %v1382_v53, %v812_v50  ;;  %v2048_v58 = vadd.f32 %v2047_v55, %v2046_v52  ;;  %v1937_v59 = vpop.f32.mrf.mxu0 }
 0x1ca   : > { %v2049_v62 = vpop.f32.mrf.mxu1 }
 0x1cb   : > { %1454 = vst [vmem:[%s2237_s30 + $0xe8] sm:$0xff] %v1422_v57  ;;  %v1387_v7 = vadd.f32 %v2048_v58, %v1936_v54  ;;  %v1938_v8 = vpop.f32.mrf.mxu0 }
 0x1cc   : > { %v1939_v9 = vadd.f32 %v1938_v8, %v1937_v59  ;;  %v2050_v10 = vpop.f32.mrf.mxu1 }
 0x1cd   : > { %v1423_v11 = vadd.f32 %v1387_v7, %v813_v61  ;;  %v2051_v16 = vadd.f32 %v2050_v10, %v2049_v62 }
 0x1cf   : > { %1455 = vst [vmem:[%s2237_s30 + $0xf0] sm:$0xff] %v1423_v11  ;;  %v1390_v13 = vadd.f32 %v2051_v16, %v1939_v9 }
 0x1d1   : > { %v1424_v14 = vadd.f32 %v1390_v13, %v814_v12 }
 0x1d3   : > { %1456 = vst [vmem:[%s2237_s30 + $0xf8] sm:$0xff] %v1424_v14 }
 0x1d4 PF: > { %s34_s3 = sadd.s32 1, %s2154_s3  }
 0x1d5   : > { %p31_p0 = scmp.ge.s32.totalorder %s34_s3, 7  }
 0x1d7   :  { %33 = sbr.rel (!%p31_p0) target bundleno = 47 (0x2f), region = 69 }

// kernel: eegnn_forward.18
= control target key start
LH: loop header
LB: loop body
LE: loop exit
PB: predicated region body
PF: predicated region fallthrough
CT: control target
= control target key end

     0   :  { %v7879_v5 = vmov 0.0|0.0   ;;  %v7880_v34 = vmov 683565275   ;;  %v7881_v36 = vmov 2475754826   ;;  %s8225_s0 = inlined_call_operand.vmem [shape: bf16[512,128], index: 0, kind: input, shape index: {}]   ;;  %s8226_s1 = inlined_call_operand.vmem [shape: f32[1,128], index: 1, kind: input, shape index: {}]   ;;  %s8227_s2 = inlined_call_operand.vmem [shape: f32[1,128], index: 2, kind: input, shape index: {}]   ;;  %s8228_s3 = inlined_call_operand.vmem [shape: bf16[512,128], index: 3, kind: output, shape index: {}]  }
   0x1   :  { %v7848_v0 = vld [vmem:[%s8225_s0] sm:$0xff]   ;;  %v7783_v6 = vcombine.low %v7879_v5, %v7879_v5  ;;  %v7917_v7 = vcombine.high %v7879_v5, %v7879_v5  ;;  %v7882_v38 = vmov 2131351028   ;;  %v7883_v40 = vmov 2102212464  }
   0x2   :  { %v7523_v1 = vld [vmem:[%s8226_s1] ss:$0 sm:$0xff]  ;;  %v7849_v2 = vunpack.c.l.bf16 %v7848_v0  ;;  %v7850_v3 = vunpack.c.h.bf16 %v7848_v0  ;;  %v7884_v42 = vmov 920167782   ;;  %v7885_v50 = vmov 1326507024  }
   0x3   :  { %v7915_v4 = vld [vmem:[%s8227_s2] ss:$0 sm:$0xff]  ;;  %7457 = vst [vmem:[%s8228_s3 + $0x8] sm:$0xf] %v7783_v6  ;;  %7459 = vst [vmem:[%s8228_s3 + $0x10] sm:$0xf] %v7783_v6 }
   0x4   :  { %v7919_v8 = vsub.f32 %v7849_v2, %v7523_v1  ;;  %v7921_v9 = vsub.f32 %v7850_v3, %v7523_v1  ;;  %7461 = vst [vmem:[%s8228_s3 + $0x18] sm:$0xf] %v7783_v6  ;;  %7463 = vst [vmem:[%s8228_s3 + $0x20] sm:$0xf] %v7783_v6 }
   0x5   :  { %7465 = vst [vmem:[%s8228_s3 + $0x28] sm:$0xf] %v7783_v6  ;;  %7467 = vst [vmem:[%s8228_s3 + $0x30] sm:$0xf] %v7783_v6 }
   0x6   :  { %7469 = vst [vmem:[%s8228_s3 + $0x38] sm:$0xf] %v7783_v6  ;;  %7471 = vst [vmem:[%s8228_s3 + $0x40] sm:$0xf] %v7783_v6  ;;  %v8142_v10 = vmul.f32 %v7915_v4, %v7919_v8  ;;  %v8146_v11 = vmul.f32 %v7915_v4, %v7921_v9 }
   0x7   :  { %7473 = vst [vmem:[%s8228_s3 + $0x48] sm:$0xf] %v7783_v6  ;;  %7475 = vst [vmem:[%s8228_s3 + $0x50] sm:$0xf] %v7783_v6 }
   0x8   :  { %7477 = vst [vmem:[%s8228_s3 + $0x58] sm:$0xf] %v7783_v6  ;;  %7479 = vst [vmem:[%s8228_s3 + $0x60] sm:$0xf] %v7783_v6  ;;  %v479_v12 = vand.u32 2147483647, %v8142_v10 }
   0x9   :  { %7481 = vst [vmem:[%s8228_s3 + $0x68] sm:$0xf] %v7783_v6  ;;  %7483 = vst [vmem:[%s8228_s3 + $0x70] sm:$0xf] %v7783_v6  ;;  %v482_v13 = vand.u32 2139095040, %v8142_v10  ;;  %v586_v15 = vand.u32 2139095040, %v8146_v11 }
   0xa   :  { %7485 = vst [vmem:[%s8228_s3 + $0x78] sm:$0xf] %v7783_v6  ;;  %7487 = vst [vmem:[%s8228_s3 + $0x80] sm:$0xf] %v7783_v6  ;;  %v583_v14 = vand.u32 2147483647, %v8146_v11 }
   0xb   :  { %7489 = vst [vmem:[%s8228_s3 + $0x88] sm:$0xf] %v7783_v6  ;;  %7491 = vst [vmem:[%s8228_s3 + $0x90] sm:$0xf] %v7783_v6  ;;  %v483_v16 = vshrl.u32 %v482_v13, 23  ;;  %v587_v18 = vshrl.u32 %v586_v15, 23 }
   0xc   :  { %7493 = vst [vmem:[%s8228_s3 + $0x98] sm:$0xf] %v7783_v6  ;;  %7495 = vst [vmem:[%s8228_s3 + $0xa0] sm:$0xf] %v7783_v6  ;;  %v486_v17 = vand.u32 8388607, %v479_v12 }
   0xd   :  { %7497 = vst [vmem:[%s8228_s3 + $0xa8] sm:$0xf] %v7783_v6  ;;  %7499 = vst [vmem:[%s8228_s3 + $0xb0] sm:$0xf] %v7783_v6  ;;  %v590_v19 = vand.u32 8388607, %v583_v14 }
   0xe   :  { %7501 = vst [vmem:[%s8228_s3 + $0xb8] sm:$0xf] %v7783_v6  ;;  %7503 = vst [vmem:[%s8228_s3 + $0xc0] sm:$0xf] %v7783_v6  ;;  %v7525_v20 = vadd.s32 4294967169, %v483_v16  ;;  %v7529_v21 = vadd.s32 4294967169, %v587_v18 }
   0xf   :  { %7505 = vst [vmem:[%s8228_s3 + $0xc8] sm:$0xf] %v7783_v6  ;;  %7507 = vst [vmem:[%s8228_s3 + $0xd0] sm:$0xf] %v7783_v6  ;;  %v487_v23 = vor.u32 8388608, %v486_v17  ;;  %v591_v24 = vor.u32 8388608, %v590_v19 }
  0x10   :  { %7509 = vst [vmem:[%s8228_s3 + $0xd8] sm:$0xf] %v7783_v6  ;;  %7511 = vst [vmem:[%s8228_s3 + $0xe0] sm:$0xf] %v7783_v6  ;;  %v489_v22 = vadd.s32 1, %v7525_v20  ;;  %v593_v25 = vadd.s32 1, %v7529_v21 }
  0x11   :  { %7513 = vst [vmem:[%s8228_s3 + $0xe8] sm:$0xf] %v7783_v6  ;;  %7515 = vst [vmem:[%s8228_s3 + $0xf0] sm:$0xf] %v7783_v6  ;;  %v8156_v30 = vshll.u32 %v487_v23, 8  ;;  %v8158_v32 = vshll.u32 %v591_v24, 8 }
  0x12   :  { %7517 = vst [vmem:[%s8228_s3 + $0xf8] sm:$0xf] %v7783_v6  ;;  %7458 = vst [vmem:[%s8228_s3 + $0xc] sm:$0xf] %v7917_v7  ;;  %vm490_vm0 = vcmp.gt.s32.totalorder %v489_v22, 0  ;;  %vm594_vm1 = vcmp.gt.s32.totalorder %v593_v25, 0 }
  0x13   :  { %7460 = vst [vmem:[%s8228_s3 + $0x14] sm:$0xf] %v7917_v7  ;;  %7462 = vst [vmem:[%s8228_s3 + $0x1c] sm:$0xf] %v7917_v7  ;;  %v491_v26 = vsel %vm490_vm0, %v489_v22, 0  ;;  %v595_v29 = vsel %vm594_vm1, %v593_v25, 0 }
  0x14   :  { %7464 = vst [vmem:[%s8228_s3 + $0x24] sm:$0xf] %v7917_v7  ;;  %7466 = vst [vmem:[%s8228_s3 + $0x2c] sm:$0xf] %v7917_v7  ;;  %v492_v27 = vshrl.u32 %v491_v26, 5  ;;  %v493_v28 = vand.u32 31, %v491_v26 }
  0x15   :  { %7468 = vst [vmem:[%s8228_s3 + $0x34] sm:$0xf] %v7917_v7  ;;  %7470 = vst [vmem:[%s8228_s3 + $0x3c] sm:$0xf] %v7917_v7  ;;  %v597_v31 = vand.u32 31, %v595_v29  ;;  %v8160_v44 = vshrl.u32 %v595_v29, 5 }
  0x16   :  { %7472 = vst [vmem:[%s8228_s3 + $0x44] sm:$0xf] %v7917_v7  ;;  %7474 = vst [vmem:[%s8228_s3 + $0x4c] sm:$0xf] %v7917_v7  ;;  %v494_v33 = vsub.s32 32, %v493_v28  ;;  %v496_v35 = vshll.u32 %v7880_v34, %v493_v28  ;;  %v499_v37 = vshll.u32 %v7881_v36, %v493_v28  ;;  %v502_v39 = vshll.u32 %v7882_v38, %v493_v28 }
  0x17   :  { %7476 = vst [vmem:[%s8228_s3 + $0x54] sm:$0xf] %v7917_v7  ;;  %7478 = vst [vmem:[%s8228_s3 + $0x5c] sm:$0xf] %v7917_v7  ;;  %v505_v41 = vshll.u32 %v7883_v40, %v493_v28  ;;  %v508_v43 = vshll.u32 %v7884_v42, %v493_v28  ;;  %vm511_vm2 = vcmp.lt.s32.totalorder %v492_v27, 1  ;;  %vm512_vm3 = vcmp.lt.s32.totalorder %v492_v27, 2 }
  0x18   :  { %7480 = vst [vmem:[%s8228_s3 + $0x64] sm:$0xf] %v7917_v7  ;;  %7482 = vst [vmem:[%s8228_s3 + $0x6c] sm:$0xf] %v7917_v7  ;;  %v495_v45 = vshrl.u32 %v7880_v34, %v494_v33  ;;  %v497_v46 = vshrl.u32 %v7881_v36, %v494_v33  ;;  %v500_v47 = vshrl.u32 %v7882_v38, %v494_v33  ;;  %vm514_vm4 = vcmp.lt.s32.totalorder %v492_v27, 4 }
  0x19   :  { %7484 = vst [vmem:[%s8228_s3 + $0x74] sm:$0xf] %v7917_v7  ;;  %7486 = vst [vmem:[%s8228_s3 + $0x7c] sm:$0xf] %v7917_v7  ;;  %v503_v48 = vshrl.u32 %v7883_v40, %v494_v33  ;;  %v506_v49 = vshrl.u32 %v7884_v42, %v494_v33  ;;  %v509_v51 = vshrl.u32 %v7885_v50, %v494_v33  ;;  %v598_v55 = vsub.s32 32, %v597_v31 }
  0x1a   :  { %7488 = vst [vmem:[%s8228_s3 + $0x84] sm:$0xf] %v7917_v7  ;;  %7490 = vst [vmem:[%s8228_s3 + $0x8c] sm:$0xf] %v7917_v7  ;;  %v498_v52 = vor.u32 %v497_v46, %v496_v35  ;;  %v501_v53 = vor.u32 %v500_v47, %v499_v37  ;;  %vm513_vm5 = vcmp.lt.s32.totalorder %v492_v27, 3  ;;  %v600_v58 = vshll.u32 %v7880_v34, %v597_v31 }
  0x1b   :  { %7492 = vst [vmem:[%s8228_s3 + $0x94] sm:$0xf] %v7917_v7  ;;  %7494 = vst [vmem:[%s8228_s3 + $0x9c] sm:$0xf] %v7917_v7  ;;  %v504_v54 = vor.u32 %v503_v48, %v502_v39  ;;  %v507_v56 = vor.u32 %v506_v49, %v505_v41  ;;  %v510_v57 = vor.u32 %v509_v51, %v508_v43  ;;  %vm615_vm6 = vcmp.lt.s32.totalorder %v8160_v44, 1 }
  0x1c   :  { %7496 = vst [vmem:[%s8228_s3 + $0xa4] sm:$0xf] %v7917_v7  ;;  %7498 = vst [vmem:[%s8228_s3 + $0xac] sm:$0xf] %v7917_v7  ;;  %v515_v59 = vsel %vm511_vm2, %v495_v45, %v498_v52  ;;  %v519_v61 = vsel %vm511_vm2, %v498_v52, %v501_v53  ;;  %v603_v2 = vshll.u32 %v7881_v36, %v597_v31  ;;  %vm616_vm7 = vcmp.lt.s32.totalorder %v8160_v44, 2 }
  0x1d   :  { %7500 = vst [vmem:[%s8228_s3 + $0xb4] sm:$0xf] %v7917_v7  ;;  %7502 = vst [vmem:[%s8228_s3 + $0xbc] sm:$0xf] %v7917_v7  ;;  %v516_v60 = vsel %vm514_vm4, %v504_v54, 2102212464  ;;  %v523_v62 = vsel %vm511_vm2, %v501_v53, %v504_v54  ;;  %v599_v5 = vshrl.u32 %v7880_v34, %v598_v55  ;;  %v601_v6 = vshrl.u32 %v7881_v36, %v598_v55 }
  0x1e   :  { %7504 = vst [vmem:[%s8228_s3 + $0xc4] sm:$0xf] %v7917_v7  ;;  %7506 = vst [vmem:[%s8228_s3 + $0xcc] sm:$0xf] %v7917_v7  ;;  %v517_v63 = vsel %vm513_vm5, %v501_v53, %v516_v60  ;;  %v520_v0 = vsel %vm514_vm4, %v507_v56, 920167782  ;;  %v604_v13 = vshrl.u32 %v7882_v38, %v598_v55  ;;  %v606_v21 = vshll.u32 %v7882_v38, %v597_v31 }
  0x1f   :  { %7508 = vst [vmem:[%s8228_s3 + $0xd4] sm:$0xf] %v7917_v7  ;;  %7510 = vst [vmem:[%s8228_s3 + $0xdc] sm:$0xf] %v7917_v7  ;;  %v524_v1 = vsel %vm514_vm4, %v510_v57, 1326507024  ;;  %v521_v3 = vsel %vm513_vm5, %v504_v54, %v520_v0  ;;  %v602_v19 = vor.u32 %v601_v6, %v600_v58  ;;  %v607_v22 = vshrl.u32 %v7883_v40, %v598_v55 }
  0x20   :  { %7512 = vst [vmem:[%s8228_s3 + $0xe4] sm:$0xf] %v7917_v7  ;;  %7514 = vst [vmem:[%s8228_s3 + $0xec] sm:$0xf] %v7917_v7  ;;  %v525_v4 = vsel %vm513_vm5, %v507_v56, %v524_v1  ;;  %v522_v8 = vsel %vm512_vm3, %v519_v61, %v521_v3  ;;  %v605_v20 = vor.u32 %v604_v13, %v603_v2  ;;  %vm617_vm9 = vcmp.lt.s32.totalorder %v8160_v44, 3 }
  0x21   :  { %7516 = vst [vmem:[%s8228_s3 + $0xf4] sm:$0xf] %v7917_v7  ;;  %7518 = vst [vmem:[%s8228_s3 + $0xfc] sm:$0xf] %v7917_v7  ;;  %v518_v7 = vsel %vm512_vm3, %v515_v59, %v517_v63  ;;  %v526_v9 = vsel %vm512_vm3, %v523_v62, %v525_v4  ;;  %v8173_v17 = vmul.u32.u64.low %v8156_v30, %v522_v8  ;;  %v8174_v18 = vmul.u32.u64.high %v8156_v30, %v522_v8, %v8173_v17 }
  0x22   :  { %v8169_v15 = vmul.u32.u64.low %v8156_v30, %v526_v9  ;;  %v8170_v16 = vmul.u32.u64.high %v8156_v30, %v526_v9, %v8169_v15  ;;  %v609_v23 = vshll.u32 %v7883_v40, %v597_v31  ;;  %v610_v24 = vshrl.u32 %v7884_v42, %v598_v55 }
  0x23   :  { %v612_v25 = vshll.u32 %v7884_v42, %v597_v31  ;;  %v613_v26 = vshrl.u32 %v7885_v50, %v598_v55  ;;  %v534_v27 = vmul.u32 %v8156_v30, %v518_v7  ;;  %v608_v28 = vor.u32 %v607_v22, %v606_v21 }
  0x24   :  { %vm536_vm8 = vc.u32 %v8170_v16, %v8173_v17  ;;  %v537_v29 = vadd.s32 1, %v8174_v18  ;;  %v611_v33 = vor.u32 %v610_v24, %v609_v23  ;;  %vm618_vm10 = vcmp.lt.s32.totalorder %v8160_v44, 4 }
  0x25   :  { %v614_v34 = vor.u32 %v613_v26, %v612_v25  ;;  %v619_v35 = vsel %vm615_vm6, %v599_v5, %v602_v19  ;;  %v623_v31 = vsel %vm615_vm6, %v602_v19, %v605_v20  ;;  %v620_v30 = vsel %vm618_vm10, %v608_v28, 2102212464 }
  0x26   :  { %v538_v36 = vsel %vm536_vm8, %v537_v29, %v8174_v18  ;;  %v624_v37 = vsel %vm618_vm10, %v611_v33, 920167782  ;;  %v627_v38 = vsel %vm615_vm6, %v605_v20, %v608_v28  ;;  %v621_v40 = vsel %vm617_vm9, %v605_v20, %v620_v30 }
  0x27   :  { %v539_v39 = vadd.s32 %v538_v36, %v534_v27  ;;  %v625_v41 = vsel %vm617_vm9, %v608_v28, %v624_v37  ;;  %v628_v42 = vsel %vm618_vm10, %v614_v34, 1326507024  ;;  %v622_v43 = vsel %vm616_vm7, %v619_v35, %v621_v40 }
  0x28   :  { %v626_v45 = vsel %vm616_vm7, %v623_v31, %v625_v41  ;;  %v629_v46 = vsel %vm617_vm9, %v611_v33, %v628_v42  ;;  %v638_v54 = vmul.u32 %v8158_v32, %v622_v43  ;;  %v535_v3 = vadd.s32 %v8173_v17, %v8170_v16 }
  0x29   :  { %v540_v47 = vadd.s32 536870912, %v539_v39  ;;  %v630_v48 = vsel %vm616_vm7, %v627_v38, %v629_v46  ;;  %v8191_v49 = vmul.u32.u64.low %v8158_v32, %v626_v45  ;;  %v8192_v50 = vmul.u32.u64.high %v8158_v32, %v626_v45, %v8191_v49 }
  0x2a   :  { %v8195_v51 = vmul.u32.u64.low %v8158_v32, %v630_v48  ;;  %v8196_v52 = vmul.u32.u64.high %v8158_v32, %v630_v48, %v8195_v51  ;;  %vm481_vm14 = vcmp.lt.s32.totalorder %v8142_v10, 0  ;;  %vm8207_vm15 = vcmp.le.f32.partialorder %v479_v12, 0.7853982 }
  0x2b   :  { %v541_v53 = vshrl.u32 %v540_v47, 30  ;;  %v641_v56 = vadd.s32 1, %v8192_v50  ;;  %vm585_vm0 = vcmp.lt.s32.totalorder %v8146_v11, 0  ;;  %vm584_vm1 = vcmp.le.f32.partialorder %v583_v14, 0.7853982 }
  0x2c   :  { %vm640_vm11 = vc.u32 %v8196_v52, %v8191_v49  ;;  %v639_v23 = vadd.s32 %v8191_v49, %v8196_v52  ;;  %vm571_vm6 = vweird.f32 %v8142_v10  ;;  %vm675_vm9 = vweird.f32 %v8146_v11 }
  0x2d   :  { %v542_v55 = vshll.u32 %v541_v53, 30  ;;  %v642_v44 = vsel %vm640_vm11, %v641_v56, %v8192_v50  ;;  %v565_v30 = vsub.s32 4, %v541_v53 }
  0x2e   :  { %v643_v58 = vadd.s32 %v642_v44, %v638_v54 }
  0x2f   :  { %v543_v57 = vsub.s32 %v539_v39, %v542_v55  ;;  %v566_v41 = vsel %vm481_vm14, %v565_v30, %v541_v53 }
  0x30   :  { %v644_v60 = vadd.s32 536870912, %v643_v58  ;;  %v568_v45 = vsel %vm8207_vm15, 0, %v566_v41 }
  0x31   :  { %v545_v59 = vsub.s32 0, %v543_v57  ;;  %v572_v49 = vadd.s32 3, %v568_v45 }
  0x32   :  { %v645_v62 = vshrl.u32 %v644_v60, 30 }
  0x33   :  { %v7526_v61 = vmin.u32 %v545_v59, %v543_v57  ;;  %v573_v52 = vand.u32 3, %v572_v49 }
  0x34   :  { %v646_v0 = vshll.u32 %v645_v62, 30  ;;  %v669_v12 = vsub.s32 4, %v645_v62 }
  0x35   :  { %v547_v63 = vclz %v7526_v61  ;;  %vm575_vm2 = vcmp.eq.s32.totalorder %v573_v52, 0  ;;  %vm578_vm3 = vcmp.eq.s32.totalorder %v573_v52, 2  ;;  %vm574_vm4 = vcmp.lt.s32.totalorder %v573_v52, 2 }
  0x36   :  { %v647_v2 = vsub.s32 %v643_v58, %v646_v0  ;;  %v670_v47 = vsel %vm585_vm0, %v669_v12, %v645_v62 }
  0x37   :  { %v7527_v1 = vadd.s32 4294967294, %v547_v63  ;;  %v672_v50 = vsel %vm584_vm1, 0, %v670_v47 }
  0x38   :  { %v649_v4 = vsub.s32 0, %v647_v2  ;;  %v676_v54 = vadd.s32 3, %v672_v50 }
  0x39   :  { %vm7528_vm12 = vcmp.lt.s32.totalorder %v7527_v1, 0 }
  0x3a   :  { %v550_v32 = vsel %vm7528_vm12, 0, %v7527_v1  ;;  %v7530_v8 = vmin.u32 %v649_v4, %v647_v2  ;;  %v677_v14 = vand.u32 3, %v676_v54 }
  0x3b   :  { %v551_v5 = vsub.s32 32, %v550_v32  ;;  %v552_v6 = vshll.u32 %v543_v57, %v550_v32  ;;  %v555_v7 = vsub.s32 4294967266, %v550_v32 }
  0x3c   :  { %v651_v15 = vclz %v7530_v8  ;;  %vm682_vm5 = vcmp.eq.s32.totalorder %v677_v14, 2  ;;  %vm679_vm7 = vcmp.eq.s32.totalorder %v677_v14, 0  ;;  %vm678_vm8 = vcmp.lt.s32.totalorder %v677_v14, 2 }
  0x3d   :  { %v553_v9 = vshrl.u32 %v535_v3, %v551_v5  ;;  %v556_v13 = vadd.s32 127, %v555_v7 }
  0x3e   :  { %v7531_v20 = vadd.s32 4294967294, %v651_v15 }
  0x3f   :  { %v554_v18 = vor.u32 %v553_v9, %v552_v6  ;;  %v557_v19 = vshll.u32 %v556_v13, 23 }
  0x40   :  { %vm7532_vm13 = vcmp.lt.s32.totalorder %v7531_v20, 0 }
  0x41   :  { %v558_v21 = vor.u32 4788187, %v557_v19  ;;  %v561_v22 = vcvt.s32.f32 %v554_v18  ;;  %v654_v16 = vsel %vm7532_vm13, 0, %v7531_v20 }
  0x42   :  { %v655_v17 = vsub.s32 32, %v654_v16  ;;  %v656_v25 = vshll.u32 %v647_v2, %v654_v16  ;;  %v659_v26 = vsub.s32 4294967266, %v654_v16 }
  0x43   :  { %v559_v24 = vand.u32 2147483647, %v558_v21 }
  0x44   :  { %v657_v28 = vshrl.u32 %v639_v23, %v655_v17  ;;  %v660_v29 = vadd.s32 127, %v659_v26 }
  0x45   :  { %v562_v27 = vmul.f32 %v561_v22, %v559_v24 }
  0x46   :  { %v658_v35 = vor.u32 %v657_v28, %v656_v25  ;;  %v661_v31 = vshll.u32 %v660_v29, 23 }
  0x47   :  { %v563_v34 = vxor.u32 2147483648, %v562_v27 }
  0x48   :  { %v662_v38 = vor.u32 4788187, %v661_v31  ;;  %v665_v39 = vcvt.s32.f32 %v658_v35 }
  0x49   :  { %v564_v36 = vsel %vm481_vm14, %v563_v34, %v562_v27 }
  0x4a   :  { %v567_v37 = vsel %vm8207_vm15, %v8142_v10, %v564_v36  ;;  %v663_v40 = vand.u32 2147483647, %v662_v38 }
  0x4b   :  { %7871 = vcosq.f32 %v567_v37 }
  0x4c   :  { %7873 = vsinq.f32 %v567_v37  ;;  %v666_v42 = vmul.f32 %v665_v39, %v663_v40 }
  0x4e   :  { %v667_v43 = vxor.u32 2147483648, %v666_v42 }
  0x50   :  { %v668_v46 = vsel %vm585_vm0, %v667_v43, %v666_v42 }
  0x51   :  { %v671_v48 = vsel %vm584_vm1, %v8146_v11, %v668_v46 }
  0x52   :  { %7875 = vcosq.f32 %v671_v48 }
  0x53   :  { %7877 = vsinq.f32 %v671_v48 }
  0x58   :  { %v7872_v51 = vpop.eup %7871 }
  0x59   :  { %v7874_v53 = vpop.eup %7873  ;;  %v579_v56 = vxor.u32 2147483648, %v7872_v51 }
  0x5a   :  { %v576_v55 = vxor.u32 2147483648, %v7874_v53 }
  0x5b   :  { %v580_v44 = vsel %vm578_vm3, %v579_v56, %v7874_v53 }
  0x5c   :  { %v577_v57 = vsel %vm575_vm2, %v7872_v51, %v576_v55 }
  0x5d   :  { %v581_v60 = vsel %vm574_vm4, %v577_v57, %v580_v44 }
  0x5e   :  { %v582_v0 = vsel %vm571_vm6, nan, %v581_v60 }
  0x5f   :  { %v7876_v58 = vpop.eup %7875 }
  0x60   :  { %v7878_v59 = vpop.eup %7877  ;;  %v683_v61 = vxor.u32 2147483648, %v7876_v58 }
  0x61   :  { %v680_v62 = vxor.u32 2147483648, %v7878_v59 }
  0x62   :  { %v684_v63 = vsel %vm682_vm5, %v683_v61, %v7878_v59 }
  0x63   :  { %v681_v1 = vsel %vm679_vm7, %v7876_v58, %v680_v62 }
  0x64   :  { %v685_v2 = vsel %vm678_vm8, %v681_v1, %v684_v63 }
  0x65   :  { %v686_v3 = vsel %vm675_vm9, nan, %v685_v2 }
  0x66   :  { %v7854_v32 = vpack.c.bf16 %v686_v3, %v582_v0 }
  0x68   :  { %7855 = vst [vmem:[%s8228_s3] sm:$0xff] %v7854_v32  }

// kernel: eegnn_forward.17
= control target key start
LH: loop header
LB: loop body
LE: loop exit
PB: predicated region body
PF: predicated region fallthrough
CT: control target
= control target key end

     0   :  { %v1780_v40 = vmov 0.0|0.0   ;;  %vm1478_vm0 = vcmask 1040384   ;;  %vm1480_vm1 = vcmask 1041408   ;;  %s2263_s1 = inlined_call_operand.vmem [shape: bf16[128,128], index: 1, kind: input, shape index: {}]   ;;  %s2264_s0 = inlined_call_operand.vmem [shape: bf16[512,128], index: 0, kind: input, shape index: {}]   ;;  %s2265_s3 = inlined_call_operand.vmem [shape: bf16[512,128], index: 3, kind: output, shape index: {0}]   ;;  %s2266_s2 = inlined_call_operand.vmem [shape: f32[1,128], index: 2, kind: input, shape index: {}]   ;;  %s2267_s4 = inlined_call_operand.vmem [shape: f32[8,128], index: 4, kind: output, shape index: {1}]  }
   0x1   :  { %v1740_v0 = vld [vmem:[%s2263_s1 + $0x38] sm:$0xff]   ;;  %v1741_v1 = vld [vmem:[%s2263_s1 + $0x30] sm:$0xff]   ;;  %v1742_v2 = vld [vmem:[%s2263_s1 + $0x28] sm:$0xff]   ;;  %v1534_v41 = vcombine.low %v1780_v40, %v1780_v40  ;;  %v1535_v42 = vcombine.high %v1780_v40, %v1780_v40  ;;  %v2120_v57 = vunpack.c.l.bf16 %v1780_v40  ;;  %v2126_v62 = vunpack.c.h.bf16 %v1780_v40 }
   0x2   :  { %1643 = vmatprep.subr.bf16.mxu0 %v1740_v0  ;;  %1723 = vmatprep.subr.bf16.mxu1 %v1740_v0  ;;  %v1743_v3 = vld [vmem:[%s2263_s1 + $0x20] sm:$0xff]   ;;  %v1744_v6 = vld [vmem:[%s2263_s1 + $0x18] sm:$0xff]   ;;  %v1745_v7 = vld [vmem:[%s2263_s1 + $0x10] sm:$0xff]  }
   0x3   :  { %1644 = vmatpush3.bf16.msra.mxu0 %v1740_v0  ;;  %1731 = vmatpush3.bf16.msra.mxu1 %v1740_v0  ;;  %v1748_v4 = vld [vmem:[%s2264_s0] sm:$0xff]   ;;  %v1746_v8 = vld [vmem:[%s2263_s1 + $0x8] sm:$0xff]   ;;  %v1752_v12 = vld [vmem:[%s2264_s0 + $0x10] sm:$0xff]   ;;  %1150 = vst [vmem:[%s2265_s3 + $0x8] sm:$0xf] %v1534_v41 }
   0x4   :  { %1645 = vmatprep.subr.bf16.mxu0 %v1741_v1  ;;  %1724 = vmatprep.subr.bf16.mxu1 %v1741_v1  ;;  %v1750_v5 = vld [vmem:[%s2264_s0 + $0x80] sm:$0xff]   ;;  %v1749_v10 = vld [vmem:[%s2264_s0 + $0x8] sm:$0xff]   ;;  %v1753_v13 = vld [vmem:[%s2264_s0 + $0x90] sm:$0xff]   ;;  %1151 = vst [vmem:[%s2265_s3 + $0xc] sm:$0xf] %v1535_v42 }
   0x5   :  { %1659 = vmatprep.mubr.bf16.mxu0 %v1748_v4  ;;  %1691 = vmatprep.mubr.bf16.mxu1 %v1750_v5  ;;  %v1747_v9 = vld [vmem:[%s2263_s1] sm:$0xff]   ;;  %v1751_v11 = vld [vmem:[%s2264_s0 + $0x88] sm:$0xff]   ;;  %v1754_v14 = vld [vmem:[%s2264_s0 + $0x18] sm:$0xff]   ;;  %1152 = vst [vmem:[%s2265_s3 + $0x10] sm:$0xf] %v1534_v41  ;;  %v2130_v4 = vmul.f32 %v2120_v57, %v2120_v57 }
   0x6   :  { %v1755_v15 = vld [vmem:[%s2264_s0 + $0x98] sm:$0xff]   ;;  %v1756_v16 = vld [vmem:[%s2264_s0 + $0x20] sm:$0xff]   ;;  %v1758_v18 = vld [vmem:[%s2264_s0 + $0x28] sm:$0xff]   ;;  %1153 = vst [vmem:[%s2265_s3 + $0x14] sm:$0xf] %v1535_v42 }
   0x7   :  { %1646 = vmatpush3.bf16.msra.mxu0 %v1741_v1  ;;  %1732 = vmatpush3.bf16.msra.mxu1 %v1741_v1  ;;  %v1757_v17 = vld [vmem:[%s2264_s0 + $0xa0] sm:$0xff]   ;;  %v1759_v19 = vld [vmem:[%s2264_s0 + $0xa8] sm:$0xff]   ;;  %v1760_v20 = vld [vmem:[%s2264_s0 + $0x30] sm:$0xff]   ;;  %1154 = vst [vmem:[%s2265_s3 + $0x18] sm:$0xf] %v1534_v41 }
   0x8   :  { %1647 = vmatprep.subr.bf16.mxu0 %v1742_v2  ;;  %1725 = vmatprep.subr.bf16.mxu1 %v1742_v2  ;;  %v1761_v21 = vld [vmem:[%s2264_s0 + $0xb0] sm:$0xff]   ;;  %v1762_v22 = vld [vmem:[%s2264_s0 + $0x38] sm:$0xff]   ;;  %v1764_v24 = vld [vmem:[%s2264_s0 + $0x40] sm:$0xff]   ;;  %1155 = vst [vmem:[%s2265_s3 + $0x1c] sm:$0xf] %v1535_v42 }
   0x9   :  { %v1763_v23 = vld [vmem:[%s2264_s0 + $0xb8] sm:$0xff]   ;;  %v1765_v25 = vld [vmem:[%s2264_s0 + $0xc0] sm:$0xff]   ;;  %v1766_v26 = vld [vmem:[%s2264_s0 + $0x48] sm:$0xff]   ;;  %1156 = vst [vmem:[%s2265_s3 + $0x20] sm:$0xf] %v1534_v41 }
   0xa   :  { %v1767_v27 = vld [vmem:[%s2264_s0 + $0xc8] sm:$0xff]   ;;  %v1768_v28 = vld [vmem:[%s2264_s0 + $0x50] sm:$0xff]   ;;  %v1770_v30 = vld [vmem:[%s2264_s0 + $0x58] sm:$0xff]   ;;  %1157 = vst [vmem:[%s2265_s3 + $0x24] sm:$0xf] %v1535_v42 }
   0xb   :  { %1648 = vmatpush3.bf16.msra.mxu0 %v1742_v2  ;;  %1733 = vmatpush3.bf16.msra.mxu1 %v1742_v2  ;;  %v1769_v29 = vld [vmem:[%s2264_s0 + $0xd0] sm:$0xff]   ;;  %v1771_v31 = vld [vmem:[%s2264_s0 + $0xd8] sm:$0xff]   ;;  %v1772_v32 = vld [vmem:[%s2264_s0 + $0x60] sm:$0xff]   ;;  %1158 = vst [vmem:[%s2265_s3 + $0x28] sm:$0xf] %v1534_v41 }
   0xc   :  { %1649 = vmatprep.subr.bf16.mxu0 %v1743_v3  ;;  %1726 = vmatprep.subr.bf16.mxu1 %v1743_v3  ;;  %v1773_v33 = vld [vmem:[%s2264_s0 + $0xe0] sm:$0xff]   ;;  %v1774_v34 = vld [vmem:[%s2264_s0 + $0x68] sm:$0xff]   ;;  %v1776_v36 = vld [vmem:[%s2264_s0 + $0x70] sm:$0xff]   ;;  %1159 = vst [vmem:[%s2265_s3 + $0x2c] sm:$0xf] %v1535_v42 }
   0xd   :  { %v1775_v35 = vld [vmem:[%s2264_s0 + $0xe8] sm:$0xff]   ;;  %v1777_v37 = vld [vmem:[%s2264_s0 + $0xf0] sm:$0xff]   ;;  %v1778_v38 = vld [vmem:[%s2264_s0 + $0x78] sm:$0xff]   ;;  %1160 = vst [vmem:[%s2265_s3 + $0x30] sm:$0xf] %v1534_v41 }
   0xe   :  { %v1779_v39 = vld [vmem:[%s2264_s0 + $0xf8] sm:$0xff]   ;;  %1161 = vst [vmem:[%s2265_s3 + $0x34] sm:$0xf] %v1535_v42  ;;  %1162 = vst [vmem:[%s2265_s3 + $0x38] sm:$0xf] %v1534_v41 }
   0xf   :  { %1650 = vmatpush3.bf16.msra.mxu0 %v1743_v3  ;;  %1734 = vmatpush3.bf16.msra.mxu1 %v1743_v3  ;;  %1163 = vst [vmem:[%s2265_s3 + $0x3c] sm:$0xf] %v1535_v42  ;;  %1164 = vst [vmem:[%s2265_s3 + $0x40] sm:$0xf] %v1534_v41  ;;  %v1491_v47 = vld [vmem:[%s2266_s2] ss:$0 sm:$0xff] }
  0x10   :  { %1651 = vmatprep.subr.bf16.mxu0 %v1744_v6  ;;  %1727 = vmatprep.subr.bf16.mxu1 %v1744_v6  ;;  %1165 = vst [vmem:[%s2265_s3 + $0x44] sm:$0xf] %v1535_v42  ;;  %1166 = vst [vmem:[%s2265_s3 + $0x48] sm:$0xf] %v1534_v41 }
  0x11   :  { %1167 = vst [vmem:[%s2265_s3 + $0x4c] sm:$0xf] %v1535_v42  ;;  %1168 = vst [vmem:[%s2265_s3 + $0x50] sm:$0xf] %v1534_v41 }
  0x12   :  { %1169 = vst [vmem:[%s2265_s3 + $0x54] sm:$0xf] %v1535_v42  ;;  %1170 = vst [vmem:[%s2265_s3 + $0x58] sm:$0xf] %v1534_v41 }
  0x13   :  { %1652 = vmatpush3.bf16.msra.mxu0 %v1744_v6  ;;  %1735 = vmatpush3.bf16.msra.mxu1 %v1744_v6  ;;  %1171 = vst [vmem:[%s2265_s3 + $0x5c] sm:$0xf] %v1535_v42  ;;  %1172 = vst [vmem:[%s2265_s3 + $0x60] sm:$0xf] %v1534_v41 }
  0x14   :  { %1653 = vmatprep.subr.bf16.mxu0 %v1745_v7  ;;  %1728 = vmatprep.subr.bf16.mxu1 %v1745_v7  ;;  %1173 = vst [vmem:[%s2265_s3 + $0x64] sm:$0xf] %v1535_v42  ;;  %1174 = vst [vmem:[%s2265_s3 + $0x68] sm:$0xf] %v1534_v41 }
  0x15   :  { %1175 = vst [vmem:[%s2265_s3 + $0x6c] sm:$0xf] %v1535_v42  ;;  %1176 = vst [vmem:[%s2265_s3 + $0x70] sm:$0xf] %v1534_v41 }
  0x16   :  { %1177 = vst [vmem:[%s2265_s3 + $0x74] sm:$0xf] %v1535_v42  ;;  %1178 = vst [vmem:[%s2265_s3 + $0x78] sm:$0xf] %v1534_v41 }
  0x17   :  { %1654 = vmatpush3.bf16.msra.mxu0 %v1745_v7  ;;  %1736 = vmatpush3.bf16.msra.mxu1 %v1745_v7  ;;  %1179 = vst [vmem:[%s2265_s3 + $0x7c] sm:$0xf] %v1535_v42  ;;  %1180 = vst [vmem:[%s2265_s3 + $0x80] sm:$0xf] %v1534_v41 }
  0x18   :  { %1655 = vmatprep.subr.bf16.mxu0 %v1746_v8  ;;  %1729 = vmatprep.subr.bf16.mxu1 %v1746_v8  ;;  %1181 = vst [vmem:[%s2265_s3 + $0x84] sm:$0xf] %v1535_v42  ;;  %1182 = vst [vmem:[%s2265_s3 + $0x88] sm:$0xf] %v1534_v41 }
  0x19   :  { %1183 = vst [vmem:[%s2265_s3 + $0x8c] sm:$0xf] %v1535_v42  ;;  %1184 = vst [vmem:[%s2265_s3 + $0x90] sm:$0xf] %v1534_v41 }
  0x1a   :  { %1185 = vst [vmem:[%s2265_s3 + $0x94] sm:$0xf] %v1535_v42  ;;  %1186 = vst [vmem:[%s2265_s3 + $0x98] sm:$0xf] %v1534_v41 }
  0x1b   :  { %1656 = vmatpush3.bf16.msra.mxu0 %v1746_v8  ;;  %1737 = vmatpush3.bf16.msra.mxu1 %v1746_v8  ;;  %1187 = vst [vmem:[%s2265_s3 + $0x9c] sm:$0xf] %v1535_v42  ;;  %1188 = vst [vmem:[%s2265_s3 + $0xa0] sm:$0xf] %v1534_v41  ;;  %v2135_v8 = vmul.f32 %v2126_v62, %v2126_v62 }
  0x1c   :  { %1657 = vmatprep.subr.bf16.mxu0 %v1747_v9  ;;  %1730 = vmatprep.subr.bf16.mxu1 %v1747_v9  ;;  %1189 = vst [vmem:[%s2265_s3 + $0xa4] sm:$0xf] %v1535_v42  ;;  %1190 = vst [vmem:[%s2265_s3 + $0xa8] sm:$0xf] %v1534_v41 }
  0x1d   :  { %1191 = vst [vmem:[%s2265_s3 + $0xac] sm:$0xf] %v1535_v42  ;;  %1192 = vst [vmem:[%s2265_s3 + $0xb0] sm:$0xf] %v1534_v41 }
  0x1e   :  { %1193 = vst [vmem:[%s2265_s3 + $0xb4] sm:$0xf] %v1535_v42  ;;  %1194 = vst [vmem:[%s2265_s3 + $0xb8] sm:$0xf] %v1534_v41 }
  0x1f   :  { %1658 = vmatpush3.bf16.msra.mxu0 %v1747_v9  ;;  %1738 = vmatpush3.bf16.msra.mxu1 %v1747_v9  ;;  %1195 = vst [vmem:[%s2265_s3 + $0xbc] sm:$0xf] %v1535_v42  ;;  %1196 = vst [vmem:[%s2265_s3 + $0xc0] sm:$0xf] %v1534_v41 }
  0x20   :  { %1197 = vst [vmem:[%s2265_s3 + $0xc4] sm:$0xf] %v1535_v42  ;;  %1198 = vst [vmem:[%s2265_s3 + $0xc8] sm:$0xf] %v1534_v41 }
  0x21   :  { %1199 = vst [vmem:[%s2265_s3 + $0xcc] sm:$0xf] %v1535_v42  ;;  %1200 = vst [vmem:[%s2265_s3 + $0xd0] sm:$0xf] %v1534_v41 }
  0x22   :  { %1660 = vmatmul.mubr.bf16.vlgmr.msra.gmra.mxu0 %v1749_v10  ;;  %1692 = vmatmul.mubr.bf16.vlgmr.msra.gmra.mxu1 %v1751_v11  ;;  %1201 = vst [vmem:[%s2265_s3 + $0xd4] sm:$0xf] %v1535_v42  ;;  %1202 = vst [vmem:[%s2265_s3 + $0xd8] sm:$0xf] %v1534_v41 }
  0x23   :  { %1663 = vmatprep.mubr.bf16.mxu0 %v1752_v12  ;;  %1695 = vmatprep.mubr.bf16.mxu1 %v1753_v13  ;;  %1203 = vst [vmem:[%s2265_s3 + $0xdc] sm:$0xf] %v1535_v42  ;;  %1204 = vst [vmem:[%s2265_s3 + $0xe0] sm:$0xf] %v1534_v41 }
  0x24   :  { %1205 = vst [vmem:[%s2265_s3 + $0xe4] sm:$0xf] %v1535_v42  ;;  %1206 = vst [vmem:[%s2265_s3 + $0xe8] sm:$0xf] %v1534_v41 }
  0x25   :  { %1207 = vst [vmem:[%s2265_s3 + $0xec] sm:$0xf] %v1535_v42  ;;  %1208 = vst [vmem:[%s2265_s3 + $0xf0] sm:$0xf] %v1534_v41 }
  0x26   :  { %1209 = vst [vmem:[%s2265_s3 + $0xf4] sm:$0xf] %v1535_v42  ;;  %1210 = vst [vmem:[%s2265_s3 + $0xf8] sm:$0xf] %v1534_v41 }
  0x27   :  { %1211 = vst [vmem:[%s2265_s3 + $0xfc] sm:$0xf] %v1535_v42 }
  0x2a   :  { %1664 = vmatmul.mubr.bf16.gmra.mxu0 %v1754_v14  ;;  %1696 = vmatmul.mubr.bf16.gmra.mxu1 %v1755_v15 }
  0x2b   :  { %1667 = vmatprep.mubr.bf16.mxu0 %v1756_v16  ;;  %1699 = vmatprep.mubr.bf16.mxu1 %v1757_v17 }
  0x32   :  { %1668 = vmatmul.mubr.bf16.gmra.mxu0 %v1758_v18  ;;  %1700 = vmatmul.mubr.bf16.gmra.mxu1 %v1759_v19 }
  0x33   :  { %1671 = vmatprep.mubr.bf16.mxu0 %v1760_v20  ;;  %1703 = vmatprep.mubr.bf16.mxu1 %v1761_v21 }
  0x3a   :  { %1672 = vmatmul.mubr.bf16.gmra.mxu0 %v1762_v22  ;;  %1704 = vmatmul.mubr.bf16.gmra.mxu1 %v1763_v23 }
  0x3b   :  { %1675 = vmatprep.mubr.bf16.mxu0 %v1764_v24  ;;  %1707 = vmatprep.mubr.bf16.mxu1 %v1765_v25 }
  0x42   :  { %1676 = vmatmul.mubr.bf16.gmra.mxu0 %v1766_v26  ;;  %1708 = vmatmul.mubr.bf16.gmra.mxu1 %v1767_v27 }
  0x43   :  { %1679 = vmatprep.mubr.bf16.mxu0 %v1768_v28  ;;  %1711 = vmatprep.mubr.bf16.mxu1 %v1769_v29 }
  0x4a   :  { %1680 = vmatmul.mubr.bf16.gmra.mxu0 %v1770_v30  ;;  %1712 = vmatmul.mubr.bf16.gmra.mxu1 %v1771_v31 }
  0x4b   :  { %1683 = vmatprep.mubr.bf16.mxu0 %v1772_v32  ;;  %1715 = vmatprep.mubr.bf16.mxu1 %v1773_v33 }
  0x52   :  { %1684 = vmatmul.mubr.bf16.gmra.mxu0 %v1774_v34  ;;  %1716 = vmatmul.mubr.bf16.gmra.mxu1 %v1775_v35 }
  0x53   :  { %1687 = vmatprep.mubr.bf16.mxu0 %v1776_v36  ;;  %1719 = vmatprep.mubr.bf16.mxu1 %v1777_v37 }
  0x5a   :  { %1688 = vmatmul.mubr.bf16.gmra.mxu0 %v1778_v38  ;;  %1720 = vmatmul.mubr.bf16.gmra.mxu1 %v1779_v39 }
  0xe2   :  { %v1661_v43 = vpop.f32.mrf.mxu0  ;;  %v1693_v44 = vpop.f32.mrf.mxu1 }
  0xe4   :  { %v378_v45 = vpop.f32.mrf.mxu0  ;;  %v506_v46 = vpop.f32.mrf.mxu1 }
  0xe5   :  { %v379_v52 = vadd.f32 %v1491_v47, %v378_v45 }
  0xe6   :  { %v1662_v48 = vpop.f32.mrf.mxu0  ;;  %v1694_v49 = vpop.f32.mrf.mxu1 }
  0xe8   :  { %v381_v50 = vpop.f32.mrf.mxu0  ;;  %v509_v51 = vpop.f32.mrf.mxu1 }
  0xe9   :  { %v382_v53 = vadd.f32 %v1491_v47, %v381_v50 }
  0xea   :  { %v1665_v54 = vpop.f32.mrf.mxu0  ;;  %v1697_v55 = vpop.f32.mrf.mxu1 }
  0xeb   :  { %v892_v56 = vpack.c.bf16 %v382_v53, %v379_v52 }
  0xec   :  { %v394_v58 = vpop.f32.mrf.mxu0  ;;  %v522_v59 = vpop.f32.mrf.mxu1 }
  0xed   :  { %1602 = vst [vmem:[%s2265_s3] sm:$0xff] %v892_v56   ;;  %v1212_v60 = vunpack.c.l.bf16 %v892_v56  ;;  %v1213_v61 = vunpack.c.h.bf16 %v892_v56 }
  0xee   :  { %v1666_v63 = vpop.f32.mrf.mxu0  ;;  %v1698_v0 = vpop.f32.mrf.mxu1 }
  0xef   :  { %v1276_v1 = vadd.f32 %v1213_v61, %v1212_v60  ;;  %v1345_v2 = vmul.f32 %v1212_v60, %v1212_v60  ;;  %v1346_v3 = vmul.f32 %v1213_v61, %v1213_v61 }
  0xf0   :  { %v397_v5 = vpop.f32.mrf.mxu0  ;;  %v525_v6 = vpop.f32.mrf.mxu1 }
  0xf1   :  { %v1277_v7 = vadd.f32 %v1276_v1, %v2120_v57  ;;  %v1409_v9 = vadd.f32 %v1346_v3, %v1345_v2 }
  0xf2   :  { %v1669_v10 = vpop.f32.mrf.mxu0  ;;  %v1701_v11 = vpop.f32.mrf.mxu1 }
  0xf3   :  { %v1278_v12 = vadd.f32 %v1277_v7, %v2126_v62  ;;  %v1410_v13 = vadd.f32 %v1409_v9, %v2130_v4 }
  0xf4   :  { %v410_v14 = vpop.f32.mrf.mxu0  ;;  %v538_v15 = vpop.f32.mrf.mxu1 }
  0xf5   :  { %v1279_v16 = vadd.f32 %v1278_v12, %v2120_v57  ;;  %v1411_v17 = vadd.f32 %v1410_v13, %v2135_v8 }
  0xf6   :  { %v1670_v18 = vpop.f32.mrf.mxu0  ;;  %v1702_v19 = vpop.f32.mrf.mxu1 }
  0xf7   :  { %v1280_v20 = vadd.f32 %v1279_v16, %v2126_v62  ;;  %v1412_v21 = vadd.f32 %v1411_v17, %v2130_v4 }
  0xf8   :  { %v413_v22 = vpop.f32.mrf.mxu0  ;;  %v541_v23 = vpop.f32.mrf.mxu1 }
  0xf9   :  { %v1281_v24 = vadd.f32 %v1280_v20, %v2120_v57  ;;  %v1413_v25 = vadd.f32 %v1412_v21, %v2135_v8 }
  0xfa   :  { %v1673_v26 = vpop.f32.mrf.mxu0  ;;  %v1705_v27 = vpop.f32.mrf.mxu1 }
  0xfb   :  { %v1282_v28 = vadd.f32 %v1281_v24, %v2126_v62  ;;  %v1414_v29 = vadd.f32 %v1413_v25, %v2130_v4 }
  0xfc   :  { %v426_v30 = vpop.f32.mrf.mxu0  ;;  %v554_v31 = vpop.f32.mrf.mxu1 }
  0xfd   :  { %v1283_v32 = vadd.f32 %v1282_v28, %v2120_v57  ;;  %v1415_v33 = vadd.f32 %v1414_v29, %v2135_v8 }
  0xfe   :  { %v1674_v34 = vpop.f32.mrf.mxu0  ;;  %v1706_v35 = vpop.f32.mrf.mxu1 }
  0xff   :  { %v1284_v36 = vadd.f32 %v1283_v32, %v2126_v62  ;;  %v1416_v37 = vadd.f32 %v1415_v33, %v2130_v4 }
 0x100   :  { %v429_v38 = vpop.f32.mrf.mxu0  ;;  %v557_v39 = vpop.f32.mrf.mxu1 }
 0x101   :  { %v1285_v40 = vadd.f32 %v1284_v36, %v2120_v57  ;;  %v1417_v41 = vadd.f32 %v1416_v37, %v2135_v8 }
 0x102   :  { %v1677_v42 = vpop.f32.mrf.mxu0  ;;  %v1709_v43 = vpop.f32.mrf.mxu1 }
 0x103   :  { %v1286_v44 = vadd.f32 %v1285_v40, %v2126_v62  ;;  %v1418_v45 = vadd.f32 %v1417_v41, %v2130_v4 }
 0x104   :  { %v442_v46 = vpop.f32.mrf.mxu0  ;;  %v570_v47 = vpop.f32.mrf.mxu1 }
 0x105   :  { %v1287_v48 = vadd.f32 %v1286_v44, %v2120_v57  ;;  %v1419_v49 = vadd.f32 %v1418_v45, %v2135_v8 }
 0x106   :  { %v1678_v50 = vpop.f32.mrf.mxu0  ;;  %v1710_v51 = vpop.f32.mrf.mxu1 }
 0x107   :  { %v1288_v52 = vadd.f32 %v1287_v48, %v2126_v62  ;;  %v1420_v53 = vadd.f32 %v1419_v49, %v2130_v4 }
 0x108   :  { %v445_v54 = vpop.f32.mrf.mxu0  ;;  %v573_v55 = vpop.f32.mrf.mxu1 }
 0x109   :  { %v1289_v56 = vadd.f32 %v1288_v52, %v2120_v57  ;;  %v1421_v58 = vadd.f32 %v1420_v53, %v2135_v8 }
 0x10a   :  { %v1681_v59 = vpop.f32.mrf.mxu0  ;;  %v1713_v60 = vpop.f32.mrf.mxu1 }
 0x10b   :  { %v1290_v61 = vadd.f32 %v1289_v56, %v2126_v62  ;;  %v1422_v63 = vadd.f32 %v1421_v58, %v2130_v4 }
 0x10c   :  { %v458_v0 = vpop.f32.mrf.mxu0  ;;  %v586_v1 = vpop.f32.mrf.mxu1 }
 0x10d   :  { %v1291_v2 = vadd.f32 %v1290_v61, %v2120_v57  ;;  %v1423_v3 = vadd.f32 %v1422_v63, %v2135_v8 }
 0x10e   :  { %v1682_v5 = vpop.f32.mrf.mxu0  ;;  %v1714_v6 = vpop.f32.mrf.mxu1 }
 0x10f   :  { %v1292_v7 = vadd.f32 %v1291_v2, %v2126_v62  ;;  %v1424_v9 = vadd.f32 %v1423_v3, %v2130_v4 }
 0x110   :  { %v461_v10 = vpop.f32.mrf.mxu0  ;;  %v589_v11 = vpop.f32.mrf.mxu1 }
 0x111   :  { %v1293_v12 = vadd.f32 %v1292_v7, %v2120_v57  ;;  %v1425_v13 = vadd.f32 %v1424_v9, %v2135_v8 }
 0x112   :  { %v1685_v14 = vpop.f32.mrf.mxu0  ;;  %v1717_v15 = vpop.f32.mrf.mxu1 }
 0x113   :  { %v1294_v16 = vadd.f32 %v1293_v12, %v2126_v62  ;;  %v1426_v17 = vadd.f32 %v1425_v13, %v2130_v4 }
 0x114   :  { %v474_v18 = vpop.f32.mrf.mxu0  ;;  %v602_v19 = vpop.f32.mrf.mxu1 }
 0x115   :  { %v1295_v20 = vadd.f32 %v1294_v16, %v2120_v57  ;;  %v1427_v21 = vadd.f32 %v1426_v17, %v2135_v8 }
 0x116   :  { %v1686_v22 = vpop.f32.mrf.mxu0  ;;  %v1718_v23 = vpop.f32.mrf.mxu1 }
 0x117   :  { %v1296_v24 = vadd.f32 %v1295_v20, %v2126_v62  ;;  %v1428_v25 = vadd.f32 %v1427_v21, %v2130_v4 }
 0x118   :  { %v477_v26 = vpop.f32.mrf.mxu0  ;;  %v605_v27 = vpop.f32.mrf.mxu1 }
 0x119   :  { %v1297_v28 = vadd.f32 %v1296_v24, %v2120_v57  ;;  %v1429_v29 = vadd.f32 %v1428_v25, %v2135_v8 }
 0x11a   :  { %v1689_v30 = vpop.f32.mrf.mxu0  ;;  %v1721_v31 = vpop.f32.mrf.mxu1 }
 0x11b   :  { %v1298_v32 = vadd.f32 %v1297_v28, %v2126_v62  ;;  %v1430_v33 = vadd.f32 %v1429_v29, %v2130_v4 }
 0x11c   :  { %v490_v34 = vpop.f32.mrf.mxu0  ;;  %v618_v35 = vpop.f32.mrf.mxu1 }
 0x11d   :  { %v1299_v36 = vadd.f32 %v1298_v32, %v2120_v57  ;;  %v1431_v37 = vadd.f32 %v1430_v33, %v2135_v8 }
 0x11e   :  { %v1690_v38 = vpop.f32.mrf.mxu0  ;;  %v1722_v39 = vpop.f32.mrf.mxu1 }
 0x11f   :  { %v1300_v40 = vadd.f32 %v1299_v36, %v2126_v62  ;;  %v1432_v41 = vadd.f32 %v1431_v37, %v2130_v4 }
 0x120   :  { %v493_v42 = vpop.f32.mrf.mxu0  ;;  %v621_v43 = vpop.f32.mrf.mxu1 }
 0x121   :  { %v1301_v44 = vadd.f32 %v1300_v40, %v2120_v57  ;;  %v1433_v45 = vadd.f32 %v1432_v41, %v2135_v8 }
 0x123   :  { %v1302_v46 = vadd.f32 %v1301_v44, %v2126_v62  ;;  %v1434_v47 = vadd.f32 %v1433_v45, %v2130_v4 }
 0x125   :  { %v1303_v48 = vadd.f32 %v1302_v46, %v2120_v57  ;;  %v1435_v49 = vadd.f32 %v1434_v47, %v2135_v8 }
 0x127   :  { %v1304_v50 = vadd.f32 %v1303_v48, %v2126_v62  ;;  %v1436_v51 = vadd.f32 %v1435_v49, %v2130_v4 }
 0x129   :  { %v1305_v52 = vadd.f32 %v1304_v50, %v2120_v57  ;;  %v1437_v53 = vadd.f32 %v1436_v51, %v2135_v8 }
 0x12b   :  { %v1306_v54 = vadd.f32 %v1305_v52, %v2126_v62  ;;  %v1438_v55 = vadd.f32 %v1437_v53, %v2130_v4 }
 0x12d   :  { %v1307_v56 = vadd.f32 %v1306_v54, %v2120_v57  ;;  %v1439_v58 = vadd.f32 %v1438_v55, %v2135_v8 }
 0x12f   :  { %v1308_v59 = vadd.f32 %v1307_v56, %v2126_v62  ;;  %v1440_v60 = vadd.f32 %v1439_v58, %v2130_v4 }
 0x131   :  { %v1309_v61 = vadd.f32 %v1308_v59, %v2120_v57  ;;  %v1441_v63 = vadd.f32 %v1440_v60, %v2135_v8 }
 0x133   :  { %v1310_v0 = vadd.f32 %v1309_v61, %v2126_v62  ;;  %v1442_v1 = vadd.f32 %v1441_v63, %v2130_v4 }
 0x135   :  { %v1311_v2 = vadd.f32 %v1310_v0, %v2120_v57  ;;  %v1443_v3 = vadd.f32 %v1442_v1, %v2135_v8 }
 0x137   :  { %v1312_v5 = vadd.f32 %v1311_v2, %v2126_v62  ;;  %v1444_v6 = vadd.f32 %v1443_v3, %v2130_v4 }
 0x139   :  { %v1313_v7 = vadd.f32 %v1312_v5, %v2120_v57  ;;  %v1445_v9 = vadd.f32 %v1444_v6, %v2135_v8 }
 0x13b   :  { %v1314_v10 = vadd.f32 %v1313_v7, %v2126_v62  ;;  %v1446_v11 = vadd.f32 %v1445_v9, %v2130_v4 }
 0x13d   :  { %v1315_v12 = vadd.f32 %v1314_v10, %v2120_v57  ;;  %v1447_v13 = vadd.f32 %v1446_v11, %v2135_v8 }
 0x13f   :  { %v1316_v14 = vadd.f32 %v1315_v12, %v2126_v62  ;;  %v1448_v15 = vadd.f32 %v1447_v13, %v2130_v4 }
 0x141   :  { %v1317_v16 = vadd.f32 %v1316_v14, %v2120_v57  ;;  %v1449_v17 = vadd.f32 %v1448_v15, %v2135_v8 }
 0x143   :  { %v1318_v18 = vadd.f32 %v1317_v16, %v2126_v62  ;;  %v1450_v19 = vadd.f32 %v1449_v17, %v2130_v4 }
 0x145   :  { %v1319_v20 = vadd.f32 %v1318_v18, %v2120_v57  ;;  %v1451_v21 = vadd.f32 %v1450_v19, %v2135_v8 }
 0x147   :  { %v1320_v22 = vadd.f32 %v1319_v20, %v2126_v62  ;;  %v1452_v23 = vadd.f32 %v1451_v21, %v2130_v4 }
 0x149   :  { %v1321_v24 = vadd.f32 %v1320_v22, %v2120_v57  ;;  %v1453_v25 = vadd.f32 %v1452_v23, %v2135_v8 }
 0x14b   :  { %v1322_v26 = vadd.f32 %v1321_v24, %v2126_v62  ;;  %v1454_v27 = vadd.f32 %v1453_v25, %v2130_v4 }
 0x14d   :  { %v1323_v28 = vadd.f32 %v1322_v26, %v2120_v57  ;;  %v1455_v29 = vadd.f32 %v1454_v27, %v2135_v8 }
 0x14f   :  { %v1324_v30 = vadd.f32 %v1323_v28, %v2126_v62  ;;  %v1456_v31 = vadd.f32 %v1455_v29, %v2130_v4 }
 0x151   :  { %v1325_v32 = vadd.f32 %v1324_v30, %v2120_v57  ;;  %v1457_v33 = vadd.f32 %v1456_v31, %v2135_v8 }
 0x153   :  { %v1326_v34 = vadd.f32 %v1325_v32, %v2126_v62  ;;  %v1458_v35 = vadd.f32 %v1457_v33, %v2130_v4 }
 0x155   :  { %v1327_v36 = vadd.f32 %v1326_v34, %v2120_v57  ;;  %v1459_v37 = vadd.f32 %v1458_v35, %v2135_v8 }
 0x157   :  { %v1328_v38 = vadd.f32 %v1327_v36, %v2126_v62  ;;  %v1460_v39 = vadd.f32 %v1459_v37, %v2130_v4 }
 0x159   :  { %v1329_v40 = vadd.f32 %v1328_v38, %v2120_v57  ;;  %v1461_v41 = vadd.f32 %v1460_v39, %v2135_v8 }
 0x15b   :  { %v1330_v42 = vadd.f32 %v1329_v40, %v2126_v62  ;;  %v1462_v43 = vadd.f32 %v1461_v41, %v2130_v4 }
 0x15d   :  { %v1331_v44 = vadd.f32 %v1330_v42, %v2120_v57  ;;  %v1463_v45 = vadd.f32 %v1462_v43, %v2135_v8 }
 0x15f   :  { %v1332_v46 = vadd.f32 %v1331_v44, %v2126_v62  ;;  %v1464_v47 = vadd.f32 %v1463_v45, %v2130_v4 }
 0x161   :  { %v1333_v48 = vadd.f32 %v1332_v46, %v2120_v57  ;;  %v1465_v49 = vadd.f32 %v1464_v47, %v2135_v8 }
 0x163   :  { %v1334_v50 = vadd.f32 %v1333_v48, %v2126_v62  ;;  %v1466_v51 = vadd.f32 %v1465_v49, %v2130_v4 }
 0x165   :  { %v1335_v52 = vadd.f32 %v1334_v50, %v2120_v57  ;;  %v1467_v53 = vadd.f32 %v1466_v51, %v2135_v8 }
 0x167   :  { %v1336_v54 = vadd.f32 %v1335_v52, %v2126_v62  ;;  %v1468_v55 = vadd.f32 %v1467_v53, %v2130_v4 }
 0x169   :  { %v1337_v56 = vadd.f32 %v1336_v54, %v2120_v57  ;;  %v1469_v58 = vadd.f32 %v1468_v55, %v2135_v8 }
 0x16b   :  { %v1338_v59 = vadd.f32 %v1337_v56, %v2126_v62  ;;  %v1470_v60 = vadd.f32 %v1469_v58, %v2130_v4 }
 0x16d   :  { %v1339_v61 = vrot.slane %v1338_v59, 4  ;;  %v1471_v63 = vadd.f32 %v1470_v60, %v2135_v8 }
 0x16f   :  { %v1340_v0 = vadd.f32 %v1339_v61, %v1338_v59  ;;  %v1472_v1 = vrot.slane %v1471_v63, 4 }
 0x171   :  { %v1341_v2 = vrot.slane %v1340_v0, 2  ;;  %v1473_v3 = vadd.f32 %v1472_v1, %v1471_v63 }
 0x173   :  { %v1342_v5 = vadd.f32 %v1341_v2, %v1340_v0  ;;  %v1474_v6 = vrot.slane %v1473_v3, 2 }
 0x175   :  { %v1343_v7 = vrot.slane %v1342_v5, 1  ;;  %v1475_v9 = vadd.f32 %v1474_v6, %v1473_v3 }
 0x177   :  { %v1476_v10 = vrot.slane %v1475_v9, 1  ;;  %v1344_v57 = vadd.f32 %v1343_v7, %v1342_v5 }
 0x179   :  { %v1477_v11 = vadd.f32 %v1476_v10, %v1475_v9 }
 0x17b   :  { %v1479_v12 = vsel %vm1478_vm0, %v1344_v57, %v1477_v11 }
 0x17c   :  { %v1481_v62 = vsel %vm1480_vm1, %v1479_v12, 0.0 }
 0x17d   :  { %1482 = vst [vmem:[%s2267_s4] sm:$0xff] %v1481_v62 }

// kernel: eegnn_forward.25
= control target key start
LH: loop header
LB: loop body
LE: loop exit
PB: predicated region body
PF: predicated region fallthrough
CT: control target
= control target key end

     0   :  { %v1176_v40 = vmov 0.0   ;;  %s1512_s1 = inlined_call_operand.vmem [shape: bf16[128,128], index: 1, kind: input, shape index: {}]   ;;  %s1513_s0 = inlined_call_operand.vmem [shape: bf16[512,128], index: 0, kind: input, shape index: {}]   ;;  %s1514_s3 = inlined_call_operand.vmem [shape: f32[512,128], index: 3, kind: output, shape index: {}]   ;;  %s1515_s2 = inlined_call_operand.vmem [shape: f32[1,128], index: 2, kind: input, shape index: {}]  }
   0x1   :  { %v1136_v0 = vld [vmem:[%s1512_s1 + $0x38] sm:$0xff]   ;;  %v1137_v1 = vld [vmem:[%s1512_s1 + $0x30] sm:$0xff]   ;;  %v1138_v2 = vld [vmem:[%s1512_s1 + $0x28] sm:$0xff]   ;;  %892 = vst [vmem:[%s1514_s3 + $0x10] sm:$0xff] %v1176_v40 }
   0x2   :  { %1039 = vmatprep.subr.bf16.mxu0 %v1136_v0  ;;  %1119 = vmatprep.subr.bf16.mxu1 %v1136_v0  ;;  %v1139_v3 = vld [vmem:[%s1512_s1 + $0x20] sm:$0xff]   ;;  %v1140_v6 = vld [vmem:[%s1512_s1 + $0x18] sm:$0xff]   ;;  %v1141_v7 = vld [vmem:[%s1512_s1 + $0x10] sm:$0xff]   ;;  %893 = vst [vmem:[%s1514_s3 + $0x18] sm:$0xff] %v1176_v40 }
   0x3   :  { %1040 = vmatpush3.bf16.msra.mxu0 %v1136_v0  ;;  %1127 = vmatpush3.bf16.msra.mxu1 %v1136_v0  ;;  %v1144_v4 = vld [vmem:[%s1513_s0] sm:$0xff]   ;;  %v1142_v8 = vld [vmem:[%s1512_s1 + $0x8] sm:$0xff]   ;;  %v1148_v12 = vld [vmem:[%s1513_s0 + $0x10] sm:$0xff]   ;;  %894 = vst [vmem:[%s1514_s3 + $0x20] sm:$0xff] %v1176_v40 }
   0x4   :  { %1041 = vmatprep.subr.bf16.mxu0 %v1137_v1  ;;  %1120 = vmatprep.subr.bf16.mxu1 %v1137_v1  ;;  %v1145_v5 = vld [vmem:[%s1513_s0 + $0x80] sm:$0xff]   ;;  %v1146_v10 = vld [vmem:[%s1513_s0 + $0x8] sm:$0xff]   ;;  %v1149_v13 = vld [vmem:[%s1513_s0 + $0x90] sm:$0xff]   ;;  %895 = vst [vmem:[%s1514_s3 + $0x28] sm:$0xff] %v1176_v40 }
   0x5   :  { %1055 = vmatprep.mubr.bf16.mxu0 %v1144_v4  ;;  %1087 = vmatprep.mubr.bf16.mxu1 %v1145_v5  ;;  %v1143_v9 = vld [vmem:[%s1512_s1] sm:$0xff]   ;;  %v1147_v11 = vld [vmem:[%s1513_s0 + $0x88] sm:$0xff]   ;;  %v1150_v14 = vld [vmem:[%s1513_s0 + $0x18] sm:$0xff]   ;;  %896 = vst [vmem:[%s1514_s3 + $0x30] sm:$0xff] %v1176_v40 }
   0x6   :  { %v1151_v15 = vld [vmem:[%s1513_s0 + $0x98] sm:$0xff]   ;;  %v1152_v16 = vld [vmem:[%s1513_s0 + $0x20] sm:$0xff]   ;;  %v1154_v18 = vld [vmem:[%s1513_s0 + $0x28] sm:$0xff]   ;;  %897 = vst [vmem:[%s1514_s3 + $0x38] sm:$0xff] %v1176_v40 }
   0x7   :  { %1042 = vmatpush3.bf16.msra.mxu0 %v1137_v1  ;;  %1128 = vmatpush3.bf16.msra.mxu1 %v1137_v1  ;;  %v1153_v17 = vld [vmem:[%s1513_s0 + $0xa0] sm:$0xff]   ;;  %v1155_v19 = vld [vmem:[%s1513_s0 + $0xa8] sm:$0xff]   ;;  %v1156_v20 = vld [vmem:[%s1513_s0 + $0x30] sm:$0xff]   ;;  %898 = vst [vmem:[%s1514_s3 + $0x40] sm:$0xff] %v1176_v40 }
   0x8   :  { %1043 = vmatprep.subr.bf16.mxu0 %v1138_v2  ;;  %1121 = vmatprep.subr.bf16.mxu1 %v1138_v2  ;;  %v1157_v21 = vld [vmem:[%s1513_s0 + $0xb0] sm:$0xff]   ;;  %v1158_v22 = vld [vmem:[%s1513_s0 + $0x38] sm:$0xff]   ;;  %v1160_v24 = vld [vmem:[%s1513_s0 + $0x40] sm:$0xff]   ;;  %899 = vst [vmem:[%s1514_s3 + $0x48] sm:$0xff] %v1176_v40 }
   0x9   :  { %v1159_v23 = vld [vmem:[%s1513_s0 + $0xb8] sm:$0xff]   ;;  %v1161_v25 = vld [vmem:[%s1513_s0 + $0xc0] sm:$0xff]   ;;  %v1162_v26 = vld [vmem:[%s1513_s0 + $0x48] sm:$0xff]   ;;  %900 = vst [vmem:[%s1514_s3 + $0x50] sm:$0xff] %v1176_v40 }
   0xa   :  { %v1163_v27 = vld [vmem:[%s1513_s0 + $0xc8] sm:$0xff]   ;;  %v1164_v28 = vld [vmem:[%s1513_s0 + $0x50] sm:$0xff]   ;;  %v1166_v30 = vld [vmem:[%s1513_s0 + $0x58] sm:$0xff]   ;;  %901 = vst [vmem:[%s1514_s3 + $0x58] sm:$0xff] %v1176_v40 }
   0xb   :  { %1044 = vmatpush3.bf16.msra.mxu0 %v1138_v2  ;;  %1129 = vmatpush3.bf16.msra.mxu1 %v1138_v2  ;;  %v1165_v29 = vld [vmem:[%s1513_s0 + $0xd0] sm:$0xff]   ;;  %v1167_v31 = vld [vmem:[%s1513_s0 + $0xd8] sm:$0xff]   ;;  %v1168_v32 = vld [vmem:[%s1513_s0 + $0x60] sm:$0xff]   ;;  %902 = vst [vmem:[%s1514_s3 + $0x60] sm:$0xff] %v1176_v40 }
   0xc   :  { %1045 = vmatprep.subr.bf16.mxu0 %v1139_v3  ;;  %1122 = vmatprep.subr.bf16.mxu1 %v1139_v3  ;;  %v1169_v33 = vld [vmem:[%s1513_s0 + $0xe0] sm:$0xff]   ;;  %v1170_v34 = vld [vmem:[%s1513_s0 + $0x68] sm:$0xff]   ;;  %v1172_v36 = vld [vmem:[%s1513_s0 + $0x70] sm:$0xff]   ;;  %903 = vst [vmem:[%s1514_s3 + $0x68] sm:$0xff] %v1176_v40 }
   0xd   :  { %v1171_v35 = vld [vmem:[%s1513_s0 + $0xe8] sm:$0xff]   ;;  %v1173_v37 = vld [vmem:[%s1513_s0 + $0xf0] sm:$0xff]   ;;  %v1174_v38 = vld [vmem:[%s1513_s0 + $0x78] sm:$0xff]   ;;  %904 = vst [vmem:[%s1514_s3 + $0x70] sm:$0xff] %v1176_v40 }
   0xe   :  { %v1175_v39 = vld [vmem:[%s1513_s0 + $0xf8] sm:$0xff]   ;;  %905 = vst [vmem:[%s1514_s3 + $0x78] sm:$0xff] %v1176_v40  ;;  %906 = vst [vmem:[%s1514_s3 + $0x80] sm:$0xff] %v1176_v40  ;;  %v958_v43 = vld [vmem:[%s1515_s2] ss:$0 sm:$0xff] }
   0xf   :  { %1046 = vmatpush3.bf16.msra.mxu0 %v1139_v3  ;;  %1130 = vmatpush3.bf16.msra.mxu1 %v1139_v3  ;;  %907 = vst [vmem:[%s1514_s3 + $0x88] sm:$0xff] %v1176_v40  ;;  %908 = vst [vmem:[%s1514_s3 + $0x90] sm:$0xff] %v1176_v40 }
  0x10   :  { %1047 = vmatprep.subr.bf16.mxu0 %v1140_v6  ;;  %1123 = vmatprep.subr.bf16.mxu1 %v1140_v6  ;;  %909 = vst [vmem:[%s1514_s3 + $0x98] sm:$0xff] %v1176_v40  ;;  %910 = vst [vmem:[%s1514_s3 + $0xa0] sm:$0xff] %v1176_v40 }
  0x11   :  { %911 = vst [vmem:[%s1514_s3 + $0xa8] sm:$0xff] %v1176_v40  ;;  %912 = vst [vmem:[%s1514_s3 + $0xb0] sm:$0xff] %v1176_v40 }
  0x12   :  { %913 = vst [vmem:[%s1514_s3 + $0xb8] sm:$0xff] %v1176_v40  ;;  %914 = vst [vmem:[%s1514_s3 + $0xc0] sm:$0xff] %v1176_v40 }
  0x13   :  { %1048 = vmatpush3.bf16.msra.mxu0 %v1140_v6  ;;  %1131 = vmatpush3.bf16.msra.mxu1 %v1140_v6  ;;  %915 = vst [vmem:[%s1514_s3 + $0xc8] sm:$0xff] %v1176_v40  ;;  %916 = vst [vmem:[%s1514_s3 + $0xd0] sm:$0xff] %v1176_v40 }
  0x14   :  { %1049 = vmatprep.subr.bf16.mxu0 %v1141_v7  ;;  %1124 = vmatprep.subr.bf16.mxu1 %v1141_v7  ;;  %917 = vst [vmem:[%s1514_s3 + $0xd8] sm:$0xff] %v1176_v40  ;;  %918 = vst [vmem:[%s1514_s3 + $0xe0] sm:$0xff] %v1176_v40 }
  0x15   :  { %919 = vst [vmem:[%s1514_s3 + $0xe8] sm:$0xff] %v1176_v40  ;;  %920 = vst [vmem:[%s1514_s3 + $0xf0] sm:$0xff] %v1176_v40 }
  0x16   :  { %921 = vst [vmem:[%s1514_s3 + $0xf8] sm:$0xff] %v1176_v40  ;;  %922 = vst [vmem:[%s1514_s3 + $0x100] sm:$0xff] %v1176_v40 }
  0x17   :  { %1050 = vmatpush3.bf16.msra.mxu0 %v1141_v7  ;;  %1132 = vmatpush3.bf16.msra.mxu1 %v1141_v7  ;;  %923 = vst [vmem:[%s1514_s3 + $0x108] sm:$0xff] %v1176_v40  ;;  %924 = vst [vmem:[%s1514_s3 + $0x110] sm:$0xff] %v1176_v40 }
  0x18   :  { %1051 = vmatprep.subr.bf16.mxu0 %v1142_v8  ;;  %1125 = vmatprep.subr.bf16.mxu1 %v1142_v8  ;;  %925 = vst [vmem:[%s1514_s3 + $0x118] sm:$0xff] %v1176_v40  ;;  %926 = vst [vmem:[%s1514_s3 + $0x120] sm:$0xff] %v1176_v40 }
  0x19   :  { %927 = vst [vmem:[%s1514_s3 + $0x128] sm:$0xff] %v1176_v40  ;;  %928 = vst [vmem:[%s1514_s3 + $0x130] sm:$0xff] %v1176_v40 }
  0x1a   :  { %929 = vst [vmem:[%s1514_s3 + $0x138] sm:$0xff] %v1176_v40  ;;  %930 = vst [vmem:[%s1514_s3 + $0x140] sm:$0xff] %v1176_v40 }
  0x1b   :  { %1052 = vmatpush3.bf16.msra.mxu0 %v1142_v8  ;;  %1133 = vmatpush3.bf16.msra.mxu1 %v1142_v8  ;;  %931 = vst [vmem:[%s1514_s3 + $0x148] sm:$0xff] %v1176_v40  ;;  %932 = vst [vmem:[%s1514_s3 + $0x150] sm:$0xff] %v1176_v40 }
  0x1c   :  { %1053 = vmatprep.subr.bf16.mxu0 %v1143_v9  ;;  %1126 = vmatprep.subr.bf16.mxu1 %v1143_v9  ;;  %933 = vst [vmem:[%s1514_s3 + $0x158] sm:$0xff] %v1176_v40  ;;  %934 = vst [vmem:[%s1514_s3 + $0x160] sm:$0xff] %v1176_v40 }
  0x1d   :  { %935 = vst [vmem:[%s1514_s3 + $0x168] sm:$0xff] %v1176_v40  ;;  %936 = vst [vmem:[%s1514_s3 + $0x170] sm:$0xff] %v1176_v40 }
  0x1e   :  { %937 = vst [vmem:[%s1514_s3 + $0x178] sm:$0xff] %v1176_v40  ;;  %938 = vst [vmem:[%s1514_s3 + $0x180] sm:$0xff] %v1176_v40 }
  0x1f   :  { %1054 = vmatpush3.bf16.msra.mxu0 %v1143_v9  ;;  %1134 = vmatpush3.bf16.msra.mxu1 %v1143_v9  ;;  %939 = vst [vmem:[%s1514_s3 + $0x188] sm:$0xff] %v1176_v40  ;;  %940 = vst [vmem:[%s1514_s3 + $0x190] sm:$0xff] %v1176_v40 }
  0x20   :  { %941 = vst [vmem:[%s1514_s3 + $0x198] sm:$0xff] %v1176_v40  ;;  %942 = vst [vmem:[%s1514_s3 + $0x1a0] sm:$0xff] %v1176_v40 }
  0x21   :  { %943 = vst [vmem:[%s1514_s3 + $0x1a8] sm:$0xff] %v1176_v40  ;;  %944 = vst [vmem:[%s1514_s3 + $0x1b0] sm:$0xff] %v1176_v40 }
  0x22   :  { %1056 = vmatmul.mubr.bf16.vlgmr.msra.gmra.mxu0 %v1146_v10  ;;  %1088 = vmatmul.mubr.bf16.vlgmr.msra.gmra.mxu1 %v1147_v11  ;;  %945 = vst [vmem:[%s1514_s3 + $0x1b8] sm:$0xff] %v1176_v40  ;;  %946 = vst [vmem:[%s1514_s3 + $0x1c0] sm:$0xff] %v1176_v40 }
  0x23   :  { %1059 = vmatprep.mubr.bf16.mxu0 %v1148_v12  ;;  %1091 = vmatprep.mubr.bf16.mxu1 %v1149_v13  ;;  %947 = vst [vmem:[%s1514_s3 + $0x1c8] sm:$0xff] %v1176_v40  ;;  %948 = vst [vmem:[%s1514_s3 + $0x1d0] sm:$0xff] %v1176_v40 }
  0x24   :  { %949 = vst [vmem:[%s1514_s3 + $0x1d8] sm:$0xff] %v1176_v40  ;;  %950 = vst [vmem:[%s1514_s3 + $0x1e0] sm:$0xff] %v1176_v40 }
  0x25   :  { %951 = vst [vmem:[%s1514_s3 + $0x1e8] sm:$0xff] %v1176_v40  ;;  %952 = vst [vmem:[%s1514_s3 + $0x1f0] sm:$0xff] %v1176_v40 }
  0x26   :  { %953 = vst [vmem:[%s1514_s3 + $0x1f8] sm:$0xff] %v1176_v40 }
  0x2a   :  { %1060 = vmatmul.mubr.bf16.gmra.mxu0 %v1150_v14  ;;  %1092 = vmatmul.mubr.bf16.gmra.mxu1 %v1151_v15 }
  0x2b   :  { %1063 = vmatprep.mubr.bf16.mxu0 %v1152_v16  ;;  %1095 = vmatprep.mubr.bf16.mxu1 %v1153_v17 }
  0x32   :  { %1064 = vmatmul.mubr.bf16.gmra.mxu0 %v1154_v18  ;;  %1096 = vmatmul.mubr.bf16.gmra.mxu1 %v1155_v19 }
  0x33   :  { %1067 = vmatprep.mubr.bf16.mxu0 %v1156_v20  ;;  %1099 = vmatprep.mubr.bf16.mxu1 %v1157_v21 }
  0x3a   :  { %1068 = vmatmul.mubr.bf16.gmra.mxu0 %v1158_v22  ;;  %1100 = vmatmul.mubr.bf16.gmra.mxu1 %v1159_v23 }
  0x3b   :  { %1071 = vmatprep.mubr.bf16.mxu0 %v1160_v24  ;;  %1103 = vmatprep.mubr.bf16.mxu1 %v1161_v25 }
  0x42   :  { %1072 = vmatmul.mubr.bf16.gmra.mxu0 %v1162_v26  ;;  %1104 = vmatmul.mubr.bf16.gmra.mxu1 %v1163_v27 }
  0x43   :  { %1075 = vmatprep.mubr.bf16.mxu0 %v1164_v28  ;;  %1107 = vmatprep.mubr.bf16.mxu1 %v1165_v29 }
  0x4a   :  { %1076 = vmatmul.mubr.bf16.gmra.mxu0 %v1166_v30  ;;  %1108 = vmatmul.mubr.bf16.gmra.mxu1 %v1167_v31 }
  0x4b   :  { %1079 = vmatprep.mubr.bf16.mxu0 %v1168_v32  ;;  %1111 = vmatprep.mubr.bf16.mxu1 %v1169_v33 }
  0x52   :  { %1080 = vmatmul.mubr.bf16.gmra.mxu0 %v1170_v34  ;;  %1112 = vmatmul.mubr.bf16.gmra.mxu1 %v1171_v35 }
  0x53   :  { %1083 = vmatprep.mubr.bf16.mxu0 %v1172_v36  ;;  %1115 = vmatprep.mubr.bf16.mxu1 %v1173_v37 }
  0x5a   :  { %1084 = vmatmul.mubr.bf16.gmra.mxu0 %v1174_v38  ;;  %1116 = vmatmul.mubr.bf16.gmra.mxu1 %v1175_v39 }
  0xe2   :  { %v1057_v41 = vpop.f32.mrf.mxu0  ;;  %v1089_v42 = vpop.f32.mrf.mxu1 }
  0xe4   :  { %v376_v44 = vpop.f32.mrf.mxu0  ;;  %v504_v45 = vpop.f32.mrf.mxu1 }
  0xe5   :  { %v377_v46 = vadd.f32 %v958_v43, %v376_v44 }
  0xe6   :  { %v1058_v47 = vpop.f32.mrf.mxu0  ;;  %v1090_v48 = vpop.f32.mrf.mxu1 }
  0xe7   :  { %890 = vst [vmem:[%s1514_s3] sm:$0xff] %v377_v46 }
  0xe8   :  { %v379_v49 = vpop.f32.mrf.mxu0  ;;  %v507_v50 = vpop.f32.mrf.mxu1 }
  0xe9   :  { %v380_v51 = vadd.f32 %v958_v43, %v379_v49 }
  0xea   :  { %v1061_v52 = vpop.f32.mrf.mxu0  ;;  %v1093_v53 = vpop.f32.mrf.mxu1 }
  0xeb   :  { %891 = vst [vmem:[%s1514_s3 + $0x8] sm:$0xff] %v380_v51 }
  0xec   :  { %v392_v54 = vpop.f32.mrf.mxu0  ;;  %v520_v55 = vpop.f32.mrf.mxu1 }
  0xee   :  { %v1062_v56 = vpop.f32.mrf.mxu0  ;;  %v1094_v57 = vpop.f32.mrf.mxu1 }
  0xf0   :  { %v395_v58 = vpop.f32.mrf.mxu0  ;;  %v523_v59 = vpop.f32.mrf.mxu1 }
  0xf2   :  { %v1065_v60 = vpop.f32.mrf.mxu0  ;;  %v1097_v61 = vpop.f32.mrf.mxu1 }
  0xf4   :  { %v408_v62 = vpop.f32.mrf.mxu0  ;;  %v536_v63 = vpop.f32.mrf.mxu1 }
  0xf6   :  { %v1066_v0 = vpop.f32.mrf.mxu0  ;;  %v1098_v1 = vpop.f32.mrf.mxu1 }
  0xf8   :  { %v411_v2 = vpop.f32.mrf.mxu0  ;;  %v539_v3 = vpop.f32.mrf.mxu1 }
  0xfa   :  { %v1069_v4 = vpop.f32.mrf.mxu0  ;;  %v1101_v5 = vpop.f32.mrf.mxu1 }
  0xfc   :  { %v424_v6 = vpop.f32.mrf.mxu0  ;;  %v552_v7 = vpop.f32.mrf.mxu1 }
  0xfe   :  { %v1070_v8 = vpop.f32.mrf.mxu0  ;;  %v1102_v9 = vpop.f32.mrf.mxu1 }
 0x100   :  { %v427_v10 = vpop.f32.mrf.mxu0  ;;  %v555_v11 = vpop.f32.mrf.mxu1 }
 0x102   :  { %v1073_v12 = vpop.f32.mrf.mxu0  ;;  %v1105_v13 = vpop.f32.mrf.mxu1 }
 0x104   :  { %v440_v14 = vpop.f32.mrf.mxu0  ;;  %v568_v15 = vpop.f32.mrf.mxu1 }
 0x106   :  { %v1074_v16 = vpop.f32.mrf.mxu0  ;;  %v1106_v17 = vpop.f32.mrf.mxu1 }
 0x108   :  { %v443_v18 = vpop.f32.mrf.mxu0  ;;  %v571_v19 = vpop.f32.mrf.mxu1 }
 0x10a   :  { %v1077_v20 = vpop.f32.mrf.mxu0  ;;  %v1109_v21 = vpop.f32.mrf.mxu1 }
 0x10c   :  { %v456_v22 = vpop.f32.mrf.mxu0  ;;  %v584_v23 = vpop.f32.mrf.mxu1 }
 0x10e   :  { %v1078_v24 = vpop.f32.mrf.mxu0  ;;  %v1110_v25 = vpop.f32.mrf.mxu1 }
 0x110   :  { %v459_v26 = vpop.f32.mrf.mxu0  ;;  %v587_v27 = vpop.f32.mrf.mxu1 }
 0x112   :  { %v1081_v28 = vpop.f32.mrf.mxu0  ;;  %v1113_v29 = vpop.f32.mrf.mxu1 }
 0x114   :  { %v472_v30 = vpop.f32.mrf.mxu0  ;;  %v600_v31 = vpop.f32.mrf.mxu1 }
 0x116   :  { %v1082_v32 = vpop.f32.mrf.mxu0  ;;  %v1114_v33 = vpop.f32.mrf.mxu1 }
 0x118   :  { %v475_v34 = vpop.f32.mrf.mxu0  ;;  %v603_v35 = vpop.f32.mrf.mxu1 }
 0x11a   :  { %v1085_v36 = vpop.f32.mrf.mxu0  ;;  %v1117_v37 = vpop.f32.mrf.mxu1 }
 0x11c   :  { %v488_v38 = vpop.f32.mrf.mxu0  ;;  %v616_v39 = vpop.f32.mrf.mxu1 }
 0x11e   :  { %v1086_v40 = vpop.f32.mrf.mxu0  ;;  %v1118_v41 = vpop.f32.mrf.mxu1 }
 0x120   :  { %v491_v42 = vpop.f32.mrf.mxu0  ;;  %v619_v43 = vpop.f32.mrf.mxu1 }

// kernel: eegnn_forward.24
= control target key start
LH: loop header
LB: loop body
LE: loop exit
PB: predicated region body
PF: predicated region fallthrough
CT: control target
= control target key end

     0   :  { %v8375_v40 = vmov 0.0|0.0   ;;  %s8821_s1 = inlined_call_operand.vmem [shape: bf16[128,128], index: 1, kind: input, shape index: {}]   ;;  %s8822_s0 = inlined_call_operand.vmem [shape: bf16[512,128], index: 0, kind: input, shape index: {}]   ;;  %s8823_s3 = inlined_call_operand.vmem [shape: bf16[512,128], index: 3, kind: output, shape index: {}]   ;;  %s8824_s2 = inlined_call_operand.vmem [shape: f32[1,128], index: 2, kind: input, shape index: {}]  }
   0x1   :  { %v8327_v0 = vld [vmem:[%s8821_s1 + $0x38] sm:$0xff]   ;;  %v8328_v1 = vld [vmem:[%s8821_s1 + $0x30] sm:$0xff]   ;;  %v8329_v2 = vld [vmem:[%s8821_s1 + $0x28] sm:$0xff]   ;;  %v8107_v41 = vcombine.low %v8375_v40, %v8375_v40  ;;  %v8108_v42 = vcombine.high %v8375_v40, %v8375_v40 }
   0x2   :  { %8216 = vmatprep.subr.bf16.mxu0 %v8327_v0  ;;  %8296 = vmatprep.subr.bf16.mxu1 %v8327_v0  ;;  %v8330_v3 = vld [vmem:[%s8821_s1 + $0x20] sm:$0xff]   ;;  %v8331_v6 = vld [vmem:[%s8821_s1 + $0x18] sm:$0xff]   ;;  %v8332_v7 = vld [vmem:[%s8821_s1 + $0x10] sm:$0xff]  }
   0x3   :  { %8217 = vmatpush3.bf16.msra.mxu0 %v8327_v0  ;;  %8304 = vmatpush3.bf16.msra.mxu1 %v8327_v0  ;;  %v8335_v4 = vld [vmem:[%s8822_s0] sm:$0xff]   ;;  %v8333_v8 = vld [vmem:[%s8821_s1 + $0x8] sm:$0xff]   ;;  %v8339_v12 = vld [vmem:[%s8822_s0 + $0x10] sm:$0xff]   ;;  %7804 = vst [vmem:[%s8823_s3 + $0x8] sm:$0xf] %v8107_v41 }
   0x4   :  { %8218 = vmatprep.subr.bf16.mxu0 %v8328_v1  ;;  %8297 = vmatprep.subr.bf16.mxu1 %v8328_v1  ;;  %v8337_v5 = vld [vmem:[%s8822_s0 + $0x80] sm:$0xff]   ;;  %v8336_v10 = vld [vmem:[%s8822_s0 + $0x8] sm:$0xff]   ;;  %v8340_v13 = vld [vmem:[%s8822_s0 + $0x90] sm:$0xff]   ;;  %7805 = vst [vmem:[%s8823_s3 + $0xc] sm:$0xf] %v8108_v42 }
   0x5   :  { %8232 = vmatprep.mubr.bf16.mxu0 %v8335_v4  ;;  %8264 = vmatprep.mubr.bf16.mxu1 %v8337_v5  ;;  %v8334_v9 = vld [vmem:[%s8821_s1] sm:$0xff]   ;;  %v8338_v11 = vld [vmem:[%s8822_s0 + $0x88] sm:$0xff]   ;;  %v8341_v14 = vld [vmem:[%s8822_s0 + $0x18] sm:$0xff]   ;;  %7806 = vst [vmem:[%s8823_s3 + $0x10] sm:$0xf] %v8107_v41 }
   0x6   :  { %v8342_v15 = vld [vmem:[%s8822_s0 + $0x98] sm:$0xff]   ;;  %v8343_v16 = vld [vmem:[%s8822_s0 + $0x20] sm:$0xff]   ;;  %v8345_v18 = vld [vmem:[%s8822_s0 + $0x28] sm:$0xff]   ;;  %7807 = vst [vmem:[%s8823_s3 + $0x14] sm:$0xf] %v8108_v42 }
   0x7   :  { %8219 = vmatpush3.bf16.msra.mxu0 %v8328_v1  ;;  %8305 = vmatpush3.bf16.msra.mxu1 %v8328_v1  ;;  %v8344_v17 = vld [vmem:[%s8822_s0 + $0xa0] sm:$0xff]   ;;  %v8346_v19 = vld [vmem:[%s8822_s0 + $0xa8] sm:$0xff]   ;;  %v8347_v20 = vld [vmem:[%s8822_s0 + $0x30] sm:$0xff]   ;;  %7808 = vst [vmem:[%s8823_s3 + $0x18] sm:$0xf] %v8107_v41 }
   0x8   :  { %8220 = vmatprep.subr.bf16.mxu0 %v8329_v2  ;;  %8298 = vmatprep.subr.bf16.mxu1 %v8329_v2  ;;  %v8348_v21 = vld [vmem:[%s8822_s0 + $0xb0] sm:$0xff]   ;;  %v8349_v22 = vld [vmem:[%s8822_s0 + $0x38] sm:$0xff]   ;;  %v8351_v24 = vld [vmem:[%s8822_s0 + $0x40] sm:$0xff]   ;;  %7809 = vst [vmem:[%s8823_s3 + $0x1c] sm:$0xf] %v8108_v42 }
   0x9   :  { %v8350_v23 = vld [vmem:[%s8822_s0 + $0xb8] sm:$0xff]   ;;  %v8352_v25 = vld [vmem:[%s8822_s0 + $0xc0] sm:$0xff]   ;;  %v8353_v26 = vld [vmem:[%s8822_s0 + $0x48] sm:$0xff]   ;;  %7810 = vst [vmem:[%s8823_s3 + $0x20] sm:$0xf] %v8107_v41 }
   0xa   :  { %v8354_v27 = vld [vmem:[%s8822_s0 + $0xc8] sm:$0xff]   ;;  %v8355_v28 = vld [vmem:[%s8822_s0 + $0x50] sm:$0xff]   ;;  %v8357_v30 = vld [vmem:[%s8822_s0 + $0x58] sm:$0xff]   ;;  %7811 = vst [vmem:[%s8823_s3 + $0x24] sm:$0xf] %v8108_v42 }
   0xb   :  { %8221 = vmatpush3.bf16.msra.mxu0 %v8329_v2  ;;  %8306 = vmatpush3.bf16.msra.mxu1 %v8329_v2  ;;  %v8356_v29 = vld [vmem:[%s8822_s0 + $0xd0] sm:$0xff]   ;;  %v8358_v31 = vld [vmem:[%s8822_s0 + $0xd8] sm:$0xff]   ;;  %v8359_v32 = vld [vmem:[%s8822_s0 + $0x60] sm:$0xff]   ;;  %7812 = vst [vmem:[%s8823_s3 + $0x28] sm:$0xf] %v8107_v41 }
   0xc   :  { %8222 = vmatprep.subr.bf16.mxu0 %v8330_v3  ;;  %8299 = vmatprep.subr.bf16.mxu1 %v8330_v3  ;;  %v8360_v33 = vld [vmem:[%s8822_s0 + $0xe0] sm:$0xff]   ;;  %v8361_v34 = vld [vmem:[%s8822_s0 + $0x68] sm:$0xff]   ;;  %v8363_v36 = vld [vmem:[%s8822_s0 + $0x70] sm:$0xff]   ;;  %7813 = vst [vmem:[%s8823_s3 + $0x2c] sm:$0xf] %v8108_v42 }
   0xd   :  { %v8362_v35 = vld [vmem:[%s8822_s0 + $0xe8] sm:$0xff]   ;;  %v8364_v37 = vld [vmem:[%s8822_s0 + $0xf0] sm:$0xff]   ;;  %v8365_v38 = vld [vmem:[%s8822_s0 + $0x78] sm:$0xff]   ;;  %7814 = vst [vmem:[%s8823_s3 + $0x30] sm:$0xf] %v8107_v41 }
   0xe   :  { %v8366_v39 = vld [vmem:[%s8822_s0 + $0xf8] sm:$0xff]   ;;  %7815 = vst [vmem:[%s8823_s3 + $0x34] sm:$0xf] %v8108_v42  ;;  %7816 = vst [vmem:[%s8823_s3 + $0x38] sm:$0xf] %v8107_v41 }
   0xf   :  { %8223 = vmatpush3.bf16.msra.mxu0 %v8330_v3  ;;  %8307 = vmatpush3.bf16.msra.mxu1 %v8330_v3  ;;  %7817 = vst [vmem:[%s8823_s3 + $0x3c] sm:$0xf] %v8108_v42  ;;  %7818 = vst [vmem:[%s8823_s3 + $0x40] sm:$0xf] %v8107_v41  ;;  %v7870_v44 = vld [vmem:[%s8824_s2] ss:$0 sm:$0xff] }
  0x10   :  { %8224 = vmatprep.subr.bf16.mxu0 %v8331_v6  ;;  %8300 = vmatprep.subr.bf16.mxu1 %v8331_v6  ;;  %7819 = vst [vmem:[%s8823_s3 + $0x44] sm:$0xf] %v8108_v42  ;;  %7820 = vst [vmem:[%s8823_s3 + $0x48] sm:$0xf] %v8107_v41 }
  0x11   :  { %7821 = vst [vmem:[%s8823_s3 + $0x4c] sm:$0xf] %v8108_v42  ;;  %7822 = vst [vmem:[%s8823_s3 + $0x50] sm:$0xf] %v8107_v41 }
  0x12   :  { %7823 = vst [vmem:[%s8823_s3 + $0x54] sm:$0xf] %v8108_v42  ;;  %7824 = vst [vmem:[%s8823_s3 + $0x58] sm:$0xf] %v8107_v41 }
  0x13   :  { %8225 = vmatpush3.bf16.msra.mxu0 %v8331_v6  ;;  %8308 = vmatpush3.bf16.msra.mxu1 %v8331_v6  ;;  %7825 = vst [vmem:[%s8823_s3 + $0x5c] sm:$0xf] %v8108_v42  ;;  %7826 = vst [vmem:[%s8823_s3 + $0x60] sm:$0xf] %v8107_v41 }
  0x14   :  { %8226 = vmatprep.subr.bf16.mxu0 %v8332_v7  ;;  %8301 = vmatprep.subr.bf16.mxu1 %v8332_v7  ;;  %7827 = vst [vmem:[%s8823_s3 + $0x64] sm:$0xf] %v8108_v42  ;;  %7828 = vst [vmem:[%s8823_s3 + $0x68] sm:$0xf] %v8107_v41 }
  0x15   :  { %7829 = vst [vmem:[%s8823_s3 + $0x6c] sm:$0xf] %v8108_v42  ;;  %7830 = vst [vmem:[%s8823_s3 + $0x70] sm:$0xf] %v8107_v41 }
  0x16   :  { %7831 = vst [vmem:[%s8823_s3 + $0x74] sm:$0xf] %v8108_v42  ;;  %7832 = vst [vmem:[%s8823_s3 + $0x78] sm:$0xf] %v8107_v41 }
  0x17   :  { %8227 = vmatpush3.bf16.msra.mxu0 %v8332_v7  ;;  %8309 = vmatpush3.bf16.msra.mxu1 %v8332_v7  ;;  %7833 = vst [vmem:[%s8823_s3 + $0x7c] sm:$0xf] %v8108_v42  ;;  %7834 = vst [vmem:[%s8823_s3 + $0x80] sm:$0xf] %v8107_v41 }
  0x18   :  { %8228 = vmatprep.subr.bf16.mxu0 %v8333_v8  ;;  %8302 = vmatprep.subr.bf16.mxu1 %v8333_v8  ;;  %7835 = vst [vmem:[%s8823_s3 + $0x84] sm:$0xf] %v8108_v42  ;;  %7836 = vst [vmem:[%s8823_s3 + $0x88] sm:$0xf] %v8107_v41 }
  0x19   :  { %7837 = vst [vmem:[%s8823_s3 + $0x8c] sm:$0xf] %v8108_v42  ;;  %7838 = vst [vmem:[%s8823_s3 + $0x90] sm:$0xf] %v8107_v41 }
  0x1a   :  { %7839 = vst [vmem:[%s8823_s3 + $0x94] sm:$0xf] %v8108_v42  ;;  %7840 = vst [vmem:[%s8823_s3 + $0x98] sm:$0xf] %v8107_v41 }
  0x1b   :  { %8229 = vmatpush3.bf16.msra.mxu0 %v8333_v8  ;;  %8310 = vmatpush3.bf16.msra.mxu1 %v8333_v8  ;;  %7841 = vst [vmem:[%s8823_s3 + $0x9c] sm:$0xf] %v8108_v42  ;;  %7842 = vst [vmem:[%s8823_s3 + $0xa0] sm:$0xf] %v8107_v41 }
  0x1c   :  { %8230 = vmatprep.subr.bf16.mxu0 %v8334_v9  ;;  %8303 = vmatprep.subr.bf16.mxu1 %v8334_v9  ;;  %7843 = vst [vmem:[%s8823_s3 + $0xa4] sm:$0xf] %v8108_v42  ;;  %7844 = vst [vmem:[%s8823_s3 + $0xa8] sm:$0xf] %v8107_v41 }
  0x1d   :  { %7845 = vst [vmem:[%s8823_s3 + $0xac] sm:$0xf] %v8108_v42  ;;  %7846 = vst [vmem:[%s8823_s3 + $0xb0] sm:$0xf] %v8107_v41 }
  0x1e   :  { %7847 = vst [vmem:[%s8823_s3 + $0xb4] sm:$0xf] %v8108_v42  ;;  %7848 = vst [vmem:[%s8823_s3 + $0xb8] sm:$0xf] %v8107_v41 }
  0x1f   :  { %8231 = vmatpush3.bf16.msra.mxu0 %v8334_v9  ;;  %8311 = vmatpush3.bf16.msra.mxu1 %v8334_v9  ;;  %7849 = vst [vmem:[%s8823_s3 + $0xbc] sm:$0xf] %v8108_v42  ;;  %7850 = vst [vmem:[%s8823_s3 + $0xc0] sm:$0xf] %v8107_v41 }
  0x20   :  { %7851 = vst [vmem:[%s8823_s3 + $0xc4] sm:$0xf] %v8108_v42  ;;  %7852 = vst [vmem:[%s8823_s3 + $0xc8] sm:$0xf] %v8107_v41 }
  0x21   :  { %7853 = vst [vmem:[%s8823_s3 + $0xcc] sm:$0xf] %v8108_v42  ;;  %7854 = vst [vmem:[%s8823_s3 + $0xd0] sm:$0xf] %v8107_v41 }
  0x22   :  { %8233 = vmatmul.mubr.bf16.vlgmr.msra.gmra.mxu0 %v8336_v10  ;;  %8265 = vmatmul.mubr.bf16.vlgmr.msra.gmra.mxu1 %v8338_v11  ;;  %7855 = vst [vmem:[%s8823_s3 + $0xd4] sm:$0xf] %v8108_v42  ;;  %7856 = vst [vmem:[%s8823_s3 + $0xd8] sm:$0xf] %v8107_v41 }
  0x23   :  { %8236 = vmatprep.mubr.bf16.mxu0 %v8339_v12  ;;  %8268 = vmatprep.mubr.bf16.mxu1 %v8340_v13  ;;  %7857 = vst [vmem:[%s8823_s3 + $0xdc] sm:$0xf] %v8108_v42  ;;  %7858 = vst [vmem:[%s8823_s3 + $0xe0] sm:$0xf] %v8107_v41 }
  0x24   :  { %7859 = vst [vmem:[%s8823_s3 + $0xe4] sm:$0xf] %v8108_v42  ;;  %7860 = vst [vmem:[%s8823_s3 + $0xe8] sm:$0xf] %v8107_v41 }
  0x25   :  { %7861 = vst [vmem:[%s8823_s3 + $0xec] sm:$0xf] %v8108_v42  ;;  %7862 = vst [vmem:[%s8823_s3 + $0xf0] sm:$0xf] %v8107_v41 }
  0x26   :  { %7863 = vst [vmem:[%s8823_s3 + $0xf4] sm:$0xf] %v8108_v42  ;;  %7864 = vst [vmem:[%s8823_s3 + $0xf8] sm:$0xf] %v8107_v41 }
  0x27   :  { %7865 = vst [vmem:[%s8823_s3 + $0xfc] sm:$0xf] %v8108_v42 }
  0x2a   :  { %8237 = vmatmul.mubr.bf16.gmra.mxu0 %v8341_v14  ;;  %8269 = vmatmul.mubr.bf16.gmra.mxu1 %v8342_v15 }
  0x2b   :  { %8240 = vmatprep.mubr.bf16.mxu0 %v8343_v16  ;;  %8272 = vmatprep.mubr.bf16.mxu1 %v8344_v17  ;;  %v8376_v16 = vmov 683565275  }
  0x32   :  { %8241 = vmatmul.mubr.bf16.gmra.mxu0 %v8345_v18  ;;  %8273 = vmatmul.mubr.bf16.gmra.mxu1 %v8346_v19 }
  0x33   :  { %8244 = vmatprep.mubr.bf16.mxu0 %v8347_v20  ;;  %8276 = vmatprep.mubr.bf16.mxu1 %v8348_v21  ;;  %v8377_v20 = vmov 2475754826  }
  0x3a   :  { %8245 = vmatmul.mubr.bf16.gmra.mxu0 %v8349_v22  ;;  %8277 = vmatmul.mubr.bf16.gmra.mxu1 %v8350_v23  ;;  %v8378_v22 = vmov 2131351028  }
  0x3b   :  { %8248 = vmatprep.mubr.bf16.mxu0 %v8351_v24  ;;  %8280 = vmatprep.mubr.bf16.mxu1 %v8352_v25  ;;  %v8379_v24 = vmov 2102212464  }
  0x42   :  { %8249 = vmatmul.mubr.bf16.gmra.mxu0 %v8353_v26  ;;  %8281 = vmatmul.mubr.bf16.gmra.mxu1 %v8354_v27  ;;  %v8380_v26 = vmov 920167782  }
  0x43   :  { %8252 = vmatprep.mubr.bf16.mxu0 %v8355_v28  ;;  %8284 = vmatprep.mubr.bf16.mxu1 %v8356_v29 }
  0x4a   :  { %8253 = vmatmul.mubr.bf16.gmra.mxu0 %v8357_v30  ;;  %8285 = vmatmul.mubr.bf16.gmra.mxu1 %v8358_v31 }
  0x4b   :  { %8256 = vmatprep.mubr.bf16.mxu0 %v8359_v32  ;;  %8288 = vmatprep.mubr.bf16.mxu1 %v8360_v33 }
  0x52   :  { %8257 = vmatmul.mubr.bf16.gmra.mxu0 %v8361_v34  ;;  %8289 = vmatmul.mubr.bf16.gmra.mxu1 %v8362_v35  ;;  %v8381_v35 = vmov 1326507024  }
  0x53   :  { %8260 = vmatprep.mubr.bf16.mxu0 %v8363_v36  ;;  %8292 = vmatprep.mubr.bf16.mxu1 %v8364_v37 }
  0x5a   :  { %8261 = vmatmul.mubr.bf16.gmra.mxu0 %v8365_v38  ;;  %8293 = vmatmul.mubr.bf16.gmra.mxu1 %v8366_v39 }
  0xe2   :  { %v8234_v43 = vpop.f32.mrf.mxu0  ;;  %v8266_v45 = vpop.f32.mrf.mxu1 }
  0xe4   :  { %v376_v46 = vpop.f32.mrf.mxu0  ;;  %v504_v47 = vpop.f32.mrf.mxu1 }
  0xe5   :  { %v8711_v48 = vadd.f32 %v7870_v44, %v376_v46 }
  0xe6   :  { %v8235_v49 = vpop.f32.mrf.mxu0  ;;  %v8267_v50 = vpop.f32.mrf.mxu1 }
  0xe7   :  { %v890_v51 = vand.u32 2147483647, %v8711_v48  ;;  %v893_v52 = vand.u32 2139095040, %v8711_v48  ;;  %vm892_vm14 = vcmp.lt.s32.totalorder %v8711_v48, 0 }
  0xe8   :  { %v379_v53 = vpop.f32.mrf.mxu0  ;;  %v507_v54 = vpop.f32.mrf.mxu1 }
  0xe9   :  { %v894_v55 = vshrl.u32 %v893_v52, 23  ;;  %v8715_v56 = vadd.f32 %v7870_v44, %v379_v53  ;;  %v897_v57 = vand.u32 8388607, %v890_v51  ;;  %vm8797_vm15 = vcmp.le.f32.partialorder %v890_v51, 0.7853982 }
  0xea   :  { %v8238_v58 = vpop.f32.mrf.mxu0  ;;  %v8270_v59 = vpop.f32.mrf.mxu1 }
  0xeb   :  { %v7911_v60 = vadd.s32 4294967169, %v894_v55  ;;  %v997_v61 = vand.u32 2139095040, %v8715_v56  ;;  %v898_v1 = vor.u32 8388608, %v897_v57  ;;  %v994_v5 = vand.u32 2147483647, %v8715_v56 }
  0xec   :  { %v392_v62 = vpop.f32.mrf.mxu0  ;;  %v520_v63 = vpop.f32.mrf.mxu1 }
  0xed   :  { %v900_v0 = vadd.s32 1, %v7911_v60  ;;  %v998_v2 = vshrl.u32 %v997_v61, 23  ;;  %v8721_v12 = vshll.u32 %v898_v1, 8  ;;  %v1001_v18 = vand.u32 8388607, %v994_v5 }
  0xee   :  { %v8239_v3 = vpop.f32.mrf.mxu0  ;;  %v8271_v4 = vpop.f32.mrf.mxu1 }
  0xef   :  { %vm901_vm0 = vcmp.gt.s32.totalorder %v900_v0, 0  ;;  %v7915_v7 = vadd.s32 4294967169, %v998_v2  ;;  %v1002_v57 = vor.u32 8388608, %v1001_v18 }
  0xf0   :  { %v902_v6 = vsel %vm901_vm0, %v900_v0, 0  ;;  %v395_v8 = vpop.f32.mrf.mxu0  ;;  %v523_v9 = vpop.f32.mrf.mxu1  ;;  %vm996_vm0 = vcmp.lt.s32.totalorder %v8715_v56, 0 }
  0xf1   :  { %v903_v10 = vshrl.u32 %v902_v6, 5  ;;  %v904_v11 = vand.u32 31, %v902_v6  ;;  %v1004_v19 = vadd.s32 1, %v7915_v7 }
  0xf2   :  { %v8242_v13 = vpop.f32.mrf.mxu0  ;;  %v8274_v14 = vpop.f32.mrf.mxu1 }
  0xf3   :  { %v905_v15 = vsub.s32 32, %v904_v11  ;;  %v907_v17 = vshll.u32 %v8376_v16, %v904_v11  ;;  %v910_v21 = vshll.u32 %v8377_v20, %v904_v11  ;;  %v913_v23 = vshll.u32 %v8378_v22, %v904_v11 }
  0xf4   :  { %v916_v25 = vshll.u32 %v8379_v24, %v904_v11  ;;  %v919_v27 = vshll.u32 %v8380_v26, %v904_v11  ;;  %v408_v28 = vpop.f32.mrf.mxu0  ;;  %v536_v29 = vpop.f32.mrf.mxu1  ;;  %vm922_vm1 = vcmp.lt.s32.totalorder %v903_v10, 1  ;;  %vm924_vm2 = vcmp.lt.s32.totalorder %v903_v10, 3 }
  0xf5   :  { %v908_v30 = vshrl.u32 %v8377_v20, %v905_v15  ;;  %v911_v31 = vshrl.u32 %v8378_v22, %v905_v15  ;;  %v914_v32 = vshrl.u32 %v8379_v24, %v905_v15  ;;  %v906_v33 = vshrl.u32 %v8376_v16, %v905_v15 }
  0xf6   :  { %v917_v34 = vshrl.u32 %v8380_v26, %v905_v15  ;;  %v920_v36 = vshrl.u32 %v8381_v35, %v905_v15  ;;  %v8243_v37 = vpop.f32.mrf.mxu0  ;;  %v8275_v38 = vpop.f32.mrf.mxu1  ;;  %vm1005_vm3 = vcmp.gt.s32.totalorder %v1004_v19, 0  ;;  %vm925_vm4 = vcmp.lt.s32.totalorder %v903_v10, 4 }
  0xf7   :  { %v909_v39 = vor.u32 %v908_v30, %v907_v17  ;;  %v912_v40 = vor.u32 %v911_v31, %v910_v21  ;;  %v915_v41 = vor.u32 %v914_v32, %v913_v23  ;;  %v1006_v44 = vsel %vm1005_vm3, %v1004_v19, 0 }
  0xf8   :  { %v918_v42 = vor.u32 %v917_v34, %v916_v25  ;;  %v921_v43 = vor.u32 %v920_v36, %v919_v27  ;;  %v411_v45 = vpop.f32.mrf.mxu0  ;;  %v539_v46 = vpop.f32.mrf.mxu1  ;;  %vm923_vm5 = vcmp.lt.s32.totalorder %v903_v10, 2  ;;  %v1008_v62 = vand.u32 31, %v1006_v44 }
  0xf9   :  { %v926_v47 = vsel %vm922_vm1, %v906_v33, %v909_v39  ;;  %v927_v49 = vsel %vm925_vm4, %v915_v41, 2102212464  ;;  %v930_v50 = vsel %vm922_vm1, %v909_v39, %v912_v40  ;;  %v934_v52 = vsel %vm922_vm1, %v912_v40, %v915_v41 }
  0xfa   :  { %v928_v53 = vsel %vm924_vm2, %v912_v40, %v927_v49  ;;  %v931_v54 = vsel %vm925_vm4, %v918_v42, 920167782  ;;  %v935_v55 = vsel %vm925_vm4, %v921_v43, 1326507024  ;;  %v8246_v58 = vpop.f32.mrf.mxu0  ;;  %v8278_v59 = vpop.f32.mrf.mxu1  ;;  %v1007_v9 = vshrl.u32 %v1006_v44, 5 }
  0xfb   :  { %v932_v60 = vsel %vm924_vm2, %v915_v41, %v931_v54  ;;  %v936_v61 = vsel %vm924_vm2, %v918_v42, %v935_v55  ;;  %v929_v63 = vsel %vm923_vm5, %v926_v47, %v928_v53  ;;  %v1009_v11 = vsub.s32 32, %v1008_v62 }
  0xfc   :  { %v933_v0 = vsel %vm923_vm5, %v930_v50, %v932_v60  ;;  %v937_v1 = vsel %vm923_vm5, %v934_v52, %v936_v61  ;;  %v424_v2 = vpop.f32.mrf.mxu0  ;;  %v552_v3 = vpop.f32.mrf.mxu1  ;;  %v8746_v13 = vshll.u32 %v1002_v57, 8  ;;  %v945_v15 = vmul.u32 %v8721_v12, %v929_v63 }
  0xfd   :  { %v8738_v4 = vmul.u32.u64.low %v8721_v12, %v937_v1  ;;  %v8739_v6 = vmul.u32.u64.high %v8721_v12, %v937_v1, %v8738_v4  ;;  %v8742_v7 = vmul.u32.u64.low %v8721_v12, %v933_v0  ;;  %v8743_v8 = vmul.u32.u64.high %v8721_v12, %v933_v0, %v8742_v7 }
  0xfe   :  { %v8247_v10 = vpop.f32.mrf.mxu0  ;;  %v8279_v14 = vpop.f32.mrf.mxu1  ;;  %v1011_v17 = vshll.u32 %v8376_v16, %v1008_v62  ;;  %v1014_v18 = vshll.u32 %v8377_v20, %v1008_v62  ;;  %v1017_v19 = vshll.u32 %v8378_v22, %v1008_v62  ;;  %v1012_v21 = vshrl.u32 %v8377_v20, %v1009_v11 }
  0xff   :  { %v1015_v23 = vshrl.u32 %v8378_v22, %v1009_v11  ;;  %v1018_v25 = vshrl.u32 %v8379_v24, %v1009_v11  ;;  %v1020_v27 = vshll.u32 %v8379_v24, %v1008_v62  ;;  %vm947_vm6 = vc.u32 %v8739_v6, %v8742_v7 }
 0x100   :  { %v427_v28 = vpop.f32.mrf.mxu0  ;;  %v555_v29 = vpop.f32.mrf.mxu1  ;;  %v948_v30 = vadd.s32 1, %v8743_v8  ;;  %v1021_v31 = vshrl.u32 %v8380_v26, %v1009_v11  ;;  %v1023_v12 = vshll.u32 %v8380_v26, %v1008_v62  ;;  %v1013_v32 = vor.u32 %v1012_v21, %v1011_v17 }
 0x101   :  { %v1016_v33 = vor.u32 %v1015_v23, %v1014_v18  ;;  %v1019_v34 = vor.u32 %v1018_v25, %v1017_v19  ;;  %v1024_v36 = vshrl.u32 %v8381_v35, %v1009_v11  ;;  %vm1026_vm7 = vcmp.lt.s32.totalorder %v1007_v9, 1 }
 0x102   :  { %v8250_v37 = vpop.f32.mrf.mxu0  ;;  %v8282_v20 = vpop.f32.mrf.mxu1  ;;  %v949_v22 = vsel %vm947_vm6, %v948_v30, %v8743_v8  ;;  %v1022_v24 = vor.u32 %v1021_v31, %v1020_v27  ;;  %vm1029_vm8 = vcmp.lt.s32.totalorder %v1007_v9, 4  ;;  %vm1028_vm9 = vcmp.lt.s32.totalorder %v1007_v9, 3 }
 0x103   :  { %v950_v38 = vadd.s32 %v949_v22, %v945_v15  ;;  %v1025_v39 = vor.u32 %v1024_v36, %v1023_v12  ;;  %v1031_v40 = vsel %vm1029_vm8, %v1019_v34, 2102212464  ;;  %v1010_v43 = vshrl.u32 %v8376_v16, %v1009_v11 }
 0x104   :  { %v440_v41 = vpop.f32.mrf.mxu0  ;;  %v568_v42 = vpop.f32.mrf.mxu1  ;;  %v1034_v26 = vsel %vm1026_vm7, %v1013_v32, %v1016_v33  ;;  %v1035_v44 = vsel %vm1029_vm8, %v1022_v24, 920167782  ;;  %v1038_v35 = vsel %vm1026_vm7, %v1016_v33, %v1019_v34  ;;  %vm1027_vm10 = vcmp.lt.s32.totalorder %v1007_v9, 2 }
 0x105   :  { %v951_v45 = vadd.s32 536870912, %v950_v38  ;;  %v1036_v46 = vsel %vm1028_vm9, %v1019_v34, %v1035_v44  ;;  %v1039_v47 = vsel %vm1029_vm8, %v1025_v39, 1326507024  ;;  %v1030_v52 = vsel %vm1026_vm7, %v1010_v43, %v1013_v32 }
 0x106   :  { %v8251_v49 = vpop.f32.mrf.mxu0  ;;  %v8283_v50 = vpop.f32.mrf.mxu1  ;;  %v1032_v53 = vsel %vm1028_vm9, %v1016_v33, %v1031_v40  ;;  %v1037_v54 = vsel %vm1027_vm10, %v1034_v26, %v1036_v46  ;;  %v1040_v16 = vsel %vm1028_vm9, %v1022_v24, %v1039_v47  ;;  %v946_v22 = vadd.s32 %v8742_v7, %v8739_v6 }
 0x107   :  { %v8766_v55 = vshrl.u32 %v951_v45, 30  ;;  %v1041_v57 = vsel %vm1027_vm10, %v1038_v35, %v1040_v16  ;;  %v8770_v58 = vmul.u32.u64.low %v8746_v13, %v1037_v54  ;;  %v8771_v59 = vmul.u32.u64.high %v8746_v13, %v1037_v54, %v8770_v58 }
 0x108   :  { %v443_v60 = vpop.f32.mrf.mxu0  ;;  %v571_v61 = vpop.f32.mrf.mxu1  ;;  %v8775_v62 = vmul.u32.u64.low %v8746_v13, %v1041_v57  ;;  %v8776_v63 = vmul.u32.u64.high %v8746_v13, %v1041_v57, %v8775_v62  ;;  %v1033_v1 = vsel %vm1027_vm10, %v1030_v52, %v1032_v53  ;;  %vm995_vm1 = vcmp.le.f32.partialorder %v994_v5, 0.7853982 }
 0x109   :  { %v953_v0 = vshll.u32 %v8766_v55, 30  ;;  %v1052_v8 = vadd.s32 1, %v8771_v59  ;;  %v1049_v14 = vmul.u32 %v8746_v13, %v1033_v1  ;;  %vm982_vm8 = vweird.f32 %v8711_v48 }
 0x10a   :  { %v8254_v2 = vpop.f32.mrf.mxu0  ;;  %v8286_v3 = vpop.f32.mrf.mxu1  ;;  %vm1051_vm11 = vc.u32 %v8776_v63, %v8770_v58  ;;  %vm1086_vm9 = vweird.f32 %v8715_v56 }
 0x10b   :  { %v954_v4 = vsub.s32 %v950_v38, %v953_v0  ;;  %v1053_v17 = vsel %vm1051_vm11, %v1052_v8, %v8771_v59  ;;  %v1050_v0 = vadd.s32 %v8770_v58, %v8776_v63 }
 0x10c   :  { %v456_v11 = vpop.f32.mrf.mxu0  ;;  %v584_v10 = vpop.f32.mrf.mxu1  ;;  %v1054_v21 = vadd.s32 %v1053_v17, %v1049_v14 }
 0x10d   :  { %v956_v15 = vsub.s32 0, %v954_v4 }
 0x10e   :  { %v8255_v18 = vpop.f32.mrf.mxu0  ;;  %v8287_v19 = vpop.f32.mrf.mxu1  ;;  %v1055_v27 = vadd.s32 536870912, %v1054_v21 }
 0x10f   :  { %v7912_v9 = vmin.u32 %v956_v15, %v954_v4 }
 0x110   :  { %v459_v23 = vpop.f32.mrf.mxu0  ;;  %v587_v25 = vpop.f32.mrf.mxu1  ;;  %v8785_v31 = vshrl.u32 %v1055_v27, 30 }
 0x111   :  { %v958_v28 = vclz %v7912_v9 }
 0x112   :  { %v8258_v29 = vpop.f32.mrf.mxu0  ;;  %v8290_v30 = vpop.f32.mrf.mxu1  ;;  %v1057_v33 = vshll.u32 %v8785_v31, 30  ;;  %v1080_v51 = vsub.s32 4, %v8785_v31 }
 0x113   :  { %v7913_v12 = vadd.s32 4294967294, %v958_v28 }
 0x114   :  { %v472_v13 = vpop.f32.mrf.mxu0  ;;  %v600_v32 = vpop.f32.mrf.mxu1  ;;  %v1058_v20 = vsub.s32 %v1054_v21, %v1057_v33  ;;  %v976_v21 = vsub.s32 4, %v8766_v55  ;;  %v1081_v30 = vsel %vm996_vm0, %v1080_v51, %v8785_v31 }
 0x115   :  { %vm7914_vm12 = vcmp.lt.s32.totalorder %v7913_v12, 0  ;;  %v1083_v13 = vsel %vm995_vm1, 0, %v1081_v30 }
 0x116   :  { %v8259_v34 = vpop.f32.mrf.mxu0  ;;  %v8291_v36 = vpop.f32.mrf.mxu1  ;;  %v961_v37 = vsel %vm7914_vm12, 0, %v7913_v12  ;;  %v1060_v41 = vsub.s32 0, %v1058_v20  ;;  %v977_v25 = vsel %vm892_vm14, %v976_v21, %v8766_v55 }
 0x117   :  { %v962_v24 = vsub.s32 32, %v961_v37  ;;  %v966_v38 = vsub.s32 4294967266, %v961_v37  ;;  %v963_v42 = vshll.u32 %v954_v4, %v961_v37  ;;  %v979_v29 = vsel %vm8797_vm15, 0, %v977_v25 }
 0x118   :  { %v475_v39 = vpop.f32.mrf.mxu0  ;;  %v603_v40 = vpop.f32.mrf.mxu1  ;;  %v7916_v45 = vmin.u32 %v1060_v41, %v1058_v20  ;;  %v983_v12 = vadd.s32 3, %v979_v29  ;;  %v1087_v34 = vadd.s32 3, %v1083_v13 }
 0x119   :  { %v964_v43 = vshrl.u32 %v946_v22, %v962_v24  ;;  %v967_v26 = vadd.s32 127, %v966_v38 }
 0x11a   :  { %v8262_v44 = vpop.f32.mrf.mxu0  ;;  %v8294_v35 = vpop.f32.mrf.mxu1  ;;  %v1062_v52 = vclz %v7916_v45  ;;  %v984_v36 = vand.u32 3, %v983_v12 }
 0x11b   :  { %v965_v46 = vor.u32 %v964_v43, %v963_v42  ;;  %v968_v47 = vshll.u32 %v967_v26, 23 }
 0x11c   :  { %v488_v49 = vpop.f32.mrf.mxu0  ;;  %v616_v50 = vpop.f32.mrf.mxu1  ;;  %v7917_v6 = vadd.s32 4294967294, %v1062_v52  ;;  %vm986_vm2 = vcmp.eq.s32.totalorder %v984_v36, 0  ;;  %vm989_vm3 = vcmp.eq.s32.totalorder %v984_v36, 2  ;;  %vm985_vm4 = vcmp.lt.s32.totalorder %v984_v36, 2 }
 0x11d   :  { %v969_v53 = vor.u32 4788187, %v968_v47  ;;  %v972_v57 = vcvt.s32.f32 %v965_v46 }
 0x11e   :  { %v8263_v54 = vpop.f32.mrf.mxu0  ;;  %v8295_v16 = vpop.f32.mrf.mxu1  ;;  %vm7918_vm13 = vcmp.lt.s32.totalorder %v7917_v6, 0 }
 0x11f   :  { %v970_v7 = vand.u32 2147483647, %v969_v53  ;;  %v1065_v62 = vsel %vm7918_vm13, 0, %v7917_v6 }
 0x120   :  { %v491_v59 = vpop.f32.mrf.mxu0  ;;  %v619_v60 = vpop.f32.mrf.mxu1  ;;  %v1066_v1 = vsub.s32 32, %v1065_v62  ;;  %v1070_v2 = vsub.s32 4294967266, %v1065_v62  ;;  %v1067_v4 = vshll.u32 %v1058_v20, %v1065_v62  ;;  %v1088_v20 = vand.u32 3, %v1087_v34 }
 0x121   :  { %v973_v61 = vmul.f32 %v972_v57, %v970_v7 }
 0x122   :  { %v1068_v8 = vshrl.u32 %v1050_v0, %v1066_v1  ;;  %v1071_v11 = vadd.s32 127, %v1070_v2  ;;  %vm1093_vm5 = vcmp.eq.s32.totalorder %v1088_v20, 2  ;;  %vm1090_vm6 = vcmp.eq.s32.totalorder %v1088_v20, 0 }
 0x123   :  { %v974_v3 = vxor.u32 2147483648, %v973_v61  ;;  %vm1089_vm7 = vcmp.lt.s32.totalorder %v1088_v20, 2 }
 0x124   :  { %v1069_v15 = vor.u32 %v1068_v8, %v1067_v4  ;;  %v1072_v17 = vshll.u32 %v1071_v11, 23 }
 0x125   :  { %v975_v10 = vsel %vm892_vm14, %v974_v3, %v973_v61 }
 0x126   :  { %v978_v58 = vsel %vm8797_vm15, %v8711_v48, %v975_v10  ;;  %v1073_v63 = vor.u32 4788187, %v1072_v17  ;;  %v1076_v19 = vcvt.s32.f32 %v1069_v15 }
 0x127   :  { %8367 = vcosq.f32 %v978_v58 }
 0x128   :  { %v1074_v18 = vand.u32 2147483647, %v1073_v63  ;;  %8369 = vsinq.f32 %v978_v58 }
 0x12a   :  { %v1077_v9 = vmul.f32 %v1076_v19, %v1074_v18 }
 0x12c   :  { %v1078_v23 = vxor.u32 2147483648, %v1077_v9 }
 0x12e   :  { %v1079_v27 = vsel %vm996_vm0, %v1078_v23, %v1077_v9 }
 0x12f   :  { %v1082_v28 = vsel %vm995_vm1, %v8715_v56, %v1079_v27 }
 0x130   :  { %8371 = vcosq.f32 %v1082_v28 }
 0x131   :  { %8373 = vsinq.f32 %v1082_v28 }
 0x134   :  { %v8368_v32 = vpop.eup %8367 }
 0x135   :  { %v8370_v33 = vpop.eup %8369  ;;  %v990_v37 = vxor.u32 2147483648, %v8368_v32 }
 0x136   :  { %v987_v55 = vxor.u32 2147483648, %v8370_v33 }
 0x137   :  { %v991_v24 = vsel %vm989_vm3, %v990_v37, %v8370_v33 }
 0x138   :  { %v988_v22 = vsel %vm986_vm2, %v8368_v32, %v987_v55 }
 0x139   :  { %v992_v31 = vsel %vm985_vm4, %v988_v22, %v991_v24 }
 0x13a   :  { %v993_v26 = vsel %vm982_vm8, nan, %v992_v31 }
 0x13d   :  { %v8372_v5 = vpop.eup %8371 }
 0x13e   :  { %v8374_v38 = vpop.eup %8373  ;;  %v1094_v39 = vxor.u32 2147483648, %v8372_v5 }
 0x13f   :  { %v1091_v40 = vxor.u32 2147483648, %v8374_v38 }
 0x140   :  { %v1095_v41 = vsel %vm1093_vm5, %v1094_v39, %v8374_v38 }
 0x141   :  { %v1092_v42 = vsel %vm1090_vm6, %v8372_v5, %v1091_v40 }
 0x142   :  { %v1096_v43 = vsel %vm1089_vm7, %v1092_v42, %v1095_v41 }
 0x143   :  { %v1097_v44 = vsel %vm1086_vm9, nan, %v1096_v43 }
 0x144   :  { %v8174_v35 = vpack.c.bf16 %v1097_v44, %v993_v26 }
 0x146   :  { %8175 = vst [vmem:[%s8823_s3] sm:$0xff] %v8174_v35  }

// kernel: eegnn_forward.26
= control target key start
LH: loop header
LB: loop body
LE: loop exit
PB: predicated region body
PF: predicated region fallthrough
CT: control target
= control target key end

     0   :  { %v8401_v40 = vmov 0.0|0.0   ;;  %s9019_s1 = inlined_call_operand.vmem [shape: bf16[128,128], index: 1, kind: input, shape index: {}]   ;;  %s9020_s0 = inlined_call_operand.vmem [shape: bf16[512,128], index: 0, kind: input, shape index: {}]   ;;  %s9021_s2 = inlined_call_operand.vmem [shape: f32[1,128], index: 2, kind: input, shape index: {}]   ;;  %s9022_s3 = inlined_call_operand.vmem [shape: bf16[512,128], index: 3, kind: output, shape index: {}]  }
   0x1   :  { %v8345_v0 = vld [vmem:[%s9019_s1 + $0x38] sm:$0xff]   ;;  %v8346_v1 = vld [vmem:[%s9019_s1 + $0x30] sm:$0xff]   ;;  %v8347_v2 = vld [vmem:[%s9019_s1 + $0x28] sm:$0xff]   ;;  %v8111_v41 = vcombine.low %v8401_v40, %v8401_v40  ;;  %v8112_v42 = vcombine.high %v8401_v40, %v8401_v40 }
   0x2   :  { %8226 = vmatprep.subr.bf16.mxu0 %v8345_v0  ;;  %8306 = vmatprep.subr.bf16.mxu1 %v8345_v0  ;;  %v8348_v3 = vld [vmem:[%s9019_s1 + $0x20] sm:$0xff]   ;;  %v8349_v6 = vld [vmem:[%s9019_s1 + $0x18] sm:$0xff]   ;;  %v8350_v7 = vld [vmem:[%s9019_s1 + $0x10] sm:$0xff]  }
   0x3   :  { %8227 = vmatpush3.bf16.msra.mxu0 %v8345_v0  ;;  %8314 = vmatpush3.bf16.msra.mxu1 %v8345_v0  ;;  %v8353_v4 = vld [vmem:[%s9020_s0] sm:$0xff]   ;;  %v8351_v8 = vld [vmem:[%s9019_s1 + $0x8] sm:$0xff]   ;;  %v8357_v12 = vld [vmem:[%s9020_s0 + $0x10] sm:$0xff]   ;;  %7806 = vst [vmem:[%s9022_s3 + $0x10] sm:$0xf] %v8111_v41 }
   0x4   :  { %8228 = vmatprep.subr.bf16.mxu0 %v8346_v1  ;;  %8307 = vmatprep.subr.bf16.mxu1 %v8346_v1  ;;  %v8355_v5 = vld [vmem:[%s9020_s0 + $0x80] sm:$0xff]   ;;  %v8354_v10 = vld [vmem:[%s9020_s0 + $0x8] sm:$0xff]   ;;  %v8358_v13 = vld [vmem:[%s9020_s0 + $0x90] sm:$0xff]   ;;  %7807 = vst [vmem:[%s9022_s3 + $0x14] sm:$0xf] %v8112_v42 }
   0x5   :  { %8242 = vmatprep.mubr.bf16.mxu0 %v8353_v4  ;;  %8274 = vmatprep.mubr.bf16.mxu1 %v8355_v5  ;;  %v8352_v9 = vld [vmem:[%s9019_s1] sm:$0xff]   ;;  %v8356_v11 = vld [vmem:[%s9020_s0 + $0x88] sm:$0xff]   ;;  %v8359_v14 = vld [vmem:[%s9020_s0 + $0x18] sm:$0xff]   ;;  %7808 = vst [vmem:[%s9022_s3 + $0x18] sm:$0xf] %v8111_v41 }
   0x6   :  { %v8360_v15 = vld [vmem:[%s9020_s0 + $0x98] sm:$0xff]   ;;  %v8361_v16 = vld [vmem:[%s9020_s0 + $0x20] sm:$0xff]   ;;  %v8363_v18 = vld [vmem:[%s9020_s0 + $0x28] sm:$0xff]   ;;  %7809 = vst [vmem:[%s9022_s3 + $0x1c] sm:$0xf] %v8112_v42 }
   0x7   :  { %8229 = vmatpush3.bf16.msra.mxu0 %v8346_v1  ;;  %8315 = vmatpush3.bf16.msra.mxu1 %v8346_v1  ;;  %v8362_v17 = vld [vmem:[%s9020_s0 + $0xa0] sm:$0xff]   ;;  %v8364_v19 = vld [vmem:[%s9020_s0 + $0xa8] sm:$0xff]   ;;  %v8365_v20 = vld [vmem:[%s9020_s0 + $0x30] sm:$0xff]   ;;  %7810 = vst [vmem:[%s9022_s3 + $0x20] sm:$0xf] %v8111_v41 }
   0x8   :  { %8230 = vmatprep.subr.bf16.mxu0 %v8347_v2  ;;  %8308 = vmatprep.subr.bf16.mxu1 %v8347_v2  ;;  %v8366_v21 = vld [vmem:[%s9020_s0 + $0xb0] sm:$0xff]   ;;  %v8367_v22 = vld [vmem:[%s9020_s0 + $0x38] sm:$0xff]   ;;  %v8369_v24 = vld [vmem:[%s9020_s0 + $0x40] sm:$0xff]   ;;  %7811 = vst [vmem:[%s9022_s3 + $0x24] sm:$0xf] %v8112_v42 }
   0x9   :  { %v8368_v23 = vld [vmem:[%s9020_s0 + $0xb8] sm:$0xff]   ;;  %v8370_v25 = vld [vmem:[%s9020_s0 + $0xc0] sm:$0xff]   ;;  %v8371_v26 = vld [vmem:[%s9020_s0 + $0x48] sm:$0xff]   ;;  %7812 = vst [vmem:[%s9022_s3 + $0x28] sm:$0xf] %v8111_v41 }
   0xa   :  { %v8372_v27 = vld [vmem:[%s9020_s0 + $0xc8] sm:$0xff]   ;;  %v8373_v28 = vld [vmem:[%s9020_s0 + $0x50] sm:$0xff]   ;;  %v8375_v30 = vld [vmem:[%s9020_s0 + $0x58] sm:$0xff]   ;;  %7813 = vst [vmem:[%s9022_s3 + $0x2c] sm:$0xf] %v8112_v42 }
   0xb   :  { %8231 = vmatpush3.bf16.msra.mxu0 %v8347_v2  ;;  %8316 = vmatpush3.bf16.msra.mxu1 %v8347_v2  ;;  %v8374_v29 = vld [vmem:[%s9020_s0 + $0xd0] sm:$0xff]   ;;  %v8376_v31 = vld [vmem:[%s9020_s0 + $0xd8] sm:$0xff]   ;;  %v8377_v32 = vld [vmem:[%s9020_s0 + $0x60] sm:$0xff]   ;;  %7814 = vst [vmem:[%s9022_s3 + $0x30] sm:$0xf] %v8111_v41 }
   0xc   :  { %8232 = vmatprep.subr.bf16.mxu0 %v8348_v3  ;;  %8309 = vmatprep.subr.bf16.mxu1 %v8348_v3  ;;  %v8378_v33 = vld [vmem:[%s9020_s0 + $0xe0] sm:$0xff]   ;;  %v8379_v34 = vld [vmem:[%s9020_s0 + $0x68] sm:$0xff]   ;;  %v8381_v36 = vld [vmem:[%s9020_s0 + $0x70] sm:$0xff]   ;;  %7815 = vst [vmem:[%s9022_s3 + $0x34] sm:$0xf] %v8112_v42 }
   0xd   :  { %v8380_v35 = vld [vmem:[%s9020_s0 + $0xe8] sm:$0xff]   ;;  %v8382_v37 = vld [vmem:[%s9020_s0 + $0xf0] sm:$0xff]   ;;  %v8383_v38 = vld [vmem:[%s9020_s0 + $0x78] sm:$0xff]   ;;  %7816 = vst [vmem:[%s9022_s3 + $0x38] sm:$0xf] %v8111_v41 }
   0xe   :  { %v8384_v39 = vld [vmem:[%s9020_s0 + $0xf8] sm:$0xff]   ;;  %7817 = vst [vmem:[%s9022_s3 + $0x3c] sm:$0xf] %v8112_v42  ;;  %7818 = vst [vmem:[%s9022_s3 + $0x40] sm:$0xf] %v8111_v41 }
   0xf   :  { %8233 = vmatpush3.bf16.msra.mxu0 %v8348_v3  ;;  %8317 = vmatpush3.bf16.msra.mxu1 %v8348_v3  ;;  %7819 = vst [vmem:[%s9022_s3 + $0x44] sm:$0xf] %v8112_v42  ;;  %7820 = vst [vmem:[%s9022_s3 + $0x48] sm:$0xf] %v8111_v41  ;;  %v8731_v43 = vld [vmem:[%s9021_s2] ss:$0 sm:$0xff] }
  0x10   :  { %8234 = vmatprep.subr.bf16.mxu0 %v8349_v6  ;;  %8310 = vmatprep.subr.bf16.mxu1 %v8349_v6  ;;  %7821 = vst [vmem:[%s9022_s3 + $0x4c] sm:$0xf] %v8112_v42  ;;  %7822 = vst [vmem:[%s9022_s3 + $0x50] sm:$0xf] %v8111_v41 }
  0x11   :  { %7823 = vst [vmem:[%s9022_s3 + $0x54] sm:$0xf] %v8112_v42  ;;  %7824 = vst [vmem:[%s9022_s3 + $0x58] sm:$0xf] %v8111_v41 }
  0x12   :  { %7825 = vst [vmem:[%s9022_s3 + $0x5c] sm:$0xf] %v8112_v42  ;;  %7826 = vst [vmem:[%s9022_s3 + $0x60] sm:$0xf] %v8111_v41 }
  0x13   :  { %8235 = vmatpush3.bf16.msra.mxu0 %v8349_v6  ;;  %8318 = vmatpush3.bf16.msra.mxu1 %v8349_v6  ;;  %7827 = vst [vmem:[%s9022_s3 + $0x64] sm:$0xf] %v8112_v42  ;;  %7828 = vst [vmem:[%s9022_s3 + $0x68] sm:$0xf] %v8111_v41 }
  0x14   :  { %8236 = vmatprep.subr.bf16.mxu0 %v8350_v7  ;;  %8311 = vmatprep.subr.bf16.mxu1 %v8350_v7  ;;  %7829 = vst [vmem:[%s9022_s3 + $0x6c] sm:$0xf] %v8112_v42  ;;  %7830 = vst [vmem:[%s9022_s3 + $0x70] sm:$0xf] %v8111_v41 }
  0x15   :  { %7831 = vst [vmem:[%s9022_s3 + $0x74] sm:$0xf] %v8112_v42  ;;  %7832 = vst [vmem:[%s9022_s3 + $0x78] sm:$0xf] %v8111_v41 }
  0x16   :  { %7833 = vst [vmem:[%s9022_s3 + $0x7c] sm:$0xf] %v8112_v42  ;;  %7834 = vst [vmem:[%s9022_s3 + $0x80] sm:$0xf] %v8111_v41 }
  0x17   :  { %8237 = vmatpush3.bf16.msra.mxu0 %v8350_v7  ;;  %8319 = vmatpush3.bf16.msra.mxu1 %v8350_v7  ;;  %7835 = vst [vmem:[%s9022_s3 + $0x84] sm:$0xf] %v8112_v42  ;;  %7836 = vst [vmem:[%s9022_s3 + $0x88] sm:$0xf] %v8111_v41 }
  0x18   :  { %8238 = vmatprep.subr.bf16.mxu0 %v8351_v8  ;;  %8312 = vmatprep.subr.bf16.mxu1 %v8351_v8  ;;  %7837 = vst [vmem:[%s9022_s3 + $0x8c] sm:$0xf] %v8112_v42  ;;  %7838 = vst [vmem:[%s9022_s3 + $0x90] sm:$0xf] %v8111_v41 }
  0x19   :  { %7839 = vst [vmem:[%s9022_s3 + $0x94] sm:$0xf] %v8112_v42  ;;  %7840 = vst [vmem:[%s9022_s3 + $0x98] sm:$0xf] %v8111_v41 }
  0x1a   :  { %7841 = vst [vmem:[%s9022_s3 + $0x9c] sm:$0xf] %v8112_v42  ;;  %7842 = vst [vmem:[%s9022_s3 + $0xa0] sm:$0xf] %v8111_v41 }
  0x1b   :  { %8239 = vmatpush3.bf16.msra.mxu0 %v8351_v8  ;;  %8320 = vmatpush3.bf16.msra.mxu1 %v8351_v8  ;;  %7843 = vst [vmem:[%s9022_s3 + $0xa4] sm:$0xf] %v8112_v42  ;;  %7844 = vst [vmem:[%s9022_s3 + $0xa8] sm:$0xf] %v8111_v41 }
  0x1c   :  { %8240 = vmatprep.subr.bf16.mxu0 %v8352_v9  ;;  %8313 = vmatprep.subr.bf16.mxu1 %v8352_v9  ;;  %7845 = vst [vmem:[%s9022_s3 + $0xac] sm:$0xf] %v8112_v42  ;;  %7846 = vst [vmem:[%s9022_s3 + $0xb0] sm:$0xf] %v8111_v41 }
  0x1d   :  { %7847 = vst [vmem:[%s9022_s3 + $0xb4] sm:$0xf] %v8112_v42  ;;  %7848 = vst [vmem:[%s9022_s3 + $0xb8] sm:$0xf] %v8111_v41 }
  0x1e   :  { %7849 = vst [vmem:[%s9022_s3 + $0xbc] sm:$0xf] %v8112_v42  ;;  %7850 = vst [vmem:[%s9022_s3 + $0xc0] sm:$0xf] %v8111_v41 }
  0x1f   :  { %8241 = vmatpush3.bf16.msra.mxu0 %v8352_v9  ;;  %8321 = vmatpush3.bf16.msra.mxu1 %v8352_v9  ;;  %7851 = vst [vmem:[%s9022_s3 + $0xc4] sm:$0xf] %v8112_v42  ;;  %7852 = vst [vmem:[%s9022_s3 + $0xc8] sm:$0xf] %v8111_v41 }
  0x20   :  { %7853 = vst [vmem:[%s9022_s3 + $0xcc] sm:$0xf] %v8112_v42  ;;  %7854 = vst [vmem:[%s9022_s3 + $0xd0] sm:$0xf] %v8111_v41 }
  0x21   :  { %7855 = vst [vmem:[%s9022_s3 + $0xd4] sm:$0xf] %v8112_v42  ;;  %7856 = vst [vmem:[%s9022_s3 + $0xd8] sm:$0xf] %v8111_v41 }
  0x22   :  { %8243 = vmatmul.mubr.bf16.vlgmr.msra.gmra.mxu0 %v8354_v10  ;;  %8275 = vmatmul.mubr.bf16.vlgmr.msra.gmra.mxu1 %v8356_v11  ;;  %7857 = vst [vmem:[%s9022_s3 + $0xdc] sm:$0xf] %v8112_v42  ;;  %7858 = vst [vmem:[%s9022_s3 + $0xe0] sm:$0xf] %v8111_v41 }
  0x23   :  { %8246 = vmatprep.mubr.bf16.mxu0 %v8357_v12  ;;  %8278 = vmatprep.mubr.bf16.mxu1 %v8358_v13  ;;  %7859 = vst [vmem:[%s9022_s3 + $0xe4] sm:$0xf] %v8112_v42  ;;  %7860 = vst [vmem:[%s9022_s3 + $0xe8] sm:$0xf] %v8111_v41 }
  0x24   :  { %7861 = vst [vmem:[%s9022_s3 + $0xec] sm:$0xf] %v8112_v42  ;;  %7862 = vst [vmem:[%s9022_s3 + $0xf0] sm:$0xf] %v8111_v41 }
  0x25   :  { %7863 = vst [vmem:[%s9022_s3 + $0xf4] sm:$0xf] %v8112_v42  ;;  %7864 = vst [vmem:[%s9022_s3 + $0xf8] sm:$0xf] %v8111_v41 }
  0x26   :  { %7865 = vst [vmem:[%s9022_s3 + $0xfc] sm:$0xf] %v8112_v42 }
  0x2a   :  { %8247 = vmatmul.mubr.bf16.gmra.mxu0 %v8359_v14  ;;  %8279 = vmatmul.mubr.bf16.gmra.mxu1 %v8360_v15 }
  0x2b   :  { %8250 = vmatprep.mubr.bf16.mxu0 %v8361_v16  ;;  %8282 = vmatprep.mubr.bf16.mxu1 %v8362_v17 }
  0x32   :  { %8251 = vmatmul.mubr.bf16.gmra.mxu0 %v8363_v18  ;;  %8283 = vmatmul.mubr.bf16.gmra.mxu1 %v8364_v19 }
  0x33   :  { %8254 = vmatprep.mubr.bf16.mxu0 %v8365_v20  ;;  %8286 = vmatprep.mubr.bf16.mxu1 %v8366_v21 }
  0x3a   :  { %8255 = vmatmul.mubr.bf16.gmra.mxu0 %v8367_v22  ;;  %8287 = vmatmul.mubr.bf16.gmra.mxu1 %v8368_v23  ;;  %v8402_v22 = vmov 683565275  }
  0x3b   :  { %8258 = vmatprep.mubr.bf16.mxu0 %v8369_v24  ;;  %8290 = vmatprep.mubr.bf16.mxu1 %v8370_v25  ;;  %v8403_v24 = vmov 2475754826  }
  0x42   :  { %8259 = vmatmul.mubr.bf16.gmra.mxu0 %v8371_v26  ;;  %8291 = vmatmul.mubr.bf16.gmra.mxu1 %v8372_v27  ;;  %v8404_v26 = vmov 2131351028  }
  0x43   :  { %8262 = vmatprep.mubr.bf16.mxu0 %v8373_v28  ;;  %8294 = vmatprep.mubr.bf16.mxu1 %v8374_v29  ;;  %v8405_v28 = vmov 2102212464  }
  0x4a   :  { %8263 = vmatmul.mubr.bf16.gmra.mxu0 %v8375_v30  ;;  %8295 = vmatmul.mubr.bf16.gmra.mxu1 %v8376_v31  ;;  %v8406_v30 = vmov 920167782  }
  0x4b   :  { %8266 = vmatprep.mubr.bf16.mxu0 %v8377_v32  ;;  %8298 = vmatprep.mubr.bf16.mxu1 %v8378_v33 }
  0x52   :  { %8267 = vmatmul.mubr.bf16.gmra.mxu0 %v8379_v34  ;;  %8299 = vmatmul.mubr.bf16.gmra.mxu1 %v8380_v35 }
  0x53   :  { %8270 = vmatprep.mubr.bf16.mxu0 %v8381_v36  ;;  %8302 = vmatprep.mubr.bf16.mxu1 %v8382_v37 }
  0x5a   :  { %8271 = vmatmul.mubr.bf16.gmra.mxu0 %v8383_v38  ;;  %8303 = vmatmul.mubr.bf16.gmra.mxu1 %v8384_v39  ;;  %v8407_v39 = vmov 1326507024  }
  0xe2   :  { %v8244_v44 = vpop.f32.mrf.mxu0  ;;  %v8276_v45 = vpop.f32.mrf.mxu1 }
  0xe3   :  { %v8734_v46 = vadd.f32 %v8244_v44, %v8731_v43 }
  0xe4   :  { %v376_v47 = vpop.f32.mrf.mxu0  ;;  %v504_v48 = vpop.f32.mrf.mxu1 }
  0xe5   :  { %v1098_v49 = vand.u32 2147483647, %v8734_v46  ;;  %v1101_v50 = vand.u32 2139095040, %v8734_v46  ;;  %v8739_v51 = vadd.f32 %v8731_v43, %v376_v47 }
  0xe6   :  { %v8245_v52 = vpop.f32.mrf.mxu0  ;;  %v8277_v53 = vpop.f32.mrf.mxu1 }
  0xe7   :  { %v1102_v54 = vshrl.u32 %v1101_v50, 23  ;;  %v8742_v55 = vadd.f32 %v8245_v52, %v8731_v43  ;;  %v1105_v56 = vand.u32 8388607, %v1098_v49  ;;  %v890_v57 = vand.u32 2147483647, %v8739_v51 }
  0xe8   :  { %v893_v58 = vand.u32 2139095040, %v8739_v51  ;;  %v8748_v59 = vpop.f32.mrf.mxu0  ;;  %v507_v60 = vpop.f32.mrf.mxu1 }
  0xe9   :  { %v7919_v61 = vadd.s32 4294967169, %v1102_v54  ;;  %v897_v63 = vand.u32 8388607, %v890_v57  ;;  %v1205_v0 = vand.u32 2139095040, %v8742_v55  ;;  %v1106_v4 = vor.u32 8388608, %v1105_v56 }
  0xea   :  { %v894_v62 = vshrl.u32 %v893_v58, 23  ;;  %v8248_v1 = vpop.f32.mrf.mxu0  ;;  %v8280_v2 = vpop.f32.mrf.mxu1 }
  0xeb   :  { %v1108_v3 = vadd.s32 1, %v7919_v61  ;;  %v898_v6 = vor.u32 8388608, %v897_v63  ;;  %v1206_v7 = vshrl.u32 %v1205_v0, 23  ;;  %v8753_v16 = vshll.u32 %v1106_v4, 8 }
  0xec   :  { %v7911_v5 = vadd.s32 4294967169, %v894_v62  ;;  %v392_v8 = vpop.f32.mrf.mxu0  ;;  %v520_v9 = vpop.f32.mrf.mxu1 }
  0xed   :  { %vm1109_vm0 = vcmp.gt.s32.totalorder %v1108_v3, 0  ;;  %v8755_v17 = vshll.u32 %v898_v6, 8  ;;  %v7923_v18 = vadd.s32 4294967169, %v1206_v7 }
  0xee   :  { %v1110_v10 = vsel %vm1109_vm0, %v1108_v3, 0  ;;  %v900_v11 = vadd.s32 1, %v7911_v5  ;;  %v8249_v12 = vpop.f32.mrf.mxu0  ;;  %v8281_v13 = vpop.f32.mrf.mxu1 }
  0xef   :  { %v1111_v14 = vshrl.u32 %v1110_v10, 5  ;;  %v1112_v15 = vand.u32 31, %v1110_v10  ;;  %v1212_v8 = vadd.s32 1, %v7923_v18 }
  0xf0   :  { %v395_v19 = vpop.f32.mrf.mxu0  ;;  %v523_v20 = vpop.f32.mrf.mxu1  ;;  %vm901_vm1 = vcmp.gt.s32.totalorder %v900_v11, 0 }
  0xf1   :  { %v1113_v21 = vsub.s32 32, %v1112_v15  ;;  %v1115_v23 = vshll.u32 %v8402_v22, %v1112_v15  ;;  %v1118_v25 = vshll.u32 %v8403_v24, %v1112_v15  ;;  %v1121_v27 = vshll.u32 %v8404_v26, %v1112_v15 }
  0xf2   :  { %v1124_v29 = vshll.u32 %v8405_v28, %v1112_v15  ;;  %v1127_v31 = vshll.u32 %v8406_v30, %v1112_v15  ;;  %vm1130_vm2 = vcmp.lt.s32.totalorder %v1111_v14, 1  ;;  %v8252_v32 = vpop.f32.mrf.mxu0  ;;  %v8284_v33 = vpop.f32.mrf.mxu1  ;;  %vm1131_vm3 = vcmp.lt.s32.totalorder %v1111_v14, 2 }
  0xf3   :  { %v1116_v34 = vshrl.u32 %v8403_v24, %v1113_v21  ;;  %v1119_v35 = vshrl.u32 %v8404_v26, %v1113_v21  ;;  %v1122_v36 = vshrl.u32 %v8405_v28, %v1113_v21  ;;  %v1114_v37 = vshrl.u32 %v8402_v22, %v1113_v21 }
  0xf4   :  { %v1125_v38 = vshrl.u32 %v8406_v30, %v1113_v21  ;;  %v1128_v40 = vshrl.u32 %v8407_v39, %v1113_v21  ;;  %vm1132_vm4 = vcmp.lt.s32.totalorder %v1111_v14, 3  ;;  %v408_v41 = vpop.f32.mrf.mxu0  ;;  %v536_v42 = vpop.f32.mrf.mxu1  ;;  %v902_v48 = vsel %vm901_vm1, %v900_v11, 0 }
  0xf5   :  { %v1117_v44 = vor.u32 %v1116_v34, %v1115_v23  ;;  %v1120_v45 = vor.u32 %v1119_v35, %v1118_v25  ;;  %v1123_v47 = vor.u32 %v1122_v36, %v1121_v27  ;;  %vm1133_vm5 = vcmp.lt.s32.totalorder %v1111_v14, 4 }
  0xf6   :  { %v1126_v50 = vor.u32 %v1125_v38, %v1124_v29  ;;  %v1129_v52 = vor.u32 %v1128_v40, %v1127_v31  ;;  %v904_v53 = vand.u32 31, %v902_v48  ;;  %v8253_v54 = vpop.f32.mrf.mxu0  ;;  %v8285_v56 = vpop.f32.mrf.mxu1  ;;  %v8778_v11 = vshrl.u32 %v902_v48, 5 }
  0xf7   :  { %v1134_v58 = vsel %vm1130_vm2, %v1114_v37, %v1117_v44  ;;  %v1135_v60 = vsel %vm1133_vm5, %v1123_v47, 2102212464  ;;  %v1138_v61 = vsel %vm1130_vm2, %v1117_v44, %v1120_v45  ;;  %v1142_v62 = vsel %vm1130_vm2, %v1120_v45, %v1123_v47 }
  0xf8   :  { %v1136_v63 = vsel %vm1132_vm4, %v1120_v45, %v1135_v60  ;;  %v1139_v0 = vsel %vm1133_vm5, %v1126_v50, 920167782  ;;  %v1143_v1 = vsel %vm1133_vm5, %v1129_v52, 1326507024  ;;  %v905_v2 = vsub.s32 32, %v904_v53  ;;  %v411_v3 = vpop.f32.mrf.mxu0  ;;  %v539_v4 = vpop.f32.mrf.mxu1 }
  0xf9   :  { %v1137_v5 = vsel %vm1131_vm3, %v1134_v58, %v1136_v63  ;;  %v1140_v6 = vsel %vm1132_vm4, %v1123_v47, %v1139_v0  ;;  %v1144_v7 = vsel %vm1132_vm4, %v1126_v50, %v1143_v1  ;;  %v907_v12 = vshll.u32 %v8402_v22, %v904_v53 }
  0xfa   :  { %v1141_v9 = vsel %vm1131_vm3, %v1138_v61, %v1140_v6  ;;  %v1145_v10 = vsel %vm1131_vm3, %v1142_v62, %v1144_v7  ;;  %v8256_v13 = vpop.f32.mrf.mxu0  ;;  %v8288_v15 = vpop.f32.mrf.mxu1  ;;  %v1153_v18 = vmul.u32 %v8753_v16, %v1137_v5  ;;  %v908_v14 = vshrl.u32 %v8403_v24, %v905_v2 }
  0xfb   :  { %v8782_v19 = vmul.u32.u64.low %v8753_v16, %v1145_v10  ;;  %v8783_v20 = vmul.u32.u64.high %v8753_v16, %v1145_v10, %v8782_v19  ;;  %v8786_v21 = vmul.u32.u64.low %v8753_v16, %v1141_v9  ;;  %v8787_v23 = vmul.u32.u64.high %v8753_v16, %v1141_v9, %v8786_v21 }
  0xfc   :  { %v910_v25 = vshll.u32 %v8403_v24, %v904_v53  ;;  %v911_v27 = vshrl.u32 %v8404_v26, %v905_v2  ;;  %v424_v29 = vpop.f32.mrf.mxu0  ;;  %v552_v31 = vpop.f32.mrf.mxu1  ;;  %v913_v32 = vshll.u32 %v8404_v26, %v904_v53  ;;  %v914_v33 = vshrl.u32 %v8405_v28, %v905_v2 }
  0xfd   :  { %v916_v34 = vshll.u32 %v8405_v28, %v904_v53  ;;  %v917_v35 = vshrl.u32 %v8406_v30, %v905_v2  ;;  %v909_v36 = vor.u32 %v908_v14, %v907_v12  ;;  %v919_v16 = vshll.u32 %v8406_v30, %v904_v53 }
  0xfe   :  { %v912_v37 = vor.u32 %v911_v27, %v910_v25  ;;  %v920_v38 = vshrl.u32 %v8407_v39, %v905_v2  ;;  %v8257_v40 = vpop.f32.mrf.mxu0  ;;  %v8289_v41 = vpop.f32.mrf.mxu1  ;;  %vm1155_vm6 = vc.u32 %v8783_v20, %v8786_v21  ;;  %v1156_v42 = vadd.s32 1, %v8787_v23 }
  0xff   :  { %v906_v44 = vshrl.u32 %v8402_v22, %v905_v2  ;;  %v915_v45 = vor.u32 %v914_v33, %v913_v32  ;;  %v918_v47 = vor.u32 %v917_v35, %v916_v34  ;;  %vm922_vm7 = vcmp.lt.s32.totalorder %v8778_v11, 1 }
 0x100   :  { %v921_v48 = vor.u32 %v920_v38, %v919_v16  ;;  %vm923_vm8 = vcmp.lt.s32.totalorder %v8778_v11, 2  ;;  %v427_v50 = vpop.f32.mrf.mxu0  ;;  %v555_v52 = vpop.f32.mrf.mxu1  ;;  %v1157_v53 = vsel %vm1155_vm6, %v1156_v42, %v8787_v23  ;;  %vm924_vm9 = vcmp.lt.s32.totalorder %v8778_v11, 3 }
 0x101   :  { %vm925_vm10 = vcmp.lt.s32.totalorder %v8778_v11, 4  ;;  %v930_v54 = vsel %vm922_vm7, %v909_v36, %v912_v37  ;;  %v1158_v56 = vadd.s32 %v1157_v53, %v1153_v18  ;;  %v934_v61 = vsel %vm922_vm7, %v912_v37, %v915_v45 }
 0x102   :  { %v927_v58 = vsel %vm925_vm10, %v915_v45, 2102212464  ;;  %v931_v60 = vsel %vm925_vm10, %v918_v47, 920167782  ;;  %v8260_v62 = vpop.f32.mrf.mxu0  ;;  %v8292_v63 = vpop.f32.mrf.mxu1  ;;  %v926_v0 = vsel %vm922_vm7, %v906_v44, %v909_v36  ;;  %v935_v2 = vsel %vm925_vm10, %v921_v48, 1326507024 }
 0x103   :  { %v932_v1 = vsel %vm924_vm9, %v915_v45, %v931_v60  ;;  %vm1213_vm11 = vcmp.gt.s32.totalorder %v1212_v8, 0  ;;  %v1159_v3 = vadd.s32 536870912, %v1158_v56  ;;  %v928_v4 = vsel %vm924_vm9, %v912_v37, %v927_v58 }
 0x104   :  { %v933_v5 = vsel %vm923_vm8, %v930_v54, %v932_v1  ;;  %v936_v6 = vsel %vm924_vm9, %v918_v47, %v935_v2  ;;  %v440_v7 = vpop.f32.mrf.mxu0  ;;  %v568_v9 = vpop.f32.mrf.mxu1  ;;  %v1214_v18 = vsel %vm1213_vm11, %v1212_v8, 0  ;;  %v929_v27 = vsel %vm923_vm8, %v926_v0, %v928_v4 }
 0x105   :  { %v937_v10 = vsel %vm923_vm8, %v934_v61, %v936_v6  ;;  %v8820_v12 = vmul.u32.u64.low %v8755_v17, %v933_v5  ;;  %v8821_v13 = vmul.u32.u64.high %v8755_v17, %v933_v5, %v8820_v12  ;;  %v8824_v15 = vshrl.u32 %v1159_v3, 30 }
 0x106   :  { %v8827_v19 = vmul.u32.u64.low %v8755_v17, %v937_v10  ;;  %v8828_v23 = vmul.u32.u64.high %v8755_v17, %v937_v10, %v8827_v19  ;;  %v8261_v14 = vpop.f32.mrf.mxu0  ;;  %v8293_v25 = vpop.f32.mrf.mxu1  ;;  %v1216_v29 = vand.u32 31, %v1214_v18  ;;  %v945_v36 = vmul.u32 %v8755_v17, %v929_v27 }
 0x107   :  { %v1161_v31 = vshll.u32 %v8824_v15, 30  ;;  %v948_v34 = vadd.s32 1, %v8821_v13  ;;  %v1202_v41 = vand.u32 2147483647, %v8742_v55  ;;  %v8844_v45 = vadd.f32 %v8731_v43, %v8748_v59 }
 0x108   :  { %v443_v32 = vpop.f32.mrf.mxu0  ;;  %v571_v33 = vpop.f32.mrf.mxu1  ;;  %vm947_vm12 = vc.u32 %v8828_v23, %v8820_v12  ;;  %v1217_v8 = vsub.s32 32, %v1216_v29  ;;  %v8847_v48 = vshrl.u32 %v1214_v18, 5  ;;  %v1228_v58 = vshll.u32 %v8405_v28, %v1216_v29 }
 0x109   :  { %v8834_v35 = vsub.s32 %v1158_v56, %v1161_v31  ;;  %v949_v11 = vsel %vm947_vm12, %v948_v34, %v8821_v13  ;;  %v1209_v43 = vand.u32 8388607, %v1202_v41  ;;  %v1219_v59 = vshll.u32 %v8402_v22, %v1216_v29 }
 0x10a   :  { %v8264_v37 = vpop.f32.mrf.mxu0  ;;  %v8296_v16 = vpop.f32.mrf.mxu1  ;;  %v950_v40 = vadd.s32 %v949_v11, %v945_v36  ;;  %v1220_v50 = vshrl.u32 %v8403_v24, %v1217_v8  ;;  %v1223_v54 = vshrl.u32 %v8404_v26, %v1217_v8  ;;  %v1226_v56 = vshrl.u32 %v8405_v28, %v1217_v8 }
 0x10b   :  { %v1164_v38 = vsub.s32 0, %v8834_v35  ;;  %v1229_v60 = vshrl.u32 %v8406_v30, %v1217_v8  ;;  %v1232_v62 = vshrl.u32 %v8407_v39, %v1217_v8  ;;  %v1222_v2 = vshll.u32 %v8403_v24, %v1216_v29 }
 0x10c   :  { %v456_v42 = vpop.f32.mrf.mxu0  ;;  %v584_v44 = vpop.f32.mrf.mxu1  ;;  %v951_v47 = vadd.s32 536870912, %v950_v40  ;;  %v1225_v3 = vshll.u32 %v8404_v26, %v1216_v29  ;;  %v1231_v6 = vshll.u32 %v8406_v30, %v1216_v29  ;;  %v997_v7 = vand.u32 2139095040, %v8844_v45 }
 0x10d   :  { %v7920_v17 = vmin.u32 %v1164_v38, %v8834_v35  ;;  %v1230_v4 = vor.u32 %v1229_v60, %v1228_v58  ;;  %v1221_v13 = vor.u32 %v1220_v50, %v1219_v59  ;;  %v1224_v19 = vor.u32 %v1223_v54, %v1222_v2 }
 0x10e   :  { %v8265_v52 = vpop.f32.mrf.mxu0  ;;  %v8297_v53 = vpop.f32.mrf.mxu1  ;;  %v8858_v1 = vshrl.u32 %v951_v47, 30  ;;  %v1227_v18 = vor.u32 %v1226_v56, %v1225_v3  ;;  %vm1237_vm13 = vcmp.lt.s32.totalorder %v8847_v48, 4  ;;  %v1233_v14 = vor.u32 %v1232_v62, %v1231_v6 }
 0x10f   :  { %v1166_v61 = vclz %v7920_v17  ;;  %v1243_v25 = vsel %vm1237_vm13, %v1230_v4, 920167782  ;;  %v1210_v33 = vor.u32 8388608, %v1209_v43  ;;  %vm1234_vm15 = vcmp.lt.s32.totalorder %v8847_v48, 1 }
 0x110   :  { %v459_v63 = vpop.f32.mrf.mxu0  ;;  %v587_v0 = vpop.f32.mrf.mxu1  ;;  %v953_v32 = vshll.u32 %v8858_v1, 30  ;;  %vm1236_vm0 = vcmp.lt.s32.totalorder %v8847_v48, 3  ;;  %v998_v29 = vshrl.u32 %v997_v7, 23  ;;  %v1242_v37 = vsel %vm1234_vm15, %v1221_v13, %v1224_v19 }
 0x111   :  { %v7921_v5 = vadd.s32 4294967294, %v1166_v61  ;;  %v1244_v16 = vsel %vm1236_vm0, %v1227_v18, %v1243_v25  ;;  %v1246_v11 = vsel %vm1234_vm15, %v1224_v19, %v1227_v18  ;;  %v1218_v38 = vshrl.u32 %v8402_v22, %v1217_v8 }
 0x112   :  { %v8268_v9 = vpop.f32.mrf.mxu0  ;;  %v8300_v10 = vpop.f32.mrf.mxu1  ;;  %vm1235_vm1 = vcmp.lt.s32.totalorder %v8847_v48, 2  ;;  %v1247_v42 = vsel %vm1237_vm13, %v1233_v14, 1326507024  ;;  %v8880_v50 = vsub.s32 %v950_v40, %v953_v32  ;;  %v1239_v52 = vsel %vm1237_vm13, %v1227_v18, 2102212464 }
 0x113   :  { %vm7922_vm14 = vcmp.lt.s32.totalorder %v7921_v5, 0  ;;  %v1248_v53 = vsel %vm1236_vm0, %v1230_v4, %v1247_v42  ;;  %v1245_v54 = vsel %vm1235_vm1, %v1242_v37, %v1244_v16  ;;  %v1250_v56 = vshll.u32 %v1210_v33, 8 }
 0x114   :  { %v472_v27 = vpop.f32.mrf.mxu0  ;;  %v600_v31 = vpop.f32.mrf.mxu1  ;;  %v1169_v47 = vsel %vm7922_vm14, 0, %v7921_v5  ;;  %v1249_v8 = vsel %vm1235_vm1, %v1246_v11, %v1248_v53  ;;  %v7915_v58 = vadd.s32 4294967169, %v998_v29  ;;  %v1238_v40 = vsel %vm1234_vm15, %v1218_v38, %v1221_v13 }
 0x115   :  { %v1174_v43 = vsub.s32 4294967266, %v1169_v47  ;;  %v1240_v59 = vsel %vm1236_vm0, %v1224_v19, %v1239_v52  ;;  %v8894_v62 = vmul.u32.u64.low %v1250_v56, %v1249_v8  ;;  %v8895_v63 = vmul.u32.u64.high %v1250_v56, %v1249_v8, %v8894_v62 }
 0x116   :  { %v8269_v34 = vpop.f32.mrf.mxu0  ;;  %v8301_v36 = vpop.f32.mrf.mxu1  ;;  %v956_v3 = vsub.s32 0, %v8880_v50  ;;  %v8898_v4 = vmul.u32.u64.low %v1250_v56, %v1245_v54  ;;  %v8899_v5 = vmul.u32.u64.high %v1250_v56, %v1245_v54, %v8898_v4  ;;  %v1004_v6 = vadd.s32 1, %v7915_v58 }
 0x117   :  { %v1241_v10 = vsel %vm1235_vm1, %v1238_v40, %v1240_v59  ;;  %v1170_v13 = vsub.s32 32, %v1169_v47  ;;  %v1175_v18 = vadd.s32 127, %v1174_v43  ;;  %v1154_v31 = vadd.s32 %v8786_v21, %v8783_v20 }
 0x118   :  { %v475_v44 = vpop.f32.mrf.mxu0  ;;  %v603_v17 = vpop.f32.mrf.mxu1  ;;  %vm1259_vm2 = vc.u32 %v8895_v63, %v8898_v4  ;;  %v7912_v25 = vmin.u32 %v956_v3, %v8880_v50  ;;  %v1260_v27 = vadd.s32 1, %v8899_v5  ;;  %v1257_v32 = vmul.u32 %v1250_v56, %v1241_v10 }
 0x119   :  { %v994_v33 = vand.u32 2147483647, %v8844_v45  ;;  %vm1005_vm3 = vcmp.gt.s32.totalorder %v1004_v6, 0  ;;  %v1172_v34 = vshrl.u32 %v1154_v31, %v1170_v13  ;;  %v1176_v36 = vshll.u32 %v1175_v18, 23 }
 0x11a   :  { %v8272_v60 = vpop.f32.mrf.mxu0  ;;  %v8304_v61 = vpop.f32.mrf.mxu1  ;;  %v1261_v48 = vsel %vm1259_vm2, %v1260_v27, %v8899_v5  ;;  %v1006_v29 = vsel %vm1005_vm3, %v1004_v6, 0  ;;  %v958_v11 = vclz %v7912_v25  ;;  %v1171_v38 = vshll.u32 %v8834_v35, %v1169_v47 }
 0x11b   :  { %v1262_v37 = vadd.s32 %v1261_v48, %v1257_v32  ;;  %v1008_v16 = vand.u32 31, %v1006_v29  ;;  %v1001_v44 = vand.u32 8388607, %v994_v33  ;;  %v1177_v21 = vor.u32 4788187, %v1176_v36 }
 0x11c   :  { %v488_v0 = vpop.f32.mrf.mxu0  ;;  %v616_v2 = vpop.f32.mrf.mxu1  ;;  %v1173_v20 = vor.u32 %v1172_v34, %v1171_v38  ;;  %v7913_v53 = vadd.s32 4294967294, %v958_v11  ;;  %v1007_v35 = vshrl.u32 %v1006_v29, 5  ;;  %vm1100_vm10 = vcmp.lt.s32.totalorder %v8734_v46, 0 }
 0x11d   :  { %v1263_v42 = vadd.s32 536870912, %v1262_v37  ;;  %v1009_v17 = vsub.s32 32, %v1008_v16  ;;  %v1002_v60 = vor.u32 8388608, %v1001_v44  ;;  %v1017_v47 = vshll.u32 %v8404_v26, %v1008_v16 }
 0x11e   :  { %v8273_v7 = vpop.f32.mrf.mxu0  ;;  %v8305_v9 = vpop.f32.mrf.mxu1  ;;  %v1011_v61 = vshll.u32 %v8402_v22, %v1008_v16  ;;  %v1014_v40 = vshll.u32 %v8403_v24, %v1008_v16  ;;  %v1020_v43 = vshll.u32 %v8405_v28, %v1008_v16  ;;  %v1178_v62 = vand.u32 2147483647, %v1177_v21 }
 0x11f   :  { %v8915_v52 = vshrl.u32 %v1263_v42, 30  ;;  %v1012_v54 = vshrl.u32 %v8403_v24, %v1009_v17  ;;  %v1015_v8 = vshrl.u32 %v8404_v26, %v1009_v17  ;;  %v1018_v56 = vshrl.u32 %v8405_v28, %v1009_v17 }
 0x120   :  { %v491_v19 = vpop.f32.mrf.mxu0  ;;  %v619_v14 = vpop.f32.mrf.mxu1  ;;  %v1021_v59 = vshrl.u32 %v8406_v30, %v1009_v17  ;;  %v1024_v3 = vshrl.u32 %v8407_v39, %v1009_v17  ;;  %v1023_v9 = vshll.u32 %v8406_v30, %v1008_v16  ;;  %v1180_v10 = vcvt.s32.f32 %v1173_v20 }
 0x121   :  { %v1265_v58 = vshll.u32 %v8915_v52, 30  ;;  %v1019_v2 = vor.u32 %v1018_v56, %v1017_v47  ;;  %v1013_v5 = vor.u32 %v1012_v54, %v1011_v61  ;;  %v1016_v6 = vor.u32 %v1015_v8, %v1014_v40 }
 0x122   :  { %v1022_v7 = vor.u32 %v1021_v59, %v1020_v43  ;;  %vm7914_vm4 = vcmp.lt.s32.totalorder %v7913_v53, 0  ;;  %v1025_v13 = vor.u32 %v1024_v3, %v1023_v9  ;;  %vm1029_vm5 = vcmp.lt.s32.totalorder %v1007_v35, 4 }
 0x123   :  { %v1266_v0 = vsub.s32 %v1262_v37, %v1265_v58  ;;  %v1042_v24 = vshll.u32 %v1002_v60, 8  ;;  %v1181_v18 = vmul.f32 %v1180_v10, %v1178_v62  ;;  %vm1026_vm6 = vcmp.lt.s32.totalorder %v1007_v35, 1 }
 0x124   :  { %v1031_v19 = vsel %vm1029_vm5, %v1019_v2, 2102212464  ;;  %v961_v14 = vsel %vm7914_vm4, 0, %v7913_v53  ;;  %v1010_v25 = vshrl.u32 %v8402_v22, %v1009_v17  ;;  %v1034_v39 = vsel %vm1026_vm6, %v1013_v5, %v1016_v6 }
 0x125   :  { %v1268_v26 = vsub.s32 0, %v1266_v0  ;;  %v1035_v27 = vsel %vm1029_vm5, %v1022_v7, 920167782  ;;  %vm1027_vm7 = vcmp.lt.s32.totalorder %v1007_v35, 2  ;;  %vm1028_vm8 = vcmp.lt.s32.totalorder %v1007_v35, 3 }
 0x126   :  { %v1038_v30 = vsel %vm1026_vm6, %v1016_v6, %v1019_v2  ;;  %v1030_v32 = vsel %vm1026_vm6, %v1010_v25, %v1013_v5  ;;  %v1032_v48 = vsel %vm1028_vm8, %v1016_v6, %v1031_v19  ;;  %v1036_v29 = vsel %vm1028_vm8, %v1019_v2, %v1035_v27 }
 0x127   :  { %v7924_v28 = vmin.u32 %v1268_v26, %v1266_v0  ;;  %v1039_v34 = vsel %vm1029_vm5, %v1025_v13, 1326507024  ;;  %v966_v36 = vsub.s32 4294967266, %v961_v14  ;;  %v1037_v16 = vsel %vm1027_vm7, %v1034_v39, %v1036_v29 }
 0x128   :  { %v1040_v11 = vsel %vm1028_vm8, %v1022_v7, %v1039_v34  ;;  %v1182_v38 = vxor.u32 2147483648, %v1181_v18  ;;  %v8932_v44 = vmul.u32.u64.low %v1042_v24, %v1037_v16  ;;  %v8933_v22 = vmul.u32.u64.high %v1042_v24, %v1037_v16, %v8932_v44 }
 0x129   :  { %v1270_v31 = vclz %v7924_v28  ;;  %v1041_v42 = vsel %vm1027_vm7, %v1038_v30, %v1040_v11  ;;  %v1033_v17 = vsel %vm1027_vm7, %v1030_v32, %v1032_v48  ;;  %v1258_v54 = vadd.s32 %v8898_v4, %v8895_v63 }
 0x12a   :  { %v8936_v20 = vmul.u32.u64.low %v1042_v24, %v1041_v42  ;;  %v8937_v21 = vmul.u32.u64.high %v1042_v24, %v1041_v42, %v8936_v20  ;;  %v1183_v58 = vsel %vm1100_vm10, %v1182_v38, %v1181_v18  ;;  %v967_v60 = vadd.s32 127, %v966_v36 }
 0x12b   :  { %v7925_v37 = vadd.s32 4294967294, %v1270_v31  ;;  %v1049_v35 = vmul.u32 %v1042_v24, %v1033_v17  ;;  %v1052_v47 = vadd.s32 1, %v8933_v22  ;;  %v962_v59 = vsub.s32 32, %v961_v14 }
 0x12c   :  { %vm1051_vm11 = vc.u32 %v8937_v21, %v8932_v44  ;;  %vm8950_vm12 = vcmp.le.f32.partialorder %v1098_v49, 0.7853982  ;;  %v946_v5 = vadd.s32 %v8820_v12, %v8828_v23  ;;  %v968_v6 = vshll.u32 %v967_v60, 23 }
 0x12d   :  { %vm7926_vm9 = vcmp.lt.s32.totalorder %v7925_v37, 0  ;;  %v1053_v62 = vsel %vm1051_vm11, %v1052_v47, %v8933_v22  ;;  %v1184_v24 = vsub.s32 4, %v8824_v15  ;;  %v963_v18 = vshll.u32 %v8880_v50, %v961_v14 }
 0x12e   :  { %v1273_v53 = vsel %vm7926_vm9, 0, %v7925_v37  ;;  %v1054_v3 = vadd.s32 %v1053_v62, %v1049_v35  ;;  %v964_v10 = vshrl.u32 %v946_v5, %v962_v59  ;;  %v969_v28 = vor.u32 4788187, %v968_v6 }
 0x12f   :  { %v1274_v8 = vsub.s32 32, %v1273_v53  ;;  %v1278_v56 = vsub.s32 4294967266, %v1273_v53  ;;  %v1275_v61 = vshll.u32 %v1266_v0, %v1273_v53  ;;  %v1186_v0 = vsel %vm8950_vm12, %v8734_v46, %v1183_v58 }
 0x130   :  { %v1055_v9 = vadd.s32 536870912, %v1054_v3  ;;  %8385 = vcosq.f32 %v1186_v0  ;;  %v965_v39 = vor.u32 %v964_v10, %v963_v18  ;;  %v1185_v27 = vsel %vm1100_vm10, %v1184_v24, %v8824_v15 }
 0x131   :  { %v1276_v40 = vshrl.u32 %v1258_v54, %v1274_v8  ;;  %v1279_v43 = vadd.s32 127, %v1278_v56  ;;  %8387 = vsinq.f32 %v1186_v0  ;;  %v970_v31 = vand.u32 2147483647, %v969_v28 }
 0x132   :  { %v8959_v13 = vshrl.u32 %v1055_v9, 30  ;;  %vm1204_vm13 = vcmp.lt.s32.totalorder %v8742_v55, 0  ;;  %v1288_v30 = vsub.s32 4, %v8915_v52  ;;  %vm8971_vm14 = vcmp.le.f32.partialorder %v1202_v41, 0.7853982 }
 0x133   :  { %v1277_v4 = vor.u32 %v1276_v40, %v1275_v61  ;;  %v1280_v2 = vshll.u32 %v1279_v43, 23  ;;  %v972_v48 = vcvt.s32.f32 %v965_v39  ;;  %v1187_v15 = vsel %vm8950_vm12, 0, %v1185_v27 }
 0x134   :  { %v1057_v25 = vshll.u32 %v8959_v13, 30  ;;  %v1289_v37 = vsel %vm1204_vm13, %v1288_v30, %v8915_v52  ;;  %v1191_v16 = vadd.s32 3, %v1187_v15  ;;  %vm892_vm0 = vcmp.lt.s32.totalorder %v8739_v51, 0 }
 0x135   :  { %v1281_v7 = vor.u32 4788187, %v1280_v2  ;;  %v1284_v49 = vcvt.s32.f32 %v1277_v4  ;;  %v973_v36 = vmul.f32 %v972_v48, %v970_v31  ;;  %v1291_v11 = vsel %vm8971_vm14, 0, %v1289_v37 }
 0x136   :  { %v1058_v23 = vsub.s32 %v1054_v3, %v1057_v25  ;;  %v1192_v20 = vand.u32 3, %v1191_v16  ;;  %v1295_v53 = vadd.s32 3, %v1291_v11  ;;  %v1050_v8 = vadd.s32 %v8932_v44, %v8937_v21 }
 0x137   :  { %v1282_v26 = vand.u32 2147483647, %v1281_v7  ;;  %v974_v22 = vxor.u32 2147483648, %v973_v36  ;;  %vm8990_vm2 = vcmp.le.f32.partialorder %v890_v57, 0.7853982  ;;  %vm1190_vm7 = vweird.f32 %v8734_v46 }
 0x138   :  { %v1060_v32 = vsub.s32 0, %v1058_v23  ;;  %vm1194_vm1 = vcmp.eq.s32.totalorder %v1192_v20, 0  ;;  %v1296_v59 = vand.u32 3, %v1295_v53  ;;  %vm1197_vm3 = vcmp.eq.s32.totalorder %v1192_v20, 2 }
 0x139   :  { %v1285_v19 = vmul.f32 %v1284_v49, %v1282_v26  ;;  %v975_v35 = vsel %vm892_vm0, %v974_v22, %v973_v36  ;;  %vm1193_vm4 = vcmp.lt.s32.totalorder %v1192_v20, 2  ;;  %v976_v49 = vsub.s32 4, %v8858_v1 }
 0x13a   :  { %v7916_v34 = vmin.u32 %v1060_v32, %v1058_v23  ;;  %v978_v44 = vsel %vm8990_vm2, %v8739_v51, %v975_v35  ;;  %vm1298_vm5 = vcmp.eq.s32.totalorder %v1296_v59, 0  ;;  %vm1301_vm6 = vcmp.eq.s32.totalorder %v1296_v59, 2 }
 0x13b   :  { %v1286_v12 = vxor.u32 2147483648, %v1285_v19  ;;  %vm1297_vm8 = vcmp.lt.s32.totalorder %v1296_v59, 2  ;;  %vm1294_vm9 = vweird.f32 %v8742_v55  ;;  %vm996_vm10 = vcmp.lt.s32.totalorder %v8844_v45, 0 }
 0x13c   :  { %v1062_v41 = vclz %v7916_v34  ;;  %v977_v46 = vsel %vm892_vm0, %v976_v49, %v8858_v1  ;;  %vm995_vm11 = vcmp.le.f32.partialorder %v994_v33, 0.7853982 }
 0x13d   :  { %v1287_v14 = vsel %vm1204_vm13, %v1286_v12, %v1285_v19  ;;  %v8386_v42 = vpop.eup %8385  ;;  %v1080_v12 = vsub.s32 4, %v8959_v13  ;;  %v979_v27 = vsel %vm8990_vm2, 0, %v977_v46  ;;  %vm982_vm2 = vweird.f32 %v8739_v51 }
 0x13e   :  { %v1290_v29 = vsel %vm8971_vm14, %v8742_v55, %v1287_v14  ;;  %v7917_v38 = vadd.s32 4294967294, %v1062_v41  ;;  %v8388_v17 = vpop.eup %8387  ;;  %v1198_v60 = vxor.u32 2147483648, %v8386_v42  ;;  %v983_v50 = vadd.s32 3, %v979_v27 }
 0x13f   :  { %8389 = vcosq.f32 %v1290_v29  ;;  %v1195_v58 = vxor.u32 2147483648, %v8388_v17  ;;  %v1081_v31 = vsel %vm996_vm10, %v1080_v12, %v8959_v13 }
 0x140   :  { %8391 = vsinq.f32 %v1290_v29  ;;  %vm7918_vm15 = vcmp.lt.s32.totalorder %v7917_v38, 0  ;;  %v1199_v2 = vsel %vm1197_vm3, %v1198_v60, %v8388_v17  ;;  %v1083_v1 = vsel %vm995_vm11, 0, %v1081_v31 }
 0x141   :  { %v1065_v54 = vsel %vm7918_vm15, 0, %v7917_v38  ;;  %v1196_v4 = vsel %vm1194_vm1, %v8386_v42, %v1195_v58  ;;  %8393 = vcosq.f32 %v978_v44  ;;  %v1087_v32 = vadd.s32 3, %v1083_v1 }
 0x142   :  { %v1066_v52 = vsub.s32 32, %v1065_v54  ;;  %v1070_v56 = vsub.s32 4294967266, %v1065_v54  ;;  %v1067_v47 = vshll.u32 %v1058_v23, %v1065_v54  ;;  %v1200_v6 = vsel %vm1193_vm4, %v1196_v4, %v1199_v2 }
 0x143   :  { %8395 = vsinq.f32 %v978_v44  ;;  %v1201_v28 = vsel %vm1190_vm7, nan, %v1200_v6  ;;  %v984_v48 = vand.u32 3, %v983_v50  ;;  %v1088_v34 = vand.u32 3, %v1087_v32 }
 0x144   :  { %v1068_v61 = vshrl.u32 %v1050_v8, %v1066_v52  ;;  %v1071_v40 = vadd.s32 127, %v1070_v56  ;;  %vm1086_vm3 = vweird.f32 %v8844_v45 }
 0x145   :  { %vm986_vm12 = vcmp.eq.s32.totalorder %v984_v48, 0  ;;  %vm989_vm13 = vcmp.eq.s32.totalorder %v984_v48, 2  ;;  %vm985_vm14 = vcmp.lt.s32.totalorder %v984_v48, 2  ;;  %vm1093_vm15 = vcmp.eq.s32.totalorder %v1088_v34, 2 }
 0x146   :  { %v1069_v21 = vor.u32 %v1068_v61, %v1067_v47  ;;  %v1072_v62 = vshll.u32 %v1071_v40, 23  ;;  %vm1090_vm0 = vcmp.eq.s32.totalorder %v1088_v34, 0  ;;  %vm1089_vm1 = vcmp.lt.s32.totalorder %v1088_v34, 2 }
 0x148   :  { %v1073_v5 = vor.u32 4788187, %v1072_v62  ;;  %v1076_v10 = vcvt.s32.f32 %v1069_v21 }
 0x14a   :  { %v1074_v9 = vand.u32 2147483647, %v1073_v5 }
 0x14c   :  { %v8390_v63 = vpop.eup %8389  ;;  %v1077_v18 = vmul.f32 %v1076_v10, %v1074_v9 }
 0x14d   :  { %v8392_v3 = vpop.eup %8391  ;;  %v1302_v0 = vxor.u32 2147483648, %v8390_v63 }
 0x14e   :  { %v1299_v57 = vxor.u32 2147483648, %v8392_v3  ;;  %v1078_v39 = vxor.u32 2147483648, %v1077_v18  ;;  %v8394_v30 = vpop.eup %8393 }
 0x14f   :  { %v1303_v7 = vsel %vm1301_vm6, %v1302_v0, %v8392_v3  ;;  %v990_v15 = vxor.u32 2147483648, %v8394_v30 }
 0x150   :  { %v1300_v26 = vsel %vm1298_vm5, %v8390_v63, %v1299_v57  ;;  %v1079_v55 = vsel %vm996_vm10, %v1078_v39, %v1077_v18  ;;  %v8396_v14 = vpop.eup %8395 }
 0x151   :  { %v1304_v24 = vsel %vm1297_vm8, %v1300_v26, %v1303_v7  ;;  %v1082_v23 = vsel %vm995_vm11, %v8844_v45, %v1079_v55  ;;  %v987_v29 = vxor.u32 2147483648, %v8396_v14  ;;  %v991_v37 = vsel %vm989_vm13, %v990_v15, %v8396_v14 }
 0x152   :  { %v1305_v19 = vsel %vm1294_vm9, nan, %v1304_v24  ;;  %8397 = vcosq.f32 %v1082_v23 }
 0x153   :  { %v8183_v25 = vpack.c.bf16 %v1305_v19, %v1201_v28  ;;  %8399 = vsinq.f32 %v1082_v23  ;;  %v988_v36 = vsel %vm986_vm12, %v8394_v30, %v987_v29 }
 0x154   :  { %v992_v13 = vsel %vm985_vm14, %v988_v36, %v991_v37 }
 0x155   :  { %8185 = vst [vmem:[%s9022_s3 + $0x8] sm:$0xff] %v8183_v25   ;;  %v993_v17 = vsel %vm982_vm2, nan, %v992_v13 }
 0x15f   :  { %v8398_v33 = vpop.eup %8397 }
 0x160   :  { %v8400_v41 = vpop.eup %8399  ;;  %v1094_v16 = vxor.u32 2147483648, %v8398_v33 }
 0x161   :  { %v1091_v11 = vxor.u32 2147483648, %v8400_v41 }
 0x162   :  { %v1095_v38 = vsel %vm1093_vm15, %v1094_v16, %v8400_v41 }
 0x163   :  { %v1092_v42 = vsel %vm1090_vm0, %v8398_v33, %v1091_v11 }
 0x164   :  { %v1096_v22 = vsel %vm1089_vm1, %v1092_v42, %v1095_v38 }
 0x165   :  { %v1097_v20 = vsel %vm1086_vm3, nan, %v1096_v22 }
 0x166   :  { %v8178_v53 = vpack.c.bf16 %v1097_v20, %v993_v17 }
 0x168   :  { %8179 = vst [vmem:[%s9022_s3] sm:$0xff] %v8178_v53  }

// kernel: eegnn_forward.27
= control target key start
LH: loop header
LB: loop body
LE: loop exit
PB: predicated region body
PF: predicated region fallthrough
CT: control target
= control target key end

     0   :  { %v1176_v40 = vmov 0.0   ;;  %s1512_s1 = inlined_call_operand.vmem [shape: bf16[128,128], index: 1, kind: input, shape index: {}]   ;;  %s1513_s0 = inlined_call_operand.vmem [shape: bf16[512,128], index: 0, kind: input, shape index: {}]   ;;  %s1514_s3 = inlined_call_operand.vmem [shape: f32[512,128], index: 3, kind: output, shape index: {}]   ;;  %s1515_s2 = inlined_call_operand.vmem [shape: f32[1,128], index: 2, kind: input, shape index: {}]  }
   0x1   :  { %v1136_v0 = vld [vmem:[%s1512_s1 + $0x38] sm:$0xff]   ;;  %v1137_v1 = vld [vmem:[%s1512_s1 + $0x30] sm:$0xff]   ;;  %v1138_v2 = vld [vmem:[%s1512_s1 + $0x28] sm:$0xff]   ;;  %894 = vst [vmem:[%s1514_s3 + $0x20] sm:$0xff] %v1176_v40 }
   0x2   :  { %1039 = vmatprep.subr.bf16.mxu0 %v1136_v0  ;;  %1119 = vmatprep.subr.bf16.mxu1 %v1136_v0  ;;  %v1139_v3 = vld [vmem:[%s1512_s1 + $0x20] sm:$0xff]   ;;  %v1140_v6 = vld [vmem:[%s1512_s1 + $0x18] sm:$0xff]   ;;  %v1141_v7 = vld [vmem:[%s1512_s1 + $0x10] sm:$0xff]   ;;  %895 = vst [vmem:[%s1514_s3 + $0x28] sm:$0xff] %v1176_v40 }
   0x3   :  { %1040 = vmatpush3.bf16.msra.mxu0 %v1136_v0  ;;  %1127 = vmatpush3.bf16.msra.mxu1 %v1136_v0  ;;  %v1144_v4 = vld [vmem:[%s1513_s0] sm:$0xff]   ;;  %v1142_v8 = vld [vmem:[%s1512_s1 + $0x8] sm:$0xff]   ;;  %v1148_v12 = vld [vmem:[%s1513_s0 + $0x10] sm:$0xff]   ;;  %896 = vst [vmem:[%s1514_s3 + $0x30] sm:$0xff] %v1176_v40 }
   0x4   :  { %1041 = vmatprep.subr.bf16.mxu0 %v1137_v1  ;;  %1120 = vmatprep.subr.bf16.mxu1 %v1137_v1  ;;  %v1145_v5 = vld [vmem:[%s1513_s0 + $0x80] sm:$0xff]   ;;  %v1146_v10 = vld [vmem:[%s1513_s0 + $0x8] sm:$0xff]   ;;  %v1149_v13 = vld [vmem:[%s1513_s0 + $0x90] sm:$0xff]   ;;  %897 = vst [vmem:[%s1514_s3 + $0x38] sm:$0xff] %v1176_v40 }
   0x5   :  { %1055 = vmatprep.mubr.bf16.mxu0 %v1144_v4  ;;  %1087 = vmatprep.mubr.bf16.mxu1 %v1145_v5  ;;  %v1143_v9 = vld [vmem:[%s1512_s1] sm:$0xff]   ;;  %v1147_v11 = vld [vmem:[%s1513_s0 + $0x88] sm:$0xff]   ;;  %v1150_v14 = vld [vmem:[%s1513_s0 + $0x18] sm:$0xff]   ;;  %898 = vst [vmem:[%s1514_s3 + $0x40] sm:$0xff] %v1176_v40 }
   0x6   :  { %v1151_v15 = vld [vmem:[%s1513_s0 + $0x98] sm:$0xff]   ;;  %v1152_v16 = vld [vmem:[%s1513_s0 + $0x20] sm:$0xff]   ;;  %v1154_v18 = vld [vmem:[%s1513_s0 + $0x28] sm:$0xff]   ;;  %899 = vst [vmem:[%s1514_s3 + $0x48] sm:$0xff] %v1176_v40 }
   0x7   :  { %1042 = vmatpush3.bf16.msra.mxu0 %v1137_v1  ;;  %1128 = vmatpush3.bf16.msra.mxu1 %v1137_v1  ;;  %v1153_v17 = vld [vmem:[%s1513_s0 + $0xa0] sm:$0xff]   ;;  %v1155_v19 = vld [vmem:[%s1513_s0 + $0xa8] sm:$0xff]   ;;  %v1156_v20 = vld [vmem:[%s1513_s0 + $0x30] sm:$0xff]   ;;  %900 = vst [vmem:[%s1514_s3 + $0x50] sm:$0xff] %v1176_v40 }
   0x8   :  { %1043 = vmatprep.subr.bf16.mxu0 %v1138_v2  ;;  %1121 = vmatprep.subr.bf16.mxu1 %v1138_v2  ;;  %v1157_v21 = vld [vmem:[%s1513_s0 + $0xb0] sm:$0xff]   ;;  %v1158_v22 = vld [vmem:[%s1513_s0 + $0x38] sm:$0xff]   ;;  %v1160_v24 = vld [vmem:[%s1513_s0 + $0x40] sm:$0xff]   ;;  %901 = vst [vmem:[%s1514_s3 + $0x58] sm:$0xff] %v1176_v40 }
   0x9   :  { %v1159_v23 = vld [vmem:[%s1513_s0 + $0xb8] sm:$0xff]   ;;  %v1161_v25 = vld [vmem:[%s1513_s0 + $0xc0] sm:$0xff]   ;;  %v1162_v26 = vld [vmem:[%s1513_s0 + $0x48] sm:$0xff]   ;;  %902 = vst [vmem:[%s1514_s3 + $0x60] sm:$0xff] %v1176_v40 }
   0xa   :  { %v1163_v27 = vld [vmem:[%s1513_s0 + $0xc8] sm:$0xff]   ;;  %v1164_v28 = vld [vmem:[%s1513_s0 + $0x50] sm:$0xff]   ;;  %v1166_v30 = vld [vmem:[%s1513_s0 + $0x58] sm:$0xff]   ;;  %903 = vst [vmem:[%s1514_s3 + $0x68] sm:$0xff] %v1176_v40 }
   0xb   :  { %1044 = vmatpush3.bf16.msra.mxu0 %v1138_v2  ;;  %1129 = vmatpush3.bf16.msra.mxu1 %v1138_v2  ;;  %v1165_v29 = vld [vmem:[%s1513_s0 + $0xd0] sm:$0xff]   ;;  %v1167_v31 = vld [vmem:[%s1513_s0 + $0xd8] sm:$0xff]   ;;  %v1168_v32 = vld [vmem:[%s1513_s0 + $0x60] sm:$0xff]   ;;  %904 = vst [vmem:[%s1514_s3 + $0x70] sm:$0xff] %v1176_v40 }
   0xc   :  { %1045 = vmatprep.subr.bf16.mxu0 %v1139_v3  ;;  %1122 = vmatprep.subr.bf16.mxu1 %v1139_v3  ;;  %v1169_v33 = vld [vmem:[%s1513_s0 + $0xe0] sm:$0xff]   ;;  %v1170_v34 = vld [vmem:[%s1513_s0 + $0x68] sm:$0xff]   ;;  %v1172_v36 = vld [vmem:[%s1513_s0 + $0x70] sm:$0xff]   ;;  %905 = vst [vmem:[%s1514_s3 + $0x78] sm:$0xff] %v1176_v40 }
   0xd   :  { %v1171_v35 = vld [vmem:[%s1513_s0 + $0xe8] sm:$0xff]   ;;  %v1173_v37 = vld [vmem:[%s1513_s0 + $0xf0] sm:$0xff]   ;;  %v1174_v38 = vld [vmem:[%s1513_s0 + $0x78] sm:$0xff]   ;;  %906 = vst [vmem:[%s1514_s3 + $0x80] sm:$0xff] %v1176_v40 }
   0xe   :  { %v1175_v39 = vld [vmem:[%s1513_s0 + $0xf8] sm:$0xff]   ;;  %907 = vst [vmem:[%s1514_s3 + $0x88] sm:$0xff] %v1176_v40  ;;  %908 = vst [vmem:[%s1514_s3 + $0x90] sm:$0xff] %v1176_v40  ;;  %v958_v41 = vld [vmem:[%s1515_s2] ss:$0 sm:$0xff] }
   0xf   :  { %1046 = vmatpush3.bf16.msra.mxu0 %v1139_v3  ;;  %1130 = vmatpush3.bf16.msra.mxu1 %v1139_v3  ;;  %909 = vst [vmem:[%s1514_s3 + $0x98] sm:$0xff] %v1176_v40  ;;  %910 = vst [vmem:[%s1514_s3 + $0xa0] sm:$0xff] %v1176_v40 }
  0x10   :  { %1047 = vmatprep.subr.bf16.mxu0 %v1140_v6  ;;  %1123 = vmatprep.subr.bf16.mxu1 %v1140_v6  ;;  %911 = vst [vmem:[%s1514_s3 + $0xa8] sm:$0xff] %v1176_v40  ;;  %912 = vst [vmem:[%s1514_s3 + $0xb0] sm:$0xff] %v1176_v40 }
  0x11   :  { %913 = vst [vmem:[%s1514_s3 + $0xb8] sm:$0xff] %v1176_v40  ;;  %914 = vst [vmem:[%s1514_s3 + $0xc0] sm:$0xff] %v1176_v40 }
  0x12   :  { %915 = vst [vmem:[%s1514_s3 + $0xc8] sm:$0xff] %v1176_v40  ;;  %916 = vst [vmem:[%s1514_s3 + $0xd0] sm:$0xff] %v1176_v40 }
  0x13   :  { %1048 = vmatpush3.bf16.msra.mxu0 %v1140_v6  ;;  %1131 = vmatpush3.bf16.msra.mxu1 %v1140_v6  ;;  %917 = vst [vmem:[%s1514_s3 + $0xd8] sm:$0xff] %v1176_v40  ;;  %918 = vst [vmem:[%s1514_s3 + $0xe0] sm:$0xff] %v1176_v40 }
  0x14   :  { %1049 = vmatprep.subr.bf16.mxu0 %v1141_v7  ;;  %1124 = vmatprep.subr.bf16.mxu1 %v1141_v7  ;;  %919 = vst [vmem:[%s1514_s3 + $0xe8] sm:$0xff] %v1176_v40  ;;  %920 = vst [vmem:[%s1514_s3 + $0xf0] sm:$0xff] %v1176_v40 }
  0x15   :  { %921 = vst [vmem:[%s1514_s3 + $0xf8] sm:$0xff] %v1176_v40  ;;  %922 = vst [vmem:[%s1514_s3 + $0x100] sm:$0xff] %v1176_v40 }
  0x16   :  { %923 = vst [vmem:[%s1514_s3 + $0x108] sm:$0xff] %v1176_v40  ;;  %924 = vst [vmem:[%s1514_s3 + $0x110] sm:$0xff] %v1176_v40 }
  0x17   :  { %1050 = vmatpush3.bf16.msra.mxu0 %v1141_v7  ;;  %1132 = vmatpush3.bf16.msra.mxu1 %v1141_v7  ;;  %925 = vst [vmem:[%s1514_s3 + $0x118] sm:$0xff] %v1176_v40  ;;  %926 = vst [vmem:[%s1514_s3 + $0x120] sm:$0xff] %v1176_v40 }
  0x18   :  { %1051 = vmatprep.subr.bf16.mxu0 %v1142_v8  ;;  %1125 = vmatprep.subr.bf16.mxu1 %v1142_v8  ;;  %927 = vst [vmem:[%s1514_s3 + $0x128] sm:$0xff] %v1176_v40  ;;  %928 = vst [vmem:[%s1514_s3 + $0x130] sm:$0xff] %v1176_v40 }
  0x19   :  { %929 = vst [vmem:[%s1514_s3 + $0x138] sm:$0xff] %v1176_v40  ;;  %930 = vst [vmem:[%s1514_s3 + $0x140] sm:$0xff] %v1176_v40 }
  0x1a   :  { %931 = vst [vmem:[%s1514_s3 + $0x148] sm:$0xff] %v1176_v40  ;;  %932 = vst [vmem:[%s1514_s3 + $0x150] sm:$0xff] %v1176_v40 }
  0x1b   :  { %1052 = vmatpush3.bf16.msra.mxu0 %v1142_v8  ;;  %1133 = vmatpush3.bf16.msra.mxu1 %v1142_v8  ;;  %933 = vst [vmem:[%s1514_s3 + $0x158] sm:$0xff] %v1176_v40  ;;  %934 = vst [vmem:[%s1514_s3 + $0x160] sm:$0xff] %v1176_v40 }
  0x1c   :  { %1053 = vmatprep.subr.bf16.mxu0 %v1143_v9  ;;  %1126 = vmatprep.subr.bf16.mxu1 %v1143_v9  ;;  %935 = vst [vmem:[%s1514_s3 + $0x168] sm:$0xff] %v1176_v40  ;;  %936 = vst [vmem:[%s1514_s3 + $0x170] sm:$0xff] %v1176_v40 }
  0x1d   :  { %937 = vst [vmem:[%s1514_s3 + $0x178] sm:$0xff] %v1176_v40  ;;  %938 = vst [vmem:[%s1514_s3 + $0x180] sm:$0xff] %v1176_v40 }
  0x1e   :  { %939 = vst [vmem:[%s1514_s3 + $0x188] sm:$0xff] %v1176_v40  ;;  %940 = vst [vmem:[%s1514_s3 + $0x190] sm:$0xff] %v1176_v40 }
  0x1f   :  { %1054 = vmatpush3.bf16.msra.mxu0 %v1143_v9  ;;  %1134 = vmatpush3.bf16.msra.mxu1 %v1143_v9  ;;  %941 = vst [vmem:[%s1514_s3 + $0x198] sm:$0xff] %v1176_v40  ;;  %942 = vst [vmem:[%s1514_s3 + $0x1a0] sm:$0xff] %v1176_v40 }
  0x20   :  { %943 = vst [vmem:[%s1514_s3 + $0x1a8] sm:$0xff] %v1176_v40  ;;  %944 = vst [vmem:[%s1514_s3 + $0x1b0] sm:$0xff] %v1176_v40 }
  0x21   :  { %945 = vst [vmem:[%s1514_s3 + $0x1b8] sm:$0xff] %v1176_v40  ;;  %946 = vst [vmem:[%s1514_s3 + $0x1c0] sm:$0xff] %v1176_v40 }
  0x22   :  { %1056 = vmatmul.mubr.bf16.vlgmr.msra.gmra.mxu0 %v1146_v10  ;;  %1088 = vmatmul.mubr.bf16.vlgmr.msra.gmra.mxu1 %v1147_v11  ;;  %947 = vst [vmem:[%s1514_s3 + $0x1c8] sm:$0xff] %v1176_v40  ;;  %948 = vst [vmem:[%s1514_s3 + $0x1d0] sm:$0xff] %v1176_v40 }
  0x23   :  { %1059 = vmatprep.mubr.bf16.mxu0 %v1148_v12  ;;  %1091 = vmatprep.mubr.bf16.mxu1 %v1149_v13  ;;  %949 = vst [vmem:[%s1514_s3 + $0x1d8] sm:$0xff] %v1176_v40  ;;  %950 = vst [vmem:[%s1514_s3 + $0x1e0] sm:$0xff] %v1176_v40 }
  0x24   :  { %951 = vst [vmem:[%s1514_s3 + $0x1e8] sm:$0xff] %v1176_v40  ;;  %952 = vst [vmem:[%s1514_s3 + $0x1f0] sm:$0xff] %v1176_v40 }
  0x25   :  { %953 = vst [vmem:[%s1514_s3 + $0x1f8] sm:$0xff] %v1176_v40 }
  0x2a   :  { %1060 = vmatmul.mubr.bf16.gmra.mxu0 %v1150_v14  ;;  %1092 = vmatmul.mubr.bf16.gmra.mxu1 %v1151_v15 }
  0x2b   :  { %1063 = vmatprep.mubr.bf16.mxu0 %v1152_v16  ;;  %1095 = vmatprep.mubr.bf16.mxu1 %v1153_v17 }
  0x32   :  { %1064 = vmatmul.mubr.bf16.gmra.mxu0 %v1154_v18  ;;  %1096 = vmatmul.mubr.bf16.gmra.mxu1 %v1155_v19 }
  0x33   :  { %1067 = vmatprep.mubr.bf16.mxu0 %v1156_v20  ;;  %1099 = vmatprep.mubr.bf16.mxu1 %v1157_v21 }
  0x3a   :  { %1068 = vmatmul.mubr.bf16.gmra.mxu0 %v1158_v22  ;;  %1100 = vmatmul.mubr.bf16.gmra.mxu1 %v1159_v23 }
  0x3b   :  { %1071 = vmatprep.mubr.bf16.mxu0 %v1160_v24  ;;  %1103 = vmatprep.mubr.bf16.mxu1 %v1161_v25 }
  0x42   :  { %1072 = vmatmul.mubr.bf16.gmra.mxu0 %v1162_v26  ;;  %1104 = vmatmul.mubr.bf16.gmra.mxu1 %v1163_v27 }
  0x43   :  { %1075 = vmatprep.mubr.bf16.mxu0 %v1164_v28  ;;  %1107 = vmatprep.mubr.bf16.mxu1 %v1165_v29 }
  0x4a   :  { %1076 = vmatmul.mubr.bf16.gmra.mxu0 %v1166_v30  ;;  %1108 = vmatmul.mubr.bf16.gmra.mxu1 %v1167_v31 }
  0x4b   :  { %1079 = vmatprep.mubr.bf16.mxu0 %v1168_v32  ;;  %1111 = vmatprep.mubr.bf16.mxu1 %v1169_v33 }
  0x52   :  { %1080 = vmatmul.mubr.bf16.gmra.mxu0 %v1170_v34  ;;  %1112 = vmatmul.mubr.bf16.gmra.mxu1 %v1171_v35 }
  0x53   :  { %1083 = vmatprep.mubr.bf16.mxu0 %v1172_v36  ;;  %1115 = vmatprep.mubr.bf16.mxu1 %v1173_v37 }
  0x5a   :  { %1084 = vmatmul.mubr.bf16.gmra.mxu0 %v1174_v38  ;;  %1116 = vmatmul.mubr.bf16.gmra.mxu1 %v1175_v39 }
  0xe2   :  { %v1057_v42 = vpop.f32.mrf.mxu0  ;;  %v1089_v43 = vpop.f32.mrf.mxu1 }
  0xe3   :  { %v385_v44 = vadd.f32 %v1057_v42, %v958_v41 }
  0xe4   :  { %v376_v45 = vpop.f32.mrf.mxu0  ;;  %v504_v46 = vpop.f32.mrf.mxu1 }
  0xe5   :  { %892 = vst [vmem:[%s1514_s3 + $0x10] sm:$0xff] %v385_v44  ;;  %v377_v47 = vadd.f32 %v958_v41, %v376_v45 }
  0xe6   :  { %v1058_v48 = vpop.f32.mrf.mxu0  ;;  %v1090_v49 = vpop.f32.mrf.mxu1 }
  0xe7   :  { %890 = vst [vmem:[%s1514_s3] sm:$0xff] %v377_v47  ;;  %v388_v50 = vadd.f32 %v1058_v48, %v958_v41 }
  0xe8   :  { %v379_v51 = vpop.f32.mrf.mxu0  ;;  %v507_v52 = vpop.f32.mrf.mxu1 }
  0xe9   :  { %893 = vst [vmem:[%s1514_s3 + $0x18] sm:$0xff] %v388_v50  ;;  %v380_v53 = vadd.f32 %v958_v41, %v379_v51 }
  0xea   :  { %v1061_v54 = vpop.f32.mrf.mxu0  ;;  %v1093_v55 = vpop.f32.mrf.mxu1 }
  0xeb   :  { %891 = vst [vmem:[%s1514_s3 + $0x8] sm:$0xff] %v380_v53 }
  0xec   :  { %v392_v56 = vpop.f32.mrf.mxu0  ;;  %v520_v57 = vpop.f32.mrf.mxu1 }
  0xee   :  { %v1062_v58 = vpop.f32.mrf.mxu0  ;;  %v1094_v59 = vpop.f32.mrf.mxu1 }
  0xf0   :  { %v395_v60 = vpop.f32.mrf.mxu0  ;;  %v523_v61 = vpop.f32.mrf.mxu1 }
  0xf2   :  { %v1065_v62 = vpop.f32.mrf.mxu0  ;;  %v1097_v63 = vpop.f32.mrf.mxu1 }
  0xf4   :  { %v408_v0 = vpop.f32.mrf.mxu0  ;;  %v536_v1 = vpop.f32.mrf.mxu1 }
  0xf6   :  { %v1066_v2 = vpop.f32.mrf.mxu0  ;;  %v1098_v3 = vpop.f32.mrf.mxu1 }
  0xf8   :  { %v411_v4 = vpop.f32.mrf.mxu0  ;;  %v539_v5 = vpop.f32.mrf.mxu1 }
  0xfa   :  { %v1069_v6 = vpop.f32.mrf.mxu0  ;;  %v1101_v7 = vpop.f32.mrf.mxu1 }
  0xfc   :  { %v424_v8 = vpop.f32.mrf.mxu0  ;;  %v552_v9 = vpop.f32.mrf.mxu1 }
  0xfe   :  { %v1070_v10 = vpop.f32.mrf.mxu0  ;;  %v1102_v11 = vpop.f32.mrf.mxu1 }
 0x100   :  { %v427_v12 = vpop.f32.mrf.mxu0  ;;  %v555_v13 = vpop.f32.mrf.mxu1 }
 0x102   :  { %v1073_v14 = vpop.f32.mrf.mxu0  ;;  %v1105_v15 = vpop.f32.mrf.mxu1 }
 0x104   :  { %v440_v16 = vpop.f32.mrf.mxu0  ;;  %v568_v17 = vpop.f32.mrf.mxu1 }
 0x106   :  { %v1074_v18 = vpop.f32.mrf.mxu0  ;;  %v1106_v19 = vpop.f32.mrf.mxu1 }
 0x108   :  { %v443_v20 = vpop.f32.mrf.mxu0  ;;  %v571_v21 = vpop.f32.mrf.mxu1 }
 0x10a   :  { %v1077_v22 = vpop.f32.mrf.mxu0  ;;  %v1109_v23 = vpop.f32.mrf.mxu1 }
 0x10c   :  { %v456_v24 = vpop.f32.mrf.mxu0  ;;  %v584_v25 = vpop.f32.mrf.mxu1 }
 0x10e   :  { %v1078_v26 = vpop.f32.mrf.mxu0  ;;  %v1110_v27 = vpop.f32.mrf.mxu1 }
 0x110   :  { %v459_v28 = vpop.f32.mrf.mxu0  ;;  %v587_v29 = vpop.f32.mrf.mxu1 }
 0x112   :  { %v1081_v30 = vpop.f32.mrf.mxu0  ;;  %v1113_v31 = vpop.f32.mrf.mxu1 }
 0x114   :  { %v472_v32 = vpop.f32.mrf.mxu0  ;;  %v600_v33 = vpop.f32.mrf.mxu1 }
 0x116   :  { %v1082_v34 = vpop.f32.mrf.mxu0  ;;  %v1114_v35 = vpop.f32.mrf.mxu1 }
 0x118   :  { %v475_v36 = vpop.f32.mrf.mxu0  ;;  %v603_v37 = vpop.f32.mrf.mxu1 }
 0x11a   :  { %v1085_v38 = vpop.f32.mrf.mxu0  ;;  %v1117_v39 = vpop.f32.mrf.mxu1 }
 0x11c   :  { %v488_v40 = vpop.f32.mrf.mxu0  ;;  %v616_v41 = vpop.f32.mrf.mxu1 }
 0x11e   :  { %v1086_v42 = vpop.f32.mrf.mxu0  ;;  %v1118_v43 = vpop.f32.mrf.mxu1 }
 0x120   :  { %v491_v44 = vpop.f32.mrf.mxu0  ;;  %v619_v45 = vpop.f32.mrf.mxu1 }

</bundles_post_ra>
